<compile_context>
chip_gen: v7x
topology: tpu7x:2x2x1
jax: 0.10.0
libtpu: 0.0.40
codegen_flags: <defaults>
</compile_context>

<pallas_src>
import jax
import jax.numpy as jnp
from jax import lax
from jax.experimental import pallas as pl
from jax.experimental.pallas import tpu as pltpu


# -----------------------------------------------------------------------------
# Init-time helpers: fold conv / upsample+conv into dense block-Toeplitz mats.
# -----------------------------------------------------------------------------
def _conv_nhwc(x, w_hwio, stride):
    return lax.conv_general_dilated(
        x, w_hwio, window_strides=(stride, stride), padding=((1, 1), (1, 1)),
        dimension_numbers=("NHWC", "HWIO", "NHWC"))


def _upsample2(x):
    return jnp.repeat(jnp.repeat(x, 2, axis=1), 2, axis=2)


def _toeplitz(w_hwio, hi, wi, stride, *, upsample=False,
              nchw_in=False, nchw_out=False):
    """Dense matrix of the linear map `flat_in -> flat_out` for (upsample+)conv."""
    ci = w_hwio.shape[2]
    k = hi * wi * ci
    basis = jnp.eye(k, dtype=jnp.float32)
    if nchw_in:
        basis = basis.reshape(k, ci, hi, wi).transpose(0, 2, 3, 1)   # (c,y,x) order
    else:
        basis = basis.reshape(k, hi, wi, ci)                          # (y,x,c) order
    if upsample:
        basis = _upsample2(basis)
    y = _conv_nhwc(basis, w_hwio, stride)                             # (k, Ho, Wo, Co)
    if nchw_out:
        y = jnp.transpose(y, (0, 3, 1, 2))
    return y.reshape(k, -1)


def _bias_row(b, ho, wo, *, nchw=False):
    co = b.shape[0]
    if nchw:
        return jnp.broadcast_to(b[:, None, None], (co, ho, wo)).reshape(1, -1)
    return jnp.broadcast_to(b, (ho, wo, co)).reshape(1, -1)


# -----------------------------------------------------------------------------
# Parameters: kaiming-normal (fan_in, relu) conv/FC weights, folded for kernel.
# Returns (kernel_params, raw_params); raw_params back the pure-JAX reference.
# -----------------------------------------------------------------------------
def init_params(latent_dim=8, in_ch=3, img=16, seed=42):
    L = latent_dim
    h1_ch, h2_ch = 16, 32
    s1, s2 = img // 2, img // 4
    d2 = h2_ch * s2 * s2

    keys = iter(jax.random.split(jax.random.PRNGKey(seed), 16))

    def conv_w(cin, cout):
        fan_in = 9 * cin
        return jax.random.normal(next(keys), (3, 3, cin, cout),
                                 jnp.float32) * (2.0 / fan_in) ** 0.5

    def fc_w(din, dout):
        return jax.random.normal(next(keys), (din, dout),
                                 jnp.float32) * (2.0 / din) ** 0.5

    def bias(n, fan_in):
        bound = 1.0 / (fan_in ** 0.5)
        return jax.random.uniform(next(keys), (n,), jnp.float32, -bound, bound)

    raw = {
        "W_c1": conv_w(in_ch, h1_ch),  "b_c1": bias(h1_ch, 9 * in_ch),
        "W_c2": conv_w(h1_ch, h2_ch),  "b_c2": bias(h2_ch, 9 * h1_ch),
        "W_mu": fc_w(d2, L),           "b_mu": bias(L, d2),
        "W_lv": fc_w(d2, L),           "b_lv": bias(L, d2),
        "W_dfc": fc_w(L, d2),          "b_dfc": bias(d2, L),
        "W_dc1": conv_w(h2_ch, h1_ch), "b_dc1": bias(h1_ch, 9 * h2_ch),
        "W_dc2": conv_w(h1_ch, in_ch), "b_dc2": bias(in_ch, 9 * h1_ch),
    }

    bf = jnp.bfloat16
    params = {
        # encoder conv1: NCHW-flat input order baked in
        "T1":  _toeplitz(raw["W_c1"], img, img, 2, nchw_in=True).astype(bf),
        "b1":  _bias_row(raw["b_c1"], s1, s1),
        # encoder conv2
        "T2":  _toeplitz(raw["W_c2"], s1, s1, 2).astype(bf),
        "b2":  _bias_row(raw["b_c2"], s2, s2),
        # variational head (split mu / logvar -> no in-kernel lane slicing)
        "W_mu": raw["W_mu"].astype(bf), "b_mu": raw["b_mu"].reshape(1, -1),
        "W_lv": raw["W_lv"].astype(bf), "b_lv": raw["b_lv"].reshape(1, -1),
        # decoder FC
        "W_dfc": raw["W_dfc"].astype(bf), "b_dfc": raw["b_dfc"].reshape(1, -1),
        # decoder upsample+conv blocks (upsample folded into the matrix)
        "T_d1": _toeplitz(raw["W_dc1"], s2, s2, 1, upsample=True).astype(bf),
        "b_d1": _bias_row(raw["b_dc1"], s1, s1),
        # final block also emits NCHW-flat output order
        "T_d2": _toeplitz(raw["W_dc2"], s1, s1, 1, upsample=True,
                          nchw_out=True).astype(bf),
        "b_d2": _bias_row(raw["b_dc2"], img, img, nchw=True),
    }
    return params, raw


# -----------------------------------------------------------------------------
# The single fused Pallas kernel: whole forward per batch tile.
# -----------------------------------------------------------------------------
def _fused_forward_kernel(x_ref, eps_ref,
                          t1, b1, t2, b2,
                          wmu, bmu, wlv, blv,
                          wdfc, bdfc, td1, bd1, td2, bd2,
                          o_ref):
    f32 = jnp.float32
    x = x_ref[...].astype(jnp.bfloat16)                              # (TB, 768)

    h1 = jnp.dot(x, t1[...], preferred_element_type=f32) + b1[...]  # enc conv1
    h1 = jnp.maximum(h1, 0.0).astype(jnp.bfloat16)                   # (TB, 1024)

    h2 = jnp.dot(h1, t2[...], preferred_element_type=f32) + b2[...]  # enc conv2
    h2 = jnp.maximum(h2, 0.0).astype(jnp.bfloat16)                   # (TB, 512)

    mu = jnp.dot(h2, wmu[...], preferred_element_type=f32) + bmu[...]
    logvar = jnp.dot(h2, wlv[...], preferred_element_type=f32) + blv[...]
    z = mu + jnp.exp(0.5 * logvar) * eps_ref[...]                    # reparam (TB, L)

    d = jnp.dot(z.astype(jnp.bfloat16), wdfc[...],
                preferred_element_type=f32) + bdfc[...]              # dec FC
    d = jnp.maximum(d, 0.0).astype(jnp.bfloat16)                     # (TB, 512)

    d1 = jnp.dot(d, td1[...], preferred_element_type=f32) + bd1[...]  # up + conv1
    d1 = jnp.maximum(d1, 0.0).astype(jnp.bfloat16)                    # (TB, 1024)

    out = jnp.dot(d1, td2[...], preferred_element_type=f32) + bd2[...]  # up + conv2
    o_ref[...] = out.astype(o_ref.dtype)                             # (TB, 768)


def make_forward(latent_dim=8, in_ch=3, img=16, batch_tile=256):
    L = latent_dim
    d_in = in_ch * img * img              # 768  (NCHW-flat)
    d1 = 16 * (img // 2) ** 2             # 1024
    d2 = 32 * (img // 4) ** 2             # 512
    d_out = d_in

    def forward(params, x_nchw, rng_key):
        B = x_nchw.shape[0]
        x_flat = x_nchw.reshape(B, d_in).astype(jnp.float32)
        eps = jax.random.normal(rng_key, (B, L), jnp.float32)

        # Batch tile: full batch for small B (block dims equal to full array are
        # always legal); 256-row tiles otherwise (>=2 parallel steps for v7x's
        # two TensorCores at realistic batch sizes).  Partial last blocks are
        # masked by Pallas — rows are independent, so no pad/slice needed.
        tb = B if B <= batch_tile else batch_tile
        grid = (pl.cdiv(B, tb),)

        def tiled(cols):
            return pl.BlockSpec((tb, cols), lambda i: (i, 0))

        def resident(rows, cols):     # grid-invariant weight block (fetched once)
            return pl.BlockSpec((rows, cols), lambda i: (0, 0))

        p = params
        out_flat = pl.pallas_call(
            _fused_forward_kernel,
            out_shape=jax.ShapeDtypeStruct((B, d_out), jnp.float32),
            grid=grid,
            in_specs=[
                tiled(d_in), tiled(L),
                resident(d_in, d1), resident(1, d1),
                resident(d1, d2),   resident(1, d2),
                resident(d2, L),    resident(1, L),
                resident(d2, L),    resident(1, L),
                resident(L, d2),    resident(1, d2),
                resident(d2, d1),   resident(1, d1),
                resident(d1, d_out), resident(1, d_out),
            ],
            out_specs=tiled(d_out),
            compiler_params=pltpu.CompilerParams(
                dimension_semantics=("parallel",),
                vmem_limit_bytes=48 * 1024 * 1024),   # budgeted vs v7x 64 MiB
        )(x_flat, eps,
          p["T1"], p["b1"], p["T2"], p["b2"],
          p["W_mu"], p["b_mu"], p["W_lv"], p["b_lv"],
          p["W_dfc"], p["b_dfc"],
          p["T_d1"], p["b_d1"], p["T_d2"], p["b_d2"])

        return out_flat.reshape(B, in_ch, img, img)

    return forward


# -----------------------------------------------------------------------------
# Pure-JAX reference (f32, explicit convs) for correctness checking.
# -----------------------------------------------------------------------------
def reference_forward(raw, x_nchw, eps, img=16):
    B = x_nchw.shape[0]
    s2 = img // 4
    x = jnp.transpose(x_nchw, (0, 2, 3, 1))
    h1 = jax.nn.relu(_conv_nhwc(x, raw["W_c1"], 2) + raw["b_c1"])
    h2 = jax.nn.relu(_conv_nhwc(h1, raw["W_c2"], 2) + raw["b_c2"])
    h2f = h2.reshape(B, -1)
    mu = h2f @ raw["W_mu"] + raw["b_mu"]
    lv = h2f @ raw["W_lv"] + raw["b_lv"]
    z = mu + jnp.exp(0.5 * lv) * eps
    d = jax.nn.relu(z @ raw["W_dfc"] + raw["b_dfc"])
    d = d.reshape(B, s2, s2, 32)
    d = jax.nn.relu(_conv_nhwc(_upsample2(d), raw["W_dc1"], 1) + raw["b_dc1"])
    out = _conv_nhwc(_upsample2(d), raw["W_dc2"], 1) + raw["b_dc2"]
    return jnp.transpose(out, (0, 3, 1, 2))


if __name__ == "__main__":
    latent_dim, alpha, l = 8, 1.0, 1.0        # alpha / l only affect the MMD loss
    B, C, H, W = 2, 3, 16, 16

    params, raw = init_params(latent_dim=latent_dim, in_ch=C, img=H, seed=42)
    forward = jax.jit(make_forward(latent_dim=latent_dim, in_ch=C, img=H))

    key = jax.random.PRNGKey(0)
    k_x, k_eps = jax.random.split(key)
    x = jax.random.normal(k_x, (B, C, H, W), jnp.float32)

    x_hat = jax.block_until_ready(forward(params, x, k_eps))

    assert x_hat.shape == (B, C, H, W), x_hat.shape
    assert x_hat.dtype == jnp.float32
    assert bool(jnp.all(jnp.isfinite(x_hat)))

    # Cross-check against the pure-JAX f32 conv reference (same eps).
    eps = jax.random.normal(k_eps, (B, latent_dim), jnp.float32)
    ref = reference_forward(raw, x, eps, img=H)
    assert bool(jnp.allclose(x_hat, ref, rtol=0.1, atol=0.1)), (
        float(jnp.max(jnp.abs(x_hat - ref))))

    print("KERNEL_OK")
</pallas_src>

<mosaic_0001>
module attributes {stable_mosaic.version = 11 : i64} {
  func.func @_fused_forward_kernel(%arg0: i32, %arg1: memref<2x768xf32, #tpu.memory_space<vmem>>, %arg2: memref<2x8xf32, #tpu.memory_space<vmem>>, %arg3: memref<768x1024xbf16, #tpu.memory_space<vmem>>, %arg4: memref<1x1024xf32, #tpu.memory_space<vmem>>, %arg5: memref<1024x512xbf16, #tpu.memory_space<vmem>>, %arg6: memref<1x512xf32, #tpu.memory_space<vmem>>, %arg7: memref<512x8xbf16, #tpu.memory_space<vmem>>, %arg8: memref<1x8xf32, #tpu.memory_space<vmem>>, %arg9: memref<512x8xbf16, #tpu.memory_space<vmem>>, %arg10: memref<1x8xf32, #tpu.memory_space<vmem>>, %arg11: memref<8x512xbf16, #tpu.memory_space<vmem>>, %arg12: memref<1x512xf32, #tpu.memory_space<vmem>>, %arg13: memref<512x1024xbf16, #tpu.memory_space<vmem>>, %arg14: memref<1x1024xf32, #tpu.memory_space<vmem>>, %arg15: memref<1024x768xbf16, #tpu.memory_space<vmem>>, %arg16: memref<1x768xf32, #tpu.memory_space<vmem>>, %arg17: memref<2x768xf32, #tpu.memory_space<vmem>>) attributes {dimension_semantics = [#tpu.dimension_semantics<parallel>], iteration_bounds = array<i64: 1>, scalar_prefetch = 0 : i64, scratch_operands = 0 : i64, tpu.core_type = #tpu.core_type<tc>, window_params = [{transform_indices = @transform_0, window_bounds = array<i64: 2, 768>}, {transform_indices = @transform_1, window_bounds = array<i64: 2, 8>}, {pipeline_mode = #tpu.pipeline_mode<synchronous>, transform_indices = @transform_2, window_bounds = array<i64: 768, 1024>}, {pipeline_mode = #tpu.pipeline_mode<synchronous>, transform_indices = @transform_3, window_bounds = array<i64: 1, 1024>}, {pipeline_mode = #tpu.pipeline_mode<synchronous>, transform_indices = @transform_4, window_bounds = array<i64: 1024, 512>}, {pipeline_mode = #tpu.pipeline_mode<synchronous>, transform_indices = @transform_5, window_bounds = array<i64: 1, 512>}, {pipeline_mode = #tpu.pipeline_mode<synchronous>, transform_indices = @transform_6, window_bounds = array<i64: 512, 8>}, {pipeline_mode = #tpu.pipeline_mode<synchronous>, transform_indices = @transform_7, window_bounds = array<i64: 1, 8>}, {pipeline_mode = #tpu.pipeline_mode<synchronous>, transform_indices = @transform_8, window_bounds = array<i64: 512, 8>}, {pipeline_mode = #tpu.pipeline_mode<synchronous>, transform_indices = @transform_9, window_bounds = array<i64: 1, 8>}, {pipeline_mode = #tpu.pipeline_mode<synchronous>, transform_indices = @transform_10, window_bounds = array<i64: 8, 512>}, {pipeline_mode = #tpu.pipeline_mode<synchronous>, transform_indices = @transform_11, window_bounds = array<i64: 1, 512>}, {pipeline_mode = #tpu.pipeline_mode<synchronous>, transform_indices = @transform_12, window_bounds = array<i64: 512, 1024>}, {pipeline_mode = #tpu.pipeline_mode<synchronous>, transform_indices = @transform_13, window_bounds = array<i64: 1, 1024>}, {pipeline_mode = #tpu.pipeline_mode<synchronous>, transform_indices = @transform_14, window_bounds = array<i64: 1024, 768>}, {pipeline_mode = #tpu.pipeline_mode<synchronous>, transform_indices = @transform_15, window_bounds = array<i64: 1, 768>}, {transform_indices = @transform_16, window_bounds = array<i64: 2, 768>}]} {
    %c0 = arith.constant 0 : index
    %c0_0 = arith.constant 0 : index
    %0 = vector.load %arg1[%c0, %c0_0] : memref<2x768xf32, #tpu.memory_space<vmem>>, vector<2x768xf32>
    %1 = arith.truncf %0 : vector<2x768xf32> to vector<2x768xbf16>
    %c0_1 = arith.constant 0 : index
    %c0_2 = arith.constant 0 : index
    %2 = vector.load %arg3[%c0_1, %c0_2] : memref<768x1024xbf16, #tpu.memory_space<vmem>>, vector<768x1024xbf16>
    %cst = arith.constant dense<0.000000e+00> : vector<2x1024xf32>
    %3 = tpu.matmul %1, %2, %cst {dimension_numbers = #tpu.dot_dimension_numbers<[1], [0], [0], [1], [0, 0, 1, 1], [], []>} : vector<2x768xbf16>, vector<768x1024xbf16>, vector<2x1024xf32> -> vector<2x1024xf32>
    %c0_3 = arith.constant 0 : index
    %c0_4 = arith.constant 0 : index
    %4 = vector.load %arg4[%c0_3, %c0_4] : memref<1x1024xf32, #tpu.memory_space<vmem>>, vector<1x1024xf32>
    %5 = vector.broadcast %4 : vector<1x1024xf32> to vector<2x1024xf32>
    %6 = arith.addf %3, %5 : vector<2x1024xf32>
    %cst_5 = arith.constant 0.000000e+00 : f32
    %7 = vector.broadcast %cst_5 : f32 to vector<2x1024xf32>
    %8 = arith.maximumf %6, %7 : vector<2x1024xf32>
    %9 = arith.truncf %8 : vector<2x1024xf32> to vector<2x1024xbf16>
    %c0_6 = arith.constant 0 : index
    %c0_7 = arith.constant 0 : index
    %10 = vector.load %arg5[%c0_6, %c0_7] : memref<1024x512xbf16, #tpu.memory_space<vmem>>, vector<1024x512xbf16>
    %cst_8 = arith.constant dense<0.000000e+00> : vector<2x512xf32>
    %11 = tpu.matmul %9, %10, %cst_8 {dimension_numbers = #tpu.dot_dimension_numbers<[1], [0], [0], [1], [0, 0, 1, 1], [], []>} : vector<2x1024xbf16>, vector<1024x512xbf16>, vector<2x512xf32> -> vector<2x512xf32>
    %c0_9 = arith.constant 0 : index
    %c0_10 = arith.constant 0 : index
    %12 = vector.load %arg6[%c0_9, %c0_10] : memref<1x512xf32, #tpu.memory_space<vmem>>, vector<1x512xf32>
    %13 = vector.broadcast %12 : vector<1x512xf32> to vector<2x512xf32>
    %14 = arith.addf %11, %13 : vector<2x512xf32>
    %cst_11 = arith.constant 0.000000e+00 : f32
    %15 = vector.broadcast %cst_11 : f32 to vector<2x512xf32>
    %16 = arith.maximumf %14, %15 : vector<2x512xf32>
    %17 = arith.truncf %16 : vector<2x512xf32> to vector<2x512xbf16>
    %c0_12 = arith.constant 0 : index
    %c0_13 = arith.constant 0 : index
    %18 = vector.load %arg7[%c0_12, %c0_13] : memref<512x8xbf16, #tpu.memory_space<vmem>>, vector<512x8xbf16>
    %cst_14 = arith.constant dense<0.000000e+00> : vector<2x8xf32>
    %19 = tpu.matmul %17, %18, %cst_14 {dimension_numbers = #tpu.dot_dimension_numbers<[1], [0], [0], [1], [0, 0, 1, 1], [], []>} : vector<2x512xbf16>, vector<512x8xbf16>, vector<2x8xf32> -> vector<2x8xf32>
    %c0_15 = arith.constant 0 : index
    %c0_16 = arith.constant 0 : index
    %20 = vector.load %arg8[%c0_15, %c0_16] : memref<1x8xf32, #tpu.memory_space<vmem>>, vector<1x8xf32>
    %21 = vector.broadcast %20 : vector<1x8xf32> to vector<2x8xf32>
    %22 = arith.addf %19, %21 : vector<2x8xf32>
    %c0_17 = arith.constant 0 : index
    %c0_18 = arith.constant 0 : index
    %23 = vector.load %arg9[%c0_17, %c0_18] : memref<512x8xbf16, #tpu.memory_space<vmem>>, vector<512x8xbf16>
    %cst_19 = arith.constant dense<0.000000e+00> : vector<2x8xf32>
    %24 = tpu.matmul %17, %23, %cst_19 {dimension_numbers = #tpu.dot_dimension_numbers<[1], [0], [0], [1], [0, 0, 1, 1], [], []>} : vector<2x512xbf16>, vector<512x8xbf16>, vector<2x8xf32> -> vector<2x8xf32>
    %c0_20 = arith.constant 0 : index
    %c0_21 = arith.constant 0 : index
    %25 = vector.load %arg10[%c0_20, %c0_21] : memref<1x8xf32, #tpu.memory_space<vmem>>, vector<1x8xf32>
    %26 = vector.broadcast %25 : vector<1x8xf32> to vector<2x8xf32>
    %27 = arith.addf %24, %26 : vector<2x8xf32>
    %cst_22 = arith.constant 5.000000e-01 : f32
    %28 = vector.broadcast %cst_22 : f32 to vector<2x8xf32>
    %29 = arith.mulf %28, %27 : vector<2x8xf32>
    %30 = math.exp %29 : vector<2x8xf32>
    %c0_23 = arith.constant 0 : index
    %c0_24 = arith.constant 0 : index
    %31 = vector.load %arg2[%c0_23, %c0_24] : memref<2x8xf32, #tpu.memory_space<vmem>>, vector<2x8xf32>
    %32 = arith.mulf %30, %31 : vector<2x8xf32>
    %33 = arith.addf %22, %32 : vector<2x8xf32>
    %34 = arith.truncf %33 : vector<2x8xf32> to vector<2x8xbf16>
    %c0_25 = arith.constant 0 : index
    %c0_26 = arith.constant 0 : index
    %35 = vector.load %arg11[%c0_25, %c0_26] : memref<8x512xbf16, #tpu.memory_space<vmem>>, vector<8x512xbf16>
    %cst_27 = arith.constant dense<0.000000e+00> : vector<2x512xf32>
    %36 = tpu.matmul %34, %35, %cst_27 {dimension_numbers = #tpu.dot_dimension_numbers<[1], [0], [0], [1], [0, 0, 1, 1], [], []>} : vector<2x8xbf16>, vector<8x512xbf16>, vector<2x512xf32> -> vector<2x512xf32>
    %c0_28 = arith.constant 0 : index
    %c0_29 = arith.constant 0 : index
    %37 = vector.load %arg12[%c0_28, %c0_29] : memref<1x512xf32, #tpu.memory_space<vmem>>, vector<1x512xf32>
    %38 = vector.broadcast %37 : vector<1x512xf32> to vector<2x512xf32>
    %39 = arith.addf %36, %38 : vector<2x512xf32>
    %cst_30 = arith.constant 0.000000e+00 : f32
    %40 = vector.broadcast %cst_30 : f32 to vector<2x512xf32>
    %41 = arith.maximumf %39, %40 : vector<2x512xf32>
    %42 = arith.truncf %41 : vector<2x512xf32> to vector<2x512xbf16>
    %c0_31 = arith.constant 0 : index
    %c0_32 = arith.constant 0 : index
    %43 = vector.load %arg13[%c0_31, %c0_32] : memref<512x1024xbf16, #tpu.memory_space<vmem>>, vector<512x1024xbf16>
    %cst_33 = arith.constant dense<0.000000e+00> : vector<2x1024xf32>
    %44 = tpu.matmul %42, %43, %cst_33 {dimension_numbers = #tpu.dot_dimension_numbers<[1], [0], [0], [1], [0, 0, 1, 1], [], []>} : vector<2x512xbf16>, vector<512x1024xbf16>, vector<2x1024xf32> -> vector<2x1024xf32>
    %c0_34 = arith.constant 0 : index
    %c0_35 = arith.constant 0 : index
    %45 = vector.load %arg14[%c0_34, %c0_35] : memref<1x1024xf32, #tpu.memory_space<vmem>>, vector<1x1024xf32>
    %46 = vector.broadcast %45 : vector<1x1024xf32> to vector<2x1024xf32>
    %47 = arith.addf %44, %46 : vector<2x1024xf32>
    %cst_36 = arith.constant 0.000000e+00 : f32
    %48 = vector.broadcast %cst_36 : f32 to vector<2x1024xf32>
    %49 = arith.maximumf %47, %48 : vector<2x1024xf32>
    %50 = arith.truncf %49 : vector<2x1024xf32> to vector<2x1024xbf16>
    %c0_37 = arith.constant 0 : index
    %c0_38 = arith.constant 0 : index
    %51 = vector.load %arg15[%c0_37, %c0_38] : memref<1024x768xbf16, #tpu.memory_space<vmem>>, vector<1024x768xbf16>
    %cst_39 = arith.constant dense<0.000000e+00> : vector<2x768xf32>
    %52 = tpu.matmul %50, %51, %cst_39 {dimension_numbers = #tpu.dot_dimension_numbers<[1], [0], [0], [1], [0, 0, 1, 1], [], []>} : vector<2x1024xbf16>, vector<1024x768xbf16>, vector<2x768xf32> -> vector<2x768xf32>
    %c0_40 = arith.constant 0 : index
    %c0_41 = arith.constant 0 : index
    %53 = vector.load %arg16[%c0_40, %c0_41] : memref<1x768xf32, #tpu.memory_space<vmem>>, vector<1x768xf32>
    %54 = vector.broadcast %53 : vector<1x768xf32> to vector<2x768xf32>
    %55 = arith.addf %52, %54 : vector<2x768xf32>
    %c0_42 = arith.constant 0 : index
    %c0_43 = arith.constant 0 : index
    %56 = vector.load %arg17[%c0_42, %c0_43] : memref<2x768xf32, #tpu.memory_space<vmem>>, vector<2x768xf32>
    tpu.vector_store %arg17[%c0_42, %c0_43], %55 {strides = array<i32>} : memref<2x768xf32, #tpu.memory_space<vmem>>, vector<2x768xf32>,
    return
  }
  func.func @transform_0(%arg0: i32) -> (i32, i32) {
    %c0_i32 = arith.constant 0 : i32
    %c0_i32_0 = arith.constant 0 : i32
    return %arg0, %c0_i32 : i32, i32
  }
  func.func @transform_1(%arg0: i32) -> (i32, i32) {
    %c0_i32 = arith.constant 0 : i32
    %c0_i32_0 = arith.constant 0 : i32
    return %arg0, %c0_i32 : i32, i32
  }
  func.func @transform_2(%arg0: i32) -> (i32, i32) {
    %c0_i32 = arith.constant 0 : i32
    %c0_i32_0 = arith.constant 0 : i32
    %c0_i32_1 = arith.constant 0 : i32
    return %c0_i32, %c0_i32_0 : i32, i32
  }
  func.func @transform_3(%arg0: i32) -> (i32, i32) {
    %c0_i32 = arith.constant 0 : i32
    %c0_i32_0 = arith.constant 0 : i32
    %c0_i32_1 = arith.constant 0 : i32
    return %c0_i32, %c0_i32_0 : i32, i32
  }
  func.func @transform_4(%arg0: i32) -> (i32, i32) {
    %c0_i32 = arith.constant 0 : i32
    %c0_i32_0 = arith.constant 0 : i32
    %c0_i32_1 = arith.constant 0 : i32
    return %c0_i32, %c0_i32_0 : i32, i32
  }
  func.func @transform_5(%arg0: i32) -> (i32, i32) {
    %c0_i32 = arith.constant 0 : i32
    %c0_i32_0 = arith.constant 0 : i32
    %c0_i32_1 = arith.constant 0 : i32
    return %c0_i32, %c0_i32_0 : i32, i32
  }
  func.func @transform_6(%arg0: i32) -> (i32, i32) {
    %c0_i32 = arith.constant 0 : i32
    %c0_i32_0 = arith.constant 0 : i32
    %c0_i32_1 = arith.constant 0 : i32
    return %c0_i32, %c0_i32_0 : i32, i32
  }
  func.func @transform_7(%arg0: i32) -> (i32, i32) {
    %c0_i32 = arith.constant 0 : i32
    %c0_i32_0 = arith.constant 0 : i32
    %c0_i32_1 = arith.constant 0 : i32
    return %c0_i32, %c0_i32_0 : i32, i32
  }
  func.func @transform_8(%arg0: i32) -> (i32, i32) {
    %c0_i32 = arith.constant 0 : i32
    %c0_i32_0 = arith.constant 0 : i32
    %c0_i32_1 = arith.constant 0 : i32
    return %c0_i32, %c0_i32_0 : i32, i32
  }
  func.func @transform_9(%arg0: i32) -> (i32, i32) {
    %c0_i32 = arith.constant 0 : i32
    %c0_i32_0 = arith.constant 0 : i32
    %c0_i32_1 = arith.constant 0 : i32
    return %c0_i32, %c0_i32_0 : i32, i32
  }
  func.func @transform_10(%arg0: i32) -> (i32, i32) {
    %c0_i32 = arith.constant 0 : i32
    %c0_i32_0 = arith.constant 0 : i32
    %c0_i32_1 = arith.constant 0 : i32
    return %c0_i32, %c0_i32_0 : i32, i32
  }
  func.func @transform_11(%arg0: i32) -> (i32, i32) {
    %c0_i32 = arith.constant 0 : i32
    %c0_i32_0 = arith.constant 0 : i32
    %c0_i32_1 = arith.constant 0 : i32
    return %c0_i32, %c0_i32_0 : i32, i32
  }
  func.func @transform_12(%arg0: i32) -> (i32, i32) {
    %c0_i32 = arith.constant 0 : i32
    %c0_i32_0 = arith.constant 0 : i32
    %c0_i32_1 = arith.constant 0 : i32
    return %c0_i32, %c0_i32_0 : i32, i32
  }
  func.func @transform_13(%arg0: i32) -> (i32, i32) {
    %c0_i32 = arith.constant 0 : i32
    %c0_i32_0 = arith.constant 0 : i32
    %c0_i32_1 = arith.constant 0 : i32
    return %c0_i32, %c0_i32_0 : i32, i32
  }
  func.func @transform_14(%arg0: i32) -> (i32, i32) {
    %c0_i32 = arith.constant 0 : i32
    %c0_i32_0 = arith.constant 0 : i32
    %c0_i32_1 = arith.constant 0 : i32
    return %c0_i32, %c0_i32_0 : i32, i32
  }
  func.func @transform_15(%arg0: i32) -> (i32, i32) {
    %c0_i32 = arith.constant 0 : i32
    %c0_i32_0 = arith.constant 0 : i32
    %c0_i32_1 = arith.constant 0 : i32
    return %c0_i32, %c0_i32_0 : i32, i32
  }
  func.func @transform_16(%arg0: i32) -> (i32, i32) {
    %c0_i32 = arith.constant 0 : i32
    %c0_i32_0 = arith.constant 0 : i32
    return %arg0, %c0_i32 : i32, i32
  }
}

</mosaic_0001>

<bundles_post_ra>
// kernel: forward.1
= control target key start
LH: loop header
LB: loop body
LE: loop exit
PB: predicated region body
PF: predicated region fallthrough
CT: control target
= control target key end

     0   :  { %s14258_s0 = inlined_call_operand.vmem [shape: f32[2,768], index: 0, kind: input, shape index: {}]   ;;  %s14259_s1 = inlined_call_operand.vmem [shape: f32[2,8], index: 1, kind: input, shape index: {}]   ;;  %s14260_s2 = inlined_call_operand.hbm [shape: bf16[768,1024], index: 2, kind: input, shape index: {}]   ;;  %s14261_s3 = inlined_call_operand.hbm [shape: f32[1,1024], index: 3, kind: input, shape index: {}]   ;;  %s14262_s4 = inlined_call_operand.hbm [shape: bf16[1024,512], index: 4, kind: input, shape index: {}]   ;;  %s14263_s5 = inlined_call_operand.hbm [shape: f32[1,512], index: 5, kind: input, shape index: {}]   ;;  %s14264_s6 = inlined_call_operand.vmem [shape: bf16[512,8], index: 6, kind: input, shape index: {}]   ;;  %s14265_s7 = inlined_call_operand.hbm [shape: f32[1,8], index: 7, kind: input, shape index: {}]   ;;  %s14266_s8 = inlined_call_operand.vmem [shape: bf16[512,8], index: 8, kind: input, shape index: {}]   ;;  %s14267_s9 = inlined_call_operand.hbm [shape: f32[1,8], index: 9, kind: input, shape index: {}]   ;;  %s14268_s10 = inlined_call_operand.hbm [shape: bf16[8,512], index: 10, kind: input, shape index: {}]   ;;  %s14269_s11 = inlined_call_operand.hbm [shape: f32[1,512], index: 11, kind: input, shape index: {}]   ;;  %s14270_s12 = inlined_call_operand.hbm [shape: bf16[512,1024], index: 12, kind: input, shape index: {}]   ;;  %s14271_s13 = inlined_call_operand.hbm [shape: f32[1,1024], index: 13, kind: input, shape index: {}]   ;;  %s14272_s14 = inlined_call_operand.hbm [shape: bf16[1024,768], index: 14, kind: input, shape index: {}]   ;;  %s14273_s15 = inlined_call_operand.hbm [shape: f32[1,768], index: 15, kind: input, shape index: {}]   ;;  %s14274_s16 = inlined_call_operand.vmem [shape: f32[2,768], index: 16, kind: output, shape index: {}]  }
   0x1   :  { %14276 = sst [smem:[#allocation28_spill]] %s14258_s0 }
   0x2   :  { %21 = vsyncpa [#allocation3], 0 }
   0x3   :  { %22 = vsyncpa [#allocation5], 0 }
   0x4   :  { %23 = vsyncpa [#allocation8], 0 }
   0x5   :  { %24 = vsyncpa [#allocation11], 0 }
   0x6   :  { %25 = vsyncpa [#allocation14], 0 }
   0x7   :  { %26 = vsyncpa [#allocation17], 0 }
   0x8   :  { %27 = vsyncpa [#allocation20], 0  ;;  %s13526_s21 = smov [#allocation4]   ;;  %s13527_s23 = smov [#allocation7]  }
   0x9   :  { %s50_s22 = sshll.u32 %s13526_s21, 4  ;;  %s72_s24 = sshll.u32 %s13527_s23, 4  ;;  %s51_s22 = int_to_ptr.vmem [resolvable:$true] %s50_s22  ;;  %s73_s24 = int_to_ptr.vmem [resolvable:$true] %s72_s24 }
   0xa   :  { %s13248_s27 = scalar_lea.hbm %s14261_s3, 128 }
   0xb   :  { %p13249_p0 = scmp.ne.s32.totalorder %s14261_s3, %s13248_s27  ;;  %p13252_p1 = scmp.lt.u32.totalorder %s13248_s27, %s14261_s3 }
   0xd   :  { %p13254_p2 = pnand %p13252_p1, %p13249_p0 }
   0xf   :  { %13257 = shalt.err (!%p13254_p2)
}
  0x10   :  { %s13258_s17 = scalar_lea.vmem %s51_s22, 128  ;;  %p13263_p4 = scmp.lt.s32.totalorder %s51_s22, %s51_s22 }
  0x11   :  { %p13259_p3 = scmp.ne.s32.totalorder %s51_s22, %s13258_s17  ;;  %p13264_p5 = scmp.lt.s32.totalorder %s13258_s17, %s13258_s17 }
  0x13   :  { %p13265_p6 = por %p13264_p5, %p13263_p4 }
  0x15   :  { %p13266_p7 = pnand %p13265_p6, %p13259_p3 }
  0x17   :  { %13269 = shalt.err (!%p13266_p7)
}
  0x18   :  { %53 = dma.hbm_to_vmem [thread:$0]  %s14261_s3, 128, %s51_s22, [#allocation5]  }
  0x19   :  { %s13270_s23 = scalar_lea.hbm %s14263_s5, 64 }
  0x1a   :  { %p13271_p8 = scmp.ne.s32.totalorder %s14263_s5, %s13270_s23  ;;  %p13274_p9 = scmp.lt.u32.totalorder %s13270_s23, %s14263_s5 }
  0x1c   :  { %p13276_p10 = pnand %p13274_p9, %p13271_p8 }
  0x1e   :  { %13279 = shalt.err (!%p13276_p10)
}
  0x1f   :  { %s13280_s29 = scalar_lea.vmem %s73_s24, 64  ;;  %p13285_p12 = scmp.lt.s32.totalorder %s73_s24, %s73_s24 }
  0x20   :  { %p13281_p11 = scmp.ne.s32.totalorder %s73_s24, %s13280_s29  ;;  %p13286_p13 = scmp.lt.s32.totalorder %s13280_s29, %s13280_s29 }
  0x22   :  { %p13287_p0 = por %p13286_p13, %p13285_p12 }
  0x24   :  { %p13288_p1 = pnand %p13287_p0, %p13281_p11 }
  0x26   :  { %13291 = shalt.err (!%p13288_p1)
}
  0x27   :  { %75 = dma.hbm_to_vmem [thread:$0]  %s14263_s5, 64, %s73_s24, [#allocation8]  }
  0x28   :  { %s13528_s30 = smov [#allocation10]   ;;  %s13529_s17 = smov [#allocation13]  }
  0x29   :  { %s96_s0 = sshll.u32 %s13528_s30, 4  ;;  %s116_s18 = sshll.u32 %s13529_s17, 4  ;;  %s97_s0 = int_to_ptr.vmem [resolvable:$true] %s96_s0  ;;  %s117_s18 = int_to_ptr.vmem [resolvable:$true] %s116_s18 }
  0x2a   :  { %s13292_s21 = scalar_lea.hbm %s14267_s9, 16 }
  0x2b   :  { %p13293_p2 = scmp.ne.s32.totalorder %s14267_s9, %s13292_s21  ;;  %p13296_p3 = scmp.lt.u32.totalorder %s13292_s21, %s14267_s9 }
  0x2d   :  { %p13298_p4 = pnand %p13296_p3, %p13293_p2 }
  0x2f   :  { %13301 = shalt.err (!%p13298_p4)
}
  0x30   :  { %s13302_s5 = scalar_lea.vmem %s97_s0, 16  ;;  %s13306_s24 = scalar_lea.vmem %s97_s0, 32 }
  0x31   :  { %p13303_p5 = scmp.ne.s32.totalorder %s97_s0, %s13302_s5  ;;  %p13307_p6 = scmp.lt.s32.totalorder %s97_s0, %s97_s0 }
  0x32   :  { %p13308_p7 = scmp.lt.s32.totalorder %s13306_s24, %s13302_s5 }
  0x34   :  { %p13309_p8 = por %p13308_p7, %p13307_p6 }
  0x36   :  { %p13310_p9 = pnand %p13309_p8, %p13303_p5 }
  0x38   :  { %13313 = shalt.err (!%p13310_p9)
}
  0x39   :  { %99 = dma.hbm_to_vmem [thread:$0]  %s14267_s9, 16, %s97_s0, [#allocation11]  }
  0x3a   :  { %s13314_s30 = scalar_lea.hbm %s14269_s11, 64 }
  0x3b   :  { %p13315_p10 = scmp.ne.s32.totalorder %s14269_s11, %s13314_s30  ;;  %p13318_p11 = scmp.lt.u32.totalorder %s13314_s30, %s14269_s11 }
  0x3d   :  { %p13320_p12 = pnand %p13318_p11, %p13315_p10 }
  0x3f   :  { %13323 = shalt.err (!%p13320_p12)
}
  0x40   :  { %s13324_s23 = scalar_lea.vmem %s117_s18, 64  ;;  %p13329_p0 = scmp.lt.s32.totalorder %s117_s18, %s117_s18 }
  0x41   :  { %p13325_p13 = scmp.ne.s32.totalorder %s117_s18, %s13324_s23  ;;  %p13330_p1 = scmp.lt.s32.totalorder %s13324_s23, %s13324_s23 }
  0x43   :  { %p13331_p2 = por %p13330_p1, %p13329_p0 }
  0x45   :  { %p13332_p3 = pnand %p13331_p2, %p13325_p13 }
  0x47   :  { %13335 = shalt.err (!%p13332_p3)
}
  0x48   :  { %119 = dma.hbm_to_vmem [thread:$0]  %s14269_s11, 64, %s117_s18, [#allocation14]  }
  0x49   :  { %s13530_s25 = smov [#allocation16]   ;;  %s13531_s27 = smov [#allocation2]  }
  0x4a   :  { %s138_s26 = sshll.u32 %s13530_s25, 4  ;;  %s37_s5 = sshll.u32 %s13531_s27, 4  ;;  %s139_s26 = int_to_ptr.vmem [resolvable:$true] %s138_s26  ;;  %s13679_s5 = int_to_ptr.vmem [resolvable:$true] %s37_s5 }
  0x4b   :  { %s13336_s29 = scalar_lea.hbm %s14271_s13, 128 }
  0x4c   :  { %p13337_p4 = scmp.ne.s32.totalorder %s14271_s13, %s13336_s29  ;;  %p13340_p5 = scmp.lt.u32.totalorder %s13336_s29, %s14271_s13 }
  0x4e   :  { %p13342_p6 = pnand %p13340_p5, %p13337_p4 }
  0x50   :  { %13345 = shalt.err (!%p13342_p6)
}
  0x51   :  { %s13346_s11 = scalar_lea.vmem %s139_s26, 128  ;;  %p13351_p8 = scmp.lt.s32.totalorder %s139_s26, %s139_s26 }
  0x52   :  { %p13347_p7 = scmp.ne.s32.totalorder %s139_s26, %s13346_s11  ;;  %p13352_p9 = scmp.lt.s32.totalorder %s13346_s11, %s13346_s11 }
  0x54   :  { %p13353_p10 = por %p13352_p9, %p13351_p8 }
  0x56   :  { %p13354_p11 = pnand %p13353_p10, %p13347_p7 }
  0x58   :  { %13357 = shalt.err (!%p13354_p11)
}
  0x59   :  { %141 = dma.hbm_to_vmem [thread:$0]  %s14271_s13, 128, %s139_s26, [#allocation17]  }
  0x5a   :  { %s13358_s23 = scalar_lea.hbm %s14260_s2, 49152 }
  0x5b   :  { %p13359_p12 = scmp.ne.s32.totalorder %s14260_s2, %s13358_s23  ;;  %p13362_p13 = scmp.lt.u32.totalorder %s13358_s23, %s14260_s2 }
  0x5d   :  { %p13364_p0 = pnand %p13362_p13, %p13359_p12 }
  0x5f   :  { %13367 = shalt.err (!%p13364_p0)
}
  0x60   :  { %s13368_s24 = scalar_lea.vmem %s13679_s5, 49152  ;;  %p13373_p2 = scmp.lt.s32.totalorder %s13679_s5, %s13679_s5 }
  0x61   :  { %p13369_p1 = scmp.ne.s32.totalorder %s13679_s5, %s13368_s24  ;;  %p13374_p3 = scmp.lt.s32.totalorder %s13368_s24, %s13368_s24 }
  0x63   :  { %p13375_p4 = por %p13374_p3, %p13373_p2 }
  0x65   :  { %p13376_p5 = pnand %p13375_p4, %p13369_p1 }
  0x67   :  { %13379 = shalt.err (!%p13376_p5)
}
  0x68   :  { %s13532_s13 = smov 512   ;;  %s13533_s26 = smov 32  }
  0x69   :  { %43 = dma.hbm_to_vmem [thread:$0]  %s14260_s2, 49152, %s13679_s5, [#allocation3], %s13532_s13, %s13532_s13, %s13533_s26  }
  0x6a   :  { %s13534_s3 = smov [#allocation6]   ;;  %s13380_s11 = scalar_lea.hbm %s14262_s4, 32768 }
  0x6b   :  { %s59_s22 = sshll.u32 %s13534_s3, 4  ;;  %p13381_p6 = scmp.ne.s32.totalorder %s14262_s4, %s13380_s11  ;;  %s60_s22 = int_to_ptr.vmem [resolvable:$true] %s59_s22 }
  0x6c   :  { %p13384_p7 = scmp.lt.u32.totalorder %s13380_s11, %s14262_s4 }
  0x6e   :  { %p13386_p8 = pnand %p13384_p7, %p13381_p6 }
  0x70   :  { %13389 = shalt.err (!%p13386_p8)
}
  0x71   :  { %s13390_s23 = scalar_lea.vmem %s60_s22, 32768  ;;  %p13395_p10 = scmp.lt.s32.totalorder %s60_s22, %s60_s22 }
  0x72   :  { %p13391_p9 = scmp.ne.s32.totalorder %s60_s22, %s13390_s23  ;;  %p13396_p11 = scmp.lt.s32.totalorder %s13390_s23, %s13390_s23 }
  0x74   :  { %p13397_p12 = por %p13396_p11, %p13395_p10 }
  0x76   :  { %p13398_p13 = pnand %p13397_p12, %p13391_p9 }
  0x78   :  { %13401 = shalt.err (!%p13398_p13)
}
  0x79   :  { %s13535_s2 = smov 256   ;;  %s13536_s5 = smov 16  }
  0x7a   :  { %65 = dma.hbm_to_vmem [thread:$0]  %s14262_s4, 32768, %s60_s22, [#allocation5], %s13535_s2, %s13535_s2, %s13536_s5  }
  0x7b   :  { %s13537_s25 = smov [#allocation9]   ;;  %s13538_s24 = smov [#allocation12]  }
  0x7c   :  { %s84_s27 = sshll.u32 %s13537_s25, 4  ;;  %s106_s28 = sshll.u32 %s13538_s24, 4  ;;  %s85_s27 = int_to_ptr.vmem [resolvable:$true] %s84_s27  ;;  %s107_s28 = int_to_ptr.vmem [resolvable:$true] %s106_s28 }
  0x7d   :  { %s13402_s30 = scalar_lea.hbm %s14265_s7, 16 }
  0x7e   :  { %p13403_p0 = scmp.ne.s32.totalorder %s14265_s7, %s13402_s30  ;;  %p13406_p1 = scmp.lt.u32.totalorder %s13402_s30, %s14265_s7 }
  0x80   :  { %p13408_p2 = pnand %p13406_p1, %p13403_p0 }
  0x82   :  { %13411 = shalt.err (!%p13408_p2)
}
  0x83   :  { %s13412_s4 = scalar_lea.vmem %s85_s27, 16  ;;  %s13416_s22 = scalar_lea.vmem %s85_s27, 32 }
  0x84   :  { %p13413_p3 = scmp.ne.s32.totalorder %s85_s27, %s13412_s4  ;;  %p13417_p4 = scmp.lt.s32.totalorder %s85_s27, %s85_s27 }
  0x85   :  { %p13418_p5 = scmp.lt.s32.totalorder %s13416_s22, %s13412_s4 }
  0x87   :  { %p13419_p6 = por %p13418_p5, %p13417_p4 }
  0x89   :  { %p13420_p7 = pnand %p13419_p6, %p13413_p3 }
  0x8b   :  { %13423 = shalt.err (!%p13420_p7)
}
  0x8c   :  { %87 = dma.hbm_to_vmem [thread:$0]  %s14265_s7, 16, %s85_s27, [#allocation8]  }
  0x8d   :  { %s13424_s5 = scalar_lea.hbm %s14268_s10, 256 }
  0x8e   :  { %p13425_p8 = scmp.ne.s32.totalorder %s14268_s10, %s13424_s5  ;;  %p13428_p9 = scmp.lt.u32.totalorder %s13424_s5, %s14268_s10 }
  0x90   :  { %p13430_p10 = pnand %p13428_p9, %p13425_p8 }
  0x92   :  { %13433 = shalt.err (!%p13430_p10)
}
  0x93   :  { %s13434_s29 = scalar_lea.vmem %s107_s28, 256  ;;  %p13439_p12 = scmp.lt.s32.totalorder %s107_s28, %s107_s28 }
  0x94   :  { %p13435_p11 = scmp.ne.s32.totalorder %s107_s28, %s13434_s29  ;;  %p13440_p13 = scmp.lt.s32.totalorder %s13434_s29, %s13434_s29 }
  0x96   :  { %p13441_p0 = por %p13440_p13, %p13439_p12 }
  0x98   :  { %p13442_p1 = pnand %p13441_p0, %p13435_p11 }
  0x9a   :  { %13445 = shalt.err (!%p13442_p1)
}
  0x9b   :  { %109 = dma.hbm_to_vmem [thread:$0]  %s14268_s10, 256, %s107_s28, [#allocation11]  }
  0x9c   :  { %s13539_s3 = smov [#allocation15]   ;;  %s13540_s17 = smov [#allocation18]  }
  0x9d   :  { %s125_s30 = sshll.u32 %s13539_s3, 4  ;;  %s147_s11 = sshll.u32 %s13540_s17, 4  ;;  %s126_s30 = int_to_ptr.vmem [resolvable:$true] %s125_s30  ;;  %s148_s11 = int_to_ptr.vmem [resolvable:$true] %s147_s11 }
  0x9e   :  { %s13446_s4 = scalar_lea.hbm %s14270_s12, 32768 }
  0x9f   :  { %p13447_p2 = scmp.ne.s32.totalorder %s14270_s12, %s13446_s4  ;;  %p13450_p3 = scmp.lt.u32.totalorder %s13446_s4, %s14270_s12 }
  0xa1   :  { %p13452_p4 = pnand %p13450_p3, %p13447_p2 }
  0xa3   :  { %13455 = shalt.err (!%p13452_p4)
}
  0xa4   :  { %s13456_s10 = scalar_lea.vmem %s126_s30, 32768  ;;  %p13461_p6 = scmp.lt.s32.totalorder %s126_s30, %s126_s30 }
  0xa5   :  { %p13457_p5 = scmp.ne.s32.totalorder %s126_s30, %s13456_s10  ;;  %p13462_p7 = scmp.lt.s32.totalorder %s13456_s10, %s13456_s10 }
  0xa7   :  { %p13463_p8 = por %p13462_p7, %p13461_p6 }
  0xa9   :  { %p13464_p9 = pnand %p13463_p8, %p13457_p5 }
  0xab   :  { %13467 = shalt.err (!%p13464_p9)
}
  0xac   :  { %131 = dma.hbm_to_vmem [thread:$0]  %s14270_s12, 32768, %s126_s30, [#allocation14], %s13532_s13, %s13532_s13, %s13533_s26  }
  0xad   :  { %s13468_s0 = scalar_lea.hbm %s14272_s14, 49152 }
  0xae   :  { %p13469_p10 = scmp.ne.s32.totalorder %s14272_s14, %s13468_s0  ;;  %p13472_p11 = scmp.lt.u32.totalorder %s13468_s0, %s14272_s14 }
  0xb0   :  { %p13474_p12 = pnand %p13472_p11, %p13469_p10 }
  0xb2   :  { %13477 = shalt.err (!%p13474_p12)
}
  0xb3   :  { %s13478_s27 = scalar_lea.vmem %s148_s11, 49152  ;;  %p13483_p0 = scmp.lt.s32.totalorder %s148_s11, %s148_s11 }
  0xb4   :  { %p13479_p13 = scmp.ne.s32.totalorder %s148_s11, %s13478_s27  ;;  %p13484_p1 = scmp.lt.s32.totalorder %s13478_s27, %s13478_s27 }
  0xb6   :  { %p13485_p2 = por %p13484_p1, %p13483_p0 }
  0xb8   :  { %p13486_p3 = pnand %p13485_p2, %p13479_p13 }
  0xba   :  { %13489 = shalt.err (!%p13486_p3)
}
  0xbb   :  { %s13541_s12 = smov 384   ;;  %s13542_s13 = smov 24  }
  0xbc   :  { %153 = dma.hbm_to_vmem [thread:$0]  %s14272_s14, 49152, %s148_s11, [#allocation17], %s13541_s12, %s13541_s12, %s13542_s13  }
  0xbd   :  { %s13543_s30 = smov [#allocation19]   ;;  %s13490_s4 = scalar_lea.hbm %s14273_s15, 96 }
  0xbe   :  { %s160_s17 = sshll.u32 %s13543_s30, 4  ;;  %p13491_p4 = scmp.ne.s32.totalorder %s14273_s15, %s13490_s4  ;;  %s161_s17 = int_to_ptr.vmem [resolvable:$true] %s160_s17 }
  0xbf   :  { %p13494_p5 = scmp.lt.u32.totalorder %s13490_s4, %s14273_s15 }
  0xc1   :  { %p13496_p6 = pnand %p13494_p5, %p13491_p4 }
  0xc3   :  { %13499 = shalt.err (!%p13496_p6)
}
  0xc4   :  { %s13500_s10 = scalar_lea.vmem %s161_s17, 96  ;;  %p13505_p8 = scmp.lt.s32.totalorder %s161_s17, %s161_s17 }
  0xc5   :  { %p13501_p7 = scmp.ne.s32.totalorder %s161_s17, %s13500_s10  ;;  %p13506_p9 = scmp.lt.s32.totalorder %s13500_s10, %s13500_s10 }
  0xc7   :  { %p13507_p10 = por %p13506_p9, %p13505_p8 }
  0xc9   :  { %p13508_p11 = pnand %p13507_p10, %p13501_p7 }
  0xcb   :  { %13511 = shalt.err (!%p13508_p11)
}
  0xcc   :  { %163 = dma.hbm_to_vmem [thread:$0]  %s14273_s15, 96, %s161_s17, [#allocation20]  }
  0xcd   :  { %13512 = dma.done.wait [#allocation3], 49152  }
  0xce   :  { %13513 = vsyncadd [#allocation3], 4294918144 }
  0xcf   :  { %13514 = dma.done.wait [#allocation5], 32896  }
  0xd0   :  { %13515 = vsyncadd [#allocation5], 4294934400 }
  0xd1   :  { %13516 = dma.done.wait [#allocation8], 80  }
  0xd2   :  { %13517 = vsyncadd [#allocation8], 4294967216 }
  0xd3   :  { %13518 = dma.done.wait [#allocation11], 272  }
  0xd4   :  { %13519 = vsyncadd [#allocation11], 4294967024 }
  0xd5   :  { %13520 = dma.done.wait [#allocation14], 32832  }
  0xd6   :  { %13521 = vsyncadd [#allocation14], 4294934464 }
  0xd7   :  { %13522 = dma.done.wait [#allocation17], 49280  }
  0xd8   :  { %13523 = vsyncadd [#allocation17], 4294918016 }
  0xd9   :  { %13524 = dma.done.wait [#allocation20], 96  }
  0xda   :  { %13525 = vsyncadd [#allocation20], 4294967200  ;;  %v242_v0 = vld [vmem:[#allocation2] sm:$0xff]  ;;  %v13544_v13 = vmov 1983009808   ;;  %v209_v15 = vlaneseq  ;;  %s14277_s2 = sld [smem:[#allocation28_spill]] }
  0xdb   :  { %v246_v1 = vld [vmem:[#allocation2 + $0x20] sm:$0xff]  ;;  %v207_v14 = vunpack.c.l.s4 %v13544_v13  ;;  %vm5721_vm0 = vcmask 1043456   ;;  %vm5717_vm1 = vcmask 64512  }
  0xdc   :  { %v250_v2 = vld [vmem:[#allocation2 + $0x40] sm:$0xff]  ;;  %v10622_v3 = vcombine.high %v242_v0, %v246_v1  ;;  %v10621_v4 = vcombine.low %v242_v0, %v246_v1  ;;  %v13788_v29 = vshrl.u32 %v209_v15, 7 }
  0xdd   :  { %v254_v5 = vld [vmem:[#allocation2 + $0x60] sm:$0xff]  ;;  %v208_v28 = vunpack.c.0.s8 %v207_v14 }
  0xde   :  { %v10630_v6 = vcombine.high %v250_v2, %v254_v5  ;;  %v258_v7 = vld [vmem:[#allocation2 + $0x80] sm:$0xff]  ;;  %2588 = vmatprep.subr.bf16.mxu1 %v10622_v3  ;;  %v10629_v9 = vcombine.low %v250_v2, %v254_v5 }
  0xdf   :  { %v262_v8 = vld [vmem:[#allocation2 + $0xa0] sm:$0xff]  ;;  %2589 = vmatpush1.bf16.msra.mxu1 %v10621_v4  ;;  %v13791_v38 = vsub.s32 %v208_v28, %v13788_v29 }
  0xe0   :  { %2590 = vmatprep.subr.bf16.mxu1 %v10630_v6  ;;  %v10638_v10 = vcombine.high %v258_v7, %v262_v8  ;;  %v498_v11 = vld [vmem:[#allocation2 + $0x800] sm:$0xff]  ;;  %v10637_v22 = vcombine.low %v258_v7, %v262_v8  ;;  %v13810_v8 = vld.sshfl [vmem:[%s14277_s2 + $0x8] sm:$0x33 pattern:$0x76325410] }
  0xe1   :  { %v502_v12 = vld [vmem:[#allocation2 + $0x820] sm:$0xff] }
  0xe2   :  { %v266_v16 = vld [vmem:[#allocation2 + $0xc0] sm:$0xff]  ;;  %v10878_v18 = vcombine.high %v498_v11, %v502_v12  ;;  %v10877_v19 = vcombine.low %v498_v11, %v502_v12 }
  0xe3   :  { %v270_v17 = vld [vmem:[#allocation2 + $0xe0] sm:$0xff]  ;;  %2591 = vmatpush1.bf16.msra.mxu1 %v10629_v9 }
  0xe4   :  { %v506_v20 = vld [vmem:[#allocation2 + $0x840] sm:$0xff]  ;;  %2670 = vmatprep.subr.bf16.mxu0 %v10878_v18  ;;  %2592 = vmatprep.subr.bf16.mxu1 %v10638_v10  ;;  %v10646_v26 = vcombine.high %v266_v16, %v270_v17  ;;  %v10645_v35 = vcombine.low %v266_v16, %v270_v17  ;;  %v229_v10 = vcombine.high %v13810_v8, %v13810_v8 }
  0xe5   :  { %v510_v21 = vld [vmem:[#allocation2 + $0x860] sm:$0xff]  ;;  %2671 = vmatpush1.bf16.msra.mxu0 %v10877_v19 }
  0xe6   :  { %v10886_v23 = vcombine.high %v506_v20, %v510_v21  ;;  %v514_v24 = vld [vmem:[#allocation2 + $0x880] sm:$0xff]  ;;  %v10885_v27 = vcombine.low %v506_v20, %v510_v21  ;;  %v13814_v16 = vpack.c.bf16 %v229_v10, %v229_v10 }
  0xe7   :  { %v518_v25 = vld [vmem:[#allocation2 + $0x8a0] sm:$0xff]  ;;  %2593 = vmatpush1.bf16.msra.mxu1 %v10637_v22 }
  0xe8   :  { %v274_v30 = vld [vmem:[#allocation2 + $0x100] sm:$0xff]  ;;  %2672 = vmatprep.subr.bf16.mxu0 %v10886_v23  ;;  %v10894_v32 = vcombine.high %v514_v24, %v518_v25  ;;  %2594 = vmatprep.subr.bf16.mxu1 %v10646_v26  ;;  %v10893_v37 = vcombine.low %v514_v24, %v518_v25 }
  0xe9   :  { %v278_v31 = vld [vmem:[#allocation2 + $0x120] sm:$0xff]  ;;  %2673 = vmatpush1.bf16.msra.mxu0 %v10885_v27  ;;  %2702 = vmatprep.mubr.bf16.mxu0 %v13814_v16 }
  0xea   :  { %v522_v33 = vld [vmem:[#allocation2 + $0x8c0] sm:$0xff]  ;;  %v10654_v36 = vcombine.high %v274_v30, %v278_v31  ;;  %2674 = vmatprep.subr.bf16.mxu0 %v10894_v32  ;;  %v10653_v44 = vcombine.low %v274_v30, %v278_v31 }
  0xeb   :  { %v526_v34 = vld [vmem:[#allocation2 + $0x8e0] sm:$0xff]  ;;  %2595 = vmatpush1.bf16.msra.mxu1 %v10645_v35 }
  0xec   :  { %v282_v39 = vld [vmem:[#allocation2 + $0x140] sm:$0xff]  ;;  %v10902_v41 = vcombine.high %v522_v33, %v526_v34  ;;  %2596 = vmatprep.subr.bf16.mxu1 %v10654_v36  ;;  %v10901_v47 = vcombine.low %v522_v33, %v526_v34 }
  0xed   :  { %v286_v40 = vld [vmem:[#allocation2 + $0x160] sm:$0xff]  ;;  %2675 = vmatpush1.bf16.msra.mxu0 %v10893_v37 }
  0xee   :  { %v530_v42 = vld [vmem:[#allocation2 + $0x900] sm:$0xff]  ;;  %v10662_v46 = vcombine.high %v282_v39, %v286_v40  ;;  %2676 = vmatprep.subr.bf16.mxu0 %v10902_v41  ;;  %v10661_v55 = vcombine.low %v282_v39, %v286_v40 }
  0xef   :  { %v534_v43 = vld [vmem:[#allocation2 + $0x920] sm:$0xff]  ;;  %2597 = vmatpush1.bf16.msra.mxu1 %v10653_v44 }
  0xf0   :  { %v13796_v45 = vld [vmem:[%s14277_s2] sm:$0xff]  ;;  %v10910_v51 = vcombine.high %v530_v42, %v534_v43  ;;  %2598 = vmatprep.subr.bf16.mxu1 %v10662_v46  ;;  %v10909_v57 = vcombine.low %v530_v42, %v534_v43 }
  0xf1   :  { %v13800_v48 = vrot.slane %v13796_v45, %v13791_v38  ;;  %v290_v49 = vld [vmem:[#allocation2 + $0x180] sm:$0xff]  ;;  %2677 = vmatpush1.bf16.msra.mxu0 %v10901_v47 }
  0xf2   :  { %v294_v50 = vld [vmem:[#allocation2 + $0x1a0] sm:$0xff]  ;;  %2678 = vmatprep.subr.bf16.mxu0 %v10910_v51 }
  0xf3   :  { %v538_v52 = vld [vmem:[#allocation2 + $0x940] sm:$0xff]  ;;  %v220_v54 = vcombine.high %v13800_v48, %v13800_v48  ;;  %v10670_v56 = vcombine.high %v290_v49, %v294_v50  ;;  %2599 = vmatpush1.bf16.msra.mxu1 %v10661_v55  ;;  %v10669_v0 = vcombine.low %v290_v49, %v294_v50 }
  0xf4   :  { %v542_v53 = vld [vmem:[#allocation2 + $0x960] sm:$0xff] }
  0xf5   :  { %v13804_v58 = vpack.c.bf16 %v220_v54, %v220_v54  ;;  %v298_v59 = vld [vmem:[#allocation2 + $0x1c0] sm:$0xff]  ;;  %v10918_v61 = vcombine.high %v538_v52, %v542_v53  ;;  %2600 = vmatprep.subr.bf16.mxu1 %v10670_v56  ;;  %2679 = vmatpush1.bf16.msra.mxu0 %v10909_v57  ;;  %v10917_v2 = vcombine.low %v538_v52, %v542_v53 }
  0xf6   :  { %v302_v60 = vld [vmem:[#allocation2 + $0x1e0] sm:$0xff] }
  0xf7   :  { %v546_v62 = vld [vmem:[#allocation2 + $0x980] sm:$0xff]  ;;  %2620 = vmatprep.mubr.bf16.mxu1 %v13804_v58  ;;  %v10678_v1 = vcombine.high %v298_v59, %v302_v60  ;;  %2680 = vmatprep.subr.bf16.mxu0 %v10918_v61  ;;  %v10677_v9 = vcombine.low %v298_v59, %v302_v60 }
  0xf8   :  { %v550_v63 = vld [vmem:[#allocation2 + $0x9a0] sm:$0xff]  ;;  %2601 = vmatpush1.bf16.msra.mxu1 %v10669_v0 }
  0xf9   :  { %v306_v3 = vld [vmem:[#allocation2 + $0x200] sm:$0xff]  ;;  %v10926_v5 = vcombine.high %v546_v62, %v550_v63  ;;  %2602 = vmatprep.subr.bf16.mxu1 %v10678_v1  ;;  %2681 = vmatpush1.bf16.msra.mxu0 %v10917_v2  ;;  %v10925_v12 = vcombine.low %v546_v62, %v550_v63  ;;  %v205_v1 = vcombine.high %v13796_v45, %v13796_v45 }
  0xfa   :  { %v310_v4 = vld [vmem:[#allocation2 + $0x220] sm:$0xff] }
  0xfb   :  { %v554_v6 = vld [vmem:[#allocation2 + $0x9c0] sm:$0xff]  ;;  %v10686_v11 = vcombine.high %v306_v3, %v310_v4  ;;  %2682 = vmatprep.subr.bf16.mxu0 %v10926_v5  ;;  %v10685_v19 = vcombine.low %v306_v3, %v310_v4 }
  0xfc   :  { %v558_v7 = vld [vmem:[#allocation2 + $0x9e0] sm:$0xff]  ;;  %2603 = vmatpush1.bf16.msra.mxu1 %v10677_v9 }
  0xfd   :  { %v314_v13 = vld [vmem:[#allocation2 + $0x240] sm:$0xff]  ;;  %v10934_v15 = vcombine.high %v554_v6, %v558_v7  ;;  %2604 = vmatprep.subr.bf16.mxu1 %v10686_v11  ;;  %2683 = vmatpush1.bf16.msra.mxu0 %v10925_v12  ;;  %v10933_v21 = vcombine.low %v554_v6, %v558_v7  ;;  %v13820_v11 = vrot.slane %v205_v1, %v13791_v38  ;;  %v280_v1 = vld [vmem:[#allocation2 + $0x130] sm:$0xff] }
  0xfe   :  { %v318_v14 = vld [vmem:[#allocation2 + $0x260] sm:$0xff] }
  0xff   :  { %v562_v17 = vld [vmem:[#allocation2 + $0xa00] sm:$0xff]  ;;  %v10694_v20 = vcombine.high %v314_v13, %v318_v14  ;;  %2684 = vmatprep.subr.bf16.mxu0 %v10934_v15  ;;  %v10693_v27 = vcombine.low %v314_v13, %v318_v14 }
 0x100   :  { %v566_v18 = vld [vmem:[#allocation2 + $0xa20] sm:$0xff]  ;;  %2605 = vmatpush1.bf16.msra.mxu1 %v10685_v19 }
 0x101   :  { %v322_v22 = vld [vmem:[#allocation2 + $0x280] sm:$0xff]  ;;  %v10942_v24 = vcombine.high %v562_v17, %v566_v18  ;;  %2606 = vmatprep.subr.bf16.mxu1 %v10694_v20  ;;  %2685 = vmatpush1.bf16.msra.mxu0 %v10933_v21  ;;  %v10941_v30 = vcombine.low %v562_v17, %v566_v18 }
 0x102   :  { %v326_v23 = vld [vmem:[#allocation2 + $0x2a0] sm:$0xff] }
 0x103   :  { %v570_v25 = vld [vmem:[#allocation2 + $0xa40] sm:$0xff]  ;;  %v10702_v28 = vcombine.high %v322_v22, %v326_v23  ;;  %2686 = vmatprep.subr.bf16.mxu0 %v10942_v24  ;;  %v10701_v36 = vcombine.low %v322_v22, %v326_v23  ;;  %v221_v22 = vcombine.high %v13820_v11, %v13820_v11 }
 0x104   :  { %v574_v26 = vld [vmem:[#allocation2 + $0xa60] sm:$0xff]  ;;  %2607 = vmatpush1.bf16.msra.mxu1 %v10693_v27  ;;  %v248_v27 = vld [vmem:[#allocation2 + $0x30] sm:$0xff] }
 0x105   :  { %v330_v31 = vld [vmem:[#allocation2 + $0x2c0] sm:$0xff]  ;;  %v10950_v33 = vcombine.high %v570_v25, %v574_v26  ;;  %2608 = vmatprep.subr.bf16.mxu1 %v10702_v28  ;;  %2687 = vmatpush1.bf16.msra.mxu0 %v10941_v30  ;;  %v10949_v39 = vcombine.low %v570_v25, %v574_v26  ;;  %v244_v26 = vld [vmem:[#allocation2 + $0x10] sm:$0xff]  ;;  %v13826_v28 = vpack.c.bf16 %v13800_v48, %v13800_v48 }
 0x106   :  { %v334_v32 = vld [vmem:[#allocation2 + $0x2e0] sm:$0xff] }
 0x107   :  { %v578_v34 = vld [vmem:[#allocation2 + $0xa80] sm:$0xff]  ;;  %v10710_v37 = vcombine.high %v330_v31, %v334_v32  ;;  %2688 = vmatprep.subr.bf16.mxu0 %v10950_v33  ;;  %v10709_v46 = vcombine.low %v330_v31, %v334_v32  ;;  %v13828_v33 = vpack.c.bf16 %v221_v22, %v221_v22 }
 0x108   :  { %v582_v35 = vld [vmem:[#allocation2 + $0xaa0] sm:$0xff]  ;;  %2609 = vmatpush1.bf16.msra.mxu1 %v10701_v36  ;;  %v10626_v36 = vcombine.high %v244_v26, %v248_v27 }
 0x109   :  { %v338_v40 = vld [vmem:[#allocation2 + $0x300] sm:$0xff]  ;;  %v10958_v42 = vcombine.high %v578_v34, %v582_v35  ;;  %2610 = vmatprep.subr.bf16.mxu1 %v10710_v37  ;;  %2689 = vmatpush1.bf16.msra.mxu0 %v10949_v39  ;;  %v10957_v49 = vcombine.low %v578_v34, %v582_v35  ;;  %v252_v37 = vld [vmem:[#allocation2 + $0x50] sm:$0xff] }
 0x10a   :  { %v342_v41 = vld [vmem:[#allocation2 + $0x320] sm:$0xff]  ;;  %v256_v39 = vld [vmem:[#allocation2 + $0x70] sm:$0xff] }
 0x10b   :  { %v586_v43 = vld [vmem:[#allocation2 + $0xac0] sm:$0xff]  ;;  %v10718_v47 = vcombine.high %v338_v40, %v342_v41  ;;  %2690 = vmatprep.subr.bf16.mxu0 %v10958_v42  ;;  %v10717_v55 = vcombine.low %v338_v40, %v342_v41  ;;  %v13833_v42 = vpack.c.bf16 %v13810_v8, %v13810_v8  ;;  %v10633_v8 = vcombine.low %v252_v37, %v256_v39 }
 0x10c   :  { %v590_v44 = vld [vmem:[#allocation2 + $0xae0] sm:$0xff]  ;;  %2611 = vmatpush1.bf16.msra.mxu1 %v10709_v46  ;;  %v10634_v46 = vcombine.high %v252_v37, %v256_v39  ;;  %v308_v37 = vld [vmem:[#allocation2 + $0x210] sm:$0xff] }
 0x10d   :  { %v346_v50 = vld [vmem:[#allocation2 + $0x340] sm:$0xff]  ;;  %v10966_v52 = vcombine.high %v586_v43, %v590_v44  ;;  %2612 = vmatprep.subr.bf16.mxu1 %v10718_v47  ;;  %2691 = vmatpush1.bf16.msra.mxu0 %v10957_v49  ;;  %v10965_v57 = vcombine.low %v586_v43, %v590_v44  ;;  %v10625_v44 = vcombine.low %v244_v26, %v248_v27  ;;  %v260_v47 = vld [vmem:[#allocation2 + $0x90] sm:$0xff] }
 0x10e   :  { %v350_v51 = vld [vmem:[#allocation2 + $0x360] sm:$0xff]  ;;  %v264_v49 = vld [vmem:[#allocation2 + $0xb0] sm:$0xff] }
 0x10f   :  { %v594_v53 = vld [vmem:[#allocation2 + $0xb00] sm:$0xff]  ;;  %v10726_v56 = vcombine.high %v346_v50, %v350_v51  ;;  %2692 = vmatprep.subr.bf16.mxu0 %v10966_v52  ;;  %v10725_v0 = vcombine.low %v346_v50, %v350_v51  ;;  %v300_v26 = vld [vmem:[#allocation2 + $0x1d0] sm:$0xff] }
 0x110   :  { %v598_v54 = vld [vmem:[#allocation2 + $0xb20] sm:$0xff]  ;;  %2613 = vmatpush1.bf16.msra.mxu1 %v10717_v55  ;;  %v268_v55 = vld [vmem:[#allocation2 + $0xd0] sm:$0xff] }
 0x111   :  { %v354_v59 = vld [vmem:[#allocation2 + $0x380] sm:$0xff]  ;;  %v10974_v61 = vcombine.high %v594_v53, %v598_v54  ;;  %2614 = vmatprep.subr.bf16.mxu1 %v10726_v56  ;;  %2693 = vmatpush1.bf16.msra.mxu0 %v10965_v57  ;;  %v10973_v3 = vcombine.low %v594_v53, %v598_v54  ;;  %v10642_v54 = vcombine.high %v260_v47, %v264_v49  ;;  %v272_v56 = vld [vmem:[#allocation2 + $0xf0] sm:$0xff] }
 0x112   :  { %v358_v60 = vld [vmem:[#allocation2 + $0x3a0] sm:$0xff]  ;;  %v304_v27 = vld [vmem:[#allocation2 + $0x1f0] sm:$0xff] }
 0x113   :  { %v602_v62 = vld [vmem:[#allocation2 + $0xb40] sm:$0xff]  ;;  %v10734_v2 = vcombine.high %v354_v59, %v358_v60  ;;  %2694 = vmatprep.subr.bf16.mxu0 %v10974_v61  ;;  %v10733_v10 = vcombine.low %v354_v59, %v358_v60  ;;  %v312_v39 = vld [vmem:[#allocation2 + $0x230] sm:$0xff] }
 0x114   :  { %v606_v63 = vld [vmem:[#allocation2 + $0xb60] sm:$0xff]  ;;  %2615 = vmatpush1.bf16.msra.mxu1 %v10725_v0  ;;  %v276_v0 = vld [vmem:[#allocation2 + $0x110] sm:$0xff] }
 0x115   :  { %v362_v4 = vld [vmem:[#allocation2 + $0x3c0] sm:$0xff]  ;;  %v10982_v6 = vcombine.high %v602_v62, %v606_v63  ;;  %2616 = vmatprep.subr.bf16.mxu1 %v10734_v2  ;;  %2695 = vmatpush1.bf16.msra.mxu0 %v10973_v3  ;;  %v10981_v45 = vcombine.low %v602_v62, %v606_v63  ;;  %v10641_v62 = vcombine.low %v260_v47, %v264_v49  ;;  %v316_v47 = vld [vmem:[#allocation2 + $0x250] sm:$0xff] }
 0x116   :  { %v366_v5 = vld [vmem:[#allocation2 + $0x3e0] sm:$0xff]  ;;  %v10650_v63 = vcombine.high %v268_v55, %v272_v56  ;;  %v320_v49 = vld [vmem:[#allocation2 + $0x270] sm:$0xff] }
 0x117   :  { %v610_v7 = vld [vmem:[#allocation2 + $0xb80] sm:$0xff]  ;;  %v10742_v12 = vcombine.high %v362_v4, %v366_v5  ;;  %2696 = vmatprep.subr.bf16.mxu0 %v10982_v6  ;;  %v10741_v19 = vcombine.low %v362_v4, %v366_v5  ;;  %v10649_v6 = vcombine.low %v268_v55, %v272_v56  ;;  %v324_v55 = vld [vmem:[#allocation2 + $0x290] sm:$0xff] }
 0x118   :  { %v614_v9 = vld [vmem:[#allocation2 + $0xba0] sm:$0xff]  ;;  %2617 = vmatpush1.bf16.msra.mxu1 %v10733_v10  ;;  %v288_v10 = vld [vmem:[#allocation2 + $0x170] sm:$0xff] }
 0x119   :  { %v370_v13 = vld [vmem:[#allocation2 + $0x400] sm:$0xff]  ;;  %v10990_v15 = vcombine.high %v610_v7, %v614_v9  ;;  %2618 = vmatprep.subr.bf16.mxu1 %v10742_v12  ;;  %2697 = vmatpush1.bf16.msra.mxu0 %v10981_v45  ;;  %v10989_v24 = vcombine.low %v610_v7, %v614_v9  ;;  %v10658_v7 = vcombine.high %v276_v0, %v280_v1  ;;  %v284_v9 = vld [vmem:[#allocation2 + $0x150] sm:$0xff] }
 0x11a   :  { %v374_v14 = vld [vmem:[#allocation2 + $0x420] sm:$0xff]  ;;  %v328_v56 = vld [vmem:[#allocation2 + $0x2b0] sm:$0xff] }
 0x11b   :  { %v618_v17 = vld [vmem:[#allocation2 + $0xbc0] sm:$0xff]  ;;  %v10750_v23 = vcombine.high %v370_v13, %v374_v14  ;;  %2698 = vmatprep.subr.bf16.mxu0 %v10990_v15  ;;  %v10749_v30 = vcombine.low %v370_v13, %v374_v14  ;;  %v10657_v15 = vcombine.low %v276_v0, %v280_v1  ;;  %v332_v0 = vld [vmem:[#allocation2 + $0x2d0] sm:$0xff] }
 0x11c   :  { %v622_v18 = vld [vmem:[#allocation2 + $0xbe0] sm:$0xff]  ;;  %2619 = vmatpush1.bf16.msra.mxu1 %v10741_v19  ;;  %v296_v19 = vld [vmem:[#allocation2 + $0x1b0] sm:$0xff] }
 0x11d   :  { %v378_v20 = vld [vmem:[#allocation2 + $0x440] sm:$0xff]  ;;  %v10998_v25 = vcombine.high %v618_v17, %v622_v18  ;;  %2629 = vmatprep.subr.bf16.mxu1 %v10750_v23  ;;  %2699 = vmatpush1.bf16.msra.mxu0 %v10989_v24  ;;  %v10997_v35 = vcombine.low %v618_v17, %v622_v18  ;;  %v10666_v17 = vcombine.high %v284_v9, %v288_v10  ;;  %v292_v18 = vld [vmem:[#allocation2 + $0x190] sm:$0xff] }
 0x11e   :  { %v382_v21 = vld [vmem:[#allocation2 + $0x460] sm:$0xff]  ;;  %v10665_v24 = vcombine.low %v284_v9, %v288_v10  ;;  %v336_v1 = vld [vmem:[#allocation2 + $0x2f0] sm:$0xff] }
 0x11f   :  { %v386_v31 = vld [vmem:[#allocation2 + $0x480] sm:$0xff]  ;;  %v10758_v34 = vcombine.high %v378_v20, %v382_v21  ;;  %2700 = vmatprep.subr.bf16.mxu0 %v10998_v25  ;;  %2621 = vmatmul.mubr.bf16.vlgmr.msra.gmra.mrb[0].mxu1 %v13826_v28  ;;  %v10757_v40 = vcombine.low %v378_v20, %v382_v21  ;;  %v10674_v25 = vcombine.high %v292_v18, %v296_v19  ;;  %v340_v9 = vld [vmem:[#allocation2 + $0x310] sm:$0xff] }
 0x120   :  { %v390_v32 = vld [vmem:[#allocation2 + $0x4a0] sm:$0xff]  ;;  %2630 = vmatpush1.bf16.msra.mxu1 %v10749_v30  ;;  %2661 = vmatprep.mubr.bf16.mxu1 %v13828_v33  ;;  %v344_v10 = vld [vmem:[#allocation2 + $0x330] sm:$0xff] }
 0x121   :  { %v394_v48 = vld [vmem:[#allocation2 + $0x4c0] sm:$0xff]  ;;  %2631 = vmatprep.subr.bf16.mxu1 %v10758_v34  ;;  %v10766_v43 = vcombine.high %v386_v31, %v390_v32  ;;  %2701 = vmatpush1.bf16.msra.mxu0 %v10997_v35  ;;  %v10765_v50 = vcombine.low %v386_v31, %v390_v32  ;;  %v10673_v35 = vcombine.low %v292_v18, %v296_v19  ;;  %v348_v18 = vld [vmem:[#allocation2 + $0x350] sm:$0xff] }
 0x122   :  { %v398_v41 = vld [vmem:[#allocation2 + $0x4e0] sm:$0xff]  ;;  %2834 = vmatprep.subr.bf16.mxu0 %v10626_v36  ;;  %v10682_v36 = vcombine.high %v300_v26, %v304_v27  ;;  %v352_v19 = vld [vmem:[#allocation2 + $0x370] sm:$0xff] }
 0x123   :  { %v402_v51 = vld [vmem:[#allocation2 + $0x500] sm:$0xff]  ;;  %v10774_v53 = vcombine.high %v394_v48, %v398_v41  ;;  %v10773_v57 = vcombine.low %v394_v48, %v398_v41 }
 0x124   :  { %2632 = vmatpush1.bf16.msra.mxu1 %v10757_v40  ;;  %v406_v52 = vld [vmem:[#allocation2 + $0x520] sm:$0xff]  ;;  %2703 = vmatmul.mubr.bf16.vlgmr.msra.gmra.mrb[0].mxu0 %v13833_v42 }
 0x125   :  { %2633 = vmatprep.subr.bf16.mxu1 %v10766_v43  ;;  %2835 = vmatpush1.bf16.msra.mxu0 %v10625_v44  ;;  %v410_v59 = vld [vmem:[#allocation2 + $0x540] sm:$0xff]  ;;  %v10782_v61 = vcombine.high %v402_v51, %v406_v52  ;;  %v10781_v2 = vcombine.low %v402_v51, %v406_v52  ;;  %v10681_v44 = vcombine.low %v300_v26, %v304_v27  ;;  %v356_v26 = vld [vmem:[#allocation2 + $0x390] sm:$0xff] }
 0x126   :  { %2836 = vmatprep.subr.bf16.mxu0 %v10634_v46  ;;  %2866 = vmatprep.mubr.bf16.mxu0 %v13804_v58  ;;  %v414_v60 = vld [vmem:[#allocation2 + $0x560] sm:$0xff]  ;;  %v10690_v46 = vcombine.high %v308_v37, %v312_v39  ;;  %v360_v27 = vld [vmem:[#allocation2 + $0x3b0] sm:$0xff] }
 0x127   :  { %v418_v3 = vld [vmem:[#allocation2 + $0x580] sm:$0xff]  ;;  %v10790_v5 = vcombine.high %v410_v59, %v414_v60  ;;  %v10789_v12 = vcombine.low %v410_v59, %v414_v60 }
 0x128   :  { %2634 = vmatpush1.bf16.msra.mxu1 %v10765_v50  ;;  %v422_v4 = vld [vmem:[#allocation2 + $0x5a0] sm:$0xff] }
 0x129   :  { %2635 = vmatprep.subr.bf16.mxu1 %v10774_v53  ;;  %2837 = vmatpush1.bf16.msra.mxu0 %v10633_v8  ;;  %v426_v13 = vld [vmem:[#allocation2 + $0x5c0] sm:$0xff]  ;;  %v10798_v45 = vcombine.high %v418_v3, %v422_v4  ;;  %v10797_v20 = vcombine.low %v418_v3, %v422_v4  ;;  %v10689_v8 = vcombine.low %v308_v37, %v312_v39  ;;  %v364_v37 = vld [vmem:[#allocation2 + $0x3d0] sm:$0xff] }
 0x12a   :  { %2838 = vmatprep.subr.bf16.mxu0 %v10642_v54  ;;  %v430_v14 = vld [vmem:[#allocation2 + $0x5e0] sm:$0xff]  ;;  %v10698_v54 = vcombine.high %v316_v47, %v320_v49  ;;  %v368_v39 = vld [vmem:[#allocation2 + $0x3f0] sm:$0xff] }
 0x12b   :  { %v434_v21 = vld [vmem:[#allocation2 + $0x600] sm:$0xff]  ;;  %v10806_v23 = vcombine.high %v426_v13, %v430_v14  ;;  %v10805_v30 = vcombine.low %v426_v13, %v430_v14 }
 0x12c   :  { %2636 = vmatpush1.bf16.msra.mxu1 %v10773_v57  ;;  %v438_v22 = vld [vmem:[#allocation2 + $0x620] sm:$0xff] }
 0x12d   :  { %2637 = vmatprep.subr.bf16.mxu1 %v10782_v61  ;;  %2839 = vmatpush1.bf16.msra.mxu0 %v10641_v62  ;;  %v442_v31 = vld [vmem:[#allocation2 + $0x640] sm:$0xff]  ;;  %v10814_v34 = vcombine.high %v434_v21, %v438_v22  ;;  %v10813_v40 = vcombine.low %v434_v21, %v438_v22  ;;  %v10697_v62 = vcombine.low %v316_v47, %v320_v49  ;;  %v372_v47 = vld [vmem:[#allocation2 + $0x410] sm:$0xff] }
 0x12e   :  { %2840 = vmatprep.subr.bf16.mxu0 %v10650_v63  ;;  %v446_v32 = vld [vmem:[#allocation2 + $0x660] sm:$0xff]  ;;  %v10706_v63 = vcombine.high %v324_v55, %v328_v56  ;;  %v376_v49 = vld [vmem:[#allocation2 + $0x430] sm:$0xff] }
 0x12f   :  { %v450_v48 = vld [vmem:[#allocation2 + $0x680] sm:$0xff]  ;;  %v10822_v43 = vcombine.high %v442_v31, %v446_v32  ;;  %v10821_v50 = vcombine.low %v442_v31, %v446_v32  ;;  %v243_v31 = vld [vmem:[#allocation2 + $0x8] sm:$0xff] }
 0x130   :  { %2638 = vmatpush1.bf16.msra.mxu1 %v10781_v2  ;;  %v454_v41 = vld [vmem:[#allocation2 + $0x6a0] sm:$0xff]  ;;  %v247_v32 = vld [vmem:[#allocation2 + $0x28] sm:$0xff] }
 0x131   :  { %2639 = vmatprep.subr.bf16.mxu1 %v10790_v5  ;;  %2841 = vmatpush1.bf16.msra.mxu0 %v10649_v6  ;;  %v458_v51 = vld [vmem:[#allocation2 + $0x6c0] sm:$0xff]  ;;  %v10830_v53 = vcombine.high %v450_v48, %v454_v41  ;;  %v10829_v57 = vcombine.low %v450_v48, %v454_v41  ;;  %v10705_v6 = vcombine.low %v324_v55, %v328_v56  ;;  %v251_v48 = vld [vmem:[#allocation2 + $0x48] sm:$0xff]  ;;  %v380_v56 = vld [vmem:[#allocation2 + $0x450] sm:$0xff] }
 0x132   :  { %2842 = vmatprep.subr.bf16.mxu0 %v10658_v7  ;;  %v462_v52 = vld [vmem:[#allocation2 + $0x6e0] sm:$0xff]  ;;  %v10714_v7 = vcombine.high %v332_v0, %v336_v1  ;;  %v255_v41 = vld [vmem:[#allocation2 + $0x68] sm:$0xff]  ;;  %v10754_v55 = vcombine.high %v372_v47, %v376_v49 }
 0x133   :  { %v466_v59 = vld [vmem:[#allocation2 + $0x700] sm:$0xff]  ;;  %v10838_v61 = vcombine.high %v458_v51, %v462_v52  ;;  %v10837_v2 = vcombine.low %v458_v51, %v462_v52  ;;  %v10623_v51 = vcombine.low %v243_v31, %v247_v32  ;;  %v259_v52 = vld [vmem:[#allocation2 + $0x88] sm:$0xff] }
 0x134   :  { %2640 = vmatpush1.bf16.msra.mxu1 %v10789_v12  ;;  %v470_v60 = vld [vmem:[#allocation2 + $0x720] sm:$0xff] }
 0x135   :  { %2641 = vmatprep.subr.bf16.mxu1 %v10798_v45  ;;  %2843 = vmatpush1.bf16.msra.mxu0 %v10657_v15  ;;  %v474_v3 = vld [vmem:[#allocation2 + $0x740] sm:$0xff]  ;;  %v10846_v5 = vcombine.high %v466_v59, %v470_v60  ;;  %v10845_v12 = vcombine.low %v466_v59, %v470_v60  ;;  %v10713_v15 = vcombine.low %v332_v0, %v336_v1  ;;  %v267_v60 = vld [vmem:[#allocation2 + $0xc8] sm:$0xff]  ;;  %v388_v0 = vld [vmem:[#allocation2 + $0x490] sm:$0xff] }
 0x136   :  { %2844 = vmatprep.subr.bf16.mxu0 %v10666_v17  ;;  %v478_v4 = vld [vmem:[#allocation2 + $0x760] sm:$0xff]  ;;  %v10722_v17 = vcombine.high %v340_v9, %v344_v10  ;;  %v10631_v59 = vcombine.low %v251_v48, %v255_v41  ;;  %v392_v1 = vld [vmem:[#allocation2 + $0x4b0] sm:$0xff] }
 0x137   :  { %v482_v13 = vld [vmem:[#allocation2 + $0x780] sm:$0xff]  ;;  %v10854_v45 = vcombine.high %v474_v3, %v478_v4 }
 0x138   :  { %2642 = vmatpush1.bf16.msra.mxu1 %v10797_v20  ;;  %v486_v14 = vld [vmem:[#allocation2 + $0x7a0] sm:$0xff]  ;;  %v10853_v20 = vcombine.low %v474_v3, %v478_v4  ;;  %v275_v3 = vld [vmem:[#allocation2 + $0x108] sm:$0xff] }
 0x139   :  { %2643 = vmatprep.subr.bf16.mxu1 %v10806_v23  ;;  %2845 = vmatpush1.bf16.msra.mxu0 %v10665_v24  ;;  %v490_v21 = vld [vmem:[#allocation2 + $0x7c0] sm:$0xff]  ;;  %v10862_v23 = vcombine.high %v482_v13, %v486_v14  ;;  %v10721_v24 = vcombine.low %v340_v9, %v344_v10  ;;  %v279_v4 = vld [vmem:[#allocation2 + $0x128] sm:$0xff]  ;;  %v396_v9 = vld [vmem:[#allocation2 + $0x4d0] sm:$0xff] }
 0x13a   :  { %2846 = vmatprep.subr.bf16.mxu0 %v10674_v25  ;;  %v494_v22 = vld [vmem:[#allocation2 + $0x7e0] sm:$0xff]  ;;  %v10730_v25 = vcombine.high %v348_v18, %v352_v19  ;;  %v400_v10 = vld [vmem:[#allocation2 + $0x4f0] sm:$0xff] }
 0x13c   :  { %2644 = vmatpush1.bf16.msra.mxu1 %v10805_v30  ;;  %v10861_v30 = vcombine.low %v482_v13, %v486_v14  ;;  %v283_v13 = vld [vmem:[#allocation2 + $0x148] sm:$0xff] }
 0x13d   :  { %2645 = vmatprep.subr.bf16.mxu1 %v10814_v34  ;;  %2847 = vmatpush1.bf16.msra.mxu0 %v10673_v35  ;;  %v10870_v34 = vcombine.high %v490_v21, %v494_v22  ;;  %v10729_v35 = vcombine.low %v348_v18, %v352_v19  ;;  %v287_v14 = vld [vmem:[#allocation2 + $0x168] sm:$0xff]  ;;  %v404_v18 = vld [vmem:[#allocation2 + $0x510] sm:$0xff] }
 0x13e   :  { %2848 = vmatprep.subr.bf16.mxu0 %v10682_v36  ;;  %v10738_v36 = vcombine.high %v356_v26, %v360_v27  ;;  %v408_v19 = vld [vmem:[#allocation2 + $0x530] sm:$0xff] }
 0x140   :  { %2646 = vmatpush1.bf16.msra.mxu1 %v10813_v40  ;;  %v10869_v40 = vcombine.low %v490_v21, %v494_v22  ;;  %v291_v21 = vld [vmem:[#allocation2 + $0x188] sm:$0xff] }
 0x141   :  { %2647 = vmatprep.subr.bf16.mxu1 %v10822_v43  ;;  %2849 = vmatpush1.bf16.msra.mxu0 %v10681_v44  ;;  %v10624_v43 = vcombine.high %v243_v31, %v247_v32  ;;  %v10737_v44 = vcombine.low %v356_v26, %v360_v27  ;;  %v295_v22 = vld [vmem:[#allocation2 + $0x1a8] sm:$0xff]  ;;  %v412_v26 = vld [vmem:[#allocation2 + $0x550] sm:$0xff] }
 0x142   :  { %2850 = vmatprep.subr.bf16.mxu0 %v10690_v46  ;;  %v10746_v46 = vcombine.high %v364_v37, %v368_v39  ;;  %v416_v27 = vld [vmem:[#allocation2 + $0x570] sm:$0xff]  ;;  %v299_v31 = vld [vmem:[#allocation2 + $0x1c8] sm:$0xff] }
 0x143   :  { %v303_v32 = vld [vmem:[#allocation2 + $0x1e8] sm:$0xff] }
 0x144   :  { %2648 = vmatpush1.bf16.msra.mxu1 %v10821_v50  ;;  %v13840_v50 = vpack.c.bf16 %v13820_v11, %v13820_v11 }
 0x145   :  { %2649 = vmatprep.subr.bf16.mxu1 %v10830_v53  ;;  %2851 = vmatpush1.bf16.msra.mxu0 %v10689_v8  ;;  %v263_v53 = vld [vmem:[#allocation2 + $0xa8] sm:$0xff]  ;;  %v10632_v8 = vcombine.high %v251_v48, %v255_v41 }
 0x146   :  { %2852 = vmatprep.subr.bf16.mxu0 %v10698_v54  ;;  %v10745_v54 = vcombine.low %v364_v37, %v368_v39  ;;  %v10640_v11 = vcombine.high %v259_v52, %v263_v53  ;;  %v420_v37 = vld [vmem:[#allocation2 + $0x590] sm:$0xff]  ;;  %v307_v48 = vld [vmem:[#allocation2 + $0x208] sm:$0xff] }
 0x147   :  { %v424_v39 = vld [vmem:[#allocation2 + $0x5b0] sm:$0xff]  ;;  %v311_v41 = vld [vmem:[#allocation2 + $0x228] sm:$0xff] }
 0x148   :  { %2650 = vmatpush1.bf16.msra.mxu1 %v10829_v57  ;;  %v384_v57 = vld [vmem:[#allocation2 + $0x470] sm:$0xff] }
 0x149   :  { %2651 = vmatprep.subr.bf16.mxu1 %v10838_v61  ;;  %2853 = vmatpush1.bf16.msra.mxu0 %v10697_v62  ;;  %v271_v61 = vld [vmem:[#allocation2 + $0xe8] sm:$0xff]  ;;  %v10753_v62 = vcombine.low %v372_v47, %v376_v49  ;;  %v428_v47 = vld [vmem:[#allocation2 + $0x5d0] sm:$0xff] }
 0x14a   :  { %2854 = vmatprep.subr.bf16.mxu0 %v10706_v63  ;;  %v10762_v63 = vcombine.high %v380_v56, %v384_v57  ;;  %v432_v49 = vld [vmem:[#allocation2 + $0x5f0] sm:$0xff] }
 0x14c   :  { %2652 = vmatpush1.bf16.msra.mxu1 %v10837_v2  ;;  %v10639_v2 = vcombine.low %v259_v52, %v263_v53  ;;  %v315_v52 = vld [vmem:[#allocation2 + $0x248] sm:$0xff] }
 0x14d   :  { %2653 = vmatprep.subr.bf16.mxu1 %v10846_v5  ;;  %2855 = vmatpush1.bf16.msra.mxu0 %v10705_v6  ;;  %v10648_v5 = vcombine.high %v267_v60, %v271_v61  ;;  %v10761_v6 = vcombine.low %v380_v56, %v384_v57  ;;  %v319_v53 = vld [vmem:[#allocation2 + $0x268] sm:$0xff]  ;;  %v10810_v56 = vcombine.high %v428_v47, %v432_v49  ;;  %v440_v57 = vld [vmem:[#allocation2 + $0x630] sm:$0xff] }
 0x14e   :  { %2856 = vmatprep.subr.bf16.mxu0 %v10714_v7  ;;  %v10770_v7 = vcombine.high %v388_v0, %v392_v1 }
 0x150   :  { %2654 = vmatpush1.bf16.msra.mxu1 %v10845_v12  ;;  %v10647_v12 = vcombine.low %v267_v60, %v271_v61  ;;  %v323_v60 = vld [vmem:[#allocation2 + $0x288] sm:$0xff] }
 0x151   :  { %2655 = vmatprep.subr.bf16.mxu1 %v10854_v45  ;;  %2857 = vmatpush1.bf16.msra.mxu0 %v10713_v15  ;;  %v10656_v45 = vcombine.high %v275_v3, %v279_v4  ;;  %v10769_v15 = vcombine.low %v388_v0, %v392_v1  ;;  %v327_v61 = vld [vmem:[#allocation2 + $0x2a8] sm:$0xff]  ;;  %v448_v1 = vld [vmem:[#allocation2 + $0x670] sm:$0xff] }
 0x152   :  { %2858 = vmatprep.subr.bf16.mxu0 %v10722_v17  ;;  %v10778_v17 = vcombine.high %v396_v9, %v400_v10 }
 0x154   :  { %2656 = vmatpush1.bf16.msra.mxu1 %v10853_v20  ;;  %v10655_v20 = vcombine.low %v275_v3, %v279_v4  ;;  %v331_v3 = vld [vmem:[#allocation2 + $0x2c8] sm:$0xff] }
 0x155   :  { %2657 = vmatprep.subr.bf16.mxu1 %v10862_v23  ;;  %2859 = vmatpush1.bf16.msra.mxu0 %v10721_v24  ;;  %v10664_v23 = vcombine.high %v283_v13, %v287_v14  ;;  %v10777_v24 = vcombine.low %v396_v9, %v400_v10  ;;  %v335_v4 = vld [vmem:[#allocation2 + $0x2e8] sm:$0xff]  ;;  %v456_v10 = vld [vmem:[#allocation2 + $0x6b0] sm:$0xff] }
 0x156   :  { %2860 = vmatprep.subr.bf16.mxu0 %v10730_v25  ;;  %v10786_v25 = vcombine.high %v404_v18, %v408_v19 }
 0x158   :  { %2658 = vmatpush1.bf16.msra.mxu1 %v10861_v30  ;;  %v10663_v30 = vcombine.low %v283_v13, %v287_v14  ;;  %v339_v13 = vld [vmem:[#allocation2 + $0x308] sm:$0xff] }
 0x159   :  { %2659 = vmatprep.subr.bf16.mxu1 %v10870_v34  ;;  %2861 = vmatpush1.bf16.msra.mxu0 %v10729_v35  ;;  %v10672_v34 = vcombine.high %v291_v21, %v295_v22  ;;  %v10785_v35 = vcombine.low %v404_v18, %v408_v19  ;;  %v343_v14 = vld [vmem:[#allocation2 + $0x328] sm:$0xff]  ;;  %v464_v19 = vld [vmem:[#allocation2 + $0x6f0] sm:$0xff] }
 0x15a   :  { %2862 = vmatprep.subr.bf16.mxu0 %v10738_v36  ;;  %v10794_v36 = vcombine.high %v412_v26, %v416_v27 }
 0x15c   :  { %2660 = vmatpush1.bf16.msra.mxu1 %v10869_v40  ;;  %v10671_v40 = vcombine.low %v291_v21, %v295_v22  ;;  %v347_v21 = vld [vmem:[#allocation2 + $0x348] sm:$0xff] }
 0x15d   :  { %2711 = vmatprep.subr.bf16.mxu1 %v10624_v43  ;;  %2863 = vmatpush1.bf16.msra.mxu0 %v10737_v44  ;;  %v10680_v43 = vcombine.high %v299_v31, %v303_v32  ;;  %v10793_v44 = vcombine.low %v412_v26, %v416_v27  ;;  %v351_v22 = vld [vmem:[#allocation2 + $0x368] sm:$0xff]  ;;  %v472_v27 = vld [vmem:[#allocation2 + $0x730] sm:$0xff] }
 0x15e   :  { %2864 = vmatprep.subr.bf16.mxu0 %v10746_v46  ;;  %v10802_v46 = vcombine.high %v420_v37, %v424_v39 }
 0x15f   :  { %2662 = vmatmul.mubr.bf16.vlgmr.msra.gmra.mrb[0].mxu1 %v13840_v50 }
 0x160   :  { %2712 = vmatpush1.bf16.msra.mxu1 %v10623_v51  ;;  %2743 = vmatprep.mubr.bf16.mxu1 %v13804_v58  ;;  %v10679_v51 = vcombine.low %v299_v31, %v303_v32  ;;  %v355_v31 = vld [vmem:[#allocation2 + $0x388] sm:$0xff] }
 0x161   :  { %2713 = vmatprep.subr.bf16.mxu1 %v10632_v8  ;;  %2865 = vmatpush1.bf16.msra.mxu0 %v10745_v54  ;;  %v10688_v8 = vcombine.high %v307_v48, %v311_v41  ;;  %v10801_v54 = vcombine.low %v420_v37, %v424_v39  ;;  %v359_v32 = vld [vmem:[#allocation2 + $0x3a8] sm:$0xff]  ;;  %v480_v39 = vld [vmem:[#allocation2 + $0x770] sm:$0xff] }
 0x162   :  { %2875 = vmatprep.subr.bf16.mxu0 %v10754_v55  ;;  %v436_v55 = vld [vmem:[#allocation2 + $0x610] sm:$0xff] }
 0x163   :  { %v10818_v0 = vcombine.high %v436_v55, %v440_v57 }
 0x164   :  { %2714 = vmatpush1.bf16.msra.mxu1 %v10631_v59  ;;  %2867 = vmatmul.mubr.bf16.vlgmr.msra.gmra.mrb[4].mxu0 %v13826_v28  ;;  %v10687_v59 = vcombine.low %v307_v48, %v311_v41  ;;  %v363_v48 = vld [vmem:[#allocation2 + $0x3c8] sm:$0xff] }
 0x165   :  { %2715 = vmatprep.subr.bf16.mxu1 %v10640_v11  ;;  %2876 = vmatpush1.bf16.msra.mxu0 %v10753_v62  ;;  %v10696_v11 = vcombine.high %v315_v52, %v319_v53  ;;  %v10809_v62 = vcombine.low %v428_v47, %v432_v49  ;;  %v367_v41 = vld [vmem:[#allocation2 + $0x3e8] sm:$0xff]  ;;  %v488_v49 = vld [vmem:[#allocation2 + $0x7b0] sm:$0xff] }
 0x166   :  { %2877 = vmatprep.subr.bf16.mxu0 %v10762_v63  ;;  %2907 = vmatprep.mubr.bf16.mxu0 %v13828_v33  ;;  %v444_v63 = vld [vmem:[#allocation2 + $0x650] sm:$0xff] }
 0x167   :  { %v10826_v9 = vcombine.high %v444_v63, %v448_v1 }
 0x168   :  { %2716 = vmatpush1.bf16.msra.mxu1 %v10639_v2  ;;  %v10695_v2 = vcombine.low %v315_v52, %v319_v53  ;;  %v371_v52 = vld [vmem:[#allocation2 + $0x408] sm:$0xff] }
 0x169   :  { %2717 = vmatprep.subr.bf16.mxu1 %v10648_v5  ;;  %2878 = vmatpush1.bf16.msra.mxu0 %v10761_v6  ;;  %v10704_v5 = vcombine.high %v323_v60, %v327_v61  ;;  %v10817_v6 = vcombine.low %v436_v55, %v440_v57  ;;  %v375_v53 = vld [vmem:[#allocation2 + $0x428] sm:$0xff]  ;;  %v492_v55 = vld [vmem:[#allocation2 + $0x7d0] sm:$0xff] }
 0x16a   :  { %2879 = vmatprep.subr.bf16.mxu0 %v10770_v7  ;;  %v452_v7 = vld [vmem:[#allocation2 + $0x690] sm:$0xff] }
 0x16b   :  { %v10834_v18 = vcombine.high %v452_v7, %v456_v10  ;;  %v496_v57 = vld [vmem:[#allocation2 + $0x7f0] sm:$0xff] }
 0x16c   :  { %2718 = vmatpush1.bf16.msra.mxu1 %v10647_v12  ;;  %v10703_v12 = vcombine.low %v323_v60, %v327_v61  ;;  %v379_v60 = vld [vmem:[#allocation2 + $0x448] sm:$0xff] }
 0x16d   :  { %2719 = vmatprep.subr.bf16.mxu1 %v10656_v45  ;;  %2880 = vmatpush1.bf16.msra.mxu0 %v10769_v15  ;;  %v10712_v45 = vcombine.high %v331_v3, %v335_v4  ;;  %v10825_v15 = vcombine.low %v444_v63, %v448_v1  ;;  %v383_v61 = vld [vmem:[#allocation2 + $0x468] sm:$0xff]  ;;  %v500_v63 = vld [vmem:[#allocation2 + $0x810] sm:$0xff] }
 0x16e   :  { %2881 = vmatprep.subr.bf16.mxu0 %v10778_v17  ;;  %v460_v17 = vld [vmem:[#allocation2 + $0x6d0] sm:$0xff] }
 0x16f   :  { %v10842_v26 = vcombine.high %v460_v17, %v464_v19  ;;  %v504_v1 = vld [vmem:[#allocation2 + $0x830] sm:$0xff] }
 0x170   :  { %2720 = vmatpush1.bf16.msra.mxu1 %v10655_v20  ;;  %v10711_v20 = vcombine.low %v331_v3, %v335_v4  ;;  %v387_v3 = vld [vmem:[#allocation2 + $0x488] sm:$0xff] }
 0x171   :  { %2721 = vmatprep.subr.bf16.mxu1 %v10664_v23  ;;  %2882 = vmatpush1.bf16.msra.mxu0 %v10777_v24  ;;  %v10720_v23 = vcombine.high %v339_v13, %v343_v14  ;;  %v10833_v24 = vcombine.low %v452_v7, %v456_v10  ;;  %v391_v4 = vld [vmem:[#allocation2 + $0x4a8] sm:$0xff]  ;;  %v508_v7 = vld [vmem:[#allocation2 + $0x850] sm:$0xff] }
 0x172   :  { %2883 = vmatprep.subr.bf16.mxu0 %v10786_v25  ;;  %v468_v25 = vld [vmem:[#allocation2 + $0x710] sm:$0xff] }
 0x173   :  { %v10850_v37 = vcombine.high %v468_v25, %v472_v27  ;;  %v512_v10 = vld [vmem:[#allocation2 + $0x870] sm:$0xff] }
 0x174   :  { %2722 = vmatpush1.bf16.msra.mxu1 %v10663_v30  ;;  %v10719_v30 = vcombine.low %v339_v13, %v343_v14  ;;  %v395_v13 = vld [vmem:[#allocation2 + $0x4c8] sm:$0xff] }
 0x175   :  { %2723 = vmatprep.subr.bf16.mxu1 %v10672_v34  ;;  %2884 = vmatpush1.bf16.msra.mxu0 %v10785_v35  ;;  %v10728_v34 = vcombine.high %v347_v21, %v351_v22  ;;  %v10841_v35 = vcombine.low %v460_v17, %v464_v19  ;;  %v399_v14 = vld [vmem:[#allocation2 + $0x4e8] sm:$0xff]  ;;  %v516_v17 = vld [vmem:[#allocation2 + $0x890] sm:$0xff] }
 0x176   :  { %2885 = vmatprep.subr.bf16.mxu0 %v10794_v36  ;;  %v476_v36 = vld [vmem:[#allocation2 + $0x750] sm:$0xff] }
 0x177   :  { %v10858_v47 = vcombine.high %v476_v36, %v480_v39  ;;  %v520_v19 = vld [vmem:[#allocation2 + $0x8b0] sm:$0xff] }
 0x178   :  { %2724 = vmatpush1.bf16.msra.mxu1 %v10671_v40  ;;  %v10727_v40 = vcombine.low %v347_v21, %v351_v22  ;;  %v403_v21 = vld [vmem:[#allocation2 + $0x508] sm:$0xff] }
 0x179   :  { %2725 = vmatprep.subr.bf16.mxu1 %v10680_v43  ;;  %2886 = vmatpush1.bf16.msra.mxu0 %v10793_v44  ;;  %v10736_v43 = vcombine.high %v355_v31, %v359_v32  ;;  %v10849_v44 = vcombine.low %v468_v25, %v472_v27  ;;  %v407_v22 = vld [vmem:[#allocation2 + $0x528] sm:$0xff]  ;;  %v524_v25 = vld [vmem:[#allocation2 + $0x8d0] sm:$0xff] }
 0x17a   :  { %2887 = vmatprep.subr.bf16.mxu0 %v10802_v46  ;;  %v484_v46 = vld [vmem:[#allocation2 + $0x790] sm:$0xff] }
 0x17b   :  { %v528_v27 = vld [vmem:[#allocation2 + $0x8f0] sm:$0xff] }
 0x17c   :  { %2726 = vmatpush1.bf16.msra.mxu1 %v10679_v51  ;;  %v10735_v51 = vcombine.low %v355_v31, %v359_v32  ;;  %v411_v31 = vld [vmem:[#allocation2 + $0x548] sm:$0xff] }
 0x17d   :  { %2727 = vmatprep.subr.bf16.mxu1 %v10688_v8  ;;  %2888 = vmatpush1.bf16.msra.mxu0 %v10801_v54  ;;  %v10744_v8 = vcombine.high %v363_v48, %v367_v41  ;;  %v10857_v54 = vcombine.low %v476_v36, %v480_v39  ;;  %v415_v32 = vld [vmem:[#allocation2 + $0x568] sm:$0xff]  ;;  %v532_v36 = vld [vmem:[#allocation2 + $0x910] sm:$0xff] }
 0x17e   :  { %2889 = vmatprep.subr.bf16.mxu0 %v10810_v56  ;;  %v10866_v56 = vcombine.high %v484_v46, %v488_v49  ;;  %v536_v39 = vld [vmem:[#allocation2 + $0x930] sm:$0xff] }
 0x180   :  { %2728 = vmatpush1.bf16.msra.mxu1 %v10687_v59  ;;  %v10743_v59 = vcombine.low %v363_v48, %v367_v41  ;;  %v419_v48 = vld [vmem:[#allocation2 + $0x588] sm:$0xff] }
 0x181   :  { %2729 = vmatprep.subr.bf16.mxu1 %v10696_v11  ;;  %2890 = vmatpush1.bf16.msra.mxu0 %v10809_v62  ;;  %v10752_v11 = vcombine.high %v371_v52, %v375_v53  ;;  %v10865_v62 = vcombine.low %v484_v46, %v488_v49  ;;  %v423_v41 = vld [vmem:[#allocation2 + $0x5a8] sm:$0xff]  ;;  %v540_v46 = vld [vmem:[#allocation2 + $0x950] sm:$0xff] }
 0x182   :  { %2891 = vmatprep.subr.bf16.mxu0 %v10818_v0  ;;  %v10874_v0 = vcombine.high %v492_v55, %v496_v57  ;;  %v544_v49 = vld [vmem:[#allocation2 + $0x970] sm:$0xff] }
 0x184   :  { %2730 = vmatpush1.bf16.msra.mxu1 %v10695_v2  ;;  %v10751_v2 = vcombine.low %v371_v52, %v375_v53  ;;  %v427_v52 = vld [vmem:[#allocation2 + $0x5c8] sm:$0xff] }
 0x185   :  { %2731 = vmatprep.subr.bf16.mxu1 %v10704_v5  ;;  %2892 = vmatpush1.bf16.msra.mxu0 %v10817_v6  ;;  %v10760_v5 = vcombine.high %v379_v60, %v383_v61  ;;  %v10873_v6 = vcombine.low %v492_v55, %v496_v57  ;;  %v431_v53 = vld [vmem:[#allocation2 + $0x5e8] sm:$0xff]  ;;  %v548_v55 = vld [vmem:[#allocation2 + $0x990] sm:$0xff] }
 0x186   :  { %2893 = vmatprep.subr.bf16.mxu0 %v10826_v9  ;;  %v10882_v9 = vcombine.high %v500_v63, %v504_v1  ;;  %v552_v57 = vld [vmem:[#allocation2 + $0x9b0] sm:$0xff] }
 0x188   :  { %2732 = vmatpush1.bf16.msra.mxu1 %v10703_v12  ;;  %v10759_v12 = vcombine.low %v379_v60, %v383_v61  ;;  %v435_v60 = vld [vmem:[#allocation2 + $0x608] sm:$0xff] }
 0x189   :  { %2733 = vmatprep.subr.bf16.mxu1 %v10712_v45  ;;  %2894 = vmatpush1.bf16.msra.mxu0 %v10825_v15  ;;  %v10768_v45 = vcombine.high %v387_v3, %v391_v4  ;;  %v10881_v15 = vcombine.low %v500_v63, %v504_v1  ;;  %v439_v61 = vld [vmem:[#allocation2 + $0x628] sm:$0xff]  ;;  %v556_v63 = vld [vmem:[#allocation2 + $0x9d0] sm:$0xff] }
 0x18a   :  { %2895 = vmatprep.subr.bf16.mxu0 %v10834_v18  ;;  %v10890_v18 = vcombine.high %v508_v7, %v512_v10  ;;  %v560_v1 = vld [vmem:[#allocation2 + $0x9f0] sm:$0xff] }
 0x18c   :  { %2734 = vmatpush1.bf16.msra.mxu1 %v10711_v20  ;;  %v10767_v20 = vcombine.low %v387_v3, %v391_v4  ;;  %v443_v3 = vld [vmem:[#allocation2 + $0x648] sm:$0xff] }
 0x18d   :  { %2735 = vmatprep.subr.bf16.mxu1 %v10720_v23  ;;  %2896 = vmatpush1.bf16.msra.mxu0 %v10833_v24  ;;  %v10776_v23 = vcombine.high %v395_v13, %v399_v14  ;;  %v10889_v24 = vcombine.low %v508_v7, %v512_v10  ;;  %v447_v4 = vld [vmem:[#allocation2 + $0x668] sm:$0xff]  ;;  %v564_v7 = vld [vmem:[#allocation2 + $0xa10] sm:$0xff]  ;;  %v10938_v10 = vcombine.high %v556_v63, %v560_v1 }
 0x18e   :  { %2897 = vmatprep.subr.bf16.mxu0 %v10842_v26  ;;  %v10898_v26 = vcombine.high %v516_v17, %v520_v19 }
 0x190   :  { %2736 = vmatpush1.bf16.msra.mxu1 %v10719_v30  ;;  %v10775_v30 = vcombine.low %v395_v13, %v399_v14  ;;  %v451_v13 = vld [vmem:[#allocation2 + $0x688] sm:$0xff] }
 0x191   :  { %2737 = vmatprep.subr.bf16.mxu1 %v10728_v34  ;;  %2898 = vmatpush1.bf16.msra.mxu0 %v10841_v35  ;;  %v10784_v34 = vcombine.high %v403_v21, %v407_v22  ;;  %v10897_v35 = vcombine.low %v516_v17, %v520_v19  ;;  %v455_v14 = vld [vmem:[#allocation2 + $0x6a8] sm:$0xff]  ;;  %v572_v17 = vld [vmem:[#allocation2 + $0xa50] sm:$0xff] }
 0x192   :  { %2899 = vmatprep.subr.bf16.mxu0 %v10850_v37  ;;  %v10906_v37 = vcombine.high %v524_v25, %v528_v27 }
 0x194   :  { %2738 = vmatpush1.bf16.msra.mxu1 %v10727_v40  ;;  %v10783_v40 = vcombine.low %v403_v21, %v407_v22  ;;  %v459_v21 = vld [vmem:[#allocation2 + $0x6c8] sm:$0xff] }
 0x195   :  { %2739 = vmatprep.subr.bf16.mxu1 %v10736_v43  ;;  %2900 = vmatpush1.bf16.msra.mxu0 %v10849_v44  ;;  %v10792_v43 = vcombine.high %v411_v31, %v415_v32  ;;  %v10905_v44 = vcombine.low %v524_v25, %v528_v27  ;;  %v463_v22 = vld [vmem:[#allocation2 + $0x6e8] sm:$0xff]  ;;  %v580_v25 = vld [vmem:[#allocation2 + $0xa90] sm:$0xff] }
 0x196   :  { %2901 = vmatprep.subr.bf16.mxu0 %v10858_v47  ;;  %v10914_v47 = vcombine.high %v532_v36, %v536_v39 }
 0x198   :  { %2740 = vmatpush1.bf16.msra.mxu1 %v10735_v51  ;;  %v10791_v51 = vcombine.low %v411_v31, %v415_v32  ;;  %v467_v31 = vld [vmem:[#allocation2 + $0x708] sm:$0xff] }
 0x199   :  { %2741 = vmatprep.subr.bf16.mxu1 %v10744_v8  ;;  %2902 = vmatpush1.bf16.msra.mxu0 %v10857_v54  ;;  %v10800_v8 = vcombine.high %v419_v48, %v423_v41  ;;  %v10913_v54 = vcombine.low %v532_v36, %v536_v39  ;;  %v471_v32 = vld [vmem:[#allocation2 + $0x728] sm:$0xff]  ;;  %v588_v36 = vld [vmem:[#allocation2 + $0xad0] sm:$0xff] }
 0x19a   :  { %2903 = vmatprep.subr.bf16.mxu0 %v10866_v56  ;;  %v10922_v56 = vcombine.high %v540_v46, %v544_v49 }
 0x19c   :  { %2742 = vmatpush1.bf16.msra.mxu1 %v10743_v59  ;;  %v10799_v59 = vcombine.low %v419_v48, %v423_v41  ;;  %v475_v48 = vld [vmem:[#allocation2 + $0x748] sm:$0xff] }
 0x19d   :  { %2752 = vmatprep.subr.bf16.mxu1 %v10752_v11  ;;  %2904 = vmatpush1.bf16.msra.mxu0 %v10865_v62  ;;  %v10808_v11 = vcombine.high %v427_v52, %v431_v53  ;;  %v10921_v62 = vcombine.low %v540_v46, %v544_v49  ;;  %v479_v41 = vld [vmem:[#allocation2 + $0x768] sm:$0xff]  ;;  %v596_v46 = vld [vmem:[#allocation2 + $0xb10] sm:$0xff] }
 0x19e   :  { %2905 = vmatprep.subr.bf16.mxu0 %v10874_v0  ;;  %v10930_v0 = vcombine.high %v548_v55, %v552_v57 }
 0x19f   :  { %2744 = vmatmul.mubr.bf16.vlgmr.msra.gmra.mrb[4].mxu1 %v13826_v28 }
 0x1a0   :  { %2753 = vmatpush1.bf16.msra.mxu1 %v10751_v2  ;;  %2784 = vmatprep.mubr.bf16.mxu1 %v13828_v33  ;;  %v10807_v2 = vcombine.low %v427_v52, %v431_v53  ;;  %v483_v52 = vld [vmem:[#allocation2 + $0x788] sm:$0xff] }
 0x1a1   :  { %2754 = vmatprep.subr.bf16.mxu1 %v10760_v5  ;;  %2906 = vmatpush1.bf16.msra.mxu0 %v10873_v6  ;;  %v10816_v5 = vcombine.high %v435_v60, %v439_v61  ;;  %v10929_v6 = vcombine.low %v548_v55, %v552_v57  ;;  %v487_v53 = vld [vmem:[#allocation2 + $0x7a8] sm:$0xff]  ;;  %v604_v55 = vld [vmem:[#allocation2 + $0xb50] sm:$0xff] }
 0x1a2   :  { %2916 = vmatprep.subr.bf16.mxu0 %v10882_v9  ;;  %v568_v9 = vld [vmem:[#allocation2 + $0xa30] sm:$0xff] }
 0x1a3   :  { %v10946_v19 = vcombine.high %v564_v7, %v568_v9 }
 0x1a4   :  { %2755 = vmatpush1.bf16.msra.mxu1 %v10759_v12  ;;  %2908 = vmatmul.mubr.bf16.vlgmr.msra.gmra.mrb[4].mxu0 %v13840_v50  ;;  %v10815_v12 = vcombine.low %v435_v60, %v439_v61  ;;  %v491_v60 = vld [vmem:[#allocation2 + $0x7c8] sm:$0xff] }
 0x1a5   :  { %2756 = vmatprep.subr.bf16.mxu1 %v10768_v45  ;;  %2917 = vmatpush1.bf16.msra.mxu0 %v10881_v15  ;;  %v10824_v45 = vcombine.high %v443_v3, %v447_v4  ;;  %v10937_v15 = vcombine.low %v556_v63, %v560_v1  ;;  %v495_v61 = vld [vmem:[#allocation2 + $0x7e8] sm:$0xff]  ;;  %v612_v63 = vld [vmem:[#allocation2 + $0xb90] sm:$0xff] }
 0x1a6   :  { %2918 = vmatprep.subr.bf16.mxu0 %v10890_v18  ;;  %2948 = vmatprep.mubr.bf16.mxu0 %v13814_v16  ;;  %v576_v18 = vld [vmem:[#allocation2 + $0xa70] sm:$0xff] }
 0x1a7   :  { %v10954_v27 = vcombine.high %v572_v17, %v576_v18 }
 0x1a8   :  { %2757 = vmatpush1.bf16.msra.mxu1 %v10767_v20  ;;  %v10823_v20 = vcombine.low %v443_v3, %v447_v4  ;;  %v499_v3 = vld [vmem:[#allocation2 + $0x808] sm:$0xff] }
 0x1a9   :  { %2758 = vmatprep.subr.bf16.mxu1 %v10776_v23  ;;  %2919 = vmatpush1.bf16.msra.mxu0 %v10889_v24  ;;  %v10832_v23 = vcombine.high %v451_v13, %v455_v14  ;;  %v10945_v24 = vcombine.low %v564_v7, %v568_v9  ;;  %v503_v4 = vld [vmem:[#allocation2 + $0x828] sm:$0xff]  ;;  %v620_v7 = vld [vmem:[#allocation2 + $0xbd0] sm:$0xff] }
 0x1aa   :  { %2920 = vmatprep.subr.bf16.mxu0 %v10898_v26  ;;  %v584_v26 = vld [vmem:[#allocation2 + $0xab0] sm:$0xff] }
 0x1ab   :  { %v10962_v39 = vcombine.high %v580_v25, %v584_v26  ;;  %v624_v9 = vld [vmem:[#allocation2 + $0xbf0] sm:$0xff] }
 0x1ac   :  { %2759 = vmatpush1.bf16.msra.mxu1 %v10775_v30  ;;  %v10831_v30 = vcombine.low %v451_v13, %v455_v14  ;;  %v507_v13 = vld [vmem:[#allocation2 + $0x848] sm:$0xff] }
 0x1ad   :  { %2760 = vmatprep.subr.bf16.mxu1 %v10784_v34  ;;  %2921 = vmatpush1.bf16.msra.mxu0 %v10897_v35  ;;  %v10840_v34 = vcombine.high %v459_v21, %v463_v22  ;;  %v10953_v35 = vcombine.low %v572_v17, %v576_v18  ;;  %v511_v14 = vld [vmem:[#allocation2 + $0x868] sm:$0xff]  ;;  %v11002_v17 = vcombine.high %v620_v7, %v624_v9 }
 0x1ae   :  { %2922 = vmatprep.subr.bf16.mxu0 %v10906_v37  ;;  %v592_v37 = vld [vmem:[#allocation2 + $0xaf0] sm:$0xff]  ;;  %v10879_v18 = vcombine.low %v499_v3, %v503_v4 }
 0x1af   :  { %v10970_v49 = vcombine.high %v588_v36, %v592_v37 }
 0x1b0   :  { %2761 = vmatpush1.bf16.msra.mxu1 %v10783_v40  ;;  %v10839_v40 = vcombine.low %v459_v21, %v463_v22  ;;  %v12219_v21 = vld [vmem:[#allocation6 + $0x4] ss:$16 sps:$4 sm:$0xff]   ;;  %v10888_v22 = vcombine.high %v507_v13, %v511_v14 }
 0x1b1   :  { %2762 = vmatprep.subr.bf16.mxu1 %v10792_v43  ;;  %2923 = vmatpush1.bf16.msra.mxu0 %v10905_v44  ;;  %v10848_v43 = vcombine.high %v467_v31, %v471_v32  ;;  %v10961_v44 = vcombine.low %v580_v25, %v584_v26  ;;  %v523_v25 = vld [vmem:[#allocation2 + $0x8c8] sm:$0xff] }
 0x1b2   :  { %2924 = vmatprep.subr.bf16.mxu0 %v10914_v47  ;;  %v600_v47 = vld [vmem:[#allocation2 + $0xb30] sm:$0xff]  ;;  %v527_v26 = vld [vmem:[#allocation2 + $0x8e8] sm:$0xff] }
 0x1b3   :  { %v10978_v57 = vcombine.high %v596_v46, %v600_v47 }
 0x1b4   :  { %2763 = vmatpush1.bf16.msra.mxu1 %v10791_v51  ;;  %v10847_v51 = vcombine.low %v467_v31, %v471_v32 }
 0x1b5   :  { %2764 = vmatprep.subr.bf16.mxu1 %v10800_v8  ;;  %2925 = vmatpush1.bf16.msra.mxu0 %v10913_v54  ;;  %v10856_v8 = vcombine.high %v475_v48, %v479_v41  ;;  %v10969_v54 = vcombine.low %v588_v36, %v592_v37  ;;  %v12220_v36 = vld [vmem:[#allocation6 + $0x20] ss:$16 sps:$4 sm:$0xff]   ;;  %v12225_v37 = vld [vmem:[#allocation6 + $0x44] ss:$16 sps:$4 sm:$0xff]  }
 0x1b6   :  { %2926 = vmatprep.subr.bf16.mxu0 %v10922_v56  ;;  %v608_v56 = vld [vmem:[#allocation2 + $0xb70] sm:$0xff] }
 0x1b7   :  { %v10986_v1 = vcombine.high %v604_v55, %v608_v56 }
 0x1b8   :  { %2765 = vmatpush1.bf16.msra.mxu1 %v10799_v59  ;;  %v10855_v59 = vcombine.low %v475_v48, %v479_v41  ;;  %v539_v48 = vld [vmem:[#allocation2 + $0x948] sm:$0xff] }
 0x1b9   :  { %2766 = vmatprep.subr.bf16.mxu1 %v10808_v11  ;;  %2927 = vmatpush1.bf16.msra.mxu0 %v10921_v62  ;;  %v10864_v11 = vcombine.high %v483_v52, %v487_v53  ;;  %v10977_v62 = vcombine.low %v596_v46, %v600_v47  ;;  %v543_v41 = vld [vmem:[#allocation2 + $0x968] sm:$0xff] }
 0x1ba   :  { %2928 = vmatprep.subr.bf16.mxu0 %v10930_v0  ;;  %v616_v0 = vld [vmem:[#allocation2 + $0xbb0] sm:$0xff] }
 0x1bc   :  { %2767 = vmatpush1.bf16.msra.mxu1 %v10807_v2  ;;  %v10863_v2 = vcombine.low %v483_v52, %v487_v53  ;;  %v12226_v52 = vld [vmem:[#allocation6 + $0x60] ss:$16 sps:$4 sm:$0xff]   ;;  %v12231_v53 = vld [vmem:[#allocation6 + $0x84] ss:$16 sps:$4 sm:$0xff]  }
 0x1bd   :  { %2768 = vmatprep.subr.bf16.mxu1 %v10816_v5  ;;  %2929 = vmatpush1.bf16.msra.mxu0 %v10929_v6  ;;  %v10872_v5 = vcombine.high %v491_v60, %v495_v61  ;;  %v10985_v6 = vcombine.low %v604_v55, %v608_v56  ;;  %v555_v55 = vld [vmem:[#allocation2 + $0x9c8] sm:$0xff] }
 0x1be   :  { %2930 = vmatprep.subr.bf16.mxu0 %v10938_v10  ;;  %v10994_v10 = vcombine.high %v612_v63, %v616_v0  ;;  %v559_v56 = vld [vmem:[#allocation2 + $0x9e8] sm:$0xff] }
 0x1c0   :  { %2769 = vmatpush1.bf16.msra.mxu1 %v10815_v12  ;;  %v10871_v12 = vcombine.low %v491_v60, %v495_v61 }
 0x1c1   :  { %2770 = vmatprep.subr.bf16.mxu1 %v10824_v45  ;;  %2931 = vmatpush1.bf16.msra.mxu0 %v10937_v15  ;;  %v10880_v45 = vcombine.high %v499_v3, %v503_v4  ;;  %v10993_v15 = vcombine.low %v612_v63, %v616_v0  ;;  %v12232_v63 = vld [vmem:[#allocation6 + $0xa0] ss:$16 sps:$4 sm:$0xff]   ;;  %v12237_v0 = vld [vmem:[#allocation6 + $0xc4] ss:$16 sps:$4 sm:$0xff]   ;;  %v10935_v3 = vcombine.low %v555_v55, %v559_v56 }
 0x1c2   :  { %2932 = vmatprep.subr.bf16.mxu0 %v10946_v19  ;;  %v515_v19 = vld [vmem:[#allocation2 + $0x888] sm:$0xff] }
 0x1c3   :  { %v571_v4 = vld [vmem:[#allocation2 + $0xa48] sm:$0xff] }
 0x1c4   :  { %2771 = vmatpush1.bf16.msra.mxu1 %v10823_v20  ;;  %v519_v20 = vld [vmem:[#allocation2 + $0x8a8] sm:$0xff] }
 0x1c5   :  { %2772 = vmatprep.subr.bf16.mxu1 %v10832_v23  ;;  %2933 = vmatpush1.bf16.msra.mxu0 %v10945_v24  ;;  %v11001_v23 = vcombine.low %v620_v7, %v624_v9  ;;  %v10887_v24 = vcombine.low %v507_v13, %v511_v14  ;;  %v10896_v31 = vcombine.high %v515_v19, %v519_v20  ;;  %v12240_v7 = vld [vmem:[#allocation6 + $0xe4] ss:$16 sps:$4 sm:$0xff]  }
 0x1c6   :  { %2934 = vmatprep.subr.bf16.mxu0 %v10954_v27  ;;  %v12217_v27 = vld [vmem:[#allocation6] ss:$16 sps:$4 sm:$0xff]   ;;  %v10895_v32 = vcombine.low %v515_v19, %v519_v20 }
 0x1c8   :  { %2773 = vmatpush1.bf16.msra.mxu1 %v10831_v30  ;;  %v12222_v30 = vld [vmem:[#allocation6 + $0x24] ss:$16 sps:$4 sm:$0xff]  }
 0x1c9   :  { %2774 = vmatprep.subr.bf16.mxu1 %v10840_v34  ;;  %2935 = vmatpush1.bf16.msra.mxu0 %v10953_v35  ;;  %v531_v34 = vld [vmem:[#allocation2 + $0x908] sm:$0xff] }
 0x1ca   :  { %2936 = vmatprep.subr.bf16.mxu0 %v10962_v39  ;;  %v535_v35 = vld [vmem:[#allocation2 + $0x928] sm:$0xff]  ;;  %v10904_v39 = vcombine.high %v523_v25, %v527_v26 }
 0x1cb   :  { %v10912_v46 = vcombine.high %v531_v34, %v535_v35  ;;  %v10911_v47 = vcombine.low %v531_v34, %v535_v35 }
 0x1cc   :  { %2775 = vmatpush1.bf16.msra.mxu1 %v10839_v40  ;;  %v10903_v40 = vcombine.low %v523_v25, %v527_v26 }
 0x1cd   :  { %2776 = vmatprep.subr.bf16.mxu1 %v10848_v43  ;;  %2937 = vmatpush1.bf16.msra.mxu0 %v10961_v44  ;;  %v12223_v43 = vld [vmem:[#allocation6 + $0x40] ss:$16 sps:$4 sm:$0xff]   ;;  %v12228_v44 = vld [vmem:[#allocation6 + $0x64] ss:$16 sps:$4 sm:$0xff]  }
 0x1ce   :  { %2938 = vmatprep.subr.bf16.mxu0 %v10970_v49  ;;  %v547_v49 = vld [vmem:[#allocation2 + $0x988] sm:$0xff] }
 0x1d0   :  { %2777 = vmatpush1.bf16.msra.mxu1 %v10847_v51  ;;  %v551_v51 = vld [vmem:[#allocation2 + $0x9a8] sm:$0xff] }
 0x1d1   :  { %2778 = vmatprep.subr.bf16.mxu1 %v10856_v8  ;;  %2939 = vmatpush1.bf16.msra.mxu0 %v10969_v54  ;;  %v10920_v8 = vcombine.high %v539_v48, %v543_v41  ;;  %v10919_v54 = vcombine.low %v539_v48, %v543_v41  ;;  %v10928_v60 = vcombine.high %v547_v49, %v551_v51 }
 0x1d2   :  { %2940 = vmatprep.subr.bf16.mxu0 %v10978_v57  ;;  %v12229_v57 = vld [vmem:[#allocation6 + $0x80] ss:$16 sps:$4 sm:$0xff]   ;;  %v10927_v61 = vcombine.low %v547_v49, %v551_v51 }
 0x1d4   :  { %2779 = vmatpush1.bf16.msra.mxu1 %v10855_v59  ;;  %v12234_v59 = vld [vmem:[#allocation6 + $0xa4] ss:$16 sps:$4 sm:$0xff]  }
 0x1d5   :  { %2780 = vmatprep.subr.bf16.mxu1 %v10864_v11  ;;  %2941 = vmatpush1.bf16.msra.mxu0 %v10977_v62  ;;  %v563_v11 = vld [vmem:[#allocation2 + $0xa08] sm:$0xff] }
 0x1d6   :  { %2942 = vmatprep.subr.bf16.mxu0 %v10986_v1  ;;  %v567_v62 = vld [vmem:[#allocation2 + $0xa28] sm:$0xff]  ;;  %v10936_v1 = vcombine.high %v555_v55, %v559_v56 }
 0x1d7   :  { %v10943_v14 = vcombine.low %v563_v11, %v567_v62 }
 0x1d8   :  { %2781 = vmatpush1.bf16.msra.mxu1 %v10863_v2 }
 0x1d9   :  { %2782 = vmatprep.subr.bf16.mxu1 %v10872_v5  ;;  %2943 = vmatpush1.bf16.msra.mxu0 %v10985_v6  ;;  %v575_v5 = vld [vmem:[#allocation2 + $0xa68] sm:$0xff] }
 0x1da   :  { %2944 = vmatprep.subr.bf16.mxu0 %v10994_v10  ;;  %v12235_v6 = vld [vmem:[#allocation6 + $0xc0] ss:$16 sps:$4 sm:$0xff]   ;;  %v10944_v10 = vcombine.high %v563_v11, %v567_v62  ;;  %v10952_v19 = vcombine.high %v571_v4, %v575_v5  ;;  %v10951_v20 = vcombine.low %v571_v4, %v575_v5 }
 0x1dc   :  { %2783 = vmatpush1.bf16.msra.mxu1 %v10871_v12 }
 0x1dd   :  { %2793 = vmatprep.subr.bf16.mxu1 %v10880_v45  ;;  %2945 = vmatpush1.bf16.msra.mxu0 %v10993_v15  ;;  %v579_v45 = vld [vmem:[#allocation2 + $0xa88] sm:$0xff] }
 0x1de   :  { %2946 = vmatprep.subr.bf16.mxu0 %v11002_v17  ;;  %v583_v15 = vld [vmem:[#allocation2 + $0xaa8] sm:$0xff] }
 0x1df   :  { %2785 = vmatmul.mubr.bf16.vlgmr.msra.gmra.mrb[4].mxu1 %v13840_v50  ;;  %v12238_v17 = vld [vmem:[#allocation6 + $0xe0] ss:$16 sps:$4 sm:$0xff]   ;;  %v10960_v25 = vcombine.high %v579_v45, %v583_v15  ;;  %v10959_v26 = vcombine.low %v579_v45, %v583_v15 }
 0x1e0   :  { %2794 = vmatpush1.bf16.msra.mxu1 %v10879_v18  ;;  %2825 = vmatprep.mubr.bf16.mxu1 %v13814_v16  ;;  %v12243_v18 = vld [vmem:[#allocation6 + $0x104] ss:$16 sps:$4 sm:$0xff]  }
 0x1e1   :  { %2795 = vmatprep.subr.bf16.mxu1 %v10888_v22  ;;  %2947 = vmatpush1.bf16.msra.mxu0 %v11001_v23  ;;  %v591_v22 = vld [vmem:[#allocation2 + $0xae8] sm:$0xff]  ;;  %v273_v45 = vld [vmem:[#allocation2 + $0xf8] sm:$0xff] }
 0x1e2   :  { %4654 = vmatprep.subr.bf16.mxu0 %v12219_v21  ;;  %v587_v21 = vld [vmem:[#allocation2 + $0xac8] sm:$0xff] }
 0x1e3   :  { %v12241_v23 = vld [vmem:[#allocation6 + $0x100] ss:$16 sps:$4 sm:$0xff]   ;;  %v10968_v34 = vcombine.high %v587_v21, %v591_v22  ;;  %v10967_v35 = vcombine.low %v587_v21, %v591_v22 }
 0x1e4   :  { %2796 = vmatpush1.bf16.msra.mxu1 %v10887_v24  ;;  %2949 = vmatmul.mubr.bf16.vlgmr.msra.gmra.mrb[4].mxu0 %v13833_v42  ;;  %v12246_v24 = vld [vmem:[#allocation6 + $0x124] ss:$16 sps:$4 sm:$0xff]  }
 0x1e5   :  { %2797 = vmatprep.subr.bf16.mxu1 %v10896_v31  ;;  %4655 = vmatpush1.bf16.msra.mxu0 %v12217_v27  ;;  %v595_v27 = vld [vmem:[#allocation2 + $0xb08] sm:$0xff]  ;;  %v285_v22 = vld [vmem:[#allocation2 + $0x158] sm:$0xff] }
 0x1e6   :  { %4656 = vmatprep.subr.bf16.mxu0 %v12222_v30  ;;  %v599_v30 = vld [vmem:[#allocation2 + $0xb28] sm:$0xff] }
 0x1e7   :  { %v12244_v31 = vld [vmem:[#allocation6 + $0x120] ss:$16 sps:$4 sm:$0xff]   ;;  %v10976_v48 = vcombine.high %v595_v27, %v599_v30  ;;  %v10975_v41 = vcombine.low %v595_v27, %v599_v30  ;;  %v13863_v27 = vsub.s32 1, %v13788_v29 }
 0x1e8   :  { %2798 = vmatpush1.bf16.msra.mxu1 %v10895_v32  ;;  %v12249_v32 = vld [vmem:[#allocation6 + $0x144] ss:$16 sps:$4 sm:$0xff]  }
 0x1e9   :  { %2799 = vmatprep.subr.bf16.mxu1 %v10904_v39  ;;  %4657 = vmatpush1.bf16.msra.mxu0 %v12220_v36  ;;  %v603_v36 = vld [vmem:[#allocation2 + $0xb48] sm:$0xff]  ;;  %v293_v30 = vld [vmem:[#allocation2 + $0x198] sm:$0xff] }
 0x1ea   :  { %4658 = vmatprep.subr.bf16.mxu0 %v12225_v37  ;;  %v607_v37 = vld [vmem:[#allocation2 + $0xb68] sm:$0xff] }
 0x1eb   :  { %v12247_v39 = vld [vmem:[#allocation6 + $0x140] ss:$16 sps:$4 sm:$0xff]   ;;  %v10984_v49 = vcombine.high %v603_v36, %v607_v37  ;;  %v10983_v51 = vcombine.low %v603_v36, %v607_v37 }
 0x1ec   :  { %2800 = vmatpush1.bf16.msra.mxu1 %v10903_v40  ;;  %v12252_v40 = vld [vmem:[#allocation6 + $0x164] ss:$16 sps:$4 sm:$0xff]  }
 0x1ed   :  { %2801 = vmatprep.subr.bf16.mxu1 %v10912_v46  ;;  %4659 = vmatpush1.bf16.msra.mxu0 %v12223_v43  ;;  %v611_v43 = vld [vmem:[#allocation2 + $0xb88] sm:$0xff]  ;;  %v301_v37 = vld [vmem:[#allocation2 + $0x1d8] sm:$0xff] }
 0x1ee   :  { %4660 = vmatprep.subr.bf16.mxu0 %v12228_v44  ;;  %v615_v44 = vld [vmem:[#allocation2 + $0xba8] sm:$0xff] }
 0x1ef   :  { %v12250_v46 = vld [vmem:[#allocation6 + $0x160] ss:$16 sps:$4 sm:$0xff]   ;;  %v10992_v55 = vcombine.high %v611_v43, %v615_v44  ;;  %v10991_v56 = vcombine.low %v611_v43, %v615_v44 }
 0x1f0   :  { %2802 = vmatpush1.bf16.msra.mxu1 %v10911_v47  ;;  %v12255_v47 = vld [vmem:[#allocation6 + $0x184] ss:$16 sps:$4 sm:$0xff]  }
 0x1f1   :  { %2803 = vmatprep.subr.bf16.mxu1 %v10920_v8  ;;  %4661 = vmatpush1.bf16.msra.mxu0 %v12226_v52  ;;  %v619_v52 = vld [vmem:[#allocation2 + $0xbc8] sm:$0xff] }
 0x1f2   :  { %4662 = vmatprep.subr.bf16.mxu0 %v12231_v53  ;;  %v623_v53 = vld [vmem:[#allocation2 + $0xbe8] sm:$0xff] }
 0x1f3   :  { %v12253_v8 = vld [vmem:[#allocation6 + $0x180] ss:$16 sps:$4 sm:$0xff]   ;;  %v11000_v11 = vcombine.high %v619_v52, %v623_v53  ;;  %v10999_v62 = vcombine.low %v619_v52, %v623_v53 }
 0x1f4   :  { %2804 = vmatpush1.bf16.msra.mxu1 %v10919_v54  ;;  %v12258_v54 = vld [vmem:[#allocation6 + $0x1a4] ss:$16 sps:$4 sm:$0xff]  }
 0x1f5   :  { %2805 = vmatprep.subr.bf16.mxu1 %v10928_v60  ;;  %4663 = vmatpush1.bf16.msra.mxu0 %v12229_v57  ;;  %v245_v57 = vld [vmem:[#allocation2 + $0x18] sm:$0xff] }
 0x1f6   :  { %4664 = vmatprep.subr.bf16.mxu0 %v12234_v59  ;;  %v249_v59 = vld [vmem:[#allocation2 + $0x38] sm:$0xff] }
 0x1f7   :  { %v13853_v2 = vpop.f32.mrb[0].mxu0  ;;  %v12256_v60 = vld [vmem:[#allocation6 + $0x1a0] ss:$16 sps:$4 sm:$0xff]   ;;  %v10628_v4 = vcombine.high %v245_v57, %v249_v59  ;;  %v10627_v5 = vcombine.low %v245_v57, %v249_v59 }
 0x1f8   :  { %2806 = vmatpush1.bf16.msra.mxu1 %v10927_v61  ;;  %v13855_v9 = vpop.f32.mrb[1].mxu0  ;;  %v12261_v61 = vld [vmem:[#allocation6 + $0x1c4] ss:$16 sps:$4 sm:$0xff]  }
 0x1f9   :  { %2807 = vmatprep.subr.bf16.mxu1 %v10936_v1  ;;  %4665 = vmatpush1.bf16.msra.mxu0 %v12232_v63  ;;  %v2708_v12 = vpop.f32.mrb[2].mxu0  ;;  %v253_v63 = vld [vmem:[#allocation2 + $0x58] sm:$0xff] }
 0x1fa   :  { %4666 = vmatprep.subr.bf16.mxu0 %v12237_v0  ;;  %v2709_v13 = vpop.f32.mrb[3].mxu0  ;;  %v257_v0 = vld [vmem:[#allocation2 + $0x78] sm:$0xff] }
 0x1fb   :  { %v12259_v1 = vld [vmem:[#allocation6 + $0x1c0] ss:$16 sps:$4 sm:$0xff]   ;;  %v10636_v12 = vcombine.high %v253_v63, %v257_v0  ;;  %v10635_v13 = vcombine.low %v253_v63, %v257_v0 }
 0x1fc   :  { %2808 = vmatpush1.bf16.msra.mxu1 %v10935_v3  ;;  %v12264_v3 = vld [vmem:[#allocation6 + $0x1e4] ss:$16 sps:$4 sm:$0xff]  }
 0x1fd   :  { %2809 = vmatprep.subr.bf16.mxu1 %v10944_v10  ;;  %4667 = vmatpush1.bf16.msra.mxu0 %v12235_v6  ;;  %v261_v6 = vld [vmem:[#allocation2 + $0x98] sm:$0xff] }
 0x1fe   :  { %4668 = vmatprep.subr.bf16.mxu0 %v12240_v7  ;;  %v265_v7 = vld [vmem:[#allocation2 + $0xb8] sm:$0xff] }
 0x1ff   :  { %v12262_v10 = vld [vmem:[#allocation6 + $0x1e0] ss:$16 sps:$4 sm:$0xff]   ;;  %v10644_v15 = vcombine.high %v261_v6, %v265_v7 }
 0x200   :  { %2810 = vmatpush1.bf16.msra.mxu1 %v10943_v14  ;;  %v269_v14 = vld [vmem:[#allocation2 + $0xd8] sm:$0xff] }
 0x201   :  { %2811 = vmatprep.subr.bf16.mxu1 %v10952_v19  ;;  %4669 = vmatpush1.bf16.msra.mxu0 %v12238_v17  ;;  %v10643_v17 = vcombine.low %v261_v6, %v265_v7  ;;  %v281_v19 = vld [vmem:[#allocation2 + $0x138] sm:$0xff]  ;;  %v10651_v21 = vcombine.low %v269_v14, %v273_v45 }
 0x202   :  { %4670 = vmatprep.subr.bf16.mxu0 %v12243_v18  ;;  %v277_v18 = vld [vmem:[#allocation2 + $0x118] sm:$0xff] }
 0x203   :  { %v317_v59 = vld [vmem:[#allocation2 + $0x258] sm:$0xff] }
 0x204   :  { %2812 = vmatpush1.bf16.msra.mxu1 %v10951_v20  ;;  %v10652_v20 = vcombine.high %v269_v14, %v273_v45  ;;  %v333_v7 = vld [vmem:[#allocation2 + $0x2d8] sm:$0xff] }
 0x205   :  { %2813 = vmatprep.subr.bf16.mxu1 %v10960_v25  ;;  %4671 = vmatpush1.bf16.msra.mxu0 %v12241_v23  ;;  %v289_v23 = vld [vmem:[#allocation2 + $0x178] sm:$0xff]  ;;  %v626_v25 = vld [vmem:[#allocation4] sm:$0xff] }
 0x206   :  { %4672 = vmatprep.subr.bf16.mxu0 %v12246_v24  ;;  %v10660_v24 = vcombine.high %v277_v18, %v281_v19  ;;  %v10667_v36 = vcombine.low %v285_v22, %v289_v23  ;;  %v12271_v14 = vld [vmem:[#allocation6 + $0x240] ss:$16 sps:$4 sm:$0xff]  }
 0x208   :  { %2814 = vmatpush1.bf16.msra.mxu1 %v10959_v26  ;;  %v13860_v26 = vsub.s32 0, %v13788_v29 }
 0x209   :  { %2815 = vmatprep.subr.bf16.mxu1 %v10968_v34  ;;  %4673 = vmatpush1.bf16.msra.mxu0 %v12244_v31  ;;  %v297_v31 = vld [vmem:[#allocation2 + $0x1b8] sm:$0xff] }
 0x20a   :  { %4674 = vmatprep.subr.bf16.mxu0 %v12249_v32  ;;  %v10668_v32 = vcombine.high %v285_v22, %v289_v23  ;;  %v631_v34 = vrot.slane %v626_v25, %v13860_v26  ;;  %v349_v22 = vld [vmem:[#allocation2 + $0x358] sm:$0xff] }
 0x20b   :  { %v353_v23 = vld [vmem:[#allocation2 + $0x378] sm:$0xff] }
 0x20c   :  { %2816 = vmatpush1.bf16.msra.mxu1 %v10967_v35  ;;  %v635_v35 = vrot.slane %v626_v25, %v13863_v27 }
 0x20d   :  { %2817 = vmatprep.subr.bf16.mxu1 %v10976_v48  ;;  %4675 = vmatpush1.bf16.msra.mxu0 %v12247_v39  ;;  %v305_v39 = vld [vmem:[#allocation2 + $0x1f8] sm:$0xff] }
 0x20e   :  { %4676 = vmatprep.subr.bf16.mxu0 %v12252_v40  ;;  %v10676_v40 = vcombine.high %v293_v30, %v297_v31  ;;  %v10683_v57 = vcombine.low %v301_v37, %v305_v39 }
 0x210   :  { %2818 = vmatpush1.bf16.msra.mxu1 %v10975_v41 }
 0x211   :  { %2819 = vmatprep.subr.bf16.mxu1 %v10984_v49  ;;  %4677 = vmatpush1.bf16.msra.mxu0 %v12250_v46  ;;  %v309_v49 = vld [vmem:[#allocation2 + $0x218] sm:$0xff] }
 0x212   :  { %4678 = vmatprep.subr.bf16.mxu0 %v12255_v47  ;;  %v10675_v47 = vcombine.low %v293_v30, %v297_v31  ;;  %v357_v31 = vld [vmem:[#allocation2 + $0x398] sm:$0xff] }
 0x214   :  { %2820 = vmatpush1.bf16.msra.mxu1 %v10983_v51  ;;  %v313_v51 = vld [vmem:[#allocation2 + $0x238] sm:$0xff] }
 0x215   :  { %2821 = vmatprep.subr.bf16.mxu1 %v10992_v55  ;;  %4679 = vmatpush1.bf16.msra.mxu0 %v12253_v8  ;;  %v10684_v8 = vcombine.high %v301_v37, %v305_v39  ;;  %v10731_v37 = vcombine.low %v349_v22, %v353_v23  ;;  %v365_v39 = vld [vmem:[#allocation2 + $0x3d8] sm:$0xff] }
 0x216   :  { %4680 = vmatprep.subr.bf16.mxu0 %v12258_v54 }
 0x218   :  { %2822 = vmatpush1.bf16.msra.mxu1 %v10991_v56 }
 0x219   :  { %2823 = vmatprep.subr.bf16.mxu1 %v11000_v11  ;;  %4681 = vmatpush1.bf16.msra.mxu0 %v12256_v60  ;;  %v321_v60 = vld [vmem:[#allocation2 + $0x278] sm:$0xff]  ;;  %v10692_v11 = vcombine.high %v309_v49, %v313_v51 }
 0x21a   :  { %4682 = vmatprep.subr.bf16.mxu0 %v12261_v61  ;;  %v12267_v61 = vld [vmem:[#allocation6 + $0x204] ss:$16 sps:$4 sm:$0xff]   ;;  %v10699_v6 = vcombine.low %v317_v59, %v321_v60 }
 0x21c   :  { %2824 = vmatpush1.bf16.msra.mxu1 %v10999_v62  ;;  %v12265_v62 = vld [vmem:[#allocation6 + $0x200] ss:$16 sps:$4 sm:$0xff]  }
 0x21d   :  { %2957 = vmatprep.subr.bf16.mxu1 %v10628_v4  ;;  %4683 = vmatpush1.bf16.msra.mxu0 %v12259_v1  ;;  %v329_v1 = vld [vmem:[#allocation2 + $0x2b8] sm:$0xff]  ;;  %v10700_v4 = vcombine.high %v317_v59, %v321_v60 }
 0x21e   :  { %4684 = vmatprep.subr.bf16.mxu0 %v12264_v3  ;;  %v12270_v3 = vld [vmem:[#allocation6 + $0x224] ss:$16 sps:$4 sm:$0xff]  }
 0x21f   :  { %2826 = vmatmul.mubr.bf16.vlgmr.msra.gmra.mrb[4].mxu1 %v13833_v42  ;;  %v389_v60 = vld [vmem:[#allocation2 + $0x498] sm:$0xff] }
 0x220   :  { %2958 = vmatpush1.bf16.msra.mxu1 %v10627_v5  ;;  %2989 = vmatprep.mubr.bf16.mxu1 %v13804_v58  ;;  %v10659_v58 = vcombine.low %v277_v18, %v281_v19  ;;  %v12268_v5 = vld [vmem:[#allocation6 + $0x220] ss:$16 sps:$4 sm:$0xff]   ;;  %v12276_v18 = vld [vmem:[#allocation6 + $0x264] ss:$16 sps:$4 sm:$0xff]  }
 0x221   :  { %2959 = vmatprep.subr.bf16.mxu1 %v10636_v12  ;;  %4685 = vmatpush1.bf16.msra.mxu0 %v12262_v10  ;;  %v337_v10 = vld [vmem:[#allocation2 + $0x2f8] sm:$0xff] }
 0x222   :  { %4695 = vmatprep.subr.bf16.mxu0 %v12267_v61  ;;  %v12273_v12 = vld [vmem:[#allocation6 + $0x244] ss:$16 sps:$4 sm:$0xff]   ;;  %v10716_v19 = vcombine.high %v333_v7, %v337_v10 }
 0x223   :  { %v12294_v61 = vld [vmem:[#allocation6 + $0x324] ss:$16 sps:$4 sm:$0xff]  }
 0x224   :  { %2960 = vmatpush1.bf16.msra.mxu1 %v10635_v13 }
 0x225   :  { %2961 = vmatprep.subr.bf16.mxu1 %v10644_v15  ;;  %v341_v15 = vld [vmem:[#allocation2 + $0x318] sm:$0xff] }
 0x228   :  { %2962 = vmatpush1.bf16.msra.mxu1 %v10643_v17  ;;  %v345_v17 = vld [vmem:[#allocation2 + $0x338] sm:$0xff] }
 0x229   :  { %2963 = vmatprep.subr.bf16.mxu1 %v10652_v20  ;;  %v12274_v20 = vld [vmem:[#allocation6 + $0x260] ss:$16 sps:$4 sm:$0xff]   ;;  %v10724_v25 = vcombine.high %v341_v15, %v345_v17  ;;  %v10723_v30 = vcombine.low %v341_v15, %v345_v17  ;;  %v12312_v17 = vld [vmem:[#allocation6 + $0x384] ss:$16 sps:$4 sm:$0xff]  }
 0x22a   :  { %v413_v15 = vld [vmem:[#allocation2 + $0x558] sm:$0xff] }
 0x22c   :  { %2964 = vmatpush1.bf16.msra.mxu1 %v10651_v21  ;;  %v10715_v21 = vcombine.low %v333_v7, %v337_v10  ;;  %v405_v10 = vld [vmem:[#allocation2 + $0x518] sm:$0xff] }
 0x22d   :  { %2965 = vmatprep.subr.bf16.mxu1 %v10660_v24  ;;  %v12279_v24 = vld [vmem:[#allocation6 + $0x284] ss:$16 sps:$4 sm:$0xff]  }
 0x230   :  { %2966 = vmatpush1.bf16.msra.mxu1 %v10659_v58  ;;  %v12277_v58 = vld [vmem:[#allocation6 + $0x280] ss:$16 sps:$4 sm:$0xff]  }
 0x231   :  { %2967 = vmatprep.subr.bf16.mxu1 %v10668_v32  ;;  %v361_v32 = vld [vmem:[#allocation2 + $0x3b8] sm:$0xff] }
 0x232   :  { %v2663_v48 = vpop.f32.mrb[0].mxu1 }
 0x233   :  { %v12064_v41 = vadd.f32 %v2663_v48, %v631_v34  ;;  %v2665_v43 = vpop.f32.mrb[1].mxu1  ;;  %v12282_v34 = vld [vmem:[#allocation6 + $0x2a4] ss:$16 sps:$4 sm:$0xff]  }
 0x234   :  { %v12066_v44 = vadd.f32 %v2665_v43, %v635_v35  ;;  %v2667_v46 = vpop.f32.mrb[2].mxu1  ;;  %2968 = vmatpush1.bf16.msra.mxu1 %v10667_v36  ;;  %v10732_v35 = vcombine.high %v349_v22, %v353_v23  ;;  %v12280_v36 = vld [vmem:[#allocation6 + $0x2a0] ss:$16 sps:$4 sm:$0xff]   ;;  %v12285_v48 = vld [vmem:[#allocation6 + $0x2c4] ss:$16 sps:$4 sm:$0xff]  }
 0x235   :  { %v12065_v52 = vadd.f32 %v12064_v41, %v13853_v2  ;;  %v2668_v53 = vpop.f32.mrb[3].mxu1  ;;  %2969 = vmatprep.subr.bf16.mxu1 %v10676_v40  ;;  %v10691_v2 = vcombine.low %v309_v49, %v313_v51  ;;  %v369_v40 = vld [vmem:[#allocation2 + $0x3f8] sm:$0xff]  ;;  %v10740_v41 = vcombine.high %v357_v31, %v361_v32 }
 0x236   :  { %v12067_v54 = vadd.f32 %v12066_v44, %v13855_v9  ;;  %v325_v9 = vld [vmem:[#allocation2 + $0x298] sm:$0xff]  ;;  %v10739_v44 = vcombine.low %v357_v31, %v361_v32  ;;  %v10748_v51 = vcombine.high %v365_v39, %v369_v40  ;;  %v10747_v53 = vcombine.low %v365_v39, %v369_v40 }
 0x237   :  { %v3080_v55 = vmax.f32 %v12065_v52, 0.0  ;;  %v10708_v13 = vcombine.high %v325_v9, %v329_v1  ;;  %v10707_v45 = vcombine.low %v325_v9, %v329_v1  ;;  %v12283_v43 = vld [vmem:[#allocation6 + $0x2c0] ss:$16 sps:$4 sm:$0xff]   ;;  %v12288_v49 = vld [vmem:[#allocation6 + $0x2e4] ss:$16 sps:$4 sm:$0xff]  }
 0x238   :  { %v3081_v56 = vmax.f32 %v12067_v54, 0.0  ;;  %2970 = vmatpush1.bf16.msra.mxu1 %v10675_v47  ;;  %v373_v46 = vld [vmem:[#allocation2 + $0x418] sm:$0xff] }
 0x239   :  { %2971 = vmatprep.subr.bf16.mxu1 %v10684_v8  ;;  %v13871_v0 = vpack.c.bf16 %v3080_v55, %v3080_v55  ;;  %v377_v47 = vld [vmem:[#allocation2 + $0x438] sm:$0xff] }
 0x23a   :  { %v13869_v63 = vpack.c.bf16 %v3081_v56, %v3081_v56  ;;  %v12286_v52 = vld [vmem:[#allocation6 + $0x2e0] ss:$16 sps:$4 sm:$0xff]   ;;  %v12291_v55 = vld [vmem:[#allocation6 + $0x304] ss:$16 sps:$4 sm:$0xff]   ;;  %v10756_v56 = vcombine.high %v373_v46, %v377_v47  ;;  %v10755_v59 = vcombine.low %v373_v46, %v377_v47 }
 0x23b   :  { %v381_v8 = vld [vmem:[#allocation2 + $0x458] sm:$0xff] }
 0x23c   :  { %2972 = vmatpush1.bf16.msra.mxu1 %v10683_v57  ;;  %4686 = vmatprep.mubr.bf16.mxu0 %v13869_v63  ;;  %v385_v54 = vld [vmem:[#allocation2 + $0x478] sm:$0xff] }
 0x23d   :  { %4687 = vmatmul.mubr.bf16.vlgmr.msra.gmra.mrb[8].mxu0 %v13871_v0  ;;  %2973 = vmatprep.subr.bf16.mxu1 %v10692_v11  ;;  %v12289_v57 = vld [vmem:[#allocation6 + $0x300] ss:$16 sps:$4 sm:$0xff]   ;;  %v10764_v11 = vcombine.high %v381_v8, %v385_v54  ;;  %v10763_v9 = vcombine.low %v381_v8, %v385_v54  ;;  %v12318_v23 = vld [vmem:[#allocation6 + $0x3a4] ss:$16 sps:$4 sm:$0xff]  }
 0x23e   :  { %4696 = vmatpush1.bf16.msra.mxu0 %v12265_v62  ;;  %v393_v62 = vld [vmem:[#allocation2 + $0x4b8] sm:$0xff] }
 0x23f   :  { %4697 = vmatprep.subr.bf16.mxu0 %v12270_v3  ;;  %v397_v1 = vld [vmem:[#allocation2 + $0x4d8] sm:$0xff]  ;;  %v10771_v7 = vcombine.low %v389_v60, %v393_v62 }
 0x240   :  { %2974 = vmatpush1.bf16.msra.mxu1 %v10691_v2  ;;  %v12292_v2 = vld [vmem:[#allocation6 + $0x320] ss:$16 sps:$4 sm:$0xff]  }
 0x241   :  { %2975 = vmatprep.subr.bf16.mxu1 %v10700_v4  ;;  %v401_v3 = vld [vmem:[#allocation2 + $0x4f8] sm:$0xff] }
 0x242   :  { %4698 = vmatpush1.bf16.msra.mxu0 %v12268_v5  ;;  %v12300_v4 = vld [vmem:[#allocation6 + $0x344] ss:$16 sps:$4 sm:$0xff]   ;;  %v10772_v5 = vcombine.high %v389_v60, %v393_v62 }
 0x243   :  { %4699 = vmatprep.subr.bf16.mxu0 %v12273_v12  ;;  %v409_v12 = vld [vmem:[#allocation2 + $0x538] sm:$0xff] }
 0x244   :  { %2976 = vmatpush1.bf16.msra.mxu1 %v10699_v6  ;;  %v12298_v6 = vld [vmem:[#allocation6 + $0x340] ss:$16 sps:$4 sm:$0xff]  }
 0x245   :  { %2977 = vmatprep.subr.bf16.mxu1 %v10708_v13  ;;  %v12306_v13 = vld [vmem:[#allocation6 + $0x364] ss:$16 sps:$4 sm:$0xff]  }
 0x246   :  { %4700 = vmatpush1.bf16.msra.mxu0 %v12271_v14  ;;  %v12304_v14 = vld [vmem:[#allocation6 + $0x360] ss:$16 sps:$4 sm:$0xff]  }
 0x247   :  { %4701 = vmatprep.subr.bf16.mxu0 %v12276_v18  ;;  %v10788_v18 = vcombine.high %v405_v10, %v409_v12  ;;  %v425_v22 = vld [vmem:[#allocation2 + $0x5b8] sm:$0xff] }
 0x248   :  { %2978 = vmatpush1.bf16.msra.mxu1 %v10707_v45  ;;  %v10779_v45 = vcombine.low %v397_v1, %v401_v3  ;;  %v429_v32 = vld [vmem:[#allocation2 + $0x5d8] sm:$0xff] }
 0x249   :  { %2979 = vmatprep.subr.bf16.mxu1 %v10716_v19  ;;  %v12310_v19 = vld [vmem:[#allocation6 + $0x380] ss:$16 sps:$4 sm:$0xff]  }
 0x24a   :  { %4702 = vmatpush1.bf16.msra.mxu0 %v12274_v20  ;;  %v10787_v20 = vcombine.low %v405_v10, %v409_v12  ;;  %v437_v40 = vld [vmem:[#allocation2 + $0x618] sm:$0xff] }
 0x24b   :  { %4703 = vmatprep.subr.bf16.mxu0 %v12279_v24  ;;  %v445_v47 = vld [vmem:[#allocation2 + $0x658] sm:$0xff] }
 0x24c   :  { %2980 = vmatpush1.bf16.msra.mxu1 %v10715_v21  ;;  %v421_v21 = vld [vmem:[#allocation2 + $0x598] sm:$0xff] }
 0x24d   :  { %2981 = vmatprep.subr.bf16.mxu1 %v10724_v25  ;;  %v12316_v25 = vld [vmem:[#allocation6 + $0x3a0] ss:$16 sps:$4 sm:$0xff]   ;;  %v10804_v31 = vcombine.high %v421_v21, %v425_v22 }
 0x24e   :  { %4704 = vmatpush1.bf16.msra.mxu0 %v12277_v58  ;;  %v457_v8 = vld [vmem:[#allocation2 + $0x6b8] sm:$0xff] }
 0x24f   :  { %4705 = vmatprep.subr.bf16.mxu0 %v12282_v34  ;;  %v433_v34 = vld [vmem:[#allocation2 + $0x5f8] sm:$0xff] }
 0x250   :  { %2982 = vmatpush1.bf16.msra.mxu1 %v10723_v30  ;;  %v12324_v30 = vld [vmem:[#allocation6 + $0x3c4] ss:$16 sps:$4 sm:$0xff]   ;;  %v10812_v39 = vcombine.high %v429_v32, %v433_v34 }
 0x251   :  { %2983 = vmatprep.subr.bf16.mxu1 %v10732_v35  ;;  %v12322_v35 = vld [vmem:[#allocation6 + $0x3c0] ss:$16 sps:$4 sm:$0xff]  }
 0x252   :  { %4706 = vmatpush1.bf16.msra.mxu0 %v12280_v36  ;;  %v10803_v36 = vcombine.low %v421_v21, %v425_v22  ;;  %v493_v12 = vld [vmem:[#allocation2 + $0x7d8] sm:$0xff] }
 0x253   :  { %4707 = vmatprep.subr.bf16.mxu0 %v12285_v48  ;;  %v441_v48 = vld [vmem:[#allocation2 + $0x638] sm:$0xff] }
 0x254   :  { %2984 = vmatpush1.bf16.msra.mxu1 %v10731_v37  ;;  %v12330_v37 = vld [vmem:[#allocation6 + $0x3e4] ss:$16 sps:$4 sm:$0xff]   ;;  %v10820_v46 = vcombine.high %v437_v40, %v441_v48 }
 0x255   :  { %2985 = vmatprep.subr.bf16.mxu1 %v10740_v41  ;;  %v12328_v41 = vld [vmem:[#allocation6 + $0x3e0] ss:$16 sps:$4 sm:$0xff]  }
 0x256   :  { %4708 = vmatpush1.bf16.msra.mxu0 %v12283_v43  ;;  %v10811_v43 = vcombine.low %v429_v32, %v433_v34  ;;  %v517_v22 = vld [vmem:[#allocation2 + $0x898] sm:$0xff] }
 0x257   :  { %4709 = vmatprep.subr.bf16.mxu0 %v12288_v49  ;;  %v449_v49 = vld [vmem:[#allocation2 + $0x678] sm:$0xff] }
 0x258   :  { %2986 = vmatpush1.bf16.msra.mxu1 %v10739_v44  ;;  %v12336_v44 = vld [vmem:[#allocation6 + $0x404] ss:$16 sps:$4 sm:$0xff]   ;;  %v10827_v54 = vcombine.low %v445_v47, %v449_v49 }
 0x259   :  { %2987 = vmatprep.subr.bf16.mxu1 %v10748_v51  ;;  %v10819_v51 = vcombine.low %v437_v40, %v441_v48  ;;  %v533_v34 = vld [vmem:[#allocation2 + $0x918] sm:$0xff] }
 0x25a   :  { %4710 = vmatpush1.bf16.msra.mxu0 %v12286_v52  ;;  %v10828_v52 = vcombine.high %v445_v47, %v449_v49  ;;  %v549_v48 = vld [vmem:[#allocation2 + $0x998] sm:$0xff] }
 0x25b   :  { %4711 = vmatprep.subr.bf16.mxu0 %v12291_v55  ;;  %v561_v47 = vld [vmem:[#allocation2 + $0x9f8] sm:$0xff] }
 0x25c   :  { %2988 = vmatpush1.bf16.msra.mxu1 %v10747_v53  ;;  %v453_v53 = vld [vmem:[#allocation2 + $0x698] sm:$0xff] }
 0x25d   :  { %2998 = vmatprep.subr.bf16.mxu1 %v10756_v56  ;;  %v10836_v55 = vcombine.high %v453_v53, %v457_v8  ;;  %v461_v56 = vld [vmem:[#allocation2 + $0x6d8] sm:$0xff] }
 0x25e   :  { %4712 = vmatpush1.bf16.msra.mxu0 %v12289_v57  ;;  %v465_v57 = vld [vmem:[#allocation2 + $0x6f8] sm:$0xff] }
 0x25f   :  { %2990 = vmatmul.mubr.bf16.vlgmr.msra.gmra.mrb[8].mxu1 %v13826_v28  ;;  %4713 = vmatprep.subr.bf16.mxu0 %v12294_v61  ;;  %v10780_v28 = vcombine.high %v397_v1, %v401_v3  ;;  %v10844_v60 = vcombine.high %v461_v56, %v465_v57  ;;  %v469_v61 = vld [vmem:[#allocation2 + $0x718] sm:$0xff]  ;;  %v10843_v62 = vcombine.low %v461_v56, %v465_v57 }
 0x260   :  { %2999 = vmatpush1.bf16.msra.mxu1 %v10755_v59  ;;  %3030 = vmatprep.mubr.bf16.mxu1 %v13828_v33  ;;  %v417_v33 = vld [vmem:[#allocation2 + $0x578] sm:$0xff]  ;;  %v10835_v59 = vcombine.low %v453_v53, %v457_v8 }
 0x261   :  { %3000 = vmatprep.subr.bf16.mxu1 %v10764_v11  ;;  %v10796_v24 = vcombine.high %v413_v15, %v417_v33  ;;  %v10795_v58 = vcombine.low %v413_v15, %v417_v33  ;;  %v473_v11 = vld [vmem:[#allocation2 + $0x738] sm:$0xff] }
 0x262   :  { %4714 = vmatpush1.bf16.msra.mxu0 %v12292_v2  ;;  %v10852_v2 = vcombine.high %v469_v61, %v473_v11  ;;  %v481_v1 = vld [vmem:[#allocation2 + $0x778] sm:$0xff]  ;;  %v10851_v3 = vcombine.low %v469_v61, %v473_v11 }
 0x263   :  { %4715 = vmatprep.subr.bf16.mxu0 %v12300_v4  ;;  %v505_v15 = vld [vmem:[#allocation2 + $0x838] sm:$0xff] }
 0x264   :  { %3001 = vmatpush1.bf16.msra.mxu1 %v10763_v9  ;;  %v477_v9 = vld [vmem:[#allocation2 + $0x758] sm:$0xff] }
 0x265   :  { %3002 = vmatprep.subr.bf16.mxu1 %v10772_v5  ;;  %v10860_v4 = vcombine.high %v477_v9, %v481_v1  ;;  %v485_v5 = vld [vmem:[#allocation2 + $0x798] sm:$0xff] }
 0x266   :  { %4716 = vmatpush1.bf16.msra.mxu0 %v12298_v6  ;;  %v489_v6 = vld [vmem:[#allocation2 + $0x7b8] sm:$0xff] }
 0x267   :  { %4717 = vmatprep.subr.bf16.mxu0 %v12306_v13  ;;  %v10868_v10 = vcombine.high %v485_v5, %v489_v6  ;;  %v497_v13 = vld [vmem:[#allocation2 + $0x7f8] sm:$0xff] }
 0x268   :  { %3003 = vmatpush1.bf16.msra.mxu1 %v10771_v7  ;;  %v10859_v7 = vcombine.low %v477_v9, %v481_v1  ;;  %v10875_v33 = vcombine.low %v493_v12, %v497_v13  ;;  %v569_v53 = vld [vmem:[#allocation2 + $0xa38] sm:$0xff] }
 0x269   :  { %3004 = vmatprep.subr.bf16.mxu1 %v10780_v28  ;;  %v10867_v28 = vcombine.low %v485_v5, %v489_v6  ;;  %v585_v9 = vld [vmem:[#allocation2 + $0xab8] sm:$0xff] }
 0x26a   :  { %4718 = vmatpush1.bf16.msra.mxu0 %v12304_v14  ;;  %v10876_v14 = vcombine.high %v493_v12, %v497_v13  ;;  %v593_v5 = vld [vmem:[#allocation2 + $0xaf8] sm:$0xff] }
 0x26b   :  { %4719 = vmatprep.subr.bf16.mxu0 %v12312_v17  ;;  %v601_v12 = vld [vmem:[#allocation2 + $0xb38] sm:$0xff] }
 0x26c   :  { %3005 = vmatpush1.bf16.msra.mxu1 %v10779_v45  ;;  %v501_v45 = vld [vmem:[#allocation2 + $0x818] sm:$0xff] }
 0x26d   :  { %3006 = vmatprep.subr.bf16.mxu1 %v10788_v18  ;;  %v10884_v17 = vcombine.high %v501_v45, %v505_v15  ;;  %v509_v18 = vld [vmem:[#allocation2 + $0x858] sm:$0xff] }
 0x26e   :  { %4720 = vmatpush1.bf16.msra.mxu0 %v12310_v19  ;;  %v513_v19 = vld [vmem:[#allocation2 + $0x878] sm:$0xff] }
 0x26f   :  { %4721 = vmatprep.subr.bf16.mxu0 %v12318_v23  ;;  %v10892_v21 = vcombine.high %v509_v18, %v513_v19  ;;  %v521_v23 = vld [vmem:[#allocation2 + $0x8b8] sm:$0xff] }
 0x270   :  { %3007 = vmatpush1.bf16.msra.mxu1 %v10787_v20  ;;  %v10883_v20 = vcombine.low %v501_v45, %v505_v15  ;;  %v609_v45 = vld [vmem:[#allocation2 + $0xb78] sm:$0xff] }
 0x271   :  { %3008 = vmatprep.subr.bf16.mxu1 %v10796_v24  ;;  %v10891_v24 = vcombine.low %v509_v18, %v513_v19  ;;  %v617_v18 = vld [vmem:[#allocation2 + $0xbb8] sm:$0xff] }
 0x272   :  { %4722 = vmatpush1.bf16.msra.mxu0 %v12316_v25  ;;  %v10900_v25 = vcombine.high %v517_v22, %v521_v23 }
 0x273   :  { %4723 = vmatprep.subr.bf16.mxu0 %v12324_v30  ;;  %v529_v30 = vld [vmem:[#allocation2 + $0x8f8] sm:$0xff] }
 0x274   :  { %3009 = vmatpush1.bf16.msra.mxu1 %v10795_v58  ;;  %v525_v58 = vld [vmem:[#allocation2 + $0x8d8] sm:$0xff] }
 0x275   :  { %3010 = vmatprep.subr.bf16.mxu1 %v10804_v31  ;;  %v10899_v31 = vcombine.low %v517_v22, %v521_v23  ;;  %v10908_v32 = vcombine.high %v525_v58, %v529_v30  ;;  %v625_v22 = vld [vmem:[#allocation2 + $0xbf8] sm:$0xff] }
 0x276   :  { %4724 = vmatpush1.bf16.msra.mxu0 %v12322_v35  ;;  %v537_v35 = vld [vmem:[#allocation2 + $0x938] sm:$0xff] }
 0x277   :  { %4725 = vmatprep.subr.bf16.mxu0 %v12330_v37  ;;  %v10916_v37 = vcombine.high %v533_v34, %v537_v35  ;;  %v10915_v40 = vcombine.low %v533_v34, %v537_v35  ;;  %v12309_v34 = vld [vmem:[#allocation6 + $0x4c] ss:$16 sps:$4 sm:$0xff]   ;;  %v12307_v35 = vld [vmem:[#allocation6 + $0x48] ss:$16 sps:$4 sm:$0xff]  }
 0x278   :  { %3011 = vmatpush1.bf16.msra.mxu1 %v10803_v36  ;;  %v10907_v36 = vcombine.low %v525_v58, %v529_v30  ;;  %v12297_v58 = vld [vmem:[#allocation6 + $0xc] ss:$16 sps:$4 sm:$0xff]   ;;  %v12295_v30 = vld [vmem:[#allocation6 + $0x8] ss:$16 sps:$4 sm:$0xff]  }
 0x279   :  { %3012 = vmatprep.subr.bf16.mxu1 %v10812_v39  ;;  %v541_v39 = vld [vmem:[#allocation2 + $0x958] sm:$0xff] }
 0x27a   :  { %4726 = vmatpush1.bf16.msra.mxu0 %v12328_v41  ;;  %v553_v41 = vld [vmem:[#allocation2 + $0x9b8] sm:$0xff] }
 0x27b   :  { %4736 = vmatprep.subr.bf16.mxu0 %v12336_v44  ;;  %v10932_v44 = vcombine.high %v549_v48, %v553_v41  ;;  %v10931_v49 = vcombine.low %v549_v48, %v553_v41  ;;  %v13894_v48 = vld [vmem:[#allocation4] sm:$0xff] }
 0x27c   :  { %3013 = vmatpush1.bf16.msra.mxu1 %v10811_v43 }
 0x27d   :  { %3014 = vmatprep.subr.bf16.mxu1 %v10820_v46  ;;  %v557_v46 = vld [vmem:[#allocation2 + $0x9d8] sm:$0xff] }
 0x280   :  { %3015 = vmatpush1.bf16.msra.mxu1 %v10819_v51  ;;  %v10940_v51 = vcombine.high %v557_v46, %v561_v47 }
 0x281   :  { %3016 = vmatprep.subr.bf16.mxu1 %v10828_v52  ;;  %v565_v52 = vld [vmem:[#allocation2 + $0xa18] sm:$0xff] }
 0x282   :  { %v10948_v56 = vcombine.high %v565_v52, %v569_v53  ;;  %v10947_v11 = vcombine.low %v565_v52, %v569_v53 }
 0x284   :  { %3017 = vmatpush1.bf16.msra.mxu1 %v10827_v54  ;;  %v10939_v54 = vcombine.low %v557_v46, %v561_v47  ;;  %v12325_v46 = vld [vmem:[#allocation6 + $0xa8] ss:$16 sps:$4 sm:$0xff]   ;;  %v12333_v47 = vld [vmem:[#allocation6 + $0xcc] ss:$16 sps:$4 sm:$0xff]  }
 0x285   :  { %3018 = vmatprep.subr.bf16.mxu1 %v10836_v55 }
 0x288   :  { %3019 = vmatpush1.bf16.msra.mxu1 %v10835_v59  ;;  %v573_v59 = vld [vmem:[#allocation2 + $0xa58] sm:$0xff] }
 0x289   :  { %3020 = vmatprep.subr.bf16.mxu1 %v10844_v60  ;;  %v577_v60 = vld [vmem:[#allocation2 + $0xa78] sm:$0xff] }
 0x28a   :  { %v10955_v1 = vcombine.low %v573_v59, %v577_v60 }
 0x28c   :  { %3021 = vmatpush1.bf16.msra.mxu1 %v10843_v62  ;;  %v10956_v62 = vcombine.high %v573_v59, %v577_v60 }
 0x28d   :  { %3022 = vmatprep.subr.bf16.mxu1 %v10852_v2  ;;  %v581_v2 = vld [vmem:[#allocation2 + $0xa98] sm:$0xff] }
 0x28e   :  { %v10963_v6 = vcombine.low %v581_v2, %v585_v9 }
 0x290   :  { %3023 = vmatpush1.bf16.msra.mxu1 %v10851_v3  ;;  %v10964_v3 = vcombine.high %v581_v2, %v585_v9  ;;  %v12334_v9 = vld [vmem:[#allocation6 + $0x400] ss:$16 sps:$4 sm:$0xff]  }
 0x291   :  { %3024 = vmatprep.subr.bf16.mxu1 %v10860_v4  ;;  %v589_v4 = vld [vmem:[#allocation2 + $0xad8] sm:$0xff] }
 0x292   :  { %v10971_v13 = vcombine.low %v589_v4, %v593_v5 }
 0x294   :  { %3025 = vmatpush1.bf16.msra.mxu1 %v10859_v7  ;;  %v10972_v7 = vcombine.high %v589_v4, %v593_v5  ;;  %v12345_v4 = vld [vmem:[#allocation6 + $0x10c] ss:$16 sps:$4 sm:$0xff]  }
 0x295   :  { %3026 = vmatprep.subr.bf16.mxu1 %v10868_v10  ;;  %v597_v10 = vld [vmem:[#allocation2 + $0xb18] sm:$0xff] }
 0x296   :  { %v10979_v15 = vcombine.low %v597_v10, %v601_v12 }
 0x298   :  { %3027 = vmatpush1.bf16.msra.mxu1 %v10867_v28  ;;  %v10980_v28 = vcombine.high %v597_v10, %v601_v12  ;;  %v12348_v10 = vld [vmem:[#allocation6 + $0x444] ss:$16 sps:$4 sm:$0xff]   ;;  %v12351_v12 = vld [vmem:[#allocation6 + $0x12c] ss:$16 sps:$4 sm:$0xff]  }
 0x299   :  { %3028 = vmatprep.subr.bf16.mxu1 %v10876_v14  ;;  %v605_v14 = vld [vmem:[#allocation2 + $0xb58] sm:$0xff] }
 0x29a   :  { %v10987_v19 = vcombine.low %v605_v14, %v609_v45 }
 0x29c   :  { %3029 = vmatpush1.bf16.msra.mxu1 %v10875_v33  ;;  %v10988_v33 = vcombine.high %v605_v14, %v609_v45  ;;  %v12354_v14 = vld [vmem:[#allocation6 + $0x464] ss:$16 sps:$4 sm:$0xff]   ;;  %v12357_v45 = vld [vmem:[#allocation6 + $0x14c] ss:$16 sps:$4 sm:$0xff]  }
 0x29d   :  { %3039 = vmatprep.subr.bf16.mxu1 %v10884_v17  ;;  %v613_v17 = vld [vmem:[#allocation2 + $0xb98] sm:$0xff] }
 0x29e   :  { %v10995_v23 = vcombine.low %v613_v17, %v617_v18 }
 0x29f   :  { %3031 = vmatmul.mubr.bf16.vlgmr.msra.gmra.mrb[8].mxu1 %v13840_v50  ;;  %v545_v50 = vld [vmem:[#allocation2 + $0x978] sm:$0xff] }
 0x2a0   :  { %3040 = vmatpush1.bf16.msra.mxu1 %v10883_v20  ;;  %3071 = vmatprep.mubr.bf16.mxu1 %v13814_v16  ;;  %v10924_v16 = vcombine.high %v541_v39, %v545_v50  ;;  %v10923_v43 = vcombine.low %v541_v39, %v545_v50  ;;  %v10996_v20 = vcombine.high %v613_v17, %v617_v18  ;;  %v12321_v39 = vld [vmem:[#allocation6 + $0x8c] ss:$16 sps:$4 sm:$0xff]   ;;  %v13886_v50 = vsub.s32 5, %v13788_v29  ;;  %v12360_v17 = vld [vmem:[#allocation6 + $0x484] ss:$16 sps:$4 sm:$0xff]  }
 0x2a1   :  { %3041 = vmatprep.subr.bf16.mxu1 %v10892_v21  ;;  %v621_v21 = vld [vmem:[#allocation2 + $0xbd8] sm:$0xff]  ;;  %v12363_v18 = vld [vmem:[#allocation6 + $0x16c] ss:$16 sps:$4 sm:$0xff]  }
 0x2a2   :  { %v651_v41 = vrot.slane %v13894_v48, %v13886_v50 }
 0x2a4   :  { %3042 = vmatpush1.bf16.msra.mxu1 %v10891_v24  ;;  %v11004_v24 = vcombine.high %v621_v21, %v625_v22 }
 0x2a5   :  { %3043 = vmatprep.subr.bf16.mxu1 %v10900_v25  ;;  %v11003_v25 = vcombine.low %v621_v21, %v625_v22  ;;  %v12366_v21 = vld [vmem:[#allocation6 + $0x4a4] ss:$16 sps:$4 sm:$0xff]   ;;  %v12369_v22 = vld [vmem:[#allocation6 + $0x18c] ss:$16 sps:$4 sm:$0xff]  }
 0x2a8   :  { %3044 = vmatpush1.bf16.msra.mxu1 %v10899_v31  ;;  %v12303_v31 = vld [vmem:[#allocation6 + $0x2c] ss:$16 sps:$4 sm:$0xff]  }
 0x2a9   :  { %3045 = vmatprep.subr.bf16.mxu1 %v10908_v32  ;;  %v12301_v32 = vld [vmem:[#allocation6 + $0x28] ss:$16 sps:$4 sm:$0xff]  }
 0x2ac   :  { %3046 = vmatpush1.bf16.msra.mxu1 %v10907_v36  ;;  %v12315_v36 = vld [vmem:[#allocation6 + $0x6c] ss:$16 sps:$4 sm:$0xff]  }
 0x2ad   :  { %3047 = vmatprep.subr.bf16.mxu1 %v10916_v37  ;;  %v12313_v37 = vld [vmem:[#allocation6 + $0x68] ss:$16 sps:$4 sm:$0xff]  }
 0x2b0   :  { %3048 = vmatpush1.bf16.msra.mxu1 %v10915_v40  ;;  %v13889_v40 = vsub.s32 2, %v13788_v29 }
 0x2b1   :  { %3049 = vmatprep.subr.bf16.mxu1 %v10924_v16  ;;  %v12327_v16 = vld [vmem:[#allocation6 + $0xac] ss:$16 sps:$4 sm:$0xff]  }
 0x2b4   :  { %3050 = vmatpush1.bf16.msra.mxu1 %v10923_v43  ;;  %v639_v43 = vrot.slane %v13894_v48, %v13889_v40 }
 0x2b5   :  { %3051 = vmatprep.subr.bf16.mxu1 %v10932_v44 }
 0x2b7   :  { %v13879_v8 = vpop.f32.mrb[4].mxu0 }
 0x2b8   :  { %3052 = vmatpush1.bf16.msra.mxu1 %v10931_v49  ;;  %v13881_v55 = vpop.f32.mrb[5].mxu0 }
 0x2b9   :  { %3053 = vmatprep.subr.bf16.mxu1 %v10940_v51  ;;  %v2954_v57 = vpop.f32.mrb[6].mxu0  ;;  %v12071_v51 = vadd.f32 %v13881_v55, %v651_v41  ;;  %v12342_v55 = vld [vmem:[#allocation6 + $0x424] ss:$16 sps:$4 sm:$0xff]  }
 0x2ba   :  { %v2955_v61 = vpop.f32.mrb[7].mxu0  ;;  %v12331_v57 = vld [vmem:[#allocation6 + $0xc8] ss:$16 sps:$4 sm:$0xff]   ;;  %v12390_v41 = vld [vmem:[#allocation6 + $0x524] ss:$16 sps:$4 sm:$0xff]  }
 0x2bb   :  { %v12339_v61 = vld [vmem:[#allocation6 + $0xec] ss:$16 sps:$4 sm:$0xff]  }
 0x2bc   :  { %3054 = vmatpush1.bf16.msra.mxu1 %v10939_v54 }
 0x2bd   :  { %3055 = vmatprep.subr.bf16.mxu1 %v10948_v56 }
 0x2c0   :  { %3056 = vmatpush1.bf16.msra.mxu1 %v10947_v11 }
 0x2c1   :  { %3057 = vmatprep.subr.bf16.mxu1 %v10956_v62  ;;  %v3085_v62 = vmax.f32 %v12071_v51, 0.0  ;;  %v12394_v51 = vld [vmem:[#allocation6 + $0x540] ss:$16 sps:$4 sm:$0xff]  }
 0x2c3   :  { %v13908_v5 = vpack.c.bf16 %v3085_v62, %v3085_v62  ;;  %v12414_v62 = vld [vmem:[#allocation6 + $0x5a4] ss:$16 sps:$4 sm:$0xff]  }
 0x2c4   :  { %3058 = vmatpush1.bf16.msra.mxu1 %v10955_v1  ;;  %v12337_v1 = vld [vmem:[#allocation6 + $0xe8] ss:$16 sps:$4 sm:$0xff]  }
 0x2c5   :  { %3059 = vmatprep.subr.bf16.mxu1 %v10964_v3 }
 0x2c8   :  { %3060 = vmatpush1.bf16.msra.mxu1 %v10963_v6  ;;  %v12340_v6 = vld [vmem:[#allocation6 + $0x420] ss:$16 sps:$4 sm:$0xff]  }
 0x2c9   :  { %3061 = vmatprep.subr.bf16.mxu1 %v10972_v7  ;;  %v12343_v7 = vld [vmem:[#allocation6 + $0x108] ss:$16 sps:$4 sm:$0xff]  }
 0x2cc   :  { %3062 = vmatpush1.bf16.msra.mxu1 %v10971_v13  ;;  %v12346_v13 = vld [vmem:[#allocation6 + $0x440] ss:$16 sps:$4 sm:$0xff]  }
 0x2cd   :  { %3063 = vmatprep.subr.bf16.mxu1 %v10980_v28  ;;  %v12349_v28 = vld [vmem:[#allocation6 + $0x128] ss:$16 sps:$4 sm:$0xff]  }
 0x2d0   :  { %3064 = vmatpush1.bf16.msra.mxu1 %v10979_v15  ;;  %v12352_v15 = vld [vmem:[#allocation6 + $0x460] ss:$16 sps:$4 sm:$0xff]  }
 0x2d1   :  { %3065 = vmatprep.subr.bf16.mxu1 %v10988_v33  ;;  %v12355_v33 = vld [vmem:[#allocation6 + $0x148] ss:$16 sps:$4 sm:$0xff]  }
 0x2d4   :  { %3066 = vmatpush1.bf16.msra.mxu1 %v10987_v19  ;;  %v12358_v19 = vld [vmem:[#allocation6 + $0x480] ss:$16 sps:$4 sm:$0xff]  }
 0x2d5   :  { %3067 = vmatprep.subr.bf16.mxu1 %v10996_v20  ;;  %v12361_v20 = vld [vmem:[#allocation6 + $0x168] ss:$16 sps:$4 sm:$0xff]  }
 0x2d8   :  { %3068 = vmatpush1.bf16.msra.mxu1 %v10995_v23  ;;  %v12364_v23 = vld [vmem:[#allocation6 + $0x4a0] ss:$16 sps:$4 sm:$0xff]  }
 0x2d9   :  { %3069 = vmatprep.subr.bf16.mxu1 %v11004_v24  ;;  %v12367_v24 = vld [vmem:[#allocation6 + $0x188] ss:$16 sps:$4 sm:$0xff]  }
 0x2dc   :  { %3070 = vmatpush1.bf16.msra.mxu1 %v11003_v25  ;;  %v12372_v25 = vld [vmem:[#allocation6 + $0x4c4] ss:$16 sps:$4 sm:$0xff]  }
 0x2dd   :  { %4818 = vmatprep.subr.bf16.mxu1 %v12297_v58  ;;  %v12375_v58 = vld [vmem:[#allocation6 + $0x1ac] ss:$16 sps:$4 sm:$0xff]  }
 0x2df   :  { %3072 = vmatmul.mubr.bf16.vlgmr.msra.gmra.mrb[8].mxu1 %v13833_v42  ;;  %v12319_v42 = vld [vmem:[#allocation6 + $0x88] ss:$16 sps:$4 sm:$0xff]  }
 0x2e0   :  { %4819 = vmatpush1.bf16.msra.mxu1 %v12295_v30  ;;  %4850 = vmatprep.mubr.bf16.mxu1 %v13869_v63  ;;  %v13892_v63 = vsub.s32 3, %v13788_v29  ;;  %v12370_v30 = vld [vmem:[#allocation6 + $0x4c0] ss:$16 sps:$4 sm:$0xff]  }
 0x2e1   :  { %4820 = vmatprep.subr.bf16.mxu1 %v12303_v31  ;;  %v12373_v31 = vld [vmem:[#allocation6 + $0x1a8] ss:$16 sps:$4 sm:$0xff]  }
 0x2e2   :  { %v643_v44 = vrot.slane %v13894_v48, %v13892_v63 }
 0x2e4   :  { %4821 = vmatpush1.bf16.msra.mxu1 %v12301_v32  ;;  %v12378_v32 = vld [vmem:[#allocation6 + $0x4e4] ss:$16 sps:$4 sm:$0xff]  }
 0x2e5   :  { %4822 = vmatprep.subr.bf16.mxu1 %v12309_v34  ;;  %v12381_v34 = vld [vmem:[#allocation6 + $0x1cc] ss:$16 sps:$4 sm:$0xff]  }
 0x2e8   :  { %4823 = vmatpush1.bf16.msra.mxu1 %v12307_v35  ;;  %v12376_v35 = vld [vmem:[#allocation6 + $0x4e0] ss:$16 sps:$4 sm:$0xff]  }
 0x2e9   :  { %4824 = vmatprep.subr.bf16.mxu1 %v12315_v36  ;;  %v12379_v36 = vld [vmem:[#allocation6 + $0x1c8] ss:$16 sps:$4 sm:$0xff]  }
 0x2ec   :  { %4825 = vmatpush1.bf16.msra.mxu1 %v12313_v37  ;;  %v12384_v37 = vld [vmem:[#allocation6 + $0x504] ss:$16 sps:$4 sm:$0xff]  }
 0x2ed   :  { %4826 = vmatprep.subr.bf16.mxu1 %v12321_v39  ;;  %v12387_v39 = vld [vmem:[#allocation6 + $0x1ec] ss:$16 sps:$4 sm:$0xff]  }
 0x2f0   :  { %4827 = vmatpush1.bf16.msra.mxu1 %v12319_v42  ;;  %v12382_v42 = vld [vmem:[#allocation6 + $0x500] ss:$16 sps:$4 sm:$0xff]  }
 0x2f1   :  { %4828 = vmatprep.subr.bf16.mxu1 %v12327_v16  ;;  %v12385_v16 = vld [vmem:[#allocation6 + $0x1e8] ss:$16 sps:$4 sm:$0xff]  }
 0x2f2   :  { %v2827_v49 = vpop.f32.mrb[4].mxu1 }
 0x2f3   :  { %v12068_v52 = vadd.f32 %v2827_v49, %v639_v43  ;;  %v2829_v53 = vpop.f32.mrb[5].mxu1  ;;  %v12393_v43 = vld [vmem:[#allocation6 + $0x20c] ss:$16 sps:$4 sm:$0xff]  }
 0x2f4   :  { %v12069_v54 = vadd.f32 %v2829_v53, %v643_v44  ;;  %v2831_v56 = vpop.f32.mrb[6].mxu1  ;;  %4829 = vmatpush1.bf16.msra.mxu1 %v12325_v46  ;;  %v12388_v44 = vld [vmem:[#allocation6 + $0x520] ss:$16 sps:$4 sm:$0xff]   ;;  %v12391_v46 = vld [vmem:[#allocation6 + $0x208] ss:$16 sps:$4 sm:$0xff]  }
 0x2f5   :  { %v3082_v59 = vmax.f32 %v12068_v52, 0.0  ;;  %v2832_v60 = vpop.f32.mrb[7].mxu1  ;;  %4830 = vmatprep.subr.bf16.mxu1 %v12333_v47  ;;  %v12396_v47 = vld [vmem:[#allocation6 + $0x544] ss:$16 sps:$4 sm:$0xff]   ;;  %v12399_v49 = vld [vmem:[#allocation6 + $0x22c] ss:$16 sps:$4 sm:$0xff]  }
 0x2f6   :  { %v3083_v11 = vmax.f32 %v12069_v54, 0.0  ;;  %v12397_v52 = vld [vmem:[#allocation6 + $0x228] ss:$16 sps:$4 sm:$0xff]   ;;  %v12402_v53 = vld [vmem:[#allocation6 + $0x564] ss:$16 sps:$4 sm:$0xff]  }
 0x2f7   :  { %v13905_v3 = vpack.c.bf16 %v3082_v59, %v3082_v59  ;;  %v12405_v54 = vld [vmem:[#allocation6 + $0x24c] ss:$16 sps:$4 sm:$0xff]   ;;  %v12400_v56 = vld [vmem:[#allocation6 + $0x560] ss:$16 sps:$4 sm:$0xff]   ;;  %v12408_v59 = vld [vmem:[#allocation6 + $0x584] ss:$16 sps:$4 sm:$0xff]  }
 0x2f8   :  { %v13903_v2 = vpack.c.bf16 %v3083_v11, %v3083_v11  ;;  %4831 = vmatpush1.bf16.msra.mxu1 %v12331_v57  ;;  %v12403_v57 = vld [vmem:[#allocation6 + $0x248] ss:$16 sps:$4 sm:$0xff]   ;;  %v12411_v60 = vld [vmem:[#allocation6 + $0x26c] ss:$16 sps:$4 sm:$0xff]   ;;  %v13915_v11 = vsub.s32 4, %v13788_v29 }
 0x2f9   :  { %4832 = vmatprep.subr.bf16.mxu1 %v12339_v61  ;;  %v12409_v61 = vld [vmem:[#allocation6 + $0x268] ss:$16 sps:$4 sm:$0xff]  }
 0x2fa   :  { %4727 = vmatprep.mubr.bf16.mxu0 %v13903_v2 }
 0x2fb   :  { %4728 = vmatmul.mubr.bf16.vlgmr.msra.gmra.mrb[8].mxu0 %v13905_v3 }
 0x2fc   :  { %4737 = vmatpush1.bf16.msra.mxu0 %v12334_v9  ;;  %4833 = vmatpush1.bf16.msra.mxu1 %v12337_v1  ;;  %v12412_v9 = vld [vmem:[#allocation6 + $0x5a0] ss:$16 sps:$4 sm:$0xff]   ;;  %v12415_v1 = vld [vmem:[#allocation6 + $0x288] ss:$16 sps:$4 sm:$0xff]  }
 0x2fd   :  { %4738 = vmatprep.subr.bf16.mxu0 %v12342_v55  ;;  %4834 = vmatprep.subr.bf16.mxu1 %v12345_v4  ;;  %v647_v55 = vrot.slane %v13894_v48, %v13915_v11  ;;  %v12420_v4 = vld [vmem:[#allocation6 + $0x5c4] ss:$16 sps:$4 sm:$0xff]  }
 0x2fe   :  { %4768 = vmatprep.mubr.bf16.mxu0 %v13908_v5 }
 0x300   :  { %4739 = vmatpush1.bf16.msra.mxu0 %v12340_v6  ;;  %4835 = vmatpush1.bf16.msra.mxu1 %v12343_v7  ;;  %v12423_v6 = vld [vmem:[#allocation6 + $0x2ac] ss:$16 sps:$4 sm:$0xff]   ;;  %v12418_v7 = vld [vmem:[#allocation6 + $0x5c0] ss:$16 sps:$4 sm:$0xff]  }
 0x301   :  { %4740 = vmatprep.subr.bf16.mxu0 %v12348_v10  ;;  %4836 = vmatprep.subr.bf16.mxu1 %v12351_v12  ;;  %v12421_v10 = vld [vmem:[#allocation6 + $0x2a8] ss:$16 sps:$4 sm:$0xff]   ;;  %v12070_v12 = vadd.f32 %v13879_v8, %v647_v55  ;;  %v12435_v8 = vld [vmem:[#allocation6 + $0x30c] ss:$16 sps:$4 sm:$0xff]   ;;  %v12540_v55 = vld [vmem:[#allocation6 + $0x744] ss:$16 sps:$4 sm:$0xff]  }
 0x304   :  { %4741 = vmatpush1.bf16.msra.mxu0 %v12346_v13  ;;  %4837 = vmatpush1.bf16.msra.mxu1 %v12349_v28  ;;  %v12426_v13 = vld [vmem:[#allocation6 + $0x5e4] ss:$16 sps:$4 sm:$0xff]   ;;  %v12429_v28 = vld [vmem:[#allocation6 + $0x2cc] ss:$16 sps:$4 sm:$0xff]  }
 0x305   :  { %4742 = vmatprep.subr.bf16.mxu0 %v12354_v14  ;;  %4838 = vmatprep.subr.bf16.mxu1 %v12357_v45  ;;  %v12424_v14 = vld [vmem:[#allocation6 + $0x5e0] ss:$16 sps:$4 sm:$0xff]   ;;  %v12427_v45 = vld [vmem:[#allocation6 + $0x2c8] ss:$16 sps:$4 sm:$0xff]  }
 0x308   :  { %4743 = vmatpush1.bf16.msra.mxu0 %v12352_v15  ;;  %4839 = vmatpush1.bf16.msra.mxu1 %v12355_v33  ;;  %v3084_v15 = vmax.f32 %v12070_v12, 0.0  ;;  %v12432_v33 = vld [vmem:[#allocation6 + $0x2ec] ss:$16 sps:$4 sm:$0xff]   ;;  %v12463_v12 = vld [vmem:[#allocation6 + $0x448] ss:$16 sps:$4 sm:$0xff]  }
 0x309   :  { %4744 = vmatprep.subr.bf16.mxu0 %v12360_v17  ;;  %4840 = vmatprep.subr.bf16.mxu1 %v12363_v18  ;;  %v12480_v17 = vld [vmem:[#allocation6 + $0x604] ss:$16 sps:$4 sm:$0xff]   ;;  %v12430_v18 = vld [vmem:[#allocation6 + $0x2e8] ss:$16 sps:$4 sm:$0xff]  }
 0x30c   :  { %4745 = vmatpush1.bf16.msra.mxu0 %v12358_v19  ;;  %4841 = vmatpush1.bf16.msra.mxu1 %v12361_v20  ;;  %v12478_v19 = vld [vmem:[#allocation6 + $0x600] ss:$16 sps:$4 sm:$0xff]   ;;  %v13920_v20 = vpack.c.bf16 %v3084_v15, %v3084_v15  ;;  %v12558_v15 = vld [vmem:[#allocation6 + $0x7a4] ss:$16 sps:$4 sm:$0xff]  }
 0x30d   :  { %4746 = vmatprep.subr.bf16.mxu0 %v12366_v21  ;;  %4842 = vmatprep.subr.bf16.mxu1 %v12369_v22  ;;  %v12486_v21 = vld [vmem:[#allocation6 + $0x624] ss:$16 sps:$4 sm:$0xff]   ;;  %v12433_v22 = vld [vmem:[#allocation6 + $0x308] ss:$16 sps:$4 sm:$0xff]  }
 0x310   :  { %4747 = vmatpush1.bf16.msra.mxu0 %v12364_v23  ;;  %4843 = vmatpush1.bf16.msra.mxu1 %v12367_v24  ;;  %v12484_v23 = vld [vmem:[#allocation6 + $0x620] ss:$16 sps:$4 sm:$0xff]   ;;  %v12438_v24 = vld [vmem:[#allocation6 + $0x32c] ss:$16 sps:$4 sm:$0xff]  }
 0x311   :  { %4748 = vmatprep.subr.bf16.mxu0 %v12372_v25  ;;  %4844 = vmatprep.subr.bf16.mxu1 %v12375_v58  ;;  %v12492_v25 = vld [vmem:[#allocation6 + $0x644] ss:$16 sps:$4 sm:$0xff]   ;;  %v12436_v58 = vld [vmem:[#allocation6 + $0x328] ss:$16 sps:$4 sm:$0xff]  }
 0x314   :  { %4749 = vmatpush1.bf16.msra.mxu0 %v12370_v30  ;;  %4845 = vmatpush1.bf16.msra.mxu1 %v12373_v31  ;;  %v12490_v30 = vld [vmem:[#allocation6 + $0x640] ss:$16 sps:$4 sm:$0xff]   ;;  %v12441_v31 = vld [vmem:[#allocation6 + $0x34c] ss:$16 sps:$4 sm:$0xff]  }
 0x315   :  { %4750 = vmatprep.subr.bf16.mxu0 %v12378_v32  ;;  %4846 = vmatprep.subr.bf16.mxu1 %v12381_v34  ;;  %v12498_v32 = vld [vmem:[#allocation6 + $0x664] ss:$16 sps:$4 sm:$0xff]   ;;  %v12439_v34 = vld [vmem:[#allocation6 + $0x348] ss:$16 sps:$4 sm:$0xff]  }
 0x318   :  { %4751 = vmatpush1.bf16.msra.mxu0 %v12376_v35  ;;  %4847 = vmatpush1.bf16.msra.mxu1 %v12379_v36  ;;  %v12496_v35 = vld [vmem:[#allocation6 + $0x660] ss:$16 sps:$4 sm:$0xff]   ;;  %v12444_v36 = vld [vmem:[#allocation6 + $0x36c] ss:$16 sps:$4 sm:$0xff]  }
 0x319   :  { %4752 = vmatprep.subr.bf16.mxu0 %v12384_v37  ;;  %4848 = vmatprep.subr.bf16.mxu1 %v12387_v39  ;;  %v12504_v37 = vld [vmem:[#allocation6 + $0x684] ss:$16 sps:$4 sm:$0xff]   ;;  %v12442_v39 = vld [vmem:[#allocation6 + $0x368] ss:$16 sps:$4 sm:$0xff]  }
 0x31c   :  { %4753 = vmatpush1.bf16.msra.mxu0 %v12382_v42  ;;  %4849 = vmatpush1.bf16.msra.mxu1 %v12385_v16  ;;  %v12502_v42 = vld [vmem:[#allocation6 + $0x680] ss:$16 sps:$4 sm:$0xff]   ;;  %v12447_v16 = vld [vmem:[#allocation6 + $0x38c] ss:$16 sps:$4 sm:$0xff]  }
 0x31d   :  { %4754 = vmatprep.subr.bf16.mxu0 %v12390_v41  ;;  %4859 = vmatprep.subr.bf16.mxu1 %v12393_v43  ;;  %v12510_v41 = vld [vmem:[#allocation6 + $0x6a4] ss:$16 sps:$4 sm:$0xff]   ;;  %v12445_v43 = vld [vmem:[#allocation6 + $0x388] ss:$16 sps:$4 sm:$0xff]  }
 0x31f   :  { %4851 = vmatmul.mubr.bf16.vlgmr.msra.gmra.mrb[12].mxu1 %v13871_v0  ;;  %v12406_v0 = vld [vmem:[#allocation6 + $0x580] ss:$16 sps:$4 sm:$0xff]  }
 0x320   :  { %4755 = vmatpush1.bf16.msra.mxu0 %v12388_v44  ;;  %4860 = vmatpush1.bf16.msra.mxu1 %v12391_v46  ;;  %v12508_v44 = vld [vmem:[#allocation6 + $0x6a0] ss:$16 sps:$4 sm:$0xff]   ;;  %v12450_v46 = vld [vmem:[#allocation6 + $0x3ac] ss:$16 sps:$4 sm:$0xff]  }
 0x321   :  { %4891 = vmatprep.mubr.bf16.mxu1 %v13903_v2  ;;  %4756 = vmatprep.subr.bf16.mxu0 %v12396_v47  ;;  %v12417_v2 = vld [vmem:[#allocation6 + $0x28c] ss:$16 sps:$4 sm:$0xff]   ;;  %v12516_v47 = vld [vmem:[#allocation6 + $0x6c4] ss:$16 sps:$4 sm:$0xff]  }
 0x322   :  { %4861 = vmatprep.subr.bf16.mxu1 %v12399_v49  ;;  %v12448_v49 = vld [vmem:[#allocation6 + $0x3a8] ss:$16 sps:$4 sm:$0xff]  }
 0x324   :  { %4757 = vmatpush1.bf16.msra.mxu0 %v12394_v51  ;;  %4862 = vmatpush1.bf16.msra.mxu1 %v12397_v52  ;;  %v12514_v51 = vld [vmem:[#allocation6 + $0x6c0] ss:$16 sps:$4 sm:$0xff]   ;;  %v12453_v52 = vld [vmem:[#allocation6 + $0x3cc] ss:$16 sps:$4 sm:$0xff]  }
 0x325   :  { %4758 = vmatprep.subr.bf16.mxu0 %v12402_v53  ;;  %4863 = vmatprep.subr.bf16.mxu1 %v12405_v54  ;;  %v12522_v53 = vld [vmem:[#allocation6 + $0x6e4] ss:$16 sps:$4 sm:$0xff]   ;;  %v12451_v54 = vld [vmem:[#allocation6 + $0x3c8] ss:$16 sps:$4 sm:$0xff]  }
 0x328   :  { %4759 = vmatpush1.bf16.msra.mxu0 %v12400_v56  ;;  %4864 = vmatpush1.bf16.msra.mxu1 %v12403_v57  ;;  %v12520_v56 = vld [vmem:[#allocation6 + $0x6e0] ss:$16 sps:$4 sm:$0xff]   ;;  %v12456_v57 = vld [vmem:[#allocation6 + $0x3ec] ss:$16 sps:$4 sm:$0xff]  }
 0x329   :  { %4760 = vmatprep.subr.bf16.mxu0 %v12408_v59  ;;  %4865 = vmatprep.subr.bf16.mxu1 %v12411_v60  ;;  %v12528_v59 = vld [vmem:[#allocation6 + $0x704] ss:$16 sps:$4 sm:$0xff]   ;;  %v12454_v60 = vld [vmem:[#allocation6 + $0x3e8] ss:$16 sps:$4 sm:$0xff]  }
 0x32c   :  { %4761 = vmatpush1.bf16.msra.mxu0 %v12406_v0  ;;  %4866 = vmatpush1.bf16.msra.mxu1 %v12409_v61  ;;  %v12526_v0 = vld [vmem:[#allocation6 + $0x700] ss:$16 sps:$4 sm:$0xff]   ;;  %v12459_v61 = vld [vmem:[#allocation6 + $0x40c] ss:$16 sps:$4 sm:$0xff]  }
 0x32d   :  { %4762 = vmatprep.subr.bf16.mxu0 %v12414_v62  ;;  %4867 = vmatprep.subr.bf16.mxu1 %v12417_v2  ;;  %v12534_v62 = vld [vmem:[#allocation6 + $0x724] ss:$16 sps:$4 sm:$0xff]   ;;  %v12457_v2 = vld [vmem:[#allocation6 + $0x408] ss:$16 sps:$4 sm:$0xff]  }
 0x330   :  { %4763 = vmatpush1.bf16.msra.mxu0 %v12412_v9  ;;  %4868 = vmatpush1.bf16.msra.mxu1 %v12415_v1  ;;  %v12462_v9 = vld [vmem:[#allocation6 + $0x42c] ss:$16 sps:$4 sm:$0xff]   ;;  %v12532_v1 = vld [vmem:[#allocation6 + $0x720] ss:$16 sps:$4 sm:$0xff]  }
 0x331   :  { %4764 = vmatprep.subr.bf16.mxu0 %v12420_v4  ;;  %4869 = vmatprep.subr.bf16.mxu1 %v12423_v6  ;;  %v12460_v4 = vld [vmem:[#allocation6 + $0x428] ss:$16 sps:$4 sm:$0xff]   ;;  %v12465_v6 = vld [vmem:[#allocation6 + $0x44c] ss:$16 sps:$4 sm:$0xff]  }
 0x334   :  { %4765 = vmatpush1.bf16.msra.mxu0 %v12418_v7  ;;  %4870 = vmatpush1.bf16.msra.mxu1 %v12421_v10  ;;  %v12538_v7 = vld [vmem:[#allocation6 + $0x740] ss:$16 sps:$4 sm:$0xff]   ;;  %v12546_v10 = vld [vmem:[#allocation6 + $0x764] ss:$16 sps:$4 sm:$0xff]  }
 0x335   :  { %4766 = vmatprep.subr.bf16.mxu0 %v12426_v13  ;;  %4871 = vmatprep.subr.bf16.mxu1 %v12429_v28  ;;  %v12468_v13 = vld [vmem:[#allocation6 + $0x46c] ss:$16 sps:$4 sm:$0xff]   ;;  %v12544_v28 = vld [vmem:[#allocation6 + $0x760] ss:$16 sps:$4 sm:$0xff]  }
 0x338   :  { %4767 = vmatpush1.bf16.msra.mxu0 %v12424_v14  ;;  %4872 = vmatpush1.bf16.msra.mxu1 %v12427_v45  ;;  %v12552_v14 = vld [vmem:[#allocation6 + $0x784] ss:$16 sps:$4 sm:$0xff]   ;;  %v12471_v45 = vld [vmem:[#allocation6 + $0x48c] ss:$16 sps:$4 sm:$0xff]  }
 0x339   :  { %4873 = vmatprep.subr.bf16.mxu1 %v12432_v33  ;;  %4777 = vmatprep.subr.bf16.mxu0 %v12480_v17  ;;  %v12469_v33 = vld [vmem:[#allocation6 + $0x488] ss:$16 sps:$4 sm:$0xff]   ;;  %v12474_v17 = vld [vmem:[#allocation6 + $0x4ac] ss:$16 sps:$4 sm:$0xff]  }
 0x33b   :  { %4769 = vmatmul.mubr.bf16.vlgmr.msra.gmra.mrb[8].mxu0 %v13920_v20 }
 0x33c   :  { %4874 = vmatpush1.bf16.msra.mxu1 %v12430_v18  ;;  %4778 = vmatpush1.bf16.msra.mxu0 %v12478_v19  ;;  %v12556_v18 = vld [vmem:[#allocation6 + $0x7a0] ss:$16 sps:$4 sm:$0xff]   ;;  %v12564_v19 = vld [vmem:[#allocation6 + $0x7c4] ss:$16 sps:$4 sm:$0xff]  }
 0x33d   :  { %4875 = vmatprep.subr.bf16.mxu1 %v12435_v8  ;;  %4779 = vmatprep.subr.bf16.mxu0 %v12486_v21  ;;  %v12472_v8 = vld [vmem:[#allocation6 + $0x4a8] ss:$16 sps:$4 sm:$0xff]   ;;  %v12477_v21 = vld [vmem:[#allocation6 + $0x4cc] ss:$16 sps:$4 sm:$0xff]  }
 0x340   :  { %4876 = vmatpush1.bf16.msra.mxu1 %v12433_v22  ;;  %4780 = vmatpush1.bf16.msra.mxu0 %v12484_v23  ;;  %v12562_v22 = vld [vmem:[#allocation6 + $0x7c0] ss:$16 sps:$4 sm:$0xff]   ;;  %v12570_v23 = vld [vmem:[#allocation6 + $0x7e4] ss:$16 sps:$4 sm:$0xff]  }
 0x341   :  { %4877 = vmatprep.subr.bf16.mxu1 %v12438_v24  ;;  %4781 = vmatprep.subr.bf16.mxu0 %v12492_v25  ;;  %v12475_v24 = vld [vmem:[#allocation6 + $0x4c8] ss:$16 sps:$4 sm:$0xff]   ;;  %v12483_v25 = vld [vmem:[#allocation6 + $0x4ec] ss:$16 sps:$4 sm:$0xff]  }
 0x344   :  { %4878 = vmatpush1.bf16.msra.mxu1 %v12436_v58  ;;  %4782 = vmatpush1.bf16.msra.mxu0 %v12490_v30  ;;  %v12568_v58 = vld [vmem:[#allocation6 + $0x7e0] ss:$16 sps:$4 sm:$0xff]   ;;  %v12601_v30 = vld [vmem:[%s14264_s6 + $0x40] sm:$0xff]  }
 0x345   :  { %4879 = vmatprep.subr.bf16.mxu1 %v12441_v31  ;;  %4783 = vmatprep.subr.bf16.mxu0 %v12498_v32  ;;  %v12481_v31 = vld [vmem:[#allocation6 + $0x4e8] ss:$16 sps:$4 sm:$0xff]   ;;  %v12489_v32 = vld [vmem:[#allocation6 + $0x50c] ss:$16 sps:$4 sm:$0xff]  }
 0x348   :  { %4880 = vmatpush1.bf16.msra.mxu1 %v12439_v34  ;;  %4784 = vmatpush1.bf16.msra.mxu0 %v12496_v35  ;;  %v12487_v34 = vld [vmem:[#allocation6 + $0x508] ss:$16 sps:$4 sm:$0xff]   ;;  %v12495_v35 = vld [vmem:[#allocation6 + $0x52c] ss:$16 sps:$4 sm:$0xff]  }
 0x349   :  { %4881 = vmatprep.subr.bf16.mxu1 %v12444_v36  ;;  %4785 = vmatprep.subr.bf16.mxu0 %v12504_v37  ;;  %v12493_v36 = vld [vmem:[#allocation6 + $0x528] ss:$16 sps:$4 sm:$0xff]   ;;  %v12501_v37 = vld [vmem:[#allocation6 + $0x54c] ss:$16 sps:$4 sm:$0xff]  }
 0x34c   :  { %4882 = vmatpush1.bf16.msra.mxu1 %v12442_v39  ;;  %4786 = vmatpush1.bf16.msra.mxu0 %v12502_v42  ;;  %v12499_v39 = vld [vmem:[#allocation6 + $0x548] ss:$16 sps:$4 sm:$0xff]   ;;  %v12507_v42 = vld [vmem:[#allocation6 + $0x56c] ss:$16 sps:$4 sm:$0xff]  }
 0x34d   :  { %4883 = vmatprep.subr.bf16.mxu1 %v12447_v16  ;;  %4787 = vmatprep.subr.bf16.mxu0 %v12510_v41  ;;  %v12505_v16 = vld [vmem:[#allocation6 + $0x568] ss:$16 sps:$4 sm:$0xff]   ;;  %v12513_v41 = vld [vmem:[#allocation6 + $0x58c] ss:$16 sps:$4 sm:$0xff]  }
 0x350   :  { %4884 = vmatpush1.bf16.msra.mxu1 %v12445_v43  ;;  %4788 = vmatpush1.bf16.msra.mxu0 %v12508_v44  ;;  %v12511_v43 = vld [vmem:[#allocation6 + $0x588] ss:$16 sps:$4 sm:$0xff]   ;;  %v12519_v44 = vld [vmem:[#allocation6 + $0x5ac] ss:$16 sps:$4 sm:$0xff]  }
 0x351   :  { %4885 = vmatprep.subr.bf16.mxu1 %v12450_v46  ;;  %4789 = vmatprep.subr.bf16.mxu0 %v12516_v47  ;;  %v12517_v46 = vld [vmem:[#allocation6 + $0x5a8] ss:$16 sps:$4 sm:$0xff]   ;;  %v12525_v47 = vld [vmem:[#allocation6 + $0x5cc] ss:$16 sps:$4 sm:$0xff]  }
 0x354   :  { %4886 = vmatpush1.bf16.msra.mxu1 %v12448_v49  ;;  %4790 = vmatpush1.bf16.msra.mxu0 %v12514_v51  ;;  %v12523_v49 = vld [vmem:[#allocation6 + $0x5c8] ss:$16 sps:$4 sm:$0xff]   ;;  %v12531_v51 = vld [vmem:[#allocation6 + $0x5ec] ss:$16 sps:$4 sm:$0xff]  }
 0x355   :  { %4887 = vmatprep.subr.bf16.mxu1 %v12453_v52  ;;  %4791 = vmatprep.subr.bf16.mxu0 %v12522_v53  ;;  %v12529_v52 = vld [vmem:[#allocation6 + $0x5e8] ss:$16 sps:$4 sm:$0xff]   ;;  %v12537_v53 = vld [vmem:[#allocation6 + $0x60c] ss:$16 sps:$4 sm:$0xff]  }
 0x358   :  { %4888 = vmatpush1.bf16.msra.mxu1 %v12451_v54  ;;  %4792 = vmatpush1.bf16.msra.mxu0 %v12520_v56  ;;  %v12535_v54 = vld [vmem:[#allocation6 + $0x608] ss:$16 sps:$4 sm:$0xff]   ;;  %v12543_v56 = vld [vmem:[#allocation6 + $0x62c] ss:$16 sps:$4 sm:$0xff]  }
 0x359   :  { %4889 = vmatprep.subr.bf16.mxu1 %v12456_v57  ;;  %4793 = vmatprep.subr.bf16.mxu0 %v12528_v59  ;;  %v12541_v57 = vld [vmem:[#allocation6 + $0x628] ss:$16 sps:$4 sm:$0xff]   ;;  %v12549_v59 = vld [vmem:[#allocation6 + $0x64c] ss:$16 sps:$4 sm:$0xff]  }
 0x35c   :  { %4890 = vmatpush1.bf16.msra.mxu1 %v12454_v60  ;;  %4794 = vmatpush1.bf16.msra.mxu0 %v12526_v0  ;;  %v12547_v60 = vld [vmem:[#allocation6 + $0x648] ss:$16 sps:$4 sm:$0xff]   ;;  %v12555_v0 = vld [vmem:[#allocation6 + $0x66c] ss:$16 sps:$4 sm:$0xff]  }
 0x35d   :  { %4900 = vmatprep.subr.bf16.mxu1 %v12459_v61  ;;  %4795 = vmatprep.subr.bf16.mxu0 %v12534_v62  ;;  %v12553_v61 = vld [vmem:[#allocation6 + $0x668] ss:$16 sps:$4 sm:$0xff]   ;;  %v12561_v62 = vld [vmem:[#allocation6 + $0x68c] ss:$16 sps:$4 sm:$0xff]  }
 0x35f   :  { %4892 = vmatmul.mubr.bf16.vlgmr.msra.gmra.mrb[12].mxu1 %v13905_v3  ;;  %v12466_v3 = vld [vmem:[#allocation6 + $0x468] ss:$16 sps:$4 sm:$0xff]  }
 0x360   :  { %4901 = vmatpush1.bf16.msra.mxu1 %v12457_v2  ;;  %4932 = vmatprep.mubr.bf16.mxu1 %v13908_v5  ;;  %v12550_v5 = vld [vmem:[#allocation6 + $0x780] ss:$16 sps:$4 sm:$0xff]   ;;  %v654_v2 = vsub.s32 6, %v13788_v29 }
 0x361   :  { %4902 = vmatprep.subr.bf16.mxu1 %v12462_v9  ;;  %4796 = vmatpush1.bf16.msra.mxu0 %v12532_v1  ;;  %v12559_v9 = vld [vmem:[#allocation6 + $0x688] ss:$16 sps:$4 sm:$0xff]   ;;  %v658_v1 = vsub.s32 7, %v13788_v29  ;;  %v13050_v29 = vld [vmem:[#allocation18 + $0xbd8] ss:$24 sps:$4 sm:$0xff]  }
 0x362   :  { %4797 = vmatprep.subr.bf16.mxu0 %v12540_v55  ;;  %v655_v55 = vrot.slane %v13894_v48, %v654_v2 }
 0x364   :  { %4903 = vmatpush1.bf16.msra.mxu1 %v12460_v4  ;;  %v659_v4 = vrot.slane %v13894_v48, %v658_v1  ;;  %v12602_v48 = vld [vmem:[%s14264_s6] sm:$0xff]  }
 0x365   :  { %4904 = vmatprep.subr.bf16.mxu1 %v12465_v6  ;;  %4798 = vmatpush1.bf16.msra.mxu0 %v12538_v7  ;;  %v12565_v6 = vld [vmem:[#allocation6 + $0x6a8] ss:$16 sps:$4 sm:$0xff]   ;;  %v12573_v7 = vld [vmem:[#allocation6 + $0x6cc] ss:$16 sps:$4 sm:$0xff]  }
 0x366   :  { %4799 = vmatprep.subr.bf16.mxu0 %v12546_v10 }
 0x368   :  { %4905 = vmatpush1.bf16.msra.mxu1 %v12463_v12 }
 0x369   :  { %4906 = vmatprep.subr.bf16.mxu1 %v12468_v13  ;;  %4800 = vmatpush1.bf16.msra.mxu0 %v12544_v28 }
 0x36a   :  { %4801 = vmatprep.subr.bf16.mxu0 %v12552_v14 }
 0x36c   :  { %4907 = vmatpush1.bf16.msra.mxu1 %v12466_v3  ;;  %v12571_v3 = vld [vmem:[#allocation6 + $0x6c8] ss:$16 sps:$4 sm:$0xff]  }
 0x36d   :  { %4908 = vmatprep.subr.bf16.mxu1 %v12471_v45  ;;  %4802 = vmatpush1.bf16.msra.mxu0 %v12550_v5 }
 0x36e   :  { %4803 = vmatprep.subr.bf16.mxu0 %v12558_v15  ;;  %v12576_v15 = vld [vmem:[#allocation6 + $0x6ec] ss:$16 sps:$4 sm:$0xff]  }
 0x370   :  { %4909 = vmatpush1.bf16.msra.mxu1 %v12469_v33 }
 0x371   :  { %4910 = vmatprep.subr.bf16.mxu1 %v12474_v17  ;;  %4804 = vmatpush1.bf16.msra.mxu0 %v12556_v18  ;;  %v12574_v18 = vld [vmem:[#allocation6 + $0x6e8] ss:$16 sps:$4 sm:$0xff]  }
 0x372   :  { %4805 = vmatprep.subr.bf16.mxu0 %v12564_v19 }
 0x374   :  { %4911 = vmatpush1.bf16.msra.mxu1 %v12472_v8  ;;  %v12579_v8 = vld [vmem:[#allocation6 + $0x70c] ss:$16 sps:$4 sm:$0xff]  }
 0x375   :  { %4912 = vmatprep.subr.bf16.mxu1 %v12477_v21  ;;  %4806 = vmatpush1.bf16.msra.mxu0 %v12562_v22  ;;  %v12603_v21 = vld [vmem:[%s14264_s6 + $0x48] sm:$0xff]   ;;  %v12577_v22 = vld [vmem:[#allocation6 + $0x708] ss:$16 sps:$4 sm:$0xff]  }
 0x376   :  { %4807 = vmatprep.subr.bf16.mxu0 %v12570_v23  ;;  %v12604_v23 = vld [vmem:[%s14264_s6 + $0x8] sm:$0xff]  }
 0x378   :  { %4913 = vmatpush1.bf16.msra.mxu1 %v12475_v24  ;;  %v12582_v24 = vld [vmem:[#allocation6 + $0x72c] ss:$16 sps:$4 sm:$0xff]  }
 0x379   :  { %4914 = vmatprep.subr.bf16.mxu1 %v12483_v25  ;;  %4808 = vmatpush1.bf16.msra.mxu0 %v12568_v58  ;;  %v12605_v25 = vld [vmem:[%s14264_s6 + $0x50] sm:$0xff]  }
 0x37a   :  { %11976 = vmatprep.subr.bf16.mxu0 %v12601_v30  ;;  %v12580_v58 = vld [vmem:[#allocation6 + $0x728] ss:$16 sps:$4 sm:$0xff]  }
 0x37b   :  { %v12606_v30 = vld [vmem:[%s14264_s6 + $0x10] sm:$0xff]  }
 0x37c   :  { %4915 = vmatpush1.bf16.msra.mxu1 %v12481_v31  ;;  %v12585_v31 = vld [vmem:[#allocation6 + $0x74c] ss:$16 sps:$4 sm:$0xff]  }
 0x37d   :  { %4916 = vmatprep.subr.bf16.mxu1 %v12489_v32  ;;  %v12607_v32 = vld [vmem:[%s14264_s6 + $0x58] sm:$0xff]  }
 0x380   :  { %4917 = vmatpush1.bf16.msra.mxu1 %v12487_v34  ;;  %v12583_v34 = vld [vmem:[#allocation6 + $0x748] ss:$16 sps:$4 sm:$0xff]  }
 0x381   :  { %4918 = vmatprep.subr.bf16.mxu1 %v12495_v35  ;;  %v12608_v35 = vld [vmem:[%s14264_s6 + $0x18] sm:$0xff]  }
 0x384   :  { %4919 = vmatpush1.bf16.msra.mxu1 %v12493_v36  ;;  %v12588_v36 = vld [vmem:[#allocation6 + $0x76c] ss:$16 sps:$4 sm:$0xff]  }
 0x385   :  { %4920 = vmatprep.subr.bf16.mxu1 %v12501_v37  ;;  %v12609_v37 = vld [vmem:[%s14264_s6 + $0x60] sm:$0xff]  }
 0x388   :  { %4921 = vmatpush1.bf16.msra.mxu1 %v12499_v39  ;;  %v12586_v39 = vld [vmem:[#allocation6 + $0x768] ss:$16 sps:$4 sm:$0xff]  }
 0x389   :  { %4922 = vmatprep.subr.bf16.mxu1 %v12507_v42  ;;  %v12610_v42 = vld [vmem:[%s14264_s6 + $0x20] sm:$0xff]  }
 0x38c   :  { %4923 = vmatpush1.bf16.msra.mxu1 %v12505_v16  ;;  %v12591_v16 = vld [vmem:[#allocation6 + $0x78c] ss:$16 sps:$4 sm:$0xff]  }
 0x38d   :  { %4924 = vmatprep.subr.bf16.mxu1 %v12513_v41  ;;  %v12611_v41 = vld [vmem:[%s14264_s6 + $0x68] sm:$0xff]  }
 0x390   :  { %4925 = vmatpush1.bf16.msra.mxu1 %v12511_v43  ;;  %v12589_v43 = vld [vmem:[#allocation6 + $0x788] ss:$16 sps:$4 sm:$0xff]  }
 0x391   :  { %4926 = vmatprep.subr.bf16.mxu1 %v12519_v44  ;;  %v12612_v44 = vld [vmem:[%s14264_s6 + $0x28] sm:$0xff]  }
 0x394   :  { %4927 = vmatpush1.bf16.msra.mxu1 %v12517_v46  ;;  %v12594_v46 = vld [vmem:[#allocation6 + $0x7ac] ss:$16 sps:$4 sm:$0xff]  }
 0x395   :  { %4928 = vmatprep.subr.bf16.mxu1 %v12525_v47  ;;  %v12592_v47 = vld [vmem:[#allocation6 + $0x7a8] ss:$16 sps:$4 sm:$0xff]  }
 0x398   :  { %4929 = vmatpush1.bf16.msra.mxu1 %v12523_v49  ;;  %v12597_v49 = vld [vmem:[#allocation6 + $0x7cc] ss:$16 sps:$4 sm:$0xff]  }
 0x399   :  { %4930 = vmatprep.subr.bf16.mxu1 %v12531_v51  ;;  %v12595_v51 = vld [vmem:[#allocation6 + $0x7c8] ss:$16 sps:$4 sm:$0xff]  }
 0x39c   :  { %4931 = vmatpush1.bf16.msra.mxu1 %v12529_v52  ;;  %v12600_v52 = vld [vmem:[#allocation6 + $0x7ec] ss:$16 sps:$4 sm:$0xff]  }
 0x39d   :  { %4941 = vmatprep.subr.bf16.mxu1 %v12537_v53  ;;  %v12598_v53 = vld [vmem:[#allocation6 + $0x7e8] ss:$16 sps:$4 sm:$0xff]  }
 0x39f   :  { %4933 = vmatmul.mubr.bf16.vlgmr.msra.gmra.mrb[12].mxu1 %v13920_v20  ;;  %v12567_v20 = vld [vmem:[#allocation6 + $0x6ac] ss:$16 sps:$4 sm:$0xff]  }
 0x3a0   :  { %4942 = vmatpush1.bf16.msra.mxu1 %v12535_v54  ;;  %v12613_v54 = vld [vmem:[%s14264_s6 + $0x70] sm:$0xff]  }
 0x3a1   :  { %4943 = vmatprep.subr.bf16.mxu1 %v12543_v56  ;;  %v12614_v56 = vld [vmem:[%s14264_s6 + $0x30] sm:$0xff]  }
 0x3a4   :  { %4944 = vmatpush1.bf16.msra.mxu1 %v12541_v57  ;;  %v12615_v57 = vld [vmem:[%s14264_s6 + $0x78] sm:$0xff]  }
 0x3a5   :  { %4945 = vmatprep.subr.bf16.mxu1 %v12549_v59  ;;  %v12616_v59 = vld [vmem:[%s14264_s6 + $0x38] sm:$0xff]  }
 0x3a8   :  { %4946 = vmatpush1.bf16.msra.mxu1 %v12547_v60  ;;  %v12617_v60 = vld [vmem:[%s14266_s8 + $0x40] sm:$0xff]  }
 0x3a9   :  { %4947 = vmatprep.subr.bf16.mxu1 %v12555_v0  ;;  %v12619_v0 = vld [vmem:[%s14264_s6 + $0xc0] sm:$0xff]  }
 0x3ac   :  { %4948 = vmatpush1.bf16.msra.mxu1 %v12553_v61  ;;  %v12621_v61 = vld [vmem:[%s14264_s6 + $0x80] sm:$0xff]  }
 0x3ad   :  { %4949 = vmatprep.subr.bf16.mxu1 %v12561_v62  ;;  %v12623_v62 = vld [vmem:[%s14264_s6 + $0xc8] sm:$0xff]  }
 0x3b0   :  { %4950 = vmatpush1.bf16.msra.mxu1 %v12559_v9  ;;  %v12625_v9 = vld [vmem:[%s14264_s6 + $0x88] sm:$0xff]  }
 0x3b1   :  { %4951 = vmatprep.subr.bf16.mxu1 %v12567_v20  ;;  %v12627_v20 = vld [vmem:[%s14264_s6 + $0xd0] sm:$0xff]  }
 0x3b2   :  { %v3073_v10 = vpop.f32.mrb[8].mxu1 }
 0x3b3   :  { %v12072_v12 = vadd.f32 %v3073_v10, %v655_v55  ;;  %v3075_v13 = vpop.f32.mrb[9].mxu1  ;;  %v12629_v55 = vld [vmem:[%s14264_s6 + $0x90] sm:$0xff]   ;;  %v12637_v10 = vld [vmem:[%s14264_s6 + $0xa0] sm:$0xff]  }
 0x3b4   :  { %v12073_v28 = vadd.f32 %v3075_v13, %v659_v4  ;;  %v3077_v14 = vpop.f32.mrb[10].mxu1  ;;  %4952 = vmatpush1.bf16.msra.mxu1 %v12565_v6  ;;  %v12631_v4 = vld [vmem:[%s14264_s6 + $0xd8] sm:$0xff]   ;;  %v12641_v13 = vld [vmem:[%s14264_s6 + $0xa8] sm:$0xff]  }
 0x3b5   :  { %v3086_v45 = vmax.f32 %v12072_v12, 0.0  ;;  %v3078_v5 = vpop.f32.mrb[11].mxu1  ;;  %4953 = vmatprep.subr.bf16.mxu1 %v12573_v7  ;;  %v12633_v6 = vld [vmem:[%s14264_s6 + $0x98] sm:$0xff]   ;;  %v12635_v7 = vld [vmem:[%s14264_s6 + $0xe0] sm:$0xff]   ;;  %v12639_v12 = vld [vmem:[%s14264_s6 + $0xe8] sm:$0xff]  }
 0x3b6   :  { %v3087_v33 = vmax.f32 %v12073_v28, 0.0  ;;  %v12643_v28 = vld [vmem:[%s14264_s6 + $0xf0] sm:$0xff]   ;;  %v12649_v5 = vld [vmem:[%s14266_s8 + $0xc0] sm:$0xff]  }
 0x3b7   :  { %v3094_v19 = vpack.c.bf16 %v3086_v45, %v3086_v45  ;;  %v12645_v14 = vld [vmem:[%s14264_s6 + $0xb0] sm:$0xff]   ;;  %v12648_v45 = vld [vmem:[%s14264_s6 + $0xb8] sm:$0xff]  }
 0x3b8   :  { %v3095_v17 = vpack.c.bf16 %v3087_v33, %v3087_v33  ;;  %4954 = vmatpush1.bf16.msra.mxu1 %v12571_v3  ;;  %v12647_v3 = vld [vmem:[%s14264_s6 + $0xf8] sm:$0xff]  }
 0x3b9   :  { %4955 = vmatprep.subr.bf16.mxu1 %v12576_v15  ;;  %v3352_v15 = vld [vmem:[#allocation7] sm:$0xf] }
 0x3ba   :  { %4809 = vmatprep.mubr.bf16.mxu0 %v3095_v17  ;;  %4973 = vmatprep.mubr.bf16.mxu1 %v3095_v17  ;;  %v3357_v33 = vrot.slane %v3352_v15, %v13860_v26  ;;  %v3361_v17 = vrot.slane %v3352_v15, %v13863_v27 }
 0x3bb   :  { %4810 = vmatmul.mubr.bf16.vlgmr.msra.gmra.mrb[8].mxu0 %v3094_v19 }
 0x3bc   :  { %4956 = vmatpush1.bf16.msra.mxu1 %v12574_v18  ;;  %11977 = vmatpush3.bf16.msra.mxu0 %v12602_v48 }
 0x3bd   :  { %4957 = vmatprep.subr.bf16.mxu1 %v12579_v8  ;;  %11978 = vmatprep.subr.bf16.mxu0 %v12603_v21 }
 0x3c0   :  { %4958 = vmatpush1.bf16.msra.mxu1 %v12577_v22  ;;  %11979 = vmatpush3.bf16.msra.mxu0 %v12604_v23 }
 0x3c1   :  { %4959 = vmatprep.subr.bf16.mxu1 %v12582_v24  ;;  %11980 = vmatprep.subr.bf16.mxu0 %v12605_v25 }
 0x3c4   :  { %4960 = vmatpush1.bf16.msra.mxu1 %v12580_v58  ;;  %11981 = vmatpush3.bf16.msra.mxu0 %v12606_v30  ;;  %v12618_v58 = vld [vmem:[%s14266_s8] sm:$0xff]  }
 0x3c5   :  { %4961 = vmatprep.subr.bf16.mxu1 %v12585_v31  ;;  %11982 = vmatprep.subr.bf16.mxu0 %v12607_v32  ;;  %v12620_v31 = vld [vmem:[%s14266_s8 + $0x48] sm:$0xff]  }
 0x3c6   :  { %v12622_v32 = vld [vmem:[%s14266_s8 + $0x8] sm:$0xff]  }
 0x3c8   :  { %4962 = vmatpush1.bf16.msra.mxu1 %v12583_v34  ;;  %11983 = vmatpush3.bf16.msra.mxu0 %v12608_v35  ;;  %v12624_v34 = vld [vmem:[%s14266_s8 + $0x50] sm:$0xff]  }
 0x3c9   :  { %4963 = vmatprep.subr.bf16.mxu1 %v12588_v36  ;;  %11984 = vmatprep.subr.bf16.mxu0 %v12609_v37  ;;  %v12626_v35 = vld [vmem:[%s14266_s8 + $0x10] sm:$0xff]   ;;  %v12628_v36 = vld [vmem:[%s14266_s8 + $0x58] sm:$0xff]  }
 0x3ca   :  { %v12630_v37 = vld [vmem:[%s14266_s8 + $0x18] sm:$0xff]  }
 0x3cc   :  { %4964 = vmatpush1.bf16.msra.mxu1 %v12586_v39  ;;  %11985 = vmatpush3.bf16.msra.mxu0 %v12610_v42  ;;  %v12632_v39 = vld [vmem:[%s14266_s8 + $0x60] sm:$0xff]  }
 0x3cd   :  { %4965 = vmatprep.subr.bf16.mxu1 %v12591_v16  ;;  %11986 = vmatprep.subr.bf16.mxu0 %v12611_v41  ;;  %v12634_v42 = vld [vmem:[%s14266_s8 + $0x20] sm:$0xff]   ;;  %v12636_v16 = vld [vmem:[%s14266_s8 + $0x68] sm:$0xff]  }
 0x3ce   :  { %v12638_v41 = vld [vmem:[%s14266_s8 + $0x28] sm:$0xff]  }
 0x3d0   :  { %4966 = vmatpush1.bf16.msra.mxu1 %v12589_v43  ;;  %11987 = vmatpush3.bf16.msra.mxu0 %v12612_v44  ;;  %v12640_v43 = vld [vmem:[%s14266_s8 + $0x70] sm:$0xff]  }
 0x3d1   :  { %4967 = vmatprep.subr.bf16.mxu1 %v12594_v46  ;;  %11988 = vmatprep.subr.bf16.mxu0 %v12613_v54  ;;  %v12642_v44 = vld [vmem:[%s14266_s8 + $0x30] sm:$0xff]   ;;  %v12644_v46 = vld [vmem:[%s14266_s8 + $0x78] sm:$0xff]  }
 0x3d4   :  { %4968 = vmatpush1.bf16.msra.mxu1 %v12592_v47  ;;  %11989 = vmatpush3.bf16.msra.mxu0 %v12614_v56  ;;  %v3365_v47 = vrot.slane %v3352_v15, %v13889_v40 }
 0x3d5   :  { %4969 = vmatprep.subr.bf16.mxu1 %v12597_v49  ;;  %11990 = vmatprep.subr.bf16.mxu0 %v12615_v57  ;;  %v3369_v49 = vrot.slane %v3352_v15, %v13892_v63  ;;  %v12664_v15 = vld [vmem:[%s14266_s8 + $0xb8] sm:$0xff]  }
 0x3d8   :  { %4970 = vmatpush1.bf16.msra.mxu1 %v12595_v51  ;;  %11991 = vmatpush3.bf16.msra.mxu0 %v12616_v59  ;;  %v12646_v51 = vld [vmem:[%s14266_s8 + $0x38] sm:$0xff]  }
 0x3d9   :  { %4971 = vmatprep.subr.bf16.mxu1 %v12600_v52  ;;  %12020 = vmatprep.subr.bf16.mxu0 %v12617_v60 }
 0x3dc   :  { %4972 = vmatpush1.bf16.msra.mxu1 %v12598_v53 }
 0x3dd   :  { %11998 = vmatprep.subr.bf16.mxu1 %v12619_v0 }
 0x3df   :  { %4974 = vmatmul.mubr.bf16.vlgmr.msra.gmra.mrb[12].mxu1 %v3094_v19 }
 0x3e0   :  { %11999 = vmatpush3.bf16.msra.mxu1 %v12621_v61 }
 0x3e1   :  { %12000 = vmatprep.subr.bf16.mxu1 %v12623_v62  ;;  %v12650_v62 = vld [vmem:[%s14266_s8 + $0x80] sm:$0xff]  }
 0x3e4   :  { %12001 = vmatpush3.bf16.msra.mxu1 %v12625_v9 }
 0x3e5   :  { %12002 = vmatprep.subr.bf16.mxu1 %v12627_v20  ;;  %v12651_v20 = vld [vmem:[%s14266_s8 + $0xc8] sm:$0xff]  }
 0x3e8   :  { %12003 = vmatpush3.bf16.msra.mxu1 %v12629_v55  ;;  %v12652_v55 = vld [vmem:[%s14266_s8 + $0x88] sm:$0xff]  }
 0x3e9   :  { %12004 = vmatprep.subr.bf16.mxu1 %v12631_v4  ;;  %v12653_v4 = vld [vmem:[%s14266_s8 + $0xd0] sm:$0xff]  }
 0x3ec   :  { %12005 = vmatpush3.bf16.msra.mxu1 %v12633_v6  ;;  %v12654_v6 = vld [vmem:[%s14266_s8 + $0x90] sm:$0xff]  }
 0x3ed   :  { %12006 = vmatprep.subr.bf16.mxu1 %v12635_v7  ;;  %v12655_v7 = vld [vmem:[%s14266_s8 + $0xd8] sm:$0xff]  }
 0x3f0   :  { %12007 = vmatpush3.bf16.msra.mxu1 %v12637_v10  ;;  %v12656_v10 = vld [vmem:[%s14266_s8 + $0x98] sm:$0xff]  }
 0x3f1   :  { %12008 = vmatprep.subr.bf16.mxu1 %v12639_v12  ;;  %v12657_v12 = vld [vmem:[%s14266_s8 + $0xe0] sm:$0xff]  }
 0x3f4   :  { %12009 = vmatpush3.bf16.msra.mxu1 %v12641_v13  ;;  %v12658_v13 = vld [vmem:[%s14266_s8 + $0xa0] sm:$0xff]  }
 0x3f5   :  { %12010 = vmatprep.subr.bf16.mxu1 %v12643_v28  ;;  %v12659_v28 = vld [vmem:[%s14266_s8 + $0xe8] sm:$0xff]  }
 0x3f8   :  { %12011 = vmatpush3.bf16.msra.mxu1 %v12645_v14  ;;  %v12660_v14 = vld [vmem:[%s14266_s8 + $0xa8] sm:$0xff]  }
 0x3f9   :  { %12012 = vmatprep.subr.bf16.mxu1 %v12647_v3  ;;  %v12661_v3 = vld [vmem:[%s14266_s8 + $0xf0] sm:$0xff]  }
 0x3fc   :  { %12013 = vmatpush3.bf16.msra.mxu1 %v12648_v45  ;;  %v12662_v45 = vld [vmem:[%s14266_s8 + $0xb0] sm:$0xff]  }
 0x3fd   :  { %12042 = vmatprep.subr.bf16.mxu1 %v12649_v5  ;;  %v12663_v5 = vld [vmem:[%s14266_s8 + $0xf8] sm:$0xff]  }
 0x48e   :  { %v4811_v18 = vpop.f32.mrb[8].mxu0 }
 0x48f   :  { %v12074_v48 = vadd.f32 %v4811_v18, %v3357_v33  ;;  %v4813_v19 = vpop.f32.mrb[9].mxu0  ;;  %v5683_v33 = vld [vmem:[#allocation12] sm:$0xff] }
 0x490   :  { %v12075_v8 = vadd.f32 %v4813_v19, %v3361_v17  ;;  %v4815_v21 = vpop.f32.mrb[10].mxu0  ;;  %v5684_v17 = vld [vmem:[#allocation12 + $0x8] sm:$0xff]  ;;  %v11328_v18 = vcombine.high %v5683_v33, %v5683_v33 }
 0x491   :  { %v4982_v22 = vmax.f32 %v12074_v48, 0.0  ;;  %v4816_v23 = vpop.f32.mrb[11].mxu0  ;;  %v11327_v48 = vcombine.low %v5683_v33, %v5683_v33  ;;  %v11330_v19 = vcombine.high %v5684_v17, %v5684_v17  ;;  %v13545_v21 = vmov 0  }
 0x492   :  { %v4983_v24 = vmax.f32 %v12075_v8, 0.0  ;;  %v11329_v8 = vcombine.low %v5684_v17, %v5684_v17 }
 0x493   :  { %v4986_v30 = vpack.c.bf16 %v4982_v22, %v4982_v22  ;;  %v5723_v22 = vsel %vm5721_vm0, %v11327_v48, 0  ;;  %v5844_v48 = vld [vmem:[#allocation15 + $0xa0] sm:$0xff] }
 0x494   :  { %v4987_v25 = vpack.c.bf16 %v4983_v24, %v4983_v24  ;;  %v5729_v23 = vsel %vm5721_vm0, %v11329_v8, 0  ;;  %v5824_v24 = vld [vmem:[#allocation15] sm:$0xff]  ;;  %v5845_v8 = vld [vmem:[#allocation15 + $0xa8] sm:$0xff] }
 0x496   :  { %5285 = vmatprep.mubr.bf16.mxu0 %v4987_v25 }
 0x497   :  { %5286 = vmatmul.mubr.bf16.vlgmr.msra.gmra.mrb[12].mxu0 %v4986_v30 }
 0x498   :  { %12021 = vmatpush3.bf16.msra.mxu0 %v12618_v58  ;;  %5628 = vmatprep.mubr.bf16.mxu0 %v4987_v25  ;;  %v5828_v25 = vld [vmem:[#allocation15 + $0x20] sm:$0xff]  ;;  %v5825_v58 = vld [vmem:[#allocation15 + $0x8] sm:$0xff] }
 0x499   :  { %12022 = vmatprep.subr.bf16.mxu0 %v12620_v31  ;;  %v11336_v31 = vcombine.high %v5824_v24, %v5828_v25 }
 0x49c   :  { %12023 = vmatpush3.bf16.msra.mxu0 %v12622_v32  ;;  %v5829_v32 = vld [vmem:[#allocation15 + $0x28] sm:$0xff] }
 0x49d   :  { %12024 = vmatprep.subr.bf16.mxu0 %v12624_v34  ;;  %v11337_v34 = vcombine.low %v5825_v58, %v5829_v32 }
 0x4a0   :  { %12025 = vmatpush3.bf16.msra.mxu0 %v12626_v35  ;;  %v11338_v35 = vcombine.high %v5825_v58, %v5829_v32  ;;  %v5852_v58 = vld [vmem:[#allocation15 + $0xe0] sm:$0xff]  ;;  %v5853_v32 = vld [vmem:[#allocation15 + $0xe8] sm:$0xff] }
 0x4a1   :  { %12026 = vmatprep.subr.bf16.mxu0 %v12628_v36 }
 0x4a4   :  { %12027 = vmatpush3.bf16.msra.mxu0 %v12630_v37 }
 0x4a5   :  { %12028 = vmatprep.subr.bf16.mxu0 %v12632_v39 }
 0x4a8   :  { %12029 = vmatpush3.bf16.msra.mxu0 %v12634_v42 }
 0x4a9   :  { %12030 = vmatprep.subr.bf16.mxu0 %v12636_v16 }
 0x4ac   :  { %12031 = vmatpush3.bf16.msra.mxu0 %v12638_v41 }
 0x4ad   :  { %12032 = vmatprep.subr.bf16.mxu0 %v12640_v43 }
 0x4b0   :  { %12033 = vmatpush3.bf16.msra.mxu0 %v12642_v44 }
 0x4b1   :  { %12034 = vmatprep.subr.bf16.mxu0 %v12644_v46 }
 0x4b2   :  { %v4975_v52 = vpop.f32.mrb[12].mxu1 }
 0x4b3   :  { %v12076_v53 = vadd.f32 %v4975_v52, %v3365_v47  ;;  %v4977_v54 = vpop.f32.mrb[13].mxu1  ;;  %v11261_v47 = vld [vmem:[#allocation9] ss:$0 sm:$0xff] }
 0x4b4   :  { %v12077_v56 = vadd.f32 %v4977_v54, %v3369_v49  ;;  %12035 = vmatpush3.bf16.msra.mxu0 %v12646_v51  ;;  %v4979_v57 = vpop.f32.mrb[14].mxu1 }
 0x4b5   :  { %v4984_v59 = vmax.f32 %v12076_v53, 0.0  ;;  %v4980_v60 = vpop.f32.mrb[15].mxu1  ;;  %11331 = vmatprep.subr.msk.bf16.mxu0 %vm5721_vm0, %v11328_v18  ;;  %v5840_v18 = vld [vmem:[#allocation15 + $0x80] sm:$0xff] }
 0x4b6   :  { %v4985_v0 = vmax.f32 %v12077_v56, 0.0  ;;  %v11294_v60 = vld [vmem:[#allocation10] ss:$0 sm:$0xff] }
 0x4b7   :  { %5629 = vmatmul.mubr.bf16.vlgmr.msra.gmra.mrb[16].mxu0 %v4986_v30  ;;  %v4988_v9 = vpack.c.bf16 %v4984_v59, %v4984_v59  ;;  %v11335_v30 = vcombine.low %v5824_v24, %v5828_v25  ;;  %v5848_v25 = vld [vmem:[#allocation15 + $0xc0] sm:$0xff] }
 0x4b8   :  { %v4989_v61 = vpack.c.bf16 %v4985_v0, %v4985_v0  ;;  %5766 = vmatprep.mubr.bf16.mxu0 %v13545_v21  ;;  %5735 = vmatpush1.bf16.msra.mxu0 %v5723_v22 }
 0x4b9   :  { %7402 = vmatprep.subr.bf16.mxu0 %v11336_v31  ;;  %v5849_v31 = vld [vmem:[#allocation15 + $0xc8] sm:$0xff] }
 0x4ba   :  { %5325 = vmatprep.mubr.bf16.mxu1 %v4989_v61 }
 0x4bb   :  { %5326 = vmatmul.mubr.bf16.vlgmr.msra.gmra.mrb[16].mxu1 %v4988_v9 }
 0x4bc   :  { %12043 = vmatpush3.bf16.msra.mxu1 %v12650_v62  ;;  %5668 = vmatprep.mubr.bf16.mxu1 %v4989_v61 }
 0x4bd   :  { %12044 = vmatprep.subr.bf16.mxu1 %v12651_v20 }
 0x4c0   :  { %12045 = vmatpush3.bf16.msra.mxu1 %v12652_v55 }
 0x4c1   :  { %12046 = vmatprep.subr.bf16.mxu1 %v12653_v4 }
 0x4c4   :  { %12047 = vmatpush3.bf16.msra.mxu1 %v12654_v6 }
 0x4c5   :  { %12048 = vmatprep.subr.bf16.mxu1 %v12655_v7 }
 0x4c8   :  { %12049 = vmatpush3.bf16.msra.mxu1 %v12656_v10  ;;  %v5679_v10 = vld [vmem:[%s14259_s1] sm:$0x3] }
 0x4c9   :  { %12050 = vmatprep.subr.bf16.mxu1 %v12657_v12 }
 0x4cc   :  { %12051 = vmatpush3.bf16.msra.mxu1 %v12658_v13 }
 0x4cd   :  { %12052 = vmatprep.subr.bf16.mxu1 %v12659_v28  ;;  %v5832_v28 = vld [vmem:[#allocation15 + $0x40] sm:$0xff] }
 0x4d0   :  { %12053 = vmatpush3.bf16.msra.mxu1 %v12660_v14  ;;  %v5836_v14 = vld [vmem:[#allocation15 + $0x60] sm:$0xff] }
 0x4d1   :  { %12054 = vmatprep.subr.bf16.mxu1 %v12661_v3  ;;  %v5833_v3 = vld [vmem:[#allocation15 + $0x48] sm:$0xff]  ;;  %v11344_v33 = vcombine.high %v5832_v28, %v5836_v14 }
 0x4d4   :  { %12055 = vmatpush3.bf16.msra.mxu1 %v12662_v45  ;;  %v5837_v45 = vld [vmem:[#allocation15 + $0x68] sm:$0xff] }
 0x4d5   :  { %12056 = vmatprep.subr.bf16.mxu1 %v12663_v5  ;;  %v11346_v17 = vcombine.high %v5833_v3, %v5837_v45  ;;  %v11345_v22 = vcombine.low %v5833_v3, %v5837_v45  ;;  %v5888_v3 = vld [vmem:[#allocation15 + $0x200] sm:$0xff] }
 0x4d6   :  { %v5892_v45 = vld [vmem:[#allocation15 + $0x220] sm:$0xff] }
 0x4d8   :  { %12057 = vmatpush3.bf16.msra.mxu1 %v12664_v15 }
 0x4d9   :  { %11333 = vmatprep.subr.msk.bf16.mxu1 %vm5721_vm0, %v11330_v19  ;;  %v5841_v19 = vld [vmem:[#allocation15 + $0x88] sm:$0xff] }
 0x4da   :  { %v11354_v24 = vcombine.high %v5841_v19, %v5845_v8 }
 0x4db   :  { %5669 = vmatmul.mubr.bf16.vlgmr.msra.gmra.mrb[20].mxu1 %v4988_v9 }
 0x4dc   :  { %5807 = vmatprep.mubr.bf16.mxu1 %v13545_v21  ;;  %5776 = vmatpush1.bf16.msra.mxu1 %v5729_v23  ;;  %v11343_v21 = vcombine.low %v5832_v28, %v5836_v14  ;;  %v11352_v23 = vcombine.high %v5840_v18, %v5844_v48 }
 0x4dd   :  { %7484 = vmatprep.subr.bf16.mxu1 %v11338_v35  ;;  %v11351_v35 = vcombine.low %v5840_v18, %v5844_v48  ;;  %v11400_v18 = vcombine.high %v5888_v3, %v5892_v45 }
 0x56a   :  { %v11992_v36 = vpop.f32.mrb[12].mxu0 }
 0x56b   :  { %v11993_v37 = vpop.f32.mrb[13].mxu0 }
 0x56c   :  { %v11994_v39 = vadd.f32 %v11993_v37, %v11992_v36  ;;  %v11995_v42 = vpop.f32.mrb[14].mxu0  ;;  %v11353_v36 = vcombine.low %v5841_v19, %v5845_v8  ;;  %v11360_v37 = vcombine.high %v5848_v25, %v5852_v58  ;;  %v5896_v19 = vld [vmem:[#allocation15 + $0x240] sm:$0xff] }
 0x56d   :  { %v11996_v16 = vpop.f32.mrb[15].mxu0  ;;  %v5857_v42 = vld [vmem:[#allocation15 + $0x108] sm:$0xff]  ;;  %v5900_v8 = vld [vmem:[#allocation15 + $0x260] sm:$0xff] }
 0x56e   :  { %v5288_v53 = vadd.f32 %v11994_v39, %v11261_v47  ;;  %v11362_v39 = vcombine.high %v5849_v31, %v5853_v32  ;;  %v5861_v16 = vld [vmem:[#allocation15 + $0x128] sm:$0xff]  ;;  %v5864_v47 = vld [vmem:[#allocation15 + $0x140] sm:$0xff] }
 0x58a   :  { %v12036_v41 = vpop.f32.mrb[16].mxu0 }
 0x58b   :  { %v12037_v43 = vpop.f32.mrb[17].mxu0 }
 0x58c   :  { %v12038_v44 = vadd.f32 %v12037_v43, %v12036_v41  ;;  %v12039_v46 = vpop.f32.mrb[18].mxu0  ;;  %v11359_v41 = vcombine.low %v5848_v25, %v5852_v58  ;;  %v11361_v43 = vcombine.low %v5849_v31, %v5853_v32  ;;  %v11408_v25 = vcombine.high %v5896_v19, %v5900_v8  ;;  %v5904_v31 = vld [vmem:[#allocation15 + $0x280] sm:$0xff] }
 0x58d   :  { %v12040_v49 = vpop.f32.mrb[19].mxu0  ;;  %v11370_v46 = vcombine.high %v5857_v42, %v5861_v16  ;;  %v5908_v32 = vld [vmem:[#allocation15 + $0x2a0] sm:$0xff] }
 0x58e   :  { %v12014_v51 = vpop.f32.mrb[16].mxu1  ;;  %v5631_v62 = vadd.f32 %v12038_v44, %v11294_v60  ;;  %v5868_v49 = vld [vmem:[#allocation15 + $0x160] sm:$0xff] }
 0x58f   :  { %v12015_v52 = vpop.f32.mrb[17].mxu1  ;;  %v5876_v60 = vld [vmem:[#allocation15 + $0x1a0] sm:$0xff] }
 0x590   :  { %v12016_v54 = vadd.f32 %v12015_v52, %v12014_v51  ;;  %v12017_v56 = vpop.f32.mrb[18].mxu1  ;;  %v5865_v51 = vld [vmem:[#allocation15 + $0x148] sm:$0xff] }
 0x591   :  { %v12018_v57 = vpop.f32.mrb[19].mxu1  ;;  %v5869_v52 = vld [vmem:[#allocation15 + $0x168] sm:$0xff]  ;;  %v11376_v56 = vcombine.high %v5864_v47, %v5868_v49 }
 0x592   :  { %v5328_v59 = vadd.f32 %v12016_v54, %v5288_v53  ;;  %v11369_v54 = vcombine.low %v5857_v42, %v5861_v16  ;;  %v11378_v57 = vcombine.high %v5865_v51, %v5869_v52  ;;  %v5912_v42 = vld [vmem:[#allocation15 + $0x2c0] sm:$0xff] }
 0x593   :  { %v5916_v16 = vld [vmem:[#allocation15 + $0x2e0] sm:$0xff] }
 0x5ae   :  { %v12058_v0 = vpop.f32.mrb[20].mxu1 }
 0x5af   :  { %v12059_v61 = vpop.f32.mrb[21].mxu1 }
 0x5b0   :  { %v12060_v9 = vadd.f32 %v12059_v61, %v12058_v0  ;;  %v12061_v20 = vpop.f32.mrb[22].mxu1  ;;  %v5873_v0 = vld [vmem:[#allocation15 + $0x188] sm:$0xff] }
 0x5b1   :  { %v12062_v55 = vpop.f32.mrb[23].mxu1  ;;  %v5877_v61 = vld [vmem:[#allocation15 + $0x1a8] sm:$0xff] }
 0x5b2   :  { %v5671_v4 = vadd.f32 %v12060_v9, %v5631_v62  ;;  %v11375_v62 = vcombine.low %v5864_v47, %v5868_v49  ;;  %v11377_v9 = vcombine.low %v5865_v51, %v5869_v52  ;;  %v11386_v55 = vcombine.high %v5873_v0, %v5877_v61  ;;  %v5920_v51 = vld [vmem:[#allocation15 + $0x300] sm:$0xff] }
 0x5b3   :  { %v11424_v47 = vcombine.high %v5912_v42, %v5916_v16  ;;  %v5924_v52 = vld [vmem:[#allocation15 + $0x320] sm:$0xff] }
 0x5b4   :  { %v5676_v6 = vmul.f32 0.5, %v5671_v4  ;;  %v5880_v4 = vld [vmem:[#allocation15 + $0x1c0] sm:$0xff] }
 0x5b6   :  { %v5677_v7 = vmul.f32 1.442695, %v5676_v6  ;;  %v5884_v6 = vld [vmem:[#allocation15 + $0x1e0] sm:$0xff] }
 0x5b7   :  { %v11392_v28 = vcombine.high %v5880_v4, %v5884_v6 }
 0x5b8   :  { %13245 = vpow2.f32 %v5677_v7  ;;  %v5881_v7 = vld [vmem:[#allocation15 + $0x1c8] sm:$0xff] }
 0x5c2   :  { %v13246_v12 = vpop.eup %13245 }
 0x5c3   :  { %v5680_v13 = vmul.f32 %v13246_v12, %v5679_v10  ;;  %v5885_v10 = vld [vmem:[#allocation15 + $0x1e8] sm:$0xff] }
 0x5c4   :  { %v11394_v14 = vcombine.high %v5881_v7, %v5885_v10 }
 0x5c5   :  { %v5681_v5 = vadd.f32 %v5680_v13, %v5328_v59  ;;  %v5872_v59 = vld [vmem:[#allocation15 + $0x180] sm:$0xff]  ;;  %v11385_v13 = vcombine.low %v5873_v0, %v5877_v61 }
 0x5c6   :  { %v11384_v20 = vcombine.high %v5872_v59, %v5876_v60  ;;  %v11383_v12 = vcombine.low %v5872_v59, %v5876_v60  ;;  %v11432_v59 = vcombine.high %v5920_v51, %v5924_v52  ;;  %v5928_v0 = vld [vmem:[#allocation15 + $0x340] sm:$0xff] }
 0x5c7   :  { %v5682_v15 = vpack.c.bf16 %v5681_v5, %v5681_v5  ;;  %v5889_v5 = vld [vmem:[#allocation15 + $0x208] sm:$0xff]  ;;  %v5932_v61 = vld [vmem:[#allocation15 + $0x360] sm:$0xff] }
 0x5c9   :  { %11332 = vmatmul.mubr.msk.bf16.vlgmr.msra.gmra.mrb[20].mxu0 %vm5717_vm1, %v5682_v15  ;;  %11334 = vmatmul.mubr.msk.bf16.vlgmr.msra.gmra.mrb[24].mxu1 %vm5717_vm1, %v5682_v15  ;;  %v5893_v15 = vld [vmem:[#allocation15 + $0x228] sm:$0xff] }
 0x5ca   :  { %7403 = vmatpush1.bf16.msra.mxu0 %v11335_v30  ;;  %7485 = vmatpush1.bf16.msra.mxu1 %v11337_v34  ;;  %v5856_v30 = vld [vmem:[#allocation15 + $0x100] sm:$0xff]  ;;  %v11402_v48 = vcombine.high %v5889_v5, %v5893_v15 }
 0x5cb   :  { %7404 = vmatprep.subr.bf16.mxu0 %v11344_v33  ;;  %7486 = vmatprep.subr.bf16.mxu1 %v11346_v17  ;;  %v5860_v34 = vld [vmem:[#allocation15 + $0x120] sm:$0xff]  ;;  %v11391_v33 = vcombine.low %v5880_v4, %v5884_v6  ;;  %v11393_v17 = vcombine.low %v5881_v7, %v5885_v10  ;;  %v11440_v4 = vcombine.high %v5928_v0, %v5932_v61 }
 0x5cc   :  { %v11368_v44 = vcombine.high %v5856_v30, %v5860_v34  ;;  %v11367_v53 = vcombine.low %v5856_v30, %v5860_v34  ;;  %v11416_v30 = vcombine.high %v5904_v31, %v5908_v32  ;;  %v11439_v7 = vcombine.low %v5928_v0, %v5932_v61  ;;  %v5961_v0 = vld [vmem:[#allocation15 + $0x448] sm:$0xff] }
 0x5cd   :  { %v5965_v61 = vld [vmem:[#allocation15 + $0x468] sm:$0xff] }
 0x5ce   :  { %7405 = vmatpush1.bf16.msra.mxu0 %v11343_v21  ;;  %7487 = vmatpush1.bf16.msra.mxu1 %v11345_v22  ;;  %v5897_v21 = vld [vmem:[#allocation15 + $0x248] sm:$0xff] }
 0x5cf   :  { %7406 = vmatprep.subr.bf16.mxu0 %v11352_v23  ;;  %7488 = vmatprep.subr.bf16.mxu1 %v11354_v24  ;;  %v5901_v22 = vld [vmem:[#allocation15 + $0x268] sm:$0xff]  ;;  %v11399_v23 = vcombine.low %v5888_v3, %v5892_v45  ;;  %v11401_v24 = vcombine.low %v5889_v5, %v5893_v15 }
 0x5d0   :  { %v11410_v58 = vcombine.high %v5897_v21, %v5901_v22  ;;  %v5941_v3 = vld [vmem:[#allocation15 + $0x3a8] sm:$0xff] }
 0x5d2   :  { %7407 = vmatpush1.bf16.msra.mxu0 %v11351_v35  ;;  %7489 = vmatpush1.bf16.msra.mxu1 %v11353_v36  ;;  %v5905_v35 = vld [vmem:[#allocation15 + $0x288] sm:$0xff] }
 0x5d3   :  { %7408 = vmatprep.subr.bf16.mxu0 %v11360_v37  ;;  %7490 = vmatprep.subr.bf16.mxu1 %v11362_v39  ;;  %v5909_v36 = vld [vmem:[#allocation15 + $0x2a8] sm:$0xff]  ;;  %v11407_v37 = vcombine.low %v5896_v19, %v5900_v8  ;;  %v11409_v39 = vcombine.low %v5897_v21, %v5901_v22 }
 0x5d4   :  { %v11418_v34 = vcombine.high %v5905_v35, %v5909_v36  ;;  %v5949_v19 = vld [vmem:[#allocation15 + $0x3e8] sm:$0xff] }
 0x5d6   :  { %7409 = vmatpush1.bf16.msra.mxu0 %v11359_v41  ;;  %7491 = vmatpush1.bf16.msra.mxu1 %v11361_v43  ;;  %v5913_v41 = vld [vmem:[#allocation15 + $0x2c8] sm:$0xff] }
 0x5d7   :  { %7410 = vmatprep.subr.bf16.mxu0 %v11368_v44  ;;  %7492 = vmatprep.subr.bf16.mxu1 %v11370_v46  ;;  %v5917_v43 = vld [vmem:[#allocation15 + $0x2e8] sm:$0xff]  ;;  %v11415_v44 = vcombine.low %v5904_v31, %v5908_v32  ;;  %v11417_v46 = vcombine.low %v5905_v35, %v5909_v36 }
 0x5d8   :  { %v11426_v49 = vcombine.high %v5913_v41, %v5917_v43  ;;  %v5957_v31 = vld [vmem:[#allocation15 + $0x428] sm:$0xff] }
 0x5da   :  { %7411 = vmatpush1.bf16.msra.mxu0 %v11367_v53  ;;  %7493 = vmatpush1.bf16.msra.mxu1 %v11369_v54  ;;  %v5921_v53 = vld [vmem:[#allocation15 + $0x308] sm:$0xff] }
 0x5db   :  { %7412 = vmatprep.subr.bf16.mxu0 %v11376_v56  ;;  %7494 = vmatprep.subr.bf16.mxu1 %v11378_v57  ;;  %v5925_v54 = vld [vmem:[#allocation15 + $0x328] sm:$0xff]  ;;  %v11423_v56 = vcombine.low %v5912_v42, %v5916_v16  ;;  %v11425_v57 = vcombine.low %v5913_v41, %v5917_v43 }
 0x5dc   :  { %v11434_v60 = vcombine.high %v5921_v53, %v5925_v54 }
 0x5de   :  { %7413 = vmatpush1.bf16.msra.mxu0 %v11375_v62  ;;  %7495 = vmatpush1.bf16.msra.mxu1 %v11377_v9  ;;  %v5929_v62 = vld [vmem:[#allocation15 + $0x348] sm:$0xff] }
 0x5df   :  { %7414 = vmatprep.subr.bf16.mxu0 %v11384_v20  ;;  %7496 = vmatprep.subr.bf16.mxu1 %v11386_v55  ;;  %v5933_v9 = vld [vmem:[#allocation15 + $0x368] sm:$0xff]  ;;  %v11431_v20 = vcombine.low %v5920_v51, %v5924_v52  ;;  %v11433_v55 = vcombine.low %v5921_v53, %v5925_v54 }
 0x5e0   :  { %v11442_v6 = vcombine.high %v5929_v62, %v5933_v9  ;;  %v11441_v10 = vcombine.low %v5929_v62, %v5933_v9 }
 0x5e2   :  { %7415 = vmatpush1.bf16.msra.mxu0 %v11383_v12  ;;  %7497 = vmatpush1.bf16.msra.mxu1 %v11385_v13  ;;  %v5936_v12 = vld [vmem:[#allocation15 + $0x380] sm:$0xff] }
 0x5e3   :  { %7416 = vmatprep.subr.bf16.mxu0 %v11392_v28  ;;  %7498 = vmatprep.subr.bf16.mxu1 %v11394_v14  ;;  %v5940_v13 = vld [vmem:[#allocation15 + $0x3a0] sm:$0xff]  ;;  %v5937_v28 = vld [vmem:[#allocation15 + $0x388] sm:$0xff] }
 0x5e4   :  { %v11448_v14 = vcombine.high %v5936_v12, %v5940_v13  ;;  %v11447_v45 = vcombine.low %v5936_v12, %v5940_v13  ;;  %v11449_v5 = vcombine.low %v5937_v28, %v5941_v3  ;;  %v11450_v15 = vcombine.high %v5937_v28, %v5941_v3 }
 0x5e5   :  { %v11473_v28 = vcombine.low %v5961_v0, %v5965_v61 }
 0x5e6   :  { %7417 = vmatpush1.bf16.msra.mxu0 %v11391_v33  ;;  %7499 = vmatpush1.bf16.msra.mxu1 %v11393_v17  ;;  %v5944_v33 = vld [vmem:[#allocation15 + $0x3c0] sm:$0xff] }
 0x5e7   :  { %7418 = vmatprep.subr.bf16.mxu0 %v11400_v18  ;;  %7500 = vmatprep.subr.bf16.mxu1 %v11402_v48  ;;  %v5948_v17 = vld [vmem:[#allocation15 + $0x3e0] sm:$0xff]  ;;  %v5945_v18 = vld [vmem:[#allocation15 + $0x3c8] sm:$0xff] }
 0x5e8   :  { %v11456_v48 = vcombine.high %v5944_v33, %v5948_v17  ;;  %v11455_v8 = vcombine.low %v5944_v33, %v5948_v17  ;;  %v11457_v21 = vcombine.low %v5945_v18, %v5949_v19  ;;  %v11458_v22 = vcombine.high %v5945_v18, %v5949_v19  ;;  %v5981_v33 = vld [vmem:[#allocation15 + $0x4e8] sm:$0xff] }
 0x5ea   :  { %7419 = vmatpush1.bf16.msra.mxu0 %v11399_v23  ;;  %7501 = vmatpush1.bf16.msra.mxu1 %v11401_v24  ;;  %v5952_v23 = vld [vmem:[#allocation15 + $0x400] sm:$0xff] }
 0x5eb   :  { %7420 = vmatprep.subr.bf16.mxu0 %v11408_v25  ;;  %7502 = vmatprep.subr.bf16.mxu1 %v11410_v58  ;;  %v5956_v24 = vld [vmem:[#allocation15 + $0x420] sm:$0xff]  ;;  %v5953_v25 = vld [vmem:[#allocation15 + $0x408] sm:$0xff] }
 0x5ec   :  { %v11464_v58 = vcombine.high %v5952_v23, %v5956_v24  ;;  %v11463_v32 = vcombine.low %v5952_v23, %v5956_v24  ;;  %v11465_v35 = vcombine.low %v5953_v25, %v5957_v31  ;;  %v11466_v36 = vcombine.high %v5953_v25, %v5957_v31  ;;  %v5989_v23 = vld [vmem:[#allocation15 + $0x528] sm:$0xff] }
 0x5ee   :  { %7421 = vmatpush1.bf16.msra.mxu0 %v11407_v37  ;;  %7503 = vmatpush1.bf16.msra.mxu1 %v11409_v39  ;;  %v14133_v37 = vld [vmem:[#allocation13] sm:$0xf] }
 0x5ef   :  { %7422 = vmatprep.subr.bf16.mxu0 %v11416_v30  ;;  %7504 = vmatprep.subr.bf16.mxu1 %v11418_v34  ;;  %v5690_v39 = vrot.slane %v14133_v37, %v13860_v26  ;;  %v5694_v30 = vrot.slane %v14133_v37, %v13863_v27  ;;  %v5702_v34 = vrot.slane %v14133_v37, %v13892_v63 }
 0x5f2   :  { %7423 = vmatpush1.bf16.msra.mxu0 %v11415_v44  ;;  %7505 = vmatpush1.bf16.msra.mxu1 %v11417_v46 }
 0x5f3   :  { %7424 = vmatprep.subr.bf16.mxu0 %v11424_v47  ;;  %7506 = vmatprep.subr.bf16.mxu1 %v11426_v49 }
 0x5f6   :  { %7425 = vmatpush1.bf16.msra.mxu0 %v11423_v56  ;;  %7507 = vmatpush1.bf16.msra.mxu1 %v11425_v57  ;;  %v5960_v57 = vld [vmem:[#allocation15 + $0x440] sm:$0xff] }
 0x5f7   :  { %7426 = vmatprep.subr.bf16.mxu0 %v11432_v59  ;;  %7508 = vmatprep.subr.bf16.mxu1 %v11434_v60  ;;  %v5964_v60 = vld [vmem:[#allocation15 + $0x460] sm:$0xff] }
 0x5f8   :  { %v11471_v13 = vcombine.low %v5960_v57, %v5964_v60 }
 0x5fa   :  { %7427 = vmatpush1.bf16.msra.mxu0 %v11431_v20  ;;  %7509 = vmatpush1.bf16.msra.mxu1 %v11433_v55  ;;  %v5968_v20 = vld [vmem:[#allocation15 + $0x480] sm:$0xff]  ;;  %v11472_v55 = vcombine.high %v5960_v57, %v5964_v60  ;;  %v6009_v57 = vld [vmem:[#allocation15 + $0x5c8] sm:$0xff] }
 0x5fb   :  { %7428 = vmatprep.subr.bf16.mxu0 %v11440_v4  ;;  %7510 = vmatprep.subr.bf16.mxu1 %v11442_v6  ;;  %v11474_v4 = vcombine.high %v5961_v0, %v5965_v61  ;;  %v5972_v6 = vld [vmem:[#allocation15 + $0x4a0] sm:$0xff] }
 0x5fc   :  { %v11479_v17 = vcombine.low %v5968_v20, %v5972_v6 }
 0x5fe   :  { %7429 = vmatpush1.bf16.msra.mxu0 %v11439_v7  ;;  %7511 = vmatpush1.bf16.msra.mxu1 %v11441_v10  ;;  %v5969_v7 = vld [vmem:[#allocation15 + $0x488] sm:$0xff] }
 0x5ff   :  { %7430 = vmatprep.subr.bf16.mxu0 %v11448_v14  ;;  %7512 = vmatprep.subr.bf16.mxu1 %v11450_v15  ;;  %v5973_v10 = vld [vmem:[#allocation15 + $0x4a8] sm:$0xff]  ;;  %v11480_v14 = vcombine.high %v5968_v20, %v5972_v6 }
 0x600   :  { %v11482_v3 = vcombine.high %v5969_v7, %v5973_v10  ;;  %v5977_v15 = vld [vmem:[#allocation15 + $0x4c8] sm:$0xff]  ;;  %v11481_v18 = vcombine.low %v5969_v7, %v5973_v10 }
 0x601   :  { %v11490_v19 = vcombine.high %v5977_v15, %v5981_v33  ;;  %v11489_v25 = vcombine.low %v5977_v15, %v5981_v33  ;;  %v6017_v6 = vld [vmem:[#allocation15 + $0x608] sm:$0xff] }
 0x602   :  { %7431 = vmatpush1.bf16.msra.mxu0 %v11447_v45  ;;  %7513 = vmatpush1.bf16.msra.mxu1 %v11449_v5  ;;  %v5976_v45 = vld [vmem:[#allocation15 + $0x4c0] sm:$0xff]  ;;  %v6021_v7 = vld [vmem:[#allocation15 + $0x628] sm:$0xff] }
 0x603   :  { %7432 = vmatprep.subr.bf16.mxu0 %v11456_v48  ;;  %7514 = vmatprep.subr.bf16.mxu1 %v11458_v22  ;;  %v5980_v5 = vld [vmem:[#allocation15 + $0x4e0] sm:$0xff]  ;;  %v5985_v22 = vld [vmem:[#allocation15 + $0x508] sm:$0xff] }
 0x604   :  { %v11488_v48 = vcombine.high %v5976_v45, %v5980_v5  ;;  %v11487_v24 = vcombine.low %v5976_v45, %v5980_v5  ;;  %v11498_v31 = vcombine.high %v5985_v22, %v5989_v23  ;;  %v6028_v45 = vld [vmem:[#allocation15 + $0x660] sm:$0xff]  ;;  %v6025_v5 = vld [vmem:[#allocation15 + $0x648] sm:$0xff] }
 0x605   :  { %v6029_v15 = vld [vmem:[#allocation15 + $0x668] sm:$0xff] }
 0x606   :  { %7433 = vmatpush1.bf16.msra.mxu0 %v11455_v8  ;;  %7515 = vmatpush1.bf16.msra.mxu1 %v11457_v21  ;;  %v5984_v8 = vld [vmem:[#allocation15 + $0x500] sm:$0xff] }
 0x607   :  { %7443 = vmatprep.subr.bf16.mxu0 %v11464_v58  ;;  %7525 = vmatprep.subr.bf16.mxu1 %v11466_v36  ;;  %v5988_v21 = vld [vmem:[#allocation15 + $0x520] sm:$0xff]  ;;  %v5993_v36 = vld [vmem:[#allocation15 + $0x548] sm:$0xff] }
 0x608   :  { %v11496_v58 = vcombine.high %v5984_v8, %v5988_v21 }
 0x69c   :  { %v5768_v42 = vpop.f32.mrb[20].mxu0  ;;  %v14141_v16 = vpop.f32.mrb[24].mxu1 }
 0x69d   :  { %v5769_v41 = vadd.f32 %v5768_v42, %v5690_v39  ;;  %v5770_v43 = vpop.f32.mrb[21].mxu0  ;;  %v5811_v44 = vpop.f32.mrb[25].mxu1  ;;  %v5997_v39 = vld [vmem:[#allocation15 + $0x568] sm:$0xff] }
 0x69e   :  { %v5771_v46 = vadd.f32 %v5770_v43, %v5694_v30  ;;  %v5812_v47 = vadd.f32 %v5811_v44, %v5702_v34  ;;  %v5772_v49 = vpop.f32.mrb[22].mxu0  ;;  %v5813_v51 = vpop.f32.mrb[26].mxu1  ;;  %v11495_v30 = vcombine.low %v5984_v8, %v5988_v21  ;;  %v11497_v34 = vcombine.low %v5985_v22, %v5989_v23  ;;  %v6000_v43 = vld [vmem:[#allocation15 + $0x580] sm:$0xff]  ;;  %v6033_v21 = vld [vmem:[#allocation15 + $0x688] sm:$0xff] }
 0x69f   :  { %v5816_v52 = vmax.f32 %v5769_v41, 0.0  ;;  %v5773_v53 = vpop.f32.mrb[23].mxu0  ;;  %v5814_v54 = vpop.f32.mrb[27].mxu1  ;;  %v11506_v41 = vcombine.high %v5993_v36, %v5997_v39  ;;  %v6004_v44 = vld [vmem:[#allocation15 + $0x5a0] sm:$0xff]  ;;  %v11505_v51 = vcombine.low %v5993_v36, %v5997_v39  ;;  %v6037_v22 = vld [vmem:[#allocation15 + $0x6a8] sm:$0xff] }
 0x6a0   :  { %v5817_v56 = vmax.f32 %v5771_v46, 0.0  ;;  %v5819_v59 = vmax.f32 %v5812_v47, 0.0  ;;  %v6001_v46 = vld [vmem:[#allocation15 + $0x588] sm:$0xff]  ;;  %v6008_v54 = vld [vmem:[#allocation15 + $0x5c0] sm:$0xff]  ;;  %v11511_v60 = vcombine.low %v6000_v43, %v6004_v44 }
 0x6a1   :  { %v14145_v9 = vpack.c.bf16 %v5816_v52, %v5816_v52  ;;  %v6005_v47 = vld [vmem:[#allocation15 + $0x5a8] sm:$0xff]  ;;  %v11512_v52 = vcombine.high %v6000_v43, %v6004_v44  ;;  %v6036_v8 = vld [vmem:[#allocation15 + $0x6a0] sm:$0xff] }
 0x6a2   :  { %v14143_v62 = vpack.c.bf16 %v5817_v56, %v5817_v56  ;;  %v14149_v12 = vpack.c.bf16 %v5819_v59, %v5819_v59  ;;  %v11514_v53 = vcombine.high %v6001_v46, %v6005_v47  ;;  %v6012_v56 = vld [vmem:[#allocation15 + $0x5e0] sm:$0xff]  ;;  %v6013_v59 = vld [vmem:[#allocation15 + $0x5e8] sm:$0xff]  ;;  %v11513_v0 = vcombine.low %v6001_v46, %v6005_v47 }
 0x6a3   :  { %v11520_v61 = vcombine.high %v6008_v54, %v6012_v56  ;;  %v11522_v20 = vcombine.high %v6009_v57, %v6013_v59  ;;  %v11519_v10 = vcombine.low %v6008_v54, %v6012_v56  ;;  %v6045_v36 = vld [vmem:[#allocation15 + $0x6e8] sm:$0xff]  ;;  %v6052_v43 = vld [vmem:[#allocation15 + $0x720] sm:$0xff] }
 0x6a4   :  { %7434 = vmatprep.mubr.bf16.mxu0 %v14143_v62  ;;  %7516 = vmatprep.mubr.bf16.mxu1 %v14143_v62  ;;  %v6049_v44 = vld [vmem:[#allocation15 + $0x708] sm:$0xff]  ;;  %v6060_v54 = vld [vmem:[#allocation15 + $0x760] sm:$0xff] }
 0x6a5   :  { %7435 = vmatmul.mubr.bf16.vlgmr.msra.gmra.mrb[24].mxu0 %v14145_v9  ;;  %7517 = vmatmul.mubr.bf16.vlgmr.msra.gmra.mrb[28].mxu1 %v14145_v9  ;;  %v6053_v46 = vld [vmem:[#allocation15 + $0x728] sm:$0xff] }
 0x6a6   :  { %7444 = vmatpush1.bf16.msra.mxu0 %v11463_v32  ;;  %7526 = vmatpush1.bf16.msra.mxu1 %v11465_v35  ;;  %v5992_v32 = vld [vmem:[#allocation15 + $0x540] sm:$0xff]  ;;  %v6057_v56 = vld [vmem:[#allocation15 + $0x748] sm:$0xff] }
 0x6a7   :  { %7475 = vmatprep.mubr.bf16.mxu0 %v14149_v12  ;;  %7557 = vmatprep.mubr.bf16.mxu1 %v14149_v12  ;;  %v5996_v35 = vld [vmem:[#allocation15 + $0x560] sm:$0xff] }
 0x6a8   :  { %7445 = vmatprep.subr.bf16.mxu0 %v11472_v55  ;;  %7527 = vmatprep.subr.bf16.mxu1 %v11474_v4  ;;  %v11504_v42 = vcombine.high %v5992_v32, %v5996_v35  ;;  %v11503_v49 = vcombine.low %v5992_v32, %v5996_v35  ;;  %v6016_v55 = vld [vmem:[#allocation15 + $0x600] sm:$0xff]  ;;  %v6041_v35 = vld [vmem:[#allocation15 + $0x6c8] sm:$0xff] }
 0x6a9   :  { %v6020_v4 = vld [vmem:[#allocation15 + $0x620] sm:$0xff] }
 0x6aa   :  { %7446 = vmatpush1.bf16.msra.mxu0 %v11471_v13  ;;  %7528 = vmatpush1.bf16.msra.mxu1 %v11473_v28  ;;  %v11521_v13 = vcombine.low %v6009_v57, %v6013_v59  ;;  %v11528_v28 = vcombine.high %v6016_v55, %v6020_v4  ;;  %v11527_v33 = vcombine.low %v6016_v55, %v6020_v4  ;;  %v6044_v32 = vld [vmem:[#allocation15 + $0x6e0] sm:$0xff]  ;;  %v6061_v57 = vld [vmem:[#allocation15 + $0x768] sm:$0xff] }
 0x6ab   :  { %7447 = vmatprep.subr.bf16.mxu0 %v11480_v14  ;;  %7529 = vmatprep.subr.bf16.mxu1 %v11482_v3  ;;  %v11530_v14 = vcombine.high %v6017_v6, %v6021_v7  ;;  %v6024_v3 = vld [vmem:[#allocation15 + $0x640] sm:$0xff]  ;;  %v6065_v4 = vld [vmem:[#allocation15 + $0x788] sm:$0xff] }
 0x6ac   :  { %v11535_v23 = vcombine.low %v6024_v3, %v6028_v45  ;;  %v6068_v55 = vld [vmem:[#allocation15 + $0x7a0] sm:$0xff] }
 0x6ae   :  { %7448 = vmatpush1.bf16.msra.mxu0 %v11479_v17  ;;  %7530 = vmatpush1.bf16.msra.mxu1 %v11481_v18  ;;  %v11529_v17 = vcombine.low %v6017_v6, %v6021_v7  ;;  %v11536_v18 = vcombine.high %v6024_v3, %v6028_v45  ;;  %v6069_v6 = vld [vmem:[#allocation15 + $0x7a8] sm:$0xff]  ;;  %v6072_v3 = vld [vmem:[#allocation15 + $0x7c0] sm:$0xff] }
 0x6af   :  { %7449 = vmatprep.subr.bf16.mxu0 %v11488_v48  ;;  %7531 = vmatprep.subr.bf16.mxu1 %v11490_v19  ;;  %v11538_v48 = vcombine.high %v6025_v5, %v6029_v15  ;;  %v6032_v19 = vld [vmem:[#allocation15 + $0x680] sm:$0xff] }
 0x6b0   :  { %v11543_v39 = vcombine.low %v6032_v19, %v6036_v8  ;;  %v6076_v45 = vld [vmem:[#allocation15 + $0x7e0] sm:$0xff] }
 0x6b2   :  { %7450 = vmatpush1.bf16.msra.mxu0 %v11487_v24  ;;  %7532 = vmatpush1.bf16.msra.mxu1 %v11489_v25  ;;  %v11537_v24 = vcombine.low %v6025_v5, %v6029_v15  ;;  %v11544_v25 = vcombine.high %v6032_v19, %v6036_v8  ;;  %v6073_v5 = vld [vmem:[#allocation15 + $0x7c8] sm:$0xff]  ;;  %v5826_v8 = vld [vmem:[#allocation15 + $0x10] sm:$0xff] }
 0x6b3   :  { %7451 = vmatprep.subr.bf16.mxu0 %v11496_v58  ;;  %7533 = vmatprep.subr.bf16.mxu1 %v11498_v31  ;;  %v11546_v58 = vcombine.high %v6033_v21, %v6037_v22  ;;  %v6040_v31 = vld [vmem:[#allocation15 + $0x6c0] sm:$0xff]  ;;  %v6077_v15 = vld [vmem:[#allocation15 + $0x7e8] sm:$0xff] }
 0x6b4   :  { %v11551_v47 = vcombine.low %v6040_v31, %v6044_v32  ;;  %v11586_v19 = vcombine.high %v6073_v5, %v6077_v15 }
 0x6b6   :  { %7452 = vmatpush1.bf16.msra.mxu0 %v11495_v30  ;;  %7534 = vmatpush1.bf16.msra.mxu1 %v11497_v34  ;;  %v11545_v30 = vcombine.low %v6033_v21, %v6037_v22  ;;  %v11552_v34 = vcombine.high %v6040_v31, %v6044_v32  ;;  %v5827_v21 = vld [vmem:[#allocation15 + $0x18] sm:$0xff]  ;;  %v5834_v32 = vld [vmem:[#allocation15 + $0x50] sm:$0xff] }
 0x6b7   :  { %7453 = vmatprep.subr.bf16.mxu0 %v11504_v42  ;;  %7535 = vmatprep.subr.bf16.mxu1 %v11506_v41  ;;  %v11554_v42 = vcombine.high %v6041_v35, %v6045_v36  ;;  %v6048_v41 = vld [vmem:[#allocation15 + $0x700] sm:$0xff]  ;;  %v5831_v22 = vld [vmem:[#allocation15 + $0x38] sm:$0xff] }
 0x6b8   :  { %v11559_v59 = vcombine.low %v6048_v41, %v6052_v43  ;;  %v11342_v31 = vcombine.high %v5827_v21, %v5831_v22 }
 0x6ba   :  { %7454 = vmatpush1.bf16.msra.mxu0 %v11503_v49  ;;  %7536 = vmatpush1.bf16.msra.mxu1 %v11505_v51  ;;  %v11553_v49 = vcombine.low %v6041_v35, %v6045_v36  ;;  %v11560_v51 = vcombine.high %v6048_v41, %v6052_v43  ;;  %v5838_v35 = vld [vmem:[#allocation15 + $0x70] sm:$0xff]  ;;  %v5839_v36 = vld [vmem:[#allocation15 + $0x78] sm:$0xff] }
 0x6bb   :  { %7455 = vmatprep.subr.bf16.mxu0 %v11512_v52  ;;  %7537 = vmatprep.subr.bf16.mxu1 %v11514_v53  ;;  %v11562_v52 = vcombine.high %v6049_v44, %v6053_v46  ;;  %v6056_v53 = vld [vmem:[#allocation15 + $0x740] sm:$0xff]  ;;  %v5842_v43 = vld [vmem:[#allocation15 + $0x90] sm:$0xff] }
 0x6bc   :  { %v11567_v7 = vcombine.low %v6056_v53, %v6060_v54 }
 0x6be   :  { %7456 = vmatpush1.bf16.msra.mxu0 %v11511_v60  ;;  %7538 = vmatpush1.bf16.msra.mxu1 %v11513_v0  ;;  %v11561_v60 = vcombine.low %v6049_v44, %v6053_v46  ;;  %v11568_v0 = vcombine.high %v6056_v53, %v6060_v54  ;;  %v5846_v44 = vld [vmem:[#allocation15 + $0xb0] sm:$0xff]  ;;  %v5843_v46 = vld [vmem:[#allocation15 + $0x98] sm:$0xff] }
 0x6bf   :  { %7457 = vmatprep.subr.bf16.mxu0 %v11520_v61  ;;  %7539 = vmatprep.subr.bf16.mxu1 %v11522_v20  ;;  %v11570_v61 = vcombine.high %v6057_v56, %v6061_v57  ;;  %v6064_v20 = vld [vmem:[#allocation15 + $0x780] sm:$0xff]  ;;  %v5850_v54 = vld [vmem:[#allocation15 + $0xd0] sm:$0xff] }
 0x6c2   :  { %7458 = vmatpush1.bf16.msra.mxu0 %v11519_v10  ;;  %7540 = vmatpush1.bf16.msra.mxu1 %v11521_v13  ;;  %v11569_v10 = vcombine.low %v6057_v56, %v6061_v57  ;;  %v5698_v13 = vrot.slane %v14133_v37, %v13889_v40  ;;  %v5830_v37 = vld [vmem:[#allocation15 + $0x30] sm:$0xff]  ;;  %v5851_v57 = vld [vmem:[#allocation15 + $0xd8] sm:$0xff] }
 0x6c3   :  { %7459 = vmatprep.subr.bf16.mxu0 %v11528_v28  ;;  %7541 = vmatprep.subr.bf16.mxu1 %v11530_v14  ;;  %v11576_v28 = vcombine.high %v6064_v20, %v6068_v55  ;;  %v11578_v14 = vcombine.high %v6065_v4, %v6069_v6  ;;  %v5854_v56 = vld [vmem:[#allocation15 + $0xf0] sm:$0xff] }
 0x6c6   :  { %7460 = vmatpush1.bf16.msra.mxu0 %v11527_v33  ;;  %7542 = vmatpush1.bf16.msra.mxu1 %v11529_v17  ;;  %v11575_v33 = vcombine.low %v6064_v20, %v6068_v55  ;;  %v11577_v17 = vcombine.low %v6065_v4, %v6069_v6  ;;  %v5858_v55 = vld [vmem:[#allocation15 + $0x110] sm:$0xff]  ;;  %v5863_v6 = vld [vmem:[#allocation15 + $0x138] sm:$0xff] }
 0x6c7   :  { %7461 = vmatprep.subr.bf16.mxu0 %v11536_v18  ;;  %7543 = vmatprep.subr.bf16.mxu1 %v11538_v48  ;;  %v5810_v18 = vadd.f32 %v14141_v16, %v5698_v13  ;;  %v11584_v48 = vcombine.high %v6072_v3, %v6076_v45  ;;  %v5835_v16 = vld [vmem:[#allocation15 + $0x58] sm:$0xff]  ;;  %v5862_v4 = vld [vmem:[#allocation15 + $0x130] sm:$0xff] }
 0x6c8   :  { %v11350_v41 = vcombine.high %v5835_v16, %v5839_v36  ;;  %v11372_v13 = vcombine.high %v5858_v55, %v5862_v4 }
 0x6ca   :  { %7462 = vmatpush1.bf16.msra.mxu0 %v11535_v23  ;;  %7544 = vmatpush1.bf16.msra.mxu1 %v11537_v24  ;;  %v11583_v23 = vcombine.low %v6072_v3, %v6076_v45  ;;  %v11585_v24 = vcombine.low %v6073_v5, %v6077_v15  ;;  %v5870_v3 = vld [vmem:[#allocation15 + $0x170] sm:$0xff]  ;;  %v5867_v45 = vld [vmem:[#allocation15 + $0x158] sm:$0xff]  ;;  %v11371_v15 = vcombine.low %v5858_v55, %v5862_v4 }
 0x6cb   :  { %7463 = vmatprep.subr.bf16.mxu0 %v11544_v25  ;;  %7545 = vmatprep.subr.bf16.mxu1 %v11546_v58  ;;  %v5818_v25 = vmax.f32 %v5810_v18, 0.0  ;;  %v11340_v58 = vcombine.high %v5826_v8, %v5830_v37  ;;  %v5871_v5 = vld [vmem:[#allocation15 + $0x178] sm:$0xff] }
 0x6cc   :  { %v11382_v18 = vcombine.high %v5867_v45, %v5871_v5  ;;  %v5911_v55 = vld [vmem:[#allocation15 + $0x2b8] sm:$0xff] }
 0x6ce   :  { %7464 = vmatpush1.bf16.msra.mxu0 %v11543_v39  ;;  %7546 = vmatpush1.bf16.msra.mxu1 %v11545_v30  ;;  %v11339_v39 = vcombine.low %v5826_v8, %v5830_v37  ;;  %v14158_v30 = vpack.c.bf16 %v5818_v25, %v5818_v25  ;;  %v5875_v8 = vld [vmem:[#allocation15 + $0x198] sm:$0xff]  ;;  %v5882_v25 = vld [vmem:[#allocation15 + $0x1d0] sm:$0xff] }
 0x6cf   :  { %7465 = vmatprep.subr.bf16.mxu0 %v11552_v34  ;;  %7547 = vmatprep.subr.bf16.mxu1 %v11554_v42  ;;  %v11341_v34 = vcombine.low %v5827_v21, %v5831_v22  ;;  %v11348_v42 = vcombine.high %v5834_v32, %v5838_v35  ;;  %v5879_v37 = vld [vmem:[#allocation15 + $0x1b8] sm:$0xff]  ;;  %v11381_v22 = vcombine.low %v5867_v45, %v5871_v5 }
 0x6d2   :  { %7466 = vmatpush1.bf16.msra.mxu0 %v11551_v47  ;;  %7548 = vmatpush1.bf16.msra.mxu1 %v11553_v49  ;;  %v5847_v47 = vld [vmem:[#allocation15 + $0xb8] sm:$0xff]  ;;  %v11347_v49 = vcombine.low %v5834_v32, %v5838_v35 }
 0x6d3   :  { %7467 = vmatprep.subr.bf16.mxu0 %v11560_v51  ;;  %7549 = vmatprep.subr.bf16.mxu1 %v11562_v52  ;;  %v11349_v51 = vcombine.low %v5835_v16, %v5839_v36  ;;  %v11356_v52 = vcombine.high %v5842_v43, %v5846_v44  ;;  %v11358_v53 = vcombine.high %v5843_v46, %v5847_v47  ;;  %v5887_v32 = vld [vmem:[#allocation15 + $0x1f8] sm:$0xff] }
 0x6d4   :  { %v11389_v16 = vcombine.low %v5875_v8, %v5879_v37 }
 0x6d6   :  { %7468 = vmatpush1.bf16.msra.mxu0 %v11559_v59  ;;  %7550 = vmatpush1.bf16.msra.mxu1 %v11561_v60  ;;  %v5855_v59 = vld [vmem:[#allocation15 + $0xf8] sm:$0xff]  ;;  %v11355_v60 = vcombine.low %v5842_v43, %v5846_v44 }
 0x6d7   :  { %7469 = vmatprep.subr.bf16.mxu0 %v11568_v0  ;;  %7551 = vmatprep.subr.bf16.mxu1 %v11570_v61  ;;  %v11357_v0 = vcombine.low %v5843_v46, %v5847_v47  ;;  %v11364_v61 = vcombine.high %v5850_v54, %v5854_v56  ;;  %v11366_v20 = vcombine.high %v5851_v57, %v5855_v59  ;;  %v5895_v43 = vld [vmem:[#allocation15 + $0x238] sm:$0xff] }
 0x6da   :  { %7470 = vmatpush1.bf16.msra.mxu0 %v11567_v7  ;;  %7552 = vmatpush1.bf16.msra.mxu1 %v11569_v10  ;;  %v11363_v7 = vcombine.low %v5850_v54, %v5854_v56  ;;  %v11365_v10 = vcombine.low %v5851_v57, %v5855_v59  ;;  %v5903_v54 = vld [vmem:[#allocation15 + $0x278] sm:$0xff] }
 0x6db   :  { %7471 = vmatprep.subr.bf16.mxu0 %v11576_v28  ;;  %7553 = vmatprep.subr.bf16.mxu1 %v11578_v14  ;;  %v5866_v14 = vld [vmem:[#allocation15 + $0x150] sm:$0xff] }
 0x6dc   :  { %v11379_v21 = vcombine.low %v5866_v14, %v5870_v3 }
 0x6de   :  { %7472 = vmatpush1.bf16.msra.mxu0 %v11575_v33  ;;  %7554 = vmatpush1.bf16.msra.mxu1 %v11577_v17  ;;  %v11380_v17 = vcombine.high %v5866_v14, %v5870_v3  ;;  %v5919_v14 = vld [vmem:[#allocation15 + $0x2f8] sm:$0xff] }
 0x6df   :  { %7473 = vmatprep.subr.bf16.mxu0 %v11584_v48  ;;  %7555 = vmatprep.subr.bf16.mxu1 %v11586_v19  ;;  %v5874_v48 = vld [vmem:[#allocation15 + $0x190] sm:$0xff] }
 0x6e0   :  { %v5878_v19 = vld [vmem:[#allocation15 + $0x1b0] sm:$0xff] }
 0x6e1   :  { %v11387_v35 = vcombine.low %v5874_v48, %v5878_v19 }
 0x6e2   :  { %7474 = vmatpush1.bf16.msra.mxu0 %v11583_v23  ;;  %7556 = vmatpush1.bf16.msra.mxu1 %v11585_v24  ;;  %v11388_v23 = vcombine.high %v5874_v48, %v5878_v19  ;;  %v11390_v24 = vcombine.high %v5875_v8, %v5879_v37  ;;  %v5927_v48 = vld [vmem:[#allocation15 + $0x338] sm:$0xff] }
 0x6e3   :  { %7566 = vmatprep.subr.bf16.mxu0 %v11340_v58  ;;  %7648 = vmatprep.subr.bf16.mxu1 %v11342_v31  ;;  %v5886_v58 = vld [vmem:[#allocation15 + $0x1f0] sm:$0xff]  ;;  %v5883_v31 = vld [vmem:[#allocation15 + $0x1d8] sm:$0xff] }
 0x6e4   :  { %v11396_v36 = vcombine.high %v5882_v25, %v5886_v58  ;;  %v11395_v44 = vcombine.low %v5882_v25, %v5886_v58  ;;  %v11397_v46 = vcombine.low %v5883_v31, %v5887_v32  ;;  %v5935_v25 = vld [vmem:[#allocation15 + $0x378] sm:$0xff] }
 0x6e5   :  { %7476 = vmatmul.mubr.bf16.vlgmr.msra.gmra.mrb[24].mxu0 %v14158_v30  ;;  %7558 = vmatmul.mubr.bf16.vlgmr.msra.gmra.mrb[28].mxu1 %v14158_v30 }
 0x6e6   :  { %7567 = vmatpush1.bf16.msra.mxu0 %v11339_v39  ;;  %7598 = vmatprep.mubr.bf16.mxu0 %v14143_v62  ;;  %v11398_v39 = vcombine.high %v5883_v31, %v5887_v32 }
 0x6e7   :  { %7649 = vmatpush1.bf16.msra.mxu1 %v11341_v34  ;;  %7680 = vmatprep.mubr.bf16.mxu1 %v14143_v62  ;;  %v5859_v62 = vld [vmem:[#allocation15 + $0x118] sm:$0xff]  ;;  %v5890_v34 = vld [vmem:[#allocation15 + $0x210] sm:$0xff] }
 0x6e8   :  { %7568 = vmatprep.subr.bf16.mxu0 %v11348_v42  ;;  %7650 = vmatprep.subr.bf16.mxu1 %v11350_v41  ;;  %v11374_v28 = vcombine.high %v5859_v62, %v5863_v6  ;;  %v11373_v33 = vcombine.low %v5859_v62, %v5863_v6  ;;  %v5894_v42 = vld [vmem:[#allocation15 + $0x230] sm:$0xff]  ;;  %v5891_v41 = vld [vmem:[#allocation15 + $0x218] sm:$0xff] }
 0x6e9   :  { %v11404_v47 = vcombine.high %v5890_v34, %v5894_v42  ;;  %v11403_v56 = vcombine.low %v5890_v34, %v5894_v42  ;;  %v11405_v57 = vcombine.low %v5891_v41, %v5895_v43  ;;  %v5943_v34 = vld [vmem:[#allocation15 + $0x3b8] sm:$0xff] }
 0x6ea   :  { %7569 = vmatpush1.bf16.msra.mxu0 %v11347_v49  ;;  %v11406_v49 = vcombine.high %v5891_v41, %v5895_v43 }
 0x6eb   :  { %7651 = vmatpush1.bf16.msra.mxu1 %v11349_v51  ;;  %7570 = vmatprep.subr.bf16.mxu0 %v11356_v52  ;;  %v5898_v51 = vld [vmem:[#allocation15 + $0x250] sm:$0xff] }
 0x6ec   :  { %7652 = vmatprep.subr.bf16.mxu1 %v11358_v53  ;;  %v5902_v52 = vld [vmem:[#allocation15 + $0x270] sm:$0xff]  ;;  %v5899_v53 = vld [vmem:[#allocation15 + $0x258] sm:$0xff] }
 0x6ed   :  { %v11412_v59 = vcombine.high %v5898_v51, %v5902_v52  ;;  %v11411_v4 = vcombine.low %v5898_v51, %v5902_v52  ;;  %v11413_v62 = vcombine.low %v5899_v53, %v5903_v54  ;;  %v5951_v51 = vld [vmem:[#allocation15 + $0x3f8] sm:$0xff] }
 0x6ee   :  { %7571 = vmatpush1.bf16.msra.mxu0 %v11355_v60  ;;  %v11414_v60 = vcombine.high %v5899_v53, %v5903_v54 }
 0x6ef   :  { %7653 = vmatpush1.bf16.msra.mxu1 %v11357_v0  ;;  %7572 = vmatprep.subr.bf16.mxu0 %v11364_v61  ;;  %v5906_v0 = vld [vmem:[#allocation15 + $0x290] sm:$0xff] }
 0x6f0   :  { %7654 = vmatprep.subr.bf16.mxu1 %v11366_v20  ;;  %v5910_v61 = vld [vmem:[#allocation15 + $0x2b0] sm:$0xff]  ;;  %v5907_v20 = vld [vmem:[#allocation15 + $0x298] sm:$0xff] }
 0x6f1   :  { %v11420_v6 = vcombine.high %v5906_v0, %v5910_v61  ;;  %v11419_v3 = vcombine.low %v5906_v0, %v5910_v61  ;;  %v11421_v45 = vcombine.low %v5907_v20, %v5911_v55  ;;  %v5959_v0 = vld [vmem:[#allocation15 + $0x438] sm:$0xff] }
 0x6f2   :  { %7573 = vmatpush1.bf16.msra.mxu0 %v11363_v7  ;;  %v11422_v7 = vcombine.high %v5907_v20, %v5911_v55 }
 0x6f3   :  { %7655 = vmatpush1.bf16.msra.mxu1 %v11365_v10  ;;  %7574 = vmatprep.subr.bf16.mxu0 %v11372_v13  ;;  %v5914_v10 = vld [vmem:[#allocation15 + $0x2d0] sm:$0xff] }
 0x6f4   :  { %7656 = vmatprep.subr.bf16.mxu1 %v11374_v28  ;;  %v5918_v13 = vld [vmem:[#allocation15 + $0x2f0] sm:$0xff]  ;;  %v5915_v28 = vld [vmem:[#allocation15 + $0x2d8] sm:$0xff] }
 0x6f5   :  { %v11428_v5 = vcombine.high %v5914_v10, %v5918_v13  ;;  %v11427_v19 = vcombine.low %v5914_v10, %v5918_v13  ;;  %v11429_v8 = vcombine.low %v5915_v28, %v5919_v14  ;;  %v5963_v10 = vld [vmem:[#allocation15 + $0x458] sm:$0xff] }
 0x6f6   :  { %7575 = vmatpush1.bf16.msra.mxu0 %v11371_v15  ;;  %v11430_v15 = vcombine.high %v5915_v28, %v5919_v14  ;;  %v5967_v13 = vld [vmem:[#allocation15 + $0x478] sm:$0xff] }
 0x6f7   :  { %7657 = vmatpush1.bf16.msra.mxu1 %v11373_v33  ;;  %7576 = vmatprep.subr.bf16.mxu0 %v11380_v17  ;;  %v5922_v33 = vld [vmem:[#allocation15 + $0x310] sm:$0xff] }
 0x6f8   :  { %7658 = vmatprep.subr.bf16.mxu1 %v11382_v18  ;;  %v5926_v17 = vld [vmem:[#allocation15 + $0x330] sm:$0xff]  ;;  %v5923_v18 = vld [vmem:[#allocation15 + $0x318] sm:$0xff] }
 0x6f9   :  { %v11436_v37 = vcombine.high %v5922_v33, %v5926_v17  ;;  %v11435_v58 = vcombine.low %v5922_v33, %v5926_v17  ;;  %v11437_v31 = vcombine.low %v5923_v18, %v5927_v48  ;;  %v5975_v33 = vld [vmem:[#allocation15 + $0x4b8] sm:$0xff] }
 0x6fa   :  { %7577 = vmatpush1.bf16.msra.mxu0 %v11379_v21  ;;  %v11438_v21 = vcombine.high %v5923_v18, %v5927_v48  ;;  %v11477_v18 = vcombine.low %v5963_v10, %v5967_v13 }
 0x6fb   :  { %7659 = vmatpush1.bf16.msra.mxu1 %v11381_v22  ;;  %7578 = vmatprep.subr.bf16.mxu0 %v11388_v23  ;;  %v5930_v22 = vld [vmem:[#allocation15 + $0x350] sm:$0xff] }
 0x6fc   :  { %7660 = vmatprep.subr.bf16.mxu1 %v11390_v24  ;;  %v5934_v23 = vld [vmem:[#allocation15 + $0x370] sm:$0xff]  ;;  %v5931_v24 = vld [vmem:[#allocation15 + $0x358] sm:$0xff] }
 0x6fd   :  { %v11444_v32 = vcombine.high %v5930_v22, %v5934_v23  ;;  %v11443_v42 = vcombine.low %v5930_v22, %v5934_v23  ;;  %v11445_v41 = vcombine.low %v5931_v24, %v5935_v25  ;;  %v5983_v22 = vld [vmem:[#allocation15 + $0x4f8] sm:$0xff] }
 0x6fe   :  { %7579 = vmatpush1.bf16.msra.mxu0 %v11387_v35  ;;  %v11446_v35 = vcombine.high %v5931_v24, %v5935_v25 }
 0x6ff   :  { %7661 = vmatpush1.bf16.msra.mxu1 %v11389_v16  ;;  %7580 = vmatprep.subr.bf16.mxu0 %v11396_v36  ;;  %v5938_v16 = vld [vmem:[#allocation15 + $0x390] sm:$0xff] }
 0x700   :  { %7662 = vmatprep.subr.bf16.mxu1 %v11398_v39  ;;  %v5942_v36 = vld [vmem:[#allocation15 + $0x3b0] sm:$0xff]  ;;  %v5939_v39 = vld [vmem:[#allocation15 + $0x398] sm:$0xff] }
 0x701   :  { %v11452_v43 = vcombine.high %v5938_v16, %v5942_v36  ;;  %v11451_v52 = vcombine.low %v5938_v16, %v5942_v36  ;;  %v11453_v53 = vcombine.low %v5939_v39, %v5943_v34 }
 0x702   :  { %7581 = vmatpush1.bf16.msra.mxu0 %v11395_v44  ;;  %v11454_v44 = vcombine.high %v5939_v39, %v5943_v34  ;;  %v5994_v34 = vld [vmem:[#allocation15 + $0x550] sm:$0xff] }
 0x703   :  { %7663 = vmatpush1.bf16.msra.mxu1 %v11397_v46  ;;  %7582 = vmatprep.subr.bf16.mxu0 %v11404_v47  ;;  %v5946_v46 = vld [vmem:[#allocation15 + $0x3d0] sm:$0xff] }
 0x704   :  { %7664 = vmatprep.subr.bf16.mxu1 %v11406_v49  ;;  %v5950_v47 = vld [vmem:[#allocation15 + $0x3f0] sm:$0xff]  ;;  %v5947_v49 = vld [vmem:[#allocation15 + $0x3d8] sm:$0xff] }
 0x705   :  { %v11460_v54 = vcombine.high %v5946_v46, %v5950_v47  ;;  %v11459_v61 = vcombine.low %v5946_v46, %v5950_v47  ;;  %v11461_v20 = vcombine.low %v5947_v49, %v5951_v51 }
 0x706   :  { %7583 = vmatpush1.bf16.msra.mxu0 %v11403_v56  ;;  %v11462_v56 = vcombine.high %v5947_v49, %v5951_v51  ;;  %v6002_v51 = vld [vmem:[#allocation15 + $0x590] sm:$0xff] }
 0x707   :  { %7665 = vmatpush1.bf16.msra.mxu1 %v11405_v57  ;;  %7584 = vmatprep.subr.bf16.mxu0 %v11412_v59  ;;  %v5954_v57 = vld [vmem:[#allocation15 + $0x410] sm:$0xff] }
 0x708   :  { %7666 = vmatprep.subr.bf16.mxu1 %v11414_v60  ;;  %v5958_v59 = vld [vmem:[#allocation15 + $0x430] sm:$0xff]  ;;  %v5955_v60 = vld [vmem:[#allocation15 + $0x418] sm:$0xff] }
 0x709   :  { %v11468_v55 = vcombine.high %v5954_v57, %v5958_v59  ;;  %v11469_v28 = vcombine.low %v5955_v60, %v5959_v0 }
 0x70a   :  { %7585 = vmatpush1.bf16.msra.mxu0 %v11411_v4  ;;  %v11470_v4 = vcombine.high %v5955_v60, %v5959_v0  ;;  %v6010_v0 = vld [vmem:[#allocation15 + $0x5d0] sm:$0xff] }
 0x70b   :  { %7667 = vmatpush1.bf16.msra.mxu1 %v11413_v62  ;;  %7586 = vmatprep.subr.bf16.mxu0 %v11420_v6  ;;  %v5962_v62 = vld [vmem:[#allocation15 + $0x450] sm:$0xff] }
 0x70c   :  { %7668 = vmatprep.subr.bf16.mxu1 %v11422_v7  ;;  %v5966_v6 = vld [vmem:[#allocation15 + $0x470] sm:$0xff]  ;;  %v11467_v7 = vcombine.low %v5954_v57, %v5958_v59 }
 0x70d   :  { %v11476_v14 = vcombine.high %v5962_v62, %v5966_v6  ;;  %v11475_v17 = vcombine.low %v5962_v62, %v5966_v6 }
 0x70e   :  { %7587 = vmatpush1.bf16.msra.mxu0 %v11419_v3  ;;  %v5970_v3 = vld [vmem:[#allocation15 + $0x490] sm:$0xff] }
 0x70f   :  { %7669 = vmatpush1.bf16.msra.mxu1 %v11421_v45  ;;  %7588 = vmatprep.subr.bf16.mxu0 %v11428_v5  ;;  %v5974_v45 = vld [vmem:[#allocation15 + $0x4b0] sm:$0xff]  ;;  %v11478_v5 = vcombine.high %v5963_v10, %v5967_v13 }
 0x710   :  { %7670 = vmatprep.subr.bf16.mxu1 %v11430_v15  ;;  %v5971_v15 = vld [vmem:[#allocation15 + $0x498] sm:$0xff]  ;;  %v11484_v48 = vcombine.high %v5970_v3, %v5974_v45  ;;  %v11483_v23 = vcombine.low %v5970_v3, %v5974_v45  ;;  %v6018_v10 = vld [vmem:[#allocation15 + $0x610] sm:$0xff] }
 0x711   :  { %v6022_v13 = vld [vmem:[#allocation15 + $0x630] sm:$0xff] }
 0x712   :  { %7589 = vmatpush1.bf16.msra.mxu0 %v11427_v19  ;;  %v11486_v19 = vcombine.high %v5971_v15, %v5975_v33 }
 0x713   :  { %7671 = vmatpush1.bf16.msra.mxu1 %v11429_v8  ;;  %7590 = vmatprep.subr.bf16.mxu0 %v11436_v37  ;;  %v5978_v8 = vld [vmem:[#allocation15 + $0x4d0] sm:$0xff] }
 0x714   :  { %7672 = vmatprep.subr.bf16.mxu1 %v11438_v21  ;;  %v5982_v37 = vld [vmem:[#allocation15 + $0x4f0] sm:$0xff]  ;;  %v5979_v21 = vld [vmem:[#allocation15 + $0x4d8] sm:$0xff] }
 0x715   :  { %v11492_v24 = vcombine.high %v5978_v8, %v5982_v37  ;;  %v11494_v25 = vcombine.high %v5979_v21, %v5983_v22  ;;  %v11493_v16 = vcombine.low %v5979_v21, %v5983_v22  ;;  %v6034_v22 = vld [vmem:[#allocation15 + $0x690] sm:$0xff] }
 0x716   :  { %7591 = vmatpush1.bf16.msra.mxu0 %v11435_v58  ;;  %v5986_v58 = vld [vmem:[#allocation15 + $0x510] sm:$0xff] }
 0x717   :  { %7673 = vmatpush1.bf16.msra.mxu1 %v11437_v31  ;;  %7592 = vmatprep.subr.bf16.mxu0 %v11444_v32  ;;  %v5990_v31 = vld [vmem:[#allocation15 + $0x530] sm:$0xff]  ;;  %v5987_v32 = vld [vmem:[#allocation15 + $0x518] sm:$0xff] }
 0x718   :  { %7674 = vmatprep.subr.bf16.mxu1 %v11446_v35  ;;  %v5991_v35 = vld [vmem:[#allocation15 + $0x538] sm:$0xff]  ;;  %v11500_v36 = vcombine.high %v5986_v58, %v5990_v31 }
 0x719   :  { %v11502_v39 = vcombine.high %v5987_v32, %v5991_v35  ;;  %v11501_v46 = vcombine.low %v5987_v32, %v5991_v35  ;;  %v6042_v35 = vld [vmem:[#allocation15 + $0x6d0] sm:$0xff] }
 0x71a   :  { %7593 = vmatpush1.bf16.msra.mxu0 %v11443_v42  ;;  %v5998_v42 = vld [vmem:[#allocation15 + $0x570] sm:$0xff] }
 0x71b   :  { %7675 = vmatpush1.bf16.msra.mxu1 %v11445_v41  ;;  %7594 = vmatprep.subr.bf16.mxu0 %v11452_v43  ;;  %v5995_v41 = vld [vmem:[#allocation15 + $0x558] sm:$0xff]  ;;  %v11508_v47 = vcombine.high %v5994_v34, %v5998_v42 }
 0x71c   :  { %7676 = vmatprep.subr.bf16.mxu1 %v11454_v44  ;;  %v5999_v43 = vld [vmem:[#allocation15 + $0x578] sm:$0xff]  ;;  %v11499_v44 = vcombine.low %v5986_v58, %v5990_v31 }
 0x71d   :  { %v11510_v49 = vcombine.high %v5995_v41, %v5999_v43  ;;  %v11509_v57 = vcombine.low %v5995_v41, %v5999_v43  ;;  %v6050_v43 = vld [vmem:[#allocation15 + $0x710] sm:$0xff] }
 0x71e   :  { %7595 = vmatpush1.bf16.msra.mxu0 %v11451_v52  ;;  %v6006_v52 = vld [vmem:[#allocation15 + $0x5b0] sm:$0xff] }
 0x71f   :  { %7677 = vmatpush1.bf16.msra.mxu1 %v11453_v53  ;;  %7596 = vmatprep.subr.bf16.mxu0 %v11460_v54  ;;  %v6003_v53 = vld [vmem:[#allocation15 + $0x598] sm:$0xff]  ;;  %v11516_v59 = vcombine.high %v6002_v51, %v6006_v52 }
 0x720   :  { %7678 = vmatprep.subr.bf16.mxu1 %v11462_v56  ;;  %v6007_v54 = vld [vmem:[#allocation15 + $0x5b8] sm:$0xff]  ;;  %v11507_v56 = vcombine.low %v5994_v34, %v5998_v42 }
 0x721   :  { %v11518_v60 = vcombine.high %v6003_v53, %v6007_v54  ;;  %v11517_v62 = vcombine.low %v6003_v53, %v6007_v54  ;;  %v6058_v54 = vld [vmem:[#allocation15 + $0x750] sm:$0xff] }
 0x722   :  { %7597 = vmatpush1.bf16.msra.mxu0 %v11459_v61  ;;  %v6014_v61 = vld [vmem:[#allocation15 + $0x5f0] sm:$0xff] }
 0x723   :  { %7679 = vmatpush1.bf16.msra.mxu1 %v11461_v20  ;;  %7607 = vmatprep.subr.bf16.mxu0 %v11468_v55  ;;  %v6011_v20 = vld [vmem:[#allocation15 + $0x5d8] sm:$0xff]  ;;  %v11524_v6 = vcombine.high %v6010_v0, %v6014_v61  ;;  %v11523_v3 = vcombine.low %v6010_v0, %v6014_v61 }
 0x724   :  { %7689 = vmatprep.subr.bf16.mxu1 %v11470_v4  ;;  %v6015_v55 = vld [vmem:[#allocation15 + $0x5f8] sm:$0xff]  ;;  %v11515_v4 = vcombine.low %v6002_v51, %v6006_v52 }
 0x725   :  { %7599 = vmatmul.mubr.bf16.vlgmr.msra.gmra.mrb[28].mxu0 %v14145_v9  ;;  %v11525_v45 = vcombine.low %v6011_v20, %v6015_v55 }
 0x726   :  { %7681 = vmatmul.mubr.bf16.vlgmr.msra.gmra.mrb[32].mxu1 %v14145_v9  ;;  %7608 = vmatpush1.bf16.msra.mxu0 %v11467_v7  ;;  %v11485_v9 = vcombine.low %v5971_v15, %v5975_v33  ;;  %v11526_v7 = vcombine.high %v6011_v20, %v6015_v55  ;;  %v6026_v33 = vld [vmem:[#allocation15 + $0x650] sm:$0xff] }
 0x727   :  { %7639 = vmatprep.mubr.bf16.mxu0 %v14149_v12  ;;  %7690 = vmatpush1.bf16.msra.mxu1 %v11469_v28  ;;  %v6019_v28 = vld [vmem:[#allocation15 + $0x618] sm:$0xff]  ;;  %v6066_v55 = vld [vmem:[#allocation15 + $0x790] sm:$0xff] }
 0x728   :  { %7721 = vmatprep.mubr.bf16.mxu1 %v14149_v12  ;;  %7609 = vmatprep.subr.bf16.mxu0 %v11476_v14  ;;  %v11491_v12 = vcombine.low %v5978_v8, %v5982_v37  ;;  %v6023_v14 = vld [vmem:[#allocation15 + $0x638] sm:$0xff] }
 0x729   :  { %7691 = vmatprep.subr.bf16.mxu1 %v11478_v5  ;;  %v11532_v5 = vcombine.high %v6018_v10, %v6022_v13  ;;  %v11534_v15 = vcombine.high %v6019_v28, %v6023_v14  ;;  %v11533_v8 = vcombine.low %v6019_v28, %v6023_v14  ;;  %v6074_v14 = vld [vmem:[#allocation15 + $0x7d0] sm:$0xff] }
 0x72a   :  { %7610 = vmatpush1.bf16.msra.mxu0 %v11475_v17  ;;  %v6030_v17 = vld [vmem:[#allocation15 + $0x670] sm:$0xff] }
 0x72b   :  { %7692 = vmatpush1.bf16.msra.mxu1 %v11477_v18  ;;  %7611 = vmatprep.subr.bf16.mxu0 %v11484_v48  ;;  %v6027_v18 = vld [vmem:[#allocation15 + $0x658] sm:$0xff]  ;;  %v11540_v37 = vcombine.high %v6026_v33, %v6030_v17 }
 0x72c   :  { %7693 = vmatprep.subr.bf16.mxu1 %v11486_v19  ;;  %v6031_v48 = vld [vmem:[#allocation15 + $0x678] sm:$0xff]  ;;  %v11531_v19 = vcombine.low %v6018_v10, %v6022_v13 }
 0x72d   :  { %v11542_v21 = vcombine.high %v6027_v18, %v6031_v48  ;;  %v11541_v58 = vcombine.low %v6027_v18, %v6031_v48 }
 0x72e   :  { %7612 = vmatpush1.bf16.msra.mxu0 %v11483_v23  ;;  %v6038_v23 = vld [vmem:[#allocation15 + $0x6b0] sm:$0xff] }
 0x72f   :  { %7694 = vmatpush1.bf16.msra.mxu1 %v11485_v9  ;;  %7613 = vmatprep.subr.bf16.mxu0 %v11492_v24  ;;  %v6035_v9 = vld [vmem:[#allocation15 + $0x698] sm:$0xff]  ;;  %v11548_v31 = vcombine.high %v6034_v22, %v6038_v23 }
 0x730   :  { %7695 = vmatprep.subr.bf16.mxu1 %v11494_v25  ;;  %v6039_v24 = vld [vmem:[#allocation15 + $0x6b8] sm:$0xff]  ;;  %v11539_v25 = vcombine.low %v6026_v33, %v6030_v17 }
 0x731   :  { %v11550_v32 = vcombine.high %v6035_v9, %v6039_v24  ;;  %v11549_v34 = vcombine.low %v6035_v9, %v6039_v24  ;;  %v12680_v9 = vld [vmem:[#allocation18 + $0x3c] ss:$24 sps:$4 sm:$0xff]   ;;  %v12675_v24 = vld [vmem:[#allocation18 + $0x30] ss:$24 sps:$4 sm:$0xff]  }
 0x732   :  { %7614 = vmatpush1.bf16.msra.mxu0 %v11491_v12  ;;  %v6046_v12 = vld [vmem:[#allocation15 + $0x6f0] sm:$0xff] }
 0x733   :  { %7696 = vmatpush1.bf16.msra.mxu1 %v11493_v16  ;;  %7615 = vmatprep.subr.bf16.mxu0 %v11500_v36  ;;  %v6043_v16 = vld [vmem:[#allocation15 + $0x6d8] sm:$0xff]  ;;  %v11556_v42 = vcombine.high %v6042_v35, %v6046_v12 }
 0x734   :  { %7697 = vmatprep.subr.bf16.mxu1 %v11502_v39  ;;  %v6047_v36 = vld [vmem:[#allocation15 + $0x6f8] sm:$0xff]  ;;  %v11547_v39 = vcombine.low %v6034_v22, %v6038_v23  ;;  %v12672_v22 = vld [vmem:[#allocation18 + $0x8] ss:$24 sps:$4 sm:$0xff]  }
 0x735   :  { %v11558_v41 = vcombine.high %v6043_v16, %v6047_v36  ;;  %v11557_v51 = vcombine.low %v6043_v16, %v6047_v36  ;;  %v12677_v23 = vld [vmem:[#allocation18 + $0x34] ss:$24 sps:$4 sm:$0xff]   ;;  %v12687_v36 = vld [vmem:[#allocation18 + $0x90] ss:$24 sps:$4 sm:$0xff]  }
 0x736   :  { %7616 = vmatpush1.bf16.msra.mxu0 %v11499_v44  ;;  %v6054_v44 = vld [vmem:[#allocation15 + $0x730] sm:$0xff]  ;;  %v12692_v16 = vld [vmem:[#allocation18 + $0x9c] ss:$24 sps:$4 sm:$0xff]  }
 0x737   :  { %7698 = vmatpush1.bf16.msra.mxu1 %v11501_v46  ;;  %7617 = vmatprep.subr.bf16.mxu0 %v11508_v47  ;;  %v6051_v46 = vld [vmem:[#allocation15 + $0x718] sm:$0xff]  ;;  %v11564_v52 = vcombine.high %v6050_v43, %v6054_v44 }
 0x738   :  { %7699 = vmatprep.subr.bf16.mxu1 %v11510_v49  ;;  %v6055_v47 = vld [vmem:[#allocation15 + $0x738] sm:$0xff]  ;;  %v11555_v49 = vcombine.low %v6042_v35, %v6046_v12  ;;  %v12684_v35 = vld [vmem:[#allocation18 + $0x68] ss:$24 sps:$4 sm:$0xff]  }
 0x739   :  { %v11566_v53 = vcombine.high %v6051_v46, %v6055_v47  ;;  %v11565_v0 = vcombine.low %v6051_v46, %v6055_v47  ;;  %v12689_v12 = vld [vmem:[#allocation18 + $0x94] ss:$24 sps:$4 sm:$0xff]   ;;  %v12699_v46 = vld [vmem:[#allocation18 + $0xf0] ss:$24 sps:$4 sm:$0xff]  }
 0x73a   :  { %7618 = vmatpush1.bf16.msra.mxu0 %v11507_v56  ;;  %v6062_v56 = vld [vmem:[#allocation15 + $0x770] sm:$0xff]  ;;  %v12702_v47 = vld [vmem:[#allocation18 + $0xf8] ss:$24 sps:$4 sm:$0xff]  }
 0x73b   :  { %7700 = vmatpush1.bf16.msra.mxu1 %v11509_v57  ;;  %7619 = vmatprep.subr.bf16.mxu0 %v11516_v59  ;;  %v6059_v57 = vld [vmem:[#allocation15 + $0x758] sm:$0xff]  ;;  %v11572_v61 = vcombine.high %v6058_v54, %v6062_v56 }
 0x73c   :  { %7701 = vmatprep.subr.bf16.mxu1 %v11518_v60  ;;  %v6063_v59 = vld [vmem:[#allocation15 + $0x778] sm:$0xff]  ;;  %v11563_v60 = vcombine.low %v6050_v43, %v6054_v44 }
 0x73d   :  { %v11574_v20 = vcombine.high %v6059_v57, %v6063_v59  ;;  %v11573_v10 = vcombine.low %v6059_v57, %v6063_v59  ;;  %v12701_v43 = vld [vmem:[#allocation18 + $0xf4] ss:$24 sps:$4 sm:$0xff]   ;;  %v12711_v57 = vld [vmem:[#allocation18 + $0x150] ss:$24 sps:$4 sm:$0xff]  }
 0x73e   :  { %7620 = vmatpush1.bf16.msra.mxu0 %v11515_v4  ;;  %v6070_v4 = vld [vmem:[#allocation15 + $0x7b0] sm:$0xff]  ;;  %v12704_v44 = vld [vmem:[#allocation18 + $0xfc] ss:$24 sps:$4 sm:$0xff]   ;;  %v12714_v59 = vld [vmem:[#allocation18 + $0x158] ss:$24 sps:$4 sm:$0xff]  }
 0x73f   :  { %7702 = vmatpush1.bf16.msra.mxu1 %v11517_v62  ;;  %7621 = vmatprep.subr.bf16.mxu0 %v11524_v6  ;;  %v6067_v62 = vld [vmem:[#allocation15 + $0x798] sm:$0xff]  ;;  %v11580_v13 = vcombine.high %v6066_v55, %v6070_v4 }
 0x740   :  { %7703 = vmatprep.subr.bf16.mxu1 %v11526_v7  ;;  %v6071_v6 = vld [vmem:[#allocation15 + $0x7b8] sm:$0xff]  ;;  %v11571_v7 = vcombine.low %v6058_v54, %v6062_v56 }
 0x741   :  { %v11582_v28 = vcombine.high %v6067_v62, %v6071_v6  ;;  %v11581_v33 = vcombine.low %v6067_v62, %v6071_v6  ;;  %v12713_v54 = vld [vmem:[#allocation18 + $0x154] ss:$24 sps:$4 sm:$0xff]   ;;  %v12723_v62 = vld [vmem:[#allocation18 + $0x1b0] ss:$24 sps:$4 sm:$0xff]  }
 0x742   :  { %7622 = vmatpush1.bf16.msra.mxu0 %v11523_v3  ;;  %v6078_v3 = vld [vmem:[#allocation15 + $0x7f0] sm:$0xff]  ;;  %v12716_v56 = vld [vmem:[#allocation18 + $0x15c] ss:$24 sps:$4 sm:$0xff]   ;;  %v12726_v6 = vld [vmem:[#allocation18 + $0x1b8] ss:$24 sps:$4 sm:$0xff]  }
 0x743   :  { %7704 = vmatpush1.bf16.msra.mxu1 %v11525_v45  ;;  %7623 = vmatprep.subr.bf16.mxu0 %v11532_v5  ;;  %v6075_v45 = vld [vmem:[#allocation15 + $0x7d8] sm:$0xff]  ;;  %v11588_v17 = vcombine.high %v6074_v14, %v6078_v3  ;;  %v11587_v48 = vcombine.low %v6074_v14, %v6078_v3 }
 0x744   :  { %7705 = vmatprep.subr.bf16.mxu1 %v11534_v15  ;;  %v6079_v5 = vld [vmem:[#allocation15 + $0x7f8] sm:$0xff]  ;;  %v11579_v15 = vcombine.low %v6066_v55, %v6070_v4 }
 0x745   :  { %v11590_v18 = vcombine.high %v6075_v45, %v6079_v5  ;;  %v12725_v55 = vld [vmem:[#allocation18 + $0x1b4] ss:$24 sps:$4 sm:$0xff]  }
 0x746   :  { %7624 = vmatpush1.bf16.msra.mxu0 %v11531_v19  ;;  %v11589_v19 = vcombine.low %v6075_v45, %v6079_v5  ;;  %v12728_v4 = vld [vmem:[#allocation18 + $0x1bc] ss:$24 sps:$4 sm:$0xff]   ;;  %v12735_v45 = vld [vmem:[#allocation18 + $0x210] ss:$24 sps:$4 sm:$0xff]  }
 0x747   :  { %7706 = vmatpush1.bf16.msra.mxu1 %v11533_v8  ;;  %7625 = vmatprep.subr.bf16.mxu0 %v11540_v37  ;;  %v12671_v8 = vld [vmem:[#allocation18 + $0x4] ss:$24 sps:$4 sm:$0xff]   ;;  %v12737_v14 = vld [vmem:[#allocation18 + $0x214] ss:$24 sps:$4 sm:$0xff]   ;;  %v12738_v5 = vld [vmem:[#allocation18 + $0x218] ss:$24 sps:$4 sm:$0xff]  }
 0x748   :  { %7707 = vmatprep.subr.bf16.mxu1 %v11542_v21  ;;  %v12674_v37 = vld [vmem:[#allocation18 + $0xc] ss:$24 sps:$4 sm:$0xff]   ;;  %v12669_v21 = vld [vmem:[#allocation18] ss:$24 sps:$4 sm:$0xff]   ;;  %v12740_v3 = vld [vmem:[#allocation18 + $0x21c] ss:$24 sps:$4 sm:$0xff]  }
 0x74a   :  { %7626 = vmatpush1.bf16.msra.mxu0 %v11539_v25  ;;  %v12678_v25 = vld [vmem:[#allocation18 + $0x38] ss:$24 sps:$4 sm:$0xff]  }
 0x74b   :  { %7708 = vmatpush1.bf16.msra.mxu1 %v11541_v58  ;;  %7627 = vmatprep.subr.bf16.mxu0 %v11548_v31  ;;  %v12683_v58 = vld [vmem:[#allocation18 + $0x64] ss:$24 sps:$4 sm:$0xff]  }
 0x74c   :  { %7709 = vmatprep.subr.bf16.mxu1 %v11550_v32  ;;  %v12686_v31 = vld [vmem:[#allocation18 + $0x6c] ss:$24 sps:$4 sm:$0xff]   ;;  %v12681_v32 = vld [vmem:[#allocation18 + $0x60] ss:$24 sps:$4 sm:$0xff]  }
 0x74e   :  { %7628 = vmatpush1.bf16.msra.mxu0 %v11547_v39  ;;  %v12695_v39 = vld [vmem:[#allocation18 + $0xc4] ss:$24 sps:$4 sm:$0xff]  }
 0x74f   :  { %7710 = vmatpush1.bf16.msra.mxu1 %v11549_v34  ;;  %7629 = vmatprep.subr.bf16.mxu0 %v11556_v42  ;;  %v12698_v34 = vld [vmem:[#allocation18 + $0xcc] ss:$24 sps:$4 sm:$0xff]   ;;  %v12693_v42 = vld [vmem:[#allocation18 + $0xc0] ss:$24 sps:$4 sm:$0xff]  }
 0x750   :  { %7711 = vmatprep.subr.bf16.mxu1 %v11558_v41  ;;  %v12696_v41 = vld [vmem:[#allocation18 + $0xc8] ss:$24 sps:$4 sm:$0xff]  }
 0x752   :  { %7630 = vmatpush1.bf16.msra.mxu0 %v11555_v49  ;;  %v12707_v49 = vld [vmem:[#allocation18 + $0x124] ss:$24 sps:$4 sm:$0xff]  }
 0x753   :  { %7712 = vmatpush1.bf16.msra.mxu1 %v11557_v51  ;;  %7631 = vmatprep.subr.bf16.mxu0 %v11564_v52  ;;  %v12710_v51 = vld [vmem:[#allocation18 + $0x12c] ss:$24 sps:$4 sm:$0xff]   ;;  %v12705_v52 = vld [vmem:[#allocation18 + $0x120] ss:$24 sps:$4 sm:$0xff]  }
 0x754   :  { %7713 = vmatprep.subr.bf16.mxu1 %v11566_v53  ;;  %v12708_v53 = vld [vmem:[#allocation18 + $0x128] ss:$24 sps:$4 sm:$0xff]  }
 0x756   :  { %7632 = vmatpush1.bf16.msra.mxu0 %v11563_v60  ;;  %v12719_v60 = vld [vmem:[#allocation18 + $0x184] ss:$24 sps:$4 sm:$0xff]  }
 0x757   :  { %7714 = vmatpush1.bf16.msra.mxu1 %v11565_v0  ;;  %7633 = vmatprep.subr.bf16.mxu0 %v11572_v61  ;;  %v12722_v0 = vld [vmem:[#allocation18 + $0x18c] ss:$24 sps:$4 sm:$0xff]   ;;  %v12717_v61 = vld [vmem:[#allocation18 + $0x180] ss:$24 sps:$4 sm:$0xff]  }
 0x758   :  { %7715 = vmatprep.subr.bf16.mxu1 %v11574_v20  ;;  %v12720_v20 = vld [vmem:[#allocation18 + $0x188] ss:$24 sps:$4 sm:$0xff]  }
 0x75a   :  { %7634 = vmatpush1.bf16.msra.mxu0 %v11571_v7  ;;  %v12731_v7 = vld [vmem:[#allocation18 + $0x1e4] ss:$24 sps:$4 sm:$0xff]  }
 0x75b   :  { %7716 = vmatpush1.bf16.msra.mxu1 %v11573_v10  ;;  %7635 = vmatprep.subr.bf16.mxu0 %v11580_v13  ;;  %v12734_v10 = vld [vmem:[#allocation18 + $0x1ec] ss:$24 sps:$4 sm:$0xff]   ;;  %v12729_v13 = vld [vmem:[#allocation18 + $0x1e0] ss:$24 sps:$4 sm:$0xff]  }
 0x75c   :  { %7717 = vmatprep.subr.bf16.mxu1 %v11582_v28  ;;  %v12732_v28 = vld [vmem:[#allocation18 + $0x1e8] ss:$24 sps:$4 sm:$0xff]  }
 0x75e   :  { %7636 = vmatpush1.bf16.msra.mxu0 %v11579_v15  ;;  %v12743_v15 = vld [vmem:[#allocation18 + $0x244] ss:$24 sps:$4 sm:$0xff]  }
 0x75f   :  { %7718 = vmatpush1.bf16.msra.mxu1 %v11581_v33  ;;  %7637 = vmatprep.subr.bf16.mxu0 %v11588_v17  ;;  %v12746_v33 = vld [vmem:[#allocation18 + $0x24c] ss:$24 sps:$4 sm:$0xff]   ;;  %v12741_v17 = vld [vmem:[#allocation18 + $0x240] ss:$24 sps:$4 sm:$0xff]  }
 0x760   :  { %7719 = vmatprep.subr.bf16.mxu1 %v11590_v18  ;;  %v12744_v18 = vld [vmem:[#allocation18 + $0x248] ss:$24 sps:$4 sm:$0xff]  }
 0x762   :  { %7638 = vmatpush1.bf16.msra.mxu0 %v11587_v48  ;;  %v12749_v48 = vld [vmem:[#allocation18 + $0x274] ss:$24 sps:$4 sm:$0xff]  }
 0x763   :  { %7720 = vmatpush1.bf16.msra.mxu1 %v11589_v19  ;;  %10082 = vmatprep.subr.bf16.mxu0 %v12671_v8  ;;  %v12752_v19 = vld [vmem:[#allocation18 + $0x27c] ss:$24 sps:$4 sm:$0xff]   ;;  %v12747_v8 = vld [vmem:[#allocation18 + $0x270] ss:$24 sps:$4 sm:$0xff]  }
 0x764   :  { %10246 = vmatprep.subr.bf16.mxu1 %v12674_v37  ;;  %v12750_v37 = vld [vmem:[#allocation18 + $0x278] ss:$24 sps:$4 sm:$0xff]  }
 0x765   :  { %7640 = vmatmul.mubr.bf16.vlgmr.msra.gmra.mrb[28].mxu0 %v14158_v30 }
 0x766   :  { %7722 = vmatmul.mubr.bf16.vlgmr.msra.gmra.mrb[32].mxu1 %v14158_v30  ;;  %10083 = vmatpush1.bf16.msra.mxu0 %v12669_v21  ;;  %v12690_v30 = vld [vmem:[#allocation18 + $0x98] ss:$24 sps:$4 sm:$0xff]   ;;  %v12755_v21 = vld [vmem:[#allocation18 + $0x2a4] ss:$24 sps:$4 sm:$0xff]  }
 0x767   :  { %10247 = vmatpush1.bf16.msra.mxu1 %v12672_v22  ;;  %10084 = vmatprep.subr.bf16.mxu0 %v12677_v23  ;;  %v12758_v22 = vld [vmem:[#allocation18 + $0x2ac] ss:$24 sps:$4 sm:$0xff]   ;;  %v12753_v23 = vld [vmem:[#allocation18 + $0x2a0] ss:$24 sps:$4 sm:$0xff]  }
 0x768   :  { %10248 = vmatprep.subr.bf16.mxu1 %v12680_v9  ;;  %v12756_v9 = vld [vmem:[#allocation18 + $0x2a8] ss:$24 sps:$4 sm:$0xff]  }
 0x76a   :  { %10085 = vmatpush1.bf16.msra.mxu0 %v12675_v24  ;;  %v12761_v24 = vld [vmem:[#allocation18 + $0x2d4] ss:$24 sps:$4 sm:$0xff]  }
 0x76b   :  { %10249 = vmatpush1.bf16.msra.mxu1 %v12678_v25  ;;  %10086 = vmatprep.subr.bf16.mxu0 %v12683_v58  ;;  %v12764_v25 = vld [vmem:[#allocation18 + $0x2dc] ss:$24 sps:$4 sm:$0xff]   ;;  %v12759_v58 = vld [vmem:[#allocation18 + $0x2d0] ss:$24 sps:$4 sm:$0xff]  }
 0x76c   :  { %10250 = vmatprep.subr.bf16.mxu1 %v12686_v31  ;;  %v12762_v31 = vld [vmem:[#allocation18 + $0x2d8] ss:$24 sps:$4 sm:$0xff]  }
 0x76e   :  { %10087 = vmatpush1.bf16.msra.mxu0 %v12681_v32  ;;  %v12767_v32 = vld [vmem:[#allocation18 + $0x304] ss:$24 sps:$4 sm:$0xff]  }
 0x76f   :  { %10251 = vmatpush1.bf16.msra.mxu1 %v12684_v35  ;;  %10088 = vmatprep.subr.bf16.mxu0 %v12689_v12  ;;  %v12770_v35 = vld [vmem:[#allocation18 + $0x30c] ss:$24 sps:$4 sm:$0xff]   ;;  %v14170_v12 = vld [vmem:[#allocation16] sm:$0xff] }
 0x770   :  { %10252 = vmatprep.subr.bf16.mxu1 %v12692_v16  ;;  %v6085_v16 = vrot.slane %v14170_v12, %v13860_v26 }
 0x772   :  { %10089 = vmatpush1.bf16.msra.mxu0 %v12687_v36  ;;  %v6089_v36 = vrot.slane %v14170_v12, %v13863_v27 }
 0x773   :  { %10253 = vmatpush1.bf16.msra.mxu1 %v12690_v30  ;;  %10090 = vmatprep.subr.bf16.mxu0 %v12695_v39  ;;  %v6097_v30 = vrot.slane %v14170_v12, %v13892_v63 }
 0x774   :  { %10254 = vmatprep.subr.bf16.mxu1 %v12698_v34 }
 0x776   :  { %10091 = vmatpush1.bf16.msra.mxu0 %v12693_v42 }
 0x777   :  { %10255 = vmatpush1.bf16.msra.mxu1 %v12696_v41  ;;  %10092 = vmatprep.subr.bf16.mxu0 %v12701_v43 }
 0x778   :  { %10256 = vmatprep.subr.bf16.mxu1 %v12704_v44 }
 0x77a   :  { %10093 = vmatpush1.bf16.msra.mxu0 %v12699_v46 }
 0x77b   :  { %10257 = vmatpush1.bf16.msra.mxu1 %v12702_v47  ;;  %10094 = vmatprep.subr.bf16.mxu0 %v12707_v49 }
 0x77c   :  { %10258 = vmatprep.subr.bf16.mxu1 %v12710_v51 }
 0x77e   :  { %10095 = vmatpush1.bf16.msra.mxu0 %v12705_v52 }
 0x77f   :  { %10259 = vmatpush1.bf16.msra.mxu1 %v12708_v53  ;;  %10096 = vmatprep.subr.bf16.mxu0 %v12713_v54 }
 0x780   :  { %10260 = vmatprep.subr.bf16.mxu1 %v12716_v56 }
 0x782   :  { %10097 = vmatpush1.bf16.msra.mxu0 %v12711_v57 }
 0x783   :  { %10261 = vmatpush1.bf16.msra.mxu1 %v12714_v59  ;;  %10098 = vmatprep.subr.bf16.mxu0 %v12719_v60  ;;  %v12765_v59 = vld [vmem:[#allocation18 + $0x300] ss:$24 sps:$4 sm:$0xff]  }
 0x784   :  { %10262 = vmatprep.subr.bf16.mxu1 %v12722_v0  ;;  %v12768_v60 = vld [vmem:[#allocation18 + $0x308] ss:$24 sps:$4 sm:$0xff]  }
 0x786   :  { %10099 = vmatpush1.bf16.msra.mxu0 %v12717_v61  ;;  %v12773_v61 = vld [vmem:[#allocation18 + $0x334] ss:$24 sps:$4 sm:$0xff]  }
 0x787   :  { %10263 = vmatpush1.bf16.msra.mxu1 %v12720_v20  ;;  %10100 = vmatprep.subr.bf16.mxu0 %v12725_v55  ;;  %v12776_v20 = vld [vmem:[#allocation18 + $0x33c] ss:$24 sps:$4 sm:$0xff]  }
 0x788   :  { %10264 = vmatprep.subr.bf16.mxu1 %v12728_v4  ;;  %v12771_v4 = vld [vmem:[#allocation18 + $0x330] ss:$24 sps:$4 sm:$0xff]  }
 0x78a   :  { %10101 = vmatpush1.bf16.msra.mxu0 %v12723_v62  ;;  %v12774_v62 = vld [vmem:[#allocation18 + $0x338] ss:$24 sps:$4 sm:$0xff]  }
 0x78b   :  { %10265 = vmatpush1.bf16.msra.mxu1 %v12726_v6  ;;  %10102 = vmatprep.subr.bf16.mxu0 %v12731_v7  ;;  %v12779_v6 = vld [vmem:[#allocation18 + $0x364] ss:$24 sps:$4 sm:$0xff]  }
 0x78c   :  { %10266 = vmatprep.subr.bf16.mxu1 %v12734_v10  ;;  %v12782_v7 = vld [vmem:[#allocation18 + $0x36c] ss:$24 sps:$4 sm:$0xff]   ;;  %v12777_v10 = vld [vmem:[#allocation18 + $0x360] ss:$24 sps:$4 sm:$0xff]  }
 0x78e   :  { %10103 = vmatpush1.bf16.msra.mxu0 %v12729_v13  ;;  %v12780_v13 = vld [vmem:[#allocation18 + $0x368] ss:$24 sps:$4 sm:$0xff]  }
 0x78f   :  { %10267 = vmatpush1.bf16.msra.mxu1 %v12732_v28  ;;  %10104 = vmatprep.subr.bf16.mxu0 %v12737_v14  ;;  %v12785_v28 = vld [vmem:[#allocation18 + $0x394] ss:$24 sps:$4 sm:$0xff]  }
 0x790   :  { %10268 = vmatprep.subr.bf16.mxu1 %v12740_v3  ;;  %v12788_v14 = vld [vmem:[#allocation18 + $0x39c] ss:$24 sps:$4 sm:$0xff]   ;;  %v12783_v3 = vld [vmem:[#allocation18 + $0x390] ss:$24 sps:$4 sm:$0xff]  }
 0x792   :  { %10105 = vmatpush1.bf16.msra.mxu0 %v12735_v45  ;;  %v12786_v45 = vld [vmem:[#allocation18 + $0x398] ss:$24 sps:$4 sm:$0xff]  }
 0x793   :  { %10269 = vmatpush1.bf16.msra.mxu1 %v12738_v5  ;;  %10106 = vmatprep.subr.bf16.mxu0 %v12743_v15  ;;  %v12791_v5 = vld [vmem:[#allocation18 + $0x3c4] ss:$24 sps:$4 sm:$0xff]  }
 0x794   :  { %10270 = vmatprep.subr.bf16.mxu1 %v12746_v33  ;;  %v12794_v15 = vld [vmem:[#allocation18 + $0x3cc] ss:$24 sps:$4 sm:$0xff]   ;;  %v12789_v33 = vld [vmem:[#allocation18 + $0x3c0] ss:$24 sps:$4 sm:$0xff]  }
 0x796   :  { %10107 = vmatpush1.bf16.msra.mxu0 %v12741_v17  ;;  %v12792_v17 = vld [vmem:[#allocation18 + $0x3c8] ss:$24 sps:$4 sm:$0xff]  }
 0x797   :  { %10271 = vmatpush1.bf16.msra.mxu1 %v12744_v18  ;;  %10108 = vmatprep.subr.bf16.mxu0 %v12749_v48  ;;  %v12797_v18 = vld [vmem:[#allocation18 + $0x3f4] ss:$24 sps:$4 sm:$0xff]  }
 0x798   :  { %10272 = vmatprep.subr.bf16.mxu1 %v12752_v19  ;;  %v12800_v48 = vld [vmem:[#allocation18 + $0x3fc] ss:$24 sps:$4 sm:$0xff]   ;;  %v12795_v19 = vld [vmem:[#allocation18 + $0x3f0] ss:$24 sps:$4 sm:$0xff]  }
 0x79a   :  { %10109 = vmatpush1.bf16.msra.mxu0 %v12747_v8  ;;  %v12798_v8 = vld [vmem:[#allocation18 + $0x3f8] ss:$24 sps:$4 sm:$0xff]  }
 0x79b   :  { %10273 = vmatpush1.bf16.msra.mxu1 %v12750_v37  ;;  %10110 = vmatprep.subr.bf16.mxu0 %v12755_v21  ;;  %v12803_v37 = vld [vmem:[#allocation18 + $0x424] ss:$24 sps:$4 sm:$0xff]  }
 0x79c   :  { %10274 = vmatprep.subr.bf16.mxu1 %v12758_v22  ;;  %v12806_v21 = vld [vmem:[#allocation18 + $0x42c] ss:$24 sps:$4 sm:$0xff]   ;;  %v12801_v22 = vld [vmem:[#allocation18 + $0x420] ss:$24 sps:$4 sm:$0xff]  }
 0x79e   :  { %10111 = vmatpush1.bf16.msra.mxu0 %v12753_v23  ;;  %v12804_v23 = vld [vmem:[#allocation18 + $0x428] ss:$24 sps:$4 sm:$0xff]  }
 0x79f   :  { %10275 = vmatpush1.bf16.msra.mxu1 %v12756_v9  ;;  %10112 = vmatprep.subr.bf16.mxu0 %v12761_v24  ;;  %v12809_v9 = vld [vmem:[#allocation18 + $0x454] ss:$24 sps:$4 sm:$0xff]  }
 0x7a0   :  { %10276 = vmatprep.subr.bf16.mxu1 %v12764_v25  ;;  %v12812_v24 = vld [vmem:[#allocation18 + $0x45c] ss:$24 sps:$4 sm:$0xff]   ;;  %v12807_v25 = vld [vmem:[#allocation18 + $0x450] ss:$24 sps:$4 sm:$0xff]  }
 0x7a2   :  { %10113 = vmatpush1.bf16.msra.mxu0 %v12759_v58  ;;  %v12810_v58 = vld [vmem:[#allocation18 + $0x458] ss:$24 sps:$4 sm:$0xff]  }
 0x7a3   :  { %10277 = vmatpush1.bf16.msra.mxu1 %v12762_v31  ;;  %10123 = vmatprep.subr.bf16.mxu0 %v12767_v32  ;;  %v12815_v31 = vld [vmem:[#allocation18 + $0x484] ss:$24 sps:$4 sm:$0xff]  }
 0x7a4   :  { %10287 = vmatprep.subr.bf16.mxu1 %v12770_v35  ;;  %v12818_v32 = vld [vmem:[#allocation18 + $0x48c] ss:$24 sps:$4 sm:$0xff]   ;;  %v12813_v35 = vld [vmem:[#allocation18 + $0x480] ss:$24 sps:$4 sm:$0xff]  }
 0x7b8   :  { %v7477_v39 = vpop.f32.mrb[24].mxu0  ;;  %v14178_v34 = vpop.f32.mrb[28].mxu1 }
 0x7b9   :  { %v12078_v42 = vadd.f32 %v7477_v39, %v6085_v16  ;;  %v7479_v41 = vpop.f32.mrb[25].mxu0  ;;  %v7561_v43 = vpop.f32.mrb[29].mxu1  ;;  %v12816_v16 = vld [vmem:[#allocation18 + $0x488] ss:$24 sps:$4 sm:$0xff]  }
 0x7ba   :  { %v12079_v44 = vadd.f32 %v7479_v41, %v6089_v36  ;;  %v12081_v46 = vadd.f32 %v7561_v43, %v6097_v30  ;;  %v7481_v47 = vpop.f32.mrb[26].mxu0  ;;  %v7563_v49 = vpop.f32.mrb[30].mxu1  ;;  %v12821_v36 = vld [vmem:[#allocation18 + $0x4b4] ss:$24 sps:$4 sm:$0xff]   ;;  %v12819_v39 = vld [vmem:[#allocation18 + $0x4b0] ss:$24 sps:$4 sm:$0xff]  }
 0x7bb   :  { %v7730_v51 = vmax.f32 %v12078_v42, 0.0  ;;  %v7482_v52 = vpop.f32.mrb[27].mxu0  ;;  %v7564_v53 = vpop.f32.mrb[31].mxu1  ;;  %v12824_v30 = vld [vmem:[#allocation18 + $0x4bc] ss:$24 sps:$4 sm:$0xff]  }
 0x7bc   :  { %v7731_v54 = vmax.f32 %v12079_v44, 0.0  ;;  %v7733_v56 = vmax.f32 %v12081_v46, 0.0  ;;  %v12822_v42 = vld [vmem:[#allocation18 + $0x4b8] ss:$24 sps:$4 sm:$0xff]   ;;  %v12827_v41 = vld [vmem:[#allocation18 + $0x4e4] ss:$24 sps:$4 sm:$0xff]  }
 0x7bd   :  { %v14182_v0 = vpack.c.bf16 %v7730_v51, %v7730_v51  ;;  %v12830_v43 = vld [vmem:[#allocation18 + $0x4ec] ss:$24 sps:$4 sm:$0xff]   ;;  %v12825_v44 = vld [vmem:[#allocation18 + $0x4e0] ss:$24 sps:$4 sm:$0xff]   ;;  %v12836_v49 = vld [vmem:[#allocation18 + $0x51c] ss:$24 sps:$4 sm:$0xff]  }
 0x7be   :  { %v14180_v57 = vpack.c.bf16 %v7731_v54, %v7731_v54  ;;  %v14186_v55 = vpack.c.bf16 %v7733_v56, %v7733_v56  ;;  %v12828_v46 = vld [vmem:[#allocation18 + $0x4e8] ss:$24 sps:$4 sm:$0xff]   ;;  %v12833_v47 = vld [vmem:[#allocation18 + $0x514] ss:$24 sps:$4 sm:$0xff]   ;;  %v12834_v52 = vld [vmem:[#allocation18 + $0x518] ss:$24 sps:$4 sm:$0xff]  }
 0x7bf   :  { %v12831_v51 = vld [vmem:[#allocation18 + $0x510] ss:$24 sps:$4 sm:$0xff]   ;;  %v12839_v53 = vld [vmem:[#allocation18 + $0x544] ss:$24 sps:$4 sm:$0xff]   ;;  %v12837_v56 = vld [vmem:[#allocation18 + $0x540] ss:$24 sps:$4 sm:$0xff]  }
 0x7c0   :  { %10114 = vmatprep.mubr.bf16.mxu0 %v14180_v57  ;;  %10278 = vmatprep.mubr.bf16.mxu1 %v14180_v57  ;;  %v12842_v54 = vld [vmem:[#allocation18 + $0x54c] ss:$24 sps:$4 sm:$0xff]  }
 0x7c1   :  { %10115 = vmatmul.mubr.bf16.vlgmr.msra.gmra.mrb[32].mxu0 %v14182_v0  ;;  %10279 = vmatmul.mubr.bf16.vlgmr.msra.gmra.mrb[36].mxu1 %v14182_v0 }
 0x7c2   :  { %10124 = vmatpush1.bf16.msra.mxu0 %v12765_v59  ;;  %10288 = vmatpush1.bf16.msra.mxu1 %v12768_v60  ;;  %v12840_v59 = vld [vmem:[#allocation18 + $0x548] ss:$24 sps:$4 sm:$0xff]   ;;  %v12845_v60 = vld [vmem:[#allocation18 + $0x574] ss:$24 sps:$4 sm:$0xff]  }
 0x7c3   :  { %10155 = vmatprep.mubr.bf16.mxu0 %v14186_v55  ;;  %10319 = vmatprep.mubr.bf16.mxu1 %v14186_v55 }
 0x7c4   :  { %10125 = vmatprep.subr.bf16.mxu0 %v12773_v61  ;;  %10289 = vmatprep.subr.bf16.mxu1 %v12776_v20  ;;  %v12848_v61 = vld [vmem:[#allocation18 + $0x57c] ss:$24 sps:$4 sm:$0xff]   ;;  %v12843_v20 = vld [vmem:[#allocation18 + $0x570] ss:$24 sps:$4 sm:$0xff]  }
 0x7c6   :  { %10126 = vmatpush1.bf16.msra.mxu0 %v12771_v4  ;;  %10290 = vmatpush1.bf16.msra.mxu1 %v12774_v62  ;;  %v12846_v4 = vld [vmem:[#allocation18 + $0x578] ss:$24 sps:$4 sm:$0xff]   ;;  %v6093_v62 = vrot.slane %v14170_v12, %v13889_v40 }
 0x7c7   :  { %10127 = vmatprep.subr.bf16.mxu0 %v12779_v6  ;;  %10291 = vmatprep.subr.bf16.mxu1 %v12782_v7  ;;  %v12851_v6 = vld [vmem:[#allocation18 + $0x5a4] ss:$24 sps:$4 sm:$0xff]  }
 0x7c8   :  { %v12854_v7 = vld [vmem:[#allocation18 + $0x5ac] ss:$24 sps:$4 sm:$0xff]  }
 0x7ca   :  { %10128 = vmatpush1.bf16.msra.mxu0 %v12777_v10  ;;  %10292 = vmatpush1.bf16.msra.mxu1 %v12780_v13  ;;  %v12849_v10 = vld [vmem:[#allocation18 + $0x5a0] ss:$24 sps:$4 sm:$0xff]  }
 0x7cb   :  { %10129 = vmatprep.subr.bf16.mxu0 %v12785_v28  ;;  %10293 = vmatprep.subr.bf16.mxu1 %v12788_v14  ;;  %v12852_v13 = vld [vmem:[#allocation18 + $0x5a8] ss:$24 sps:$4 sm:$0xff]   ;;  %v12080_v28 = vadd.f32 %v14178_v34, %v6093_v62  ;;  %v12857_v14 = vld [vmem:[#allocation18 + $0x5d4] ss:$24 sps:$4 sm:$0xff]  }
 0x7cc   :  { %v12869_v34 = vld [vmem:[#allocation18 + $0x634] ss:$24 sps:$4 sm:$0xff]   ;;  %v12915_v62 = vld [vmem:[#allocation18 + $0x7b0] ss:$24 sps:$4 sm:$0xff]  }
 0x7ce   :  { %10130 = vmatpush1.bf16.msra.mxu0 %v12783_v3  ;;  %10294 = vmatpush1.bf16.msra.mxu1 %v12786_v45  ;;  %v12860_v3 = vld [vmem:[#allocation18 + $0x5dc] ss:$24 sps:$4 sm:$0xff]   ;;  %v12855_v45 = vld [vmem:[#allocation18 + $0x5d0] ss:$24 sps:$4 sm:$0xff]  }
 0x7cf   :  { %10131 = vmatprep.subr.bf16.mxu0 %v12791_v5  ;;  %10295 = vmatprep.subr.bf16.mxu1 %v12794_v15  ;;  %v12858_v5 = vld [vmem:[#allocation18 + $0x5d8] ss:$24 sps:$4 sm:$0xff]   ;;  %v7732_v15 = vmax.f32 %v12080_v28, 0.0  ;;  %v12924_v28 = vld [vmem:[#allocation18 + $0x7e8] ss:$24 sps:$4 sm:$0xff]  }
 0x7d2   :  { %10132 = vmatpush1.bf16.msra.mxu0 %v12789_v33  ;;  %10296 = vmatpush1.bf16.msra.mxu1 %v12792_v17  ;;  %v12863_v33 = vld [vmem:[#allocation18 + $0x604] ss:$24 sps:$4 sm:$0xff]  }
 0x7d3   :  { %10133 = vmatprep.subr.bf16.mxu0 %v12797_v18  ;;  %10297 = vmatprep.subr.bf16.mxu1 %v12800_v48  ;;  %v12866_v17 = vld [vmem:[#allocation18 + $0x60c] ss:$24 sps:$4 sm:$0xff]   ;;  %v12861_v18 = vld [vmem:[#allocation18 + $0x600] ss:$24 sps:$4 sm:$0xff]  }
 0x7d4   :  { %v12864_v48 = vld [vmem:[#allocation18 + $0x608] ss:$24 sps:$4 sm:$0xff]  }
 0x7d6   :  { %10134 = vmatpush1.bf16.msra.mxu0 %v12795_v19  ;;  %10298 = vmatpush1.bf16.msra.mxu1 %v12798_v8  ;;  %v14195_v19 = vpack.c.bf16 %v7732_v15, %v7732_v15  ;;  %v12872_v8 = vld [vmem:[#allocation18 + $0x63c] ss:$24 sps:$4 sm:$0xff]  }
 0x7d7   :  { %10135 = vmatprep.subr.bf16.mxu0 %v12803_v37  ;;  %10299 = vmatprep.subr.bf16.mxu1 %v12806_v21  ;;  %v12867_v37 = vld [vmem:[#allocation18 + $0x630] ss:$24 sps:$4 sm:$0xff]   ;;  %v12935_v15 = vld [vmem:[#allocation18 + $0x844] ss:$24 sps:$4 sm:$0xff]  }
 0x7d8   :  { %v12870_v21 = vld [vmem:[#allocation18 + $0x638] ss:$24 sps:$4 sm:$0xff]  }
 0x7da   :  { %10136 = vmatpush1.bf16.msra.mxu0 %v12801_v22  ;;  %10300 = vmatpush1.bf16.msra.mxu1 %v12804_v23  ;;  %v12875_v22 = vld [vmem:[#allocation18 + $0x664] ss:$24 sps:$4 sm:$0xff]  }
 0x7db   :  { %10137 = vmatprep.subr.bf16.mxu0 %v12809_v9  ;;  %10301 = vmatprep.subr.bf16.mxu1 %v12812_v24  ;;  %v12878_v23 = vld [vmem:[#allocation18 + $0x66c] ss:$24 sps:$4 sm:$0xff]   ;;  %v12873_v9 = vld [vmem:[#allocation18 + $0x660] ss:$24 sps:$4 sm:$0xff]  }
 0x7dc   :  { %v12876_v24 = vld [vmem:[#allocation18 + $0x668] ss:$24 sps:$4 sm:$0xff]  }
 0x7de   :  { %10138 = vmatpush1.bf16.msra.mxu0 %v12807_v25  ;;  %10302 = vmatpush1.bf16.msra.mxu1 %v12810_v58  ;;  %v12881_v25 = vld [vmem:[#allocation18 + $0x694] ss:$24 sps:$4 sm:$0xff]  }
 0x7df   :  { %10139 = vmatprep.subr.bf16.mxu0 %v12815_v31  ;;  %10303 = vmatprep.subr.bf16.mxu1 %v12818_v32  ;;  %v12884_v58 = vld [vmem:[#allocation18 + $0x69c] ss:$24 sps:$4 sm:$0xff]   ;;  %v12879_v31 = vld [vmem:[#allocation18 + $0x690] ss:$24 sps:$4 sm:$0xff]  }
 0x7e0   :  { %v12882_v32 = vld [vmem:[#allocation18 + $0x698] ss:$24 sps:$4 sm:$0xff]  }
 0x7e2   :  { %10140 = vmatpush1.bf16.msra.mxu0 %v12813_v35  ;;  %10304 = vmatpush1.bf16.msra.mxu1 %v12816_v16  ;;  %v12887_v35 = vld [vmem:[#allocation18 + $0x6c4] ss:$24 sps:$4 sm:$0xff]  }
 0x7e3   :  { %10141 = vmatprep.subr.bf16.mxu0 %v12821_v36  ;;  %10305 = vmatprep.subr.bf16.mxu1 %v12824_v30  ;;  %v12890_v16 = vld [vmem:[#allocation18 + $0x6cc] ss:$24 sps:$4 sm:$0xff]   ;;  %v12885_v36 = vld [vmem:[#allocation18 + $0x6c0] ss:$24 sps:$4 sm:$0xff]  }
 0x7e4   :  { %v12888_v30 = vld [vmem:[#allocation18 + $0x6c8] ss:$24 sps:$4 sm:$0xff]  }
 0x7e6   :  { %10142 = vmatpush1.bf16.msra.mxu0 %v12819_v39  ;;  %10306 = vmatpush1.bf16.msra.mxu1 %v12822_v42  ;;  %v12893_v39 = vld [vmem:[#allocation18 + $0x6f4] ss:$24 sps:$4 sm:$0xff]  }
 0x7e7   :  { %10143 = vmatprep.subr.bf16.mxu0 %v12827_v41  ;;  %10307 = vmatprep.subr.bf16.mxu1 %v12830_v43  ;;  %v12896_v42 = vld [vmem:[#allocation18 + $0x6fc] ss:$24 sps:$4 sm:$0xff]   ;;  %v12891_v41 = vld [vmem:[#allocation18 + $0x6f0] ss:$24 sps:$4 sm:$0xff]  }
 0x7e8   :  { %v12894_v43 = vld [vmem:[#allocation18 + $0x6f8] ss:$24 sps:$4 sm:$0xff]  }
 0x7ea   :  { %10144 = vmatpush1.bf16.msra.mxu0 %v12825_v44  ;;  %10308 = vmatpush1.bf16.msra.mxu1 %v12828_v46  ;;  %v12899_v44 = vld [vmem:[#allocation18 + $0x724] ss:$24 sps:$4 sm:$0xff]  }
 0x7eb   :  { %10145 = vmatprep.subr.bf16.mxu0 %v12833_v47  ;;  %10309 = vmatprep.subr.bf16.mxu1 %v12836_v49  ;;  %v12902_v46 = vld [vmem:[#allocation18 + $0x72c] ss:$24 sps:$4 sm:$0xff]   ;;  %v12897_v47 = vld [vmem:[#allocation18 + $0x720] ss:$24 sps:$4 sm:$0xff]  }
 0x7ec   :  { %v12900_v49 = vld [vmem:[#allocation18 + $0x728] ss:$24 sps:$4 sm:$0xff]  }
 0x7ee   :  { %10146 = vmatpush1.bf16.msra.mxu0 %v12831_v51  ;;  %10310 = vmatpush1.bf16.msra.mxu1 %v12834_v52  ;;  %v12905_v51 = vld [vmem:[#allocation18 + $0x754] ss:$24 sps:$4 sm:$0xff]  }
 0x7ef   :  { %10147 = vmatprep.subr.bf16.mxu0 %v12839_v53  ;;  %10311 = vmatprep.subr.bf16.mxu1 %v12842_v54  ;;  %v12908_v52 = vld [vmem:[#allocation18 + $0x75c] ss:$24 sps:$4 sm:$0xff]   ;;  %v12903_v53 = vld [vmem:[#allocation18 + $0x750] ss:$24 sps:$4 sm:$0xff]  }
 0x7f0   :  { %v12906_v54 = vld [vmem:[#allocation18 + $0x758] ss:$24 sps:$4 sm:$0xff]  }
 0x7f2   :  { %10148 = vmatpush1.bf16.msra.mxu0 %v12837_v56  ;;  %10312 = vmatpush1.bf16.msra.mxu1 %v12840_v59  ;;  %v12911_v56 = vld [vmem:[#allocation18 + $0x784] ss:$24 sps:$4 sm:$0xff]  }
 0x7f3   :  { %10149 = vmatprep.subr.bf16.mxu0 %v12845_v60  ;;  %10313 = vmatprep.subr.bf16.mxu1 %v12848_v61  ;;  %v12914_v59 = vld [vmem:[#allocation18 + $0x78c] ss:$24 sps:$4 sm:$0xff]   ;;  %v12909_v60 = vld [vmem:[#allocation18 + $0x780] ss:$24 sps:$4 sm:$0xff]  }
 0x7f4   :  { %v12912_v61 = vld [vmem:[#allocation18 + $0x788] ss:$24 sps:$4 sm:$0xff]  }
 0x7f6   :  { %10150 = vmatpush1.bf16.msra.mxu0 %v12843_v20  ;;  %10314 = vmatpush1.bf16.msra.mxu1 %v12846_v4  ;;  %v12917_v20 = vld [vmem:[#allocation18 + $0x7b4] ss:$24 sps:$4 sm:$0xff]  }
 0x7f7   :  { %10151 = vmatprep.subr.bf16.mxu0 %v12851_v6  ;;  %10315 = vmatprep.subr.bf16.mxu1 %v12854_v7  ;;  %v12920_v4 = vld [vmem:[#allocation18 + $0x7bc] ss:$24 sps:$4 sm:$0xff]   ;;  %v12918_v6 = vld [vmem:[#allocation18 + $0x7b8] ss:$24 sps:$4 sm:$0xff]  }
 0x7f8   :  { %v12923_v7 = vld [vmem:[#allocation18 + $0x7e4] ss:$24 sps:$4 sm:$0xff]  }
 0x7fa   :  { %10152 = vmatpush1.bf16.msra.mxu0 %v12849_v10  ;;  %10316 = vmatpush1.bf16.msra.mxu1 %v12852_v13  ;;  %v12926_v10 = vld [vmem:[#allocation18 + $0x7ec] ss:$24 sps:$4 sm:$0xff]   ;;  %v12921_v13 = vld [vmem:[#allocation18 + $0x7e0] ss:$24 sps:$4 sm:$0xff]  }
 0x7fb   :  { %10153 = vmatprep.subr.bf16.mxu0 %v12857_v14  ;;  %10317 = vmatprep.subr.bf16.mxu1 %v12860_v3  ;;  %v12929_v14 = vld [vmem:[#allocation18 + $0x814] ss:$24 sps:$4 sm:$0xff]  }
 0x7fc   :  { %v12932_v3 = vld [vmem:[#allocation18 + $0x81c] ss:$24 sps:$4 sm:$0xff]  }
 0x7fe   :  { %10154 = vmatpush1.bf16.msra.mxu0 %v12855_v45  ;;  %10318 = vmatpush1.bf16.msra.mxu1 %v12858_v5  ;;  %v12927_v45 = vld [vmem:[#allocation18 + $0x810] ss:$24 sps:$4 sm:$0xff]  }
 0x7ff   :  { %10164 = vmatprep.subr.bf16.mxu0 %v12863_v33  ;;  %10328 = vmatprep.subr.bf16.mxu1 %v12866_v17  ;;  %v12930_v5 = vld [vmem:[#allocation18 + $0x818] ss:$24 sps:$4 sm:$0xff]   ;;  %v12938_v33 = vld [vmem:[#allocation18 + $0x84c] ss:$24 sps:$4 sm:$0xff]  }
 0x800   :  { %v12933_v17 = vld [vmem:[#allocation18 + $0x840] ss:$24 sps:$4 sm:$0xff]  }
 0x801   :  { %10156 = vmatmul.mubr.bf16.vlgmr.msra.gmra.mrb[32].mxu0 %v14195_v19  ;;  %10320 = vmatmul.mubr.bf16.vlgmr.msra.gmra.mrb[36].mxu1 %v14195_v19 }
 0x802   :  { %10165 = vmatpush1.bf16.msra.mxu0 %v12861_v18  ;;  %10329 = vmatpush1.bf16.msra.mxu1 %v12864_v48  ;;  %v12936_v18 = vld [vmem:[#allocation18 + $0x848] ss:$24 sps:$4 sm:$0xff]   ;;  %v12941_v48 = vld [vmem:[#allocation18 + $0x874] ss:$24 sps:$4 sm:$0xff]  }
 0x803   :  { %10166 = vmatprep.subr.bf16.mxu0 %v12869_v34  ;;  %10330 = vmatprep.subr.bf16.mxu1 %v12872_v8  ;;  %v12944_v34 = vld [vmem:[#allocation18 + $0x87c] ss:$24 sps:$4 sm:$0xff]   ;;  %v12939_v8 = vld [vmem:[#allocation18 + $0x870] ss:$24 sps:$4 sm:$0xff]  }
 0x806   :  { %10167 = vmatpush1.bf16.msra.mxu0 %v12867_v37  ;;  %10331 = vmatpush1.bf16.msra.mxu1 %v12870_v21  ;;  %v12942_v37 = vld [vmem:[#allocation18 + $0x878] ss:$24 sps:$4 sm:$0xff]   ;;  %v12947_v21 = vld [vmem:[#allocation18 + $0x8a4] ss:$24 sps:$4 sm:$0xff]  }
 0x807   :  { %10168 = vmatprep.subr.bf16.mxu0 %v12875_v22  ;;  %10332 = vmatprep.subr.bf16.mxu1 %v12878_v23  ;;  %v12950_v22 = vld [vmem:[#allocation18 + $0x8ac] ss:$24 sps:$4 sm:$0xff]   ;;  %v6101_v23 = vrot.slane %v14170_v12, %v13915_v11 }
 0x80a   :  { %10169 = vmatpush1.bf16.msra.mxu0 %v12873_v9  ;;  %10333 = vmatpush1.bf16.msra.mxu1 %v12876_v24  ;;  %v12945_v9 = vld [vmem:[#allocation18 + $0x8a0] ss:$24 sps:$4 sm:$0xff]  }
 0x80b   :  { %10170 = vmatprep.subr.bf16.mxu0 %v12881_v25  ;;  %10334 = vmatprep.subr.bf16.mxu1 %v12884_v58  ;;  %v12948_v24 = vld [vmem:[#allocation18 + $0x8a8] ss:$24 sps:$4 sm:$0xff]   ;;  %v6105_v25 = vrot.slane %v14170_v12, %v13886_v50  ;;  %v6113_v58 = vrot.slane %v14170_v12, %v658_v1  ;;  %v12962_v1 = vld [vmem:[#allocation18 + $0x90c] ss:$24 sps:$4 sm:$0xff]  }
 0x80e   :  { %10171 = vmatpush1.bf16.msra.mxu0 %v12879_v31  ;;  %10335 = vmatpush1.bf16.msra.mxu1 %v12882_v32  ;;  %v12953_v31 = vld [vmem:[#allocation18 + $0x8d4] ss:$24 sps:$4 sm:$0xff]  }
 0x80f   :  { %10172 = vmatprep.subr.bf16.mxu0 %v12887_v35  ;;  %10336 = vmatprep.subr.bf16.mxu1 %v12890_v16  ;;  %v12956_v32 = vld [vmem:[#allocation18 + $0x8dc] ss:$24 sps:$4 sm:$0xff]  }
 0x812   :  { %10173 = vmatpush1.bf16.msra.mxu0 %v12885_v36  ;;  %10337 = vmatpush1.bf16.msra.mxu1 %v12888_v30 }
 0x813   :  { %10174 = vmatprep.subr.bf16.mxu0 %v12893_v39  ;;  %10338 = vmatprep.subr.bf16.mxu1 %v12896_v42  ;;  %v12951_v39 = vld [vmem:[#allocation18 + $0x8d0] ss:$24 sps:$4 sm:$0xff]  }
 0x816   :  { %10175 = vmatpush1.bf16.msra.mxu0 %v12891_v41  ;;  %10339 = vmatpush1.bf16.msra.mxu1 %v12894_v43 }
 0x817   :  { %10176 = vmatprep.subr.bf16.mxu0 %v12899_v44  ;;  %10340 = vmatprep.subr.bf16.mxu1 %v12902_v46  ;;  %v12954_v44 = vld [vmem:[#allocation18 + $0x8d8] ss:$24 sps:$4 sm:$0xff]   ;;  %v12959_v46 = vld [vmem:[#allocation18 + $0x904] ss:$24 sps:$4 sm:$0xff]  }
 0x81a   :  { %10177 = vmatpush1.bf16.msra.mxu0 %v12897_v47  ;;  %10341 = vmatpush1.bf16.msra.mxu1 %v12900_v49 }
 0x81b   :  { %10178 = vmatprep.subr.bf16.mxu0 %v12905_v51  ;;  %10342 = vmatprep.subr.bf16.mxu1 %v12908_v52 }
 0x81e   :  { %10179 = vmatpush1.bf16.msra.mxu0 %v12903_v53  ;;  %10343 = vmatpush1.bf16.msra.mxu1 %v12906_v54 }
 0x81f   :  { %10180 = vmatprep.subr.bf16.mxu0 %v12911_v56  ;;  %10344 = vmatprep.subr.bf16.mxu1 %v12914_v59 }
 0x822   :  { %10181 = vmatpush1.bf16.msra.mxu0 %v12909_v60  ;;  %10345 = vmatpush1.bf16.msra.mxu1 %v12912_v61  ;;  %v12957_v60 = vld [vmem:[#allocation18 + $0x900] ss:$24 sps:$4 sm:$0xff]  }
 0x823   :  { %10182 = vmatprep.subr.bf16.mxu0 %v12917_v20  ;;  %10346 = vmatprep.subr.bf16.mxu1 %v12920_v4  ;;  %v12960_v61 = vld [vmem:[#allocation18 + $0x908] ss:$24 sps:$4 sm:$0xff]   ;;  %v12965_v4 = vld [vmem:[#allocation18 + $0x934] ss:$24 sps:$4 sm:$0xff]  }
 0x826   :  { %10183 = vmatpush1.bf16.msra.mxu0 %v12915_v62  ;;  %10347 = vmatpush1.bf16.msra.mxu1 %v12918_v6  ;;  %v12968_v62 = vld [vmem:[#allocation18 + $0x93c] ss:$24 sps:$4 sm:$0xff]  }
 0x827   :  { %10184 = vmatprep.subr.bf16.mxu0 %v12923_v7  ;;  %10348 = vmatprep.subr.bf16.mxu1 %v12926_v10  ;;  %v12963_v7 = vld [vmem:[#allocation18 + $0x930] ss:$24 sps:$4 sm:$0xff]  }
 0x828   :  { %v12966_v10 = vld [vmem:[#allocation18 + $0x938] ss:$24 sps:$4 sm:$0xff]  }
 0x82a   :  { %10185 = vmatpush1.bf16.msra.mxu0 %v12921_v13  ;;  %10349 = vmatpush1.bf16.msra.mxu1 %v12924_v28  ;;  %v12971_v13 = vld [vmem:[#allocation18 + $0x964] ss:$24 sps:$4 sm:$0xff]  }
 0x82b   :  { %10186 = vmatprep.subr.bf16.mxu0 %v12929_v14  ;;  %10350 = vmatprep.subr.bf16.mxu1 %v12932_v3  ;;  %v12974_v28 = vld [vmem:[#allocation18 + $0x96c] ss:$24 sps:$4 sm:$0xff]   ;;  %v12969_v14 = vld [vmem:[#allocation18 + $0x960] ss:$24 sps:$4 sm:$0xff]  }
 0x82c   :  { %v12972_v3 = vld [vmem:[#allocation18 + $0x968] ss:$24 sps:$4 sm:$0xff]  }
 0x82e   :  { %10187 = vmatpush1.bf16.msra.mxu0 %v12927_v45  ;;  %10351 = vmatpush1.bf16.msra.mxu1 %v12930_v5  ;;  %v12977_v45 = vld [vmem:[#allocation18 + $0x994] ss:$24 sps:$4 sm:$0xff]  }
 0x82f   :  { %10188 = vmatprep.subr.bf16.mxu0 %v12935_v15  ;;  %10352 = vmatprep.subr.bf16.mxu1 %v12938_v33  ;;  %v12980_v5 = vld [vmem:[#allocation18 + $0x99c] ss:$24 sps:$4 sm:$0xff]   ;;  %v12975_v15 = vld [vmem:[#allocation18 + $0x990] ss:$24 sps:$4 sm:$0xff]  }
 0x830   :  { %v12978_v33 = vld [vmem:[#allocation18 + $0x998] ss:$24 sps:$4 sm:$0xff]  }
 0x832   :  { %10189 = vmatpush1.bf16.msra.mxu0 %v12933_v17  ;;  %10353 = vmatpush1.bf16.msra.mxu1 %v12936_v18  ;;  %v12983_v17 = vld [vmem:[#allocation18 + $0x9c4] ss:$24 sps:$4 sm:$0xff]  }
 0x833   :  { %10190 = vmatprep.subr.bf16.mxu0 %v12941_v48  ;;  %10354 = vmatprep.subr.bf16.mxu1 %v12944_v34  ;;  %v12986_v18 = vld [vmem:[#allocation18 + $0x9cc] ss:$24 sps:$4 sm:$0xff]   ;;  %v12981_v48 = vld [vmem:[#allocation18 + $0x9c0] ss:$24 sps:$4 sm:$0xff]  }
 0x834   :  { %v12984_v34 = vld [vmem:[#allocation18 + $0x9c8] ss:$24 sps:$4 sm:$0xff]  }
 0x836   :  { %10191 = vmatpush1.bf16.msra.mxu0 %v12939_v8  ;;  %10355 = vmatpush1.bf16.msra.mxu1 %v12942_v37  ;;  %v12989_v8 = vld [vmem:[#allocation18 + $0x9f4] ss:$24 sps:$4 sm:$0xff]  }
 0x837   :  { %10192 = vmatprep.subr.bf16.mxu0 %v12947_v21  ;;  %10356 = vmatprep.subr.bf16.mxu1 %v12950_v22  ;;  %v12992_v37 = vld [vmem:[#allocation18 + $0x9fc] ss:$24 sps:$4 sm:$0xff]   ;;  %v12987_v21 = vld [vmem:[#allocation18 + $0x9f0] ss:$24 sps:$4 sm:$0xff]  }
 0x838   :  { %v7641_v35 = vpop.f32.mrb[28].mxu0  ;;  %v12990_v22 = vld [vmem:[#allocation18 + $0x9f8] ss:$24 sps:$4 sm:$0xff]  }
 0x839   :  { %v12082_v16 = vadd.f32 %v7641_v35, %v6101_v23  ;;  %v14206_v36 = vpop.f32.mrb[32].mxu1  ;;  %v7643_v30 = vpop.f32.mrb[29].mxu0  ;;  %v12995_v23 = vld [vmem:[#allocation18 + $0xa24] ss:$24 sps:$4 sm:$0xff]   ;;  %v13002_v35 = vld [vmem:[#allocation18 + $0xa58] ss:$24 sps:$4 sm:$0xff]  }
 0x83a   :  { %v12083_v42 = vadd.f32 %v7643_v30, %v6105_v25  ;;  %v7725_v41 = vpop.f32.mrb[33].mxu1  ;;  %10193 = vmatpush1.bf16.msra.mxu0 %v12945_v9  ;;  %10357 = vmatpush1.bf16.msra.mxu1 %v12948_v24  ;;  %v7645_v43 = vpop.f32.mrb[30].mxu0  ;;  %v12998_v9 = vld [vmem:[#allocation18 + $0xa2c] ss:$24 sps:$4 sm:$0xff]   ;;  %v12993_v24 = vld [vmem:[#allocation18 + $0xa20] ss:$24 sps:$4 sm:$0xff]  }
 0x83b   :  { %v7734_v47 = vmax.f32 %v12082_v16, 0.0  ;;  %v12085_v49 = vadd.f32 %v7725_v41, %v6113_v58  ;;  %v7727_v51 = vpop.f32.mrb[34].mxu1  ;;  %v7646_v52 = vpop.f32.mrb[31].mxu0  ;;  %10194 = vmatprep.subr.bf16.mxu0 %v12953_v31  ;;  %10358 = vmatprep.subr.bf16.mxu1 %v12956_v32  ;;  %v12996_v25 = vld [vmem:[#allocation18 + $0xa28] ss:$24 sps:$4 sm:$0xff]  }
 0x83c   :  { %v7735_v53 = vmax.f32 %v12083_v42, 0.0  ;;  %v7728_v54 = vpop.f32.mrb[35].mxu1  ;;  %v13001_v58 = vld [vmem:[#allocation18 + $0xa54] ss:$24 sps:$4 sm:$0xff]   ;;  %v12999_v32 = vld [vmem:[#allocation18 + $0xa50] ss:$24 sps:$4 sm:$0xff]  }
 0x83d   :  { %v7737_v56 = vmax.f32 %v12085_v49, 0.0  ;;  %v14210_v20 = vpack.c.bf16 %v7734_v47, %v7734_v47  ;;  %v13004_v31 = vld [vmem:[#allocation18 + $0xa5c] ss:$24 sps:$4 sm:$0xff]   ;;  %v13010_v30 = vld [vmem:[#allocation18 + $0xa8c] ss:$24 sps:$4 sm:$0xff]  }
 0x83e   :  { %v14208_v59 = vpack.c.bf16 %v7735_v53, %v7735_v53  ;;  %10195 = vmatpush1.bf16.msra.mxu0 %v12951_v39  ;;  %10359 = vmatpush1.bf16.msra.mxu1 %v12954_v44  ;;  %v13007_v16 = vld [vmem:[#allocation18 + $0xa84] ss:$24 sps:$4 sm:$0xff]   ;;  %v13005_v39 = vld [vmem:[#allocation18 + $0xa80] ss:$24 sps:$4 sm:$0xff]   ;;  %v13013_v41 = vld [vmem:[#allocation18 + $0xab4] ss:$24 sps:$4 sm:$0xff]  }
 0x83f   :  { %10205 = vmatprep.subr.bf16.mxu0 %v12959_v46  ;;  %10369 = vmatprep.subr.bf16.mxu1 %v12962_v1  ;;  %v14214_v6 = vpack.c.bf16 %v7737_v56, %v7737_v56  ;;  %v13008_v42 = vld [vmem:[#allocation18 + $0xa88] ss:$24 sps:$4 sm:$0xff]   ;;  %v13016_v43 = vld [vmem:[#allocation18 + $0xabc] ss:$24 sps:$4 sm:$0xff]   ;;  %v13014_v46 = vld [vmem:[#allocation18 + $0xab8] ss:$24 sps:$4 sm:$0xff]  }
 0x840   :  { %10196 = vmatprep.mubr.bf16.mxu0 %v14208_v59  ;;  %10360 = vmatprep.mubr.bf16.mxu1 %v14208_v59  ;;  %v13011_v44 = vld [vmem:[#allocation18 + $0xab0] ss:$24 sps:$4 sm:$0xff]   ;;  %v13019_v47 = vld [vmem:[#allocation18 + $0xae4] ss:$24 sps:$4 sm:$0xff]   ;;  %v13017_v51 = vld [vmem:[#allocation18 + $0xae0] ss:$24 sps:$4 sm:$0xff]  }
 0x841   :  { %10197 = vmatmul.mubr.bf16.vlgmr.msra.gmra.mrb[32].mxu0 %v14210_v20  ;;  %10361 = vmatmul.mubr.bf16.vlgmr.msra.gmra.mrb[36].mxu1 %v14210_v20  ;;  %v13022_v49 = vld [vmem:[#allocation18 + $0xaec] ss:$24 sps:$4 sm:$0xff]   ;;  %v13020_v52 = vld [vmem:[#allocation18 + $0xae8] ss:$24 sps:$4 sm:$0xff]   ;;  %v13028_v53 = vld [vmem:[#allocation18 + $0xb1c] ss:$24 sps:$4 sm:$0xff]  }
 0x842   :  { %10206 = vmatpush1.bf16.msra.mxu0 %v12957_v60  ;;  %10370 = vmatpush1.bf16.msra.mxu1 %v12960_v61  ;;  %v13025_v1 = vld [vmem:[#allocation18 + $0xb14] ss:$24 sps:$4 sm:$0xff]   ;;  %v13023_v54 = vld [vmem:[#allocation18 + $0xb10] ss:$24 sps:$4 sm:$0xff]   ;;  %v13031_v60 = vld [vmem:[#allocation18 + $0xb44] ss:$24 sps:$4 sm:$0xff]  }
 0x843   :  { %10237 = vmatprep.mubr.bf16.mxu0 %v14214_v6  ;;  %10401 = vmatprep.mubr.bf16.mxu1 %v14214_v6  ;;  %v13026_v56 = vld [vmem:[#allocation18 + $0xb18] ss:$24 sps:$4 sm:$0xff]   ;;  %v13034_v61 = vld [vmem:[#allocation18 + $0xb4c] ss:$24 sps:$4 sm:$0xff]  }
 0x844   :  { %10207 = vmatprep.subr.bf16.mxu0 %v12965_v4  ;;  %10371 = vmatprep.subr.bf16.mxu1 %v12968_v62  ;;  %v13029_v4 = vld [vmem:[#allocation18 + $0xb40] ss:$24 sps:$4 sm:$0xff]  }
 0x845   :  { %v13032_v62 = vld [vmem:[#allocation18 + $0xb48] ss:$24 sps:$4 sm:$0xff]  }
 0x846   :  { %10208 = vmatpush1.bf16.msra.mxu0 %v12963_v7  ;;  %10372 = vmatpush1.bf16.msra.mxu1 %v12966_v10  ;;  %v13037_v7 = vld [vmem:[#allocation18 + $0xb74] ss:$24 sps:$4 sm:$0xff]  }
 0x847   :  { %10209 = vmatprep.subr.bf16.mxu0 %v12971_v13  ;;  %10373 = vmatprep.subr.bf16.mxu1 %v12974_v28  ;;  %v13040_v10 = vld [vmem:[#allocation18 + $0xb7c] ss:$24 sps:$4 sm:$0xff]   ;;  %v13035_v13 = vld [vmem:[#allocation18 + $0xb70] ss:$24 sps:$4 sm:$0xff]  }
 0x848   :  { %v13038_v28 = vld [vmem:[#allocation18 + $0xb78] ss:$24 sps:$4 sm:$0xff]  }
 0x84a   :  { %10210 = vmatpush1.bf16.msra.mxu0 %v12969_v14  ;;  %10374 = vmatpush1.bf16.msra.mxu1 %v12972_v3  ;;  %v6109_v14 = vrot.slane %v14170_v12, %v654_v2  ;;  %v13043_v3 = vld [vmem:[#allocation18 + $0xba4] ss:$24 sps:$4 sm:$0xff]   ;;  %v13055_v2 = vld [vmem:[#allocation18 + $0x14] ss:$24 sps:$4 sm:$0xff]   ;;  %v13053_v12 = vld [vmem:[#allocation18 + $0x10] ss:$24 sps:$4 sm:$0xff]  }
 0x84b   :  { %10211 = vmatprep.subr.bf16.mxu0 %v12977_v45  ;;  %10375 = vmatprep.subr.bf16.mxu1 %v12980_v5  ;;  %v13046_v45 = vld [vmem:[#allocation18 + $0xbac] ss:$24 sps:$4 sm:$0xff]   ;;  %v13041_v5 = vld [vmem:[#allocation18 + $0xba0] ss:$24 sps:$4 sm:$0xff]  }
 0x84e   :  { %10212 = vmatpush1.bf16.msra.mxu0 %v12975_v15  ;;  %10376 = vmatpush1.bf16.msra.mxu1 %v12978_v33  ;;  %v13044_v15 = vld [vmem:[#allocation18 + $0xba8] ss:$24 sps:$4 sm:$0xff]   ;;  %v12084_v33 = vadd.f32 %v14206_v36, %v6109_v14 }
 0x84f   :  { %10213 = vmatprep.subr.bf16.mxu0 %v12983_v17  ;;  %10377 = vmatprep.subr.bf16.mxu1 %v12986_v18  ;;  %v13049_v17 = vld [vmem:[#allocation18 + $0xbd4] ss:$24 sps:$4 sm:$0xff]   ;;  %v13056_v36 = vld [vmem:[#allocation18 + $0x40] ss:$24 sps:$4 sm:$0xff]  }
 0x850   :  { %v13052_v18 = vld [vmem:[#allocation18 + $0xbdc] ss:$24 sps:$4 sm:$0xff]   ;;  %v13110_v14 = vld [vmem:[#allocation18 + $0x3a0] ss:$24 sps:$4 sm:$0xff]  }
 0x852   :  { %10214 = vmatpush1.bf16.msra.mxu0 %v12981_v48  ;;  %10378 = vmatpush1.bf16.msra.mxu1 %v12984_v34  ;;  %v13047_v48 = vld [vmem:[#allocation18 + $0xbd0] ss:$24 sps:$4 sm:$0xff]   ;;  %v7736_v34 = vmax.f32 %v12084_v33, 0.0  ;;  %v13124_v33 = vld [vmem:[#allocation18 + $0x464] ss:$24 sps:$4 sm:$0xff]  }
 0x853   :  { %10215 = vmatprep.subr.bf16.mxu0 %v12989_v8  ;;  %10379 = vmatprep.subr.bf16.mxu1 %v12992_v37  ;;  %v13058_v37 = vld [vmem:[#allocation18 + $0x44] ss:$24 sps:$4 sm:$0xff]  }
 0x854   :  { %v14224_v8 = vpack.c.bf16 %v7736_v34, %v7736_v34  ;;  %v13128_v34 = vld [vmem:[#allocation18 + $0x4c0] ss:$24 sps:$4 sm:$0xff]  }
 0x856   :  { %10216 = vmatpush1.bf16.msra.mxu0 %v12987_v21  ;;  %10380 = vmatpush1.bf16.msra.mxu1 %v12990_v22  ;;  %v13061_v21 = vld [vmem:[#allocation18 + $0x74] ss:$24 sps:$4 sm:$0xff]   ;;  %v13059_v22 = vld [vmem:[#allocation18 + $0x70] ss:$24 sps:$4 sm:$0xff]  }
 0x857   :  { %10217 = vmatprep.subr.bf16.mxu0 %v12995_v23  ;;  %10381 = vmatprep.subr.bf16.mxu1 %v12998_v9  ;;  %v13064_v23 = vld [vmem:[#allocation18 + $0xa4] ss:$24 sps:$4 sm:$0xff]   ;;  %v13062_v9 = vld [vmem:[#allocation18 + $0xa0] ss:$24 sps:$4 sm:$0xff]  }
 0x85a   :  { %10218 = vmatpush1.bf16.msra.mxu0 %v12993_v24  ;;  %10382 = vmatpush1.bf16.msra.mxu1 %v12996_v25  ;;  %v13067_v24 = vld [vmem:[#allocation18 + $0xd4] ss:$24 sps:$4 sm:$0xff]   ;;  %v13065_v25 = vld [vmem:[#allocation18 + $0xd0] ss:$24 sps:$4 sm:$0xff]  }
 0x85b   :  { %10219 = vmatprep.subr.bf16.mxu0 %v13001_v58  ;;  %10383 = vmatprep.subr.bf16.mxu1 %v13004_v31  ;;  %v13070_v58 = vld [vmem:[#allocation18 + $0x104] ss:$24 sps:$4 sm:$0xff]   ;;  %v13068_v31 = vld [vmem:[#allocation18 + $0x100] ss:$24 sps:$4 sm:$0xff]  }
 0x85e   :  { %10220 = vmatpush1.bf16.msra.mxu0 %v12999_v32  ;;  %10384 = vmatpush1.bf16.msra.mxu1 %v13002_v35  ;;  %v13073_v32 = vld [vmem:[#allocation18 + $0x134] ss:$24 sps:$4 sm:$0xff]   ;;  %v13076_v35 = vld [vmem:[#allocation18 + $0x164] ss:$24 sps:$4 sm:$0xff]  }
 0x85f   :  { %10221 = vmatprep.subr.bf16.mxu0 %v13007_v16  ;;  %10385 = vmatprep.subr.bf16.mxu1 %v13010_v30  ;;  %v13074_v16 = vld [vmem:[#allocation18 + $0x160] ss:$24 sps:$4 sm:$0xff]   ;;  %v13079_v30 = vld [vmem:[#allocation18 + $0x194] ss:$24 sps:$4 sm:$0xff]  }
 0x862   :  { %10222 = vmatpush1.bf16.msra.mxu0 %v13005_v39  ;;  %10386 = vmatpush1.bf16.msra.mxu1 %v13008_v42  ;;  %v13077_v39 = vld [vmem:[#allocation18 + $0x190] ss:$24 sps:$4 sm:$0xff]   ;;  %v13082_v42 = vld [vmem:[#allocation18 + $0x1c4] ss:$24 sps:$4 sm:$0xff]  }
 0x863   :  { %10223 = vmatprep.subr.bf16.mxu0 %v13013_v41  ;;  %10387 = vmatprep.subr.bf16.mxu1 %v13016_v43  ;;  %v13080_v41 = vld [vmem:[#allocation18 + $0x1c0] ss:$24 sps:$4 sm:$0xff]   ;;  %v13085_v43 = vld [vmem:[#allocation18 + $0x1f4] ss:$24 sps:$4 sm:$0xff]  }
 0x866   :  { %10224 = vmatpush1.bf16.msra.mxu0 %v13011_v44  ;;  %10388 = vmatpush1.bf16.msra.mxu1 %v13014_v46  ;;  %v13083_v44 = vld [vmem:[#allocation18 + $0x1f0] ss:$24 sps:$4 sm:$0xff]   ;;  %v13088_v46 = vld [vmem:[#allocation18 + $0x224] ss:$24 sps:$4 sm:$0xff]  }
 0x867   :  { %10225 = vmatprep.subr.bf16.mxu0 %v13019_v47  ;;  %10389 = vmatprep.subr.bf16.mxu1 %v13022_v49  ;;  %v13086_v47 = vld [vmem:[#allocation18 + $0x220] ss:$24 sps:$4 sm:$0xff]   ;;  %v13091_v49 = vld [vmem:[#allocation18 + $0x254] ss:$24 sps:$4 sm:$0xff]  }
 0x86a   :  { %10226 = vmatpush1.bf16.msra.mxu0 %v13017_v51  ;;  %10390 = vmatpush1.bf16.msra.mxu1 %v13020_v52  ;;  %v13089_v51 = vld [vmem:[#allocation18 + $0x250] ss:$24 sps:$4 sm:$0xff]   ;;  %v13094_v52 = vld [vmem:[#allocation18 + $0x284] ss:$24 sps:$4 sm:$0xff]  }
 0x86b   :  { %10227 = vmatprep.subr.bf16.mxu0 %v13025_v1  ;;  %10391 = vmatprep.subr.bf16.mxu1 %v13028_v53  ;;  %v13092_v1 = vld [vmem:[#allocation18 + $0x280] ss:$24 sps:$4 sm:$0xff]   ;;  %v13097_v53 = vld [vmem:[#allocation18 + $0x2b4] ss:$24 sps:$4 sm:$0xff]  }
 0x86e   :  { %10228 = vmatpush1.bf16.msra.mxu0 %v13023_v54  ;;  %10392 = vmatpush1.bf16.msra.mxu1 %v13026_v56  ;;  %v13095_v54 = vld [vmem:[#allocation18 + $0x2b0] ss:$24 sps:$4 sm:$0xff]   ;;  %v13100_v56 = vld [vmem:[#allocation18 + $0x2e4] ss:$24 sps:$4 sm:$0xff]  }
 0x86f   :  { %10229 = vmatprep.subr.bf16.mxu0 %v13031_v60  ;;  %10393 = vmatprep.subr.bf16.mxu1 %v13034_v61  ;;  %v13098_v60 = vld [vmem:[#allocation18 + $0x2e0] ss:$24 sps:$4 sm:$0xff]   ;;  %v13103_v61 = vld [vmem:[#allocation18 + $0x314] ss:$24 sps:$4 sm:$0xff]  }
 0x872   :  { %10230 = vmatpush1.bf16.msra.mxu0 %v13029_v4  ;;  %10394 = vmatpush1.bf16.msra.mxu1 %v13032_v62  ;;  %v13101_v4 = vld [vmem:[#allocation18 + $0x310] ss:$24 sps:$4 sm:$0xff]   ;;  %v13106_v62 = vld [vmem:[#allocation18 + $0x344] ss:$24 sps:$4 sm:$0xff]  }
 0x873   :  { %10231 = vmatprep.subr.bf16.mxu0 %v13037_v7  ;;  %10395 = vmatprep.subr.bf16.mxu1 %v13040_v10  ;;  %v13104_v7 = vld [vmem:[#allocation18 + $0x340] ss:$24 sps:$4 sm:$0xff]   ;;  %v13109_v10 = vld [vmem:[#allocation18 + $0x374] ss:$24 sps:$4 sm:$0xff]  }
 0x876   :  { %10232 = vmatpush1.bf16.msra.mxu0 %v13035_v13  ;;  %10396 = vmatpush1.bf16.msra.mxu1 %v13038_v28  ;;  %v13107_v13 = vld [vmem:[#allocation18 + $0x370] ss:$24 sps:$4 sm:$0xff]   ;;  %v13112_v28 = vld [vmem:[#allocation18 + $0x3a4] ss:$24 sps:$4 sm:$0xff]  }
 0x877   :  { %10233 = vmatprep.subr.bf16.mxu0 %v13043_v3  ;;  %10397 = vmatprep.subr.bf16.mxu1 %v13046_v45  ;;  %v13115_v3 = vld [vmem:[#allocation18 + $0x3d4] ss:$24 sps:$4 sm:$0xff]   ;;  %v13113_v45 = vld [vmem:[#allocation18 + $0x3d0] ss:$24 sps:$4 sm:$0xff]  }
 0x87a   :  { %10234 = vmatpush1.bf16.msra.mxu0 %v13041_v5  ;;  %10398 = vmatpush1.bf16.msra.mxu1 %v13044_v15  ;;  %v13118_v5 = vld [vmem:[#allocation18 + $0x404] ss:$24 sps:$4 sm:$0xff]   ;;  %v13121_v15 = vld [vmem:[#allocation18 + $0x434] ss:$24 sps:$4 sm:$0xff]  }
 0x87b   :  { %10235 = vmatprep.subr.bf16.mxu0 %v13049_v17  ;;  %10399 = vmatprep.subr.bf16.mxu1 %v13052_v18  ;;  %v13122_v17 = vld [vmem:[#allocation18 + $0x460] ss:$24 sps:$4 sm:$0xff]   ;;  %v13127_v18 = vld [vmem:[#allocation18 + $0x494] ss:$24 sps:$4 sm:$0xff]  }
 0x87e   :  { %10236 = vmatpush1.bf16.msra.mxu0 %v13047_v48  ;;  %10400 = vmatpush1.bf16.msra.mxu1 %v13050_v29  ;;  %v13125_v48 = vld [vmem:[#allocation18 + $0x490] ss:$24 sps:$4 sm:$0xff]   ;;  %v13130_v29 = vld [vmem:[#allocation18 + $0x4c4] ss:$24 sps:$4 sm:$0xff]  }
 0x87f   :  { %10410 = vmatprep.subr.bf16.mxu0 %v13055_v2  ;;  %v13133_v2 = vld [vmem:[#allocation18 + $0x4f4] ss:$24 sps:$4 sm:$0xff]  }
 0x881   :  { %10238 = vmatmul.mubr.bf16.vlgmr.msra.gmra.mrb[32].mxu0 %v14224_v8  ;;  %10402 = vmatmul.mubr.bf16.vlgmr.msra.gmra.mrb[36].mxu1 %v14224_v8 }
 0x882   :  { %10411 = vmatpush1.bf16.msra.mxu0 %v13053_v12  ;;  %10442 = vmatprep.mubr.bf16.mxu0 %v14180_v57  ;;  %v13071_v57 = vld [vmem:[#allocation18 + $0x130] ss:$24 sps:$4 sm:$0xff]  }
 0x883   :  { %10412 = vmatprep.subr.bf16.mxu0 %v13058_v37  ;;  %v13131_v12 = vld [vmem:[#allocation18 + $0x4f0] ss:$24 sps:$4 sm:$0xff]   ;;  %v13136_v37 = vld [vmem:[#allocation18 + $0x524] ss:$24 sps:$4 sm:$0xff]  }
 0x886   :  { %10413 = vmatpush1.bf16.msra.mxu0 %v13056_v36  ;;  %v13134_v36 = vld [vmem:[#allocation18 + $0x520] ss:$24 sps:$4 sm:$0xff]  }
 0x887   :  { %10414 = vmatprep.subr.bf16.mxu0 %v13061_v21  ;;  %v13139_v21 = vld [vmem:[#allocation18 + $0x554] ss:$24 sps:$4 sm:$0xff]  }
 0x88a   :  { %10415 = vmatpush1.bf16.msra.mxu0 %v13059_v22  ;;  %v13137_v22 = vld [vmem:[#allocation18 + $0x550] ss:$24 sps:$4 sm:$0xff]  }
 0x88b   :  { %10416 = vmatprep.subr.bf16.mxu0 %v13064_v23  ;;  %v13142_v23 = vld [vmem:[#allocation18 + $0x584] ss:$24 sps:$4 sm:$0xff]  }
 0x88e   :  { %10417 = vmatpush1.bf16.msra.mxu0 %v13062_v9  ;;  %v13140_v9 = vld [vmem:[#allocation18 + $0x580] ss:$24 sps:$4 sm:$0xff]  }
 0x88f   :  { %10418 = vmatprep.subr.bf16.mxu0 %v13067_v24  ;;  %v13145_v24 = vld [vmem:[#allocation18 + $0x5b4] ss:$24 sps:$4 sm:$0xff]  }
 0x892   :  { %10419 = vmatpush1.bf16.msra.mxu0 %v13065_v25  ;;  %v13143_v25 = vld [vmem:[#allocation18 + $0x5b0] ss:$24 sps:$4 sm:$0xff]  }
 0x893   :  { %10420 = vmatprep.subr.bf16.mxu0 %v13070_v58  ;;  %v13148_v58 = vld [vmem:[#allocation18 + $0x5e4] ss:$24 sps:$4 sm:$0xff]  }
 0x896   :  { %10421 = vmatpush1.bf16.msra.mxu0 %v13068_v31  ;;  %v13146_v31 = vld [vmem:[#allocation18 + $0x5e0] ss:$24 sps:$4 sm:$0xff]  }
 0x897   :  { %10422 = vmatprep.subr.bf16.mxu0 %v13073_v32  ;;  %v13151_v32 = vld [vmem:[#allocation18 + $0x614] ss:$24 sps:$4 sm:$0xff]  }
 0x89a   :  { %10423 = vmatpush1.bf16.msra.mxu0 %v13071_v57  ;;  %v13149_v57 = vld [vmem:[#allocation18 + $0x610] ss:$24 sps:$4 sm:$0xff]  }
 0x89b   :  { %10424 = vmatprep.subr.bf16.mxu0 %v13076_v35  ;;  %v13154_v35 = vld [vmem:[#allocation18 + $0x644] ss:$24 sps:$4 sm:$0xff]  }
 0x89e   :  { %10425 = vmatpush1.bf16.msra.mxu0 %v13074_v16  ;;  %v13152_v16 = vld [vmem:[#allocation18 + $0x640] ss:$24 sps:$4 sm:$0xff]  }
 0x89f   :  { %10426 = vmatprep.subr.bf16.mxu0 %v13079_v30  ;;  %v13157_v30 = vld [vmem:[#allocation18 + $0x674] ss:$24 sps:$4 sm:$0xff]  }
 0x8a2   :  { %10427 = vmatpush1.bf16.msra.mxu0 %v13077_v39  ;;  %v13155_v39 = vld [vmem:[#allocation18 + $0x670] ss:$24 sps:$4 sm:$0xff]  }
 0x8a3   :  { %10428 = vmatprep.subr.bf16.mxu0 %v13082_v42  ;;  %v13160_v42 = vld [vmem:[#allocation18 + $0x6a4] ss:$24 sps:$4 sm:$0xff]  }
 0x8a6   :  { %10429 = vmatpush1.bf16.msra.mxu0 %v13080_v41  ;;  %v13158_v41 = vld [vmem:[#allocation18 + $0x6a0] ss:$24 sps:$4 sm:$0xff]  }
 0x8a7   :  { %10430 = vmatprep.subr.bf16.mxu0 %v13085_v43  ;;  %v13163_v43 = vld [vmem:[#allocation18 + $0x6d4] ss:$24 sps:$4 sm:$0xff]  }
 0x8aa   :  { %10431 = vmatpush1.bf16.msra.mxu0 %v13083_v44  ;;  %v13161_v44 = vld [vmem:[#allocation18 + $0x6d0] ss:$24 sps:$4 sm:$0xff]  }
 0x8ab   :  { %10432 = vmatprep.subr.bf16.mxu0 %v13088_v46  ;;  %v13166_v46 = vld [vmem:[#allocation18 + $0x704] ss:$24 sps:$4 sm:$0xff]  }
 0x8ae   :  { %10433 = vmatpush1.bf16.msra.mxu0 %v13086_v47  ;;  %v13169_v47 = vld [vmem:[#allocation18 + $0x734] ss:$24 sps:$4 sm:$0xff]  }
 0x8af   :  { %10434 = vmatprep.subr.bf16.mxu0 %v13091_v49  ;;  %v13172_v49 = vld [vmem:[#allocation18 + $0x764] ss:$24 sps:$4 sm:$0xff]  }
 0x8b2   :  { %10435 = vmatpush1.bf16.msra.mxu0 %v13089_v51  ;;  %v13170_v51 = vld [vmem:[#allocation18 + $0x760] ss:$24 sps:$4 sm:$0xff]  }
 0x8b3   :  { %10436 = vmatprep.subr.bf16.mxu0 %v13094_v52  ;;  %v13175_v52 = vld [vmem:[#allocation18 + $0x794] ss:$24 sps:$4 sm:$0xff]  }
 0x8b6   :  { %10437 = vmatpush1.bf16.msra.mxu0 %v13092_v1  ;;  %v13173_v1 = vld [vmem:[#allocation18 + $0x790] ss:$24 sps:$4 sm:$0xff]  }
 0x8b7   :  { %10438 = vmatprep.subr.bf16.mxu0 %v13097_v53  ;;  %v13178_v53 = vld [vmem:[#allocation18 + $0x7c4] ss:$24 sps:$4 sm:$0xff]  }
 0x8ba   :  { %10439 = vmatpush1.bf16.msra.mxu0 %v13095_v54  ;;  %v13176_v54 = vld [vmem:[#allocation18 + $0x7c0] ss:$24 sps:$4 sm:$0xff]  }
 0x8bb   :  { %10440 = vmatprep.subr.bf16.mxu0 %v13100_v56  ;;  %v13181_v56 = vld [vmem:[#allocation18 + $0x7f4] ss:$24 sps:$4 sm:$0xff]  }
 0x8be   :  { %10441 = vmatpush1.bf16.msra.mxu0 %v13098_v60  ;;  %v13179_v60 = vld [vmem:[#allocation18 + $0x7f0] ss:$24 sps:$4 sm:$0xff]  }
 0x8bf   :  { %10451 = vmatprep.subr.bf16.mxu0 %v13103_v61  ;;  %v13184_v61 = vld [vmem:[#allocation18 + $0x824] ss:$24 sps:$4 sm:$0xff]  }
 0x8c1   :  { %10443 = vmatmul.mubr.bf16.vlgmr.msra.gmra.mrb[36].mxu0 %v14182_v0  ;;  %v13116_v0 = vld [vmem:[#allocation18 + $0x400] ss:$24 sps:$4 sm:$0xff]  }
 0x8c2   :  { %10452 = vmatpush1.bf16.msra.mxu0 %v13101_v4  ;;  %10483 = vmatprep.mubr.bf16.mxu0 %v14186_v55  ;;  %v13119_v55 = vld [vmem:[#allocation18 + $0x430] ss:$24 sps:$4 sm:$0xff]   ;;  %v13182_v4 = vld [vmem:[#allocation18 + $0x820] ss:$24 sps:$4 sm:$0xff]  }
 0x8c3   :  { %10453 = vmatprep.subr.bf16.mxu0 %v13106_v62  ;;  %v13187_v62 = vld [vmem:[#allocation18 + $0x854] ss:$24 sps:$4 sm:$0xff]  }
 0x8c6   :  { %10454 = vmatpush1.bf16.msra.mxu0 %v13104_v7  ;;  %v13185_v7 = vld [vmem:[#allocation18 + $0x850] ss:$24 sps:$4 sm:$0xff]  }
 0x8c7   :  { %10455 = vmatprep.subr.bf16.mxu0 %v13109_v10  ;;  %v13190_v10 = vld [vmem:[#allocation18 + $0x884] ss:$24 sps:$4 sm:$0xff]  }
 0x8ca   :  { %10456 = vmatpush1.bf16.msra.mxu0 %v13107_v13  ;;  %v13188_v13 = vld [vmem:[#allocation18 + $0x880] ss:$24 sps:$4 sm:$0xff]  }
 0x8cb   :  { %10457 = vmatprep.subr.bf16.mxu0 %v13112_v28  ;;  %v13193_v28 = vld [vmem:[#allocation18 + $0x8b4] ss:$24 sps:$4 sm:$0xff]  }
 0x8ce   :  { %10458 = vmatpush1.bf16.msra.mxu0 %v13110_v14  ;;  %v13191_v14 = vld [vmem:[#allocation18 + $0x8b0] ss:$24 sps:$4 sm:$0xff]  }
 0x8cf   :  { %10459 = vmatprep.subr.bf16.mxu0 %v13115_v3  ;;  %v13196_v3 = vld [vmem:[#allocation18 + $0x8e4] ss:$24 sps:$4 sm:$0xff]  }
 0x8d2   :  { %10460 = vmatpush1.bf16.msra.mxu0 %v13113_v45  ;;  %v13194_v45 = vld [vmem:[#allocation18 + $0x8e0] ss:$24 sps:$4 sm:$0xff]  }
 0x8d3   :  { %10461 = vmatprep.subr.bf16.mxu0 %v13118_v5  ;;  %v13199_v5 = vld [vmem:[#allocation18 + $0x914] ss:$24 sps:$4 sm:$0xff]  }
 0x8d6   :  { %10462 = vmatpush1.bf16.msra.mxu0 %v13116_v0  ;;  %v13197_v0 = vld [vmem:[#allocation18 + $0x910] ss:$24 sps:$4 sm:$0xff]  }
 0x8d7   :  { %10463 = vmatprep.subr.bf16.mxu0 %v13121_v15  ;;  %v13202_v15 = vld [vmem:[#allocation18 + $0x944] ss:$24 sps:$4 sm:$0xff]  }
 0x8da   :  { %10464 = vmatpush1.bf16.msra.mxu0 %v13119_v55  ;;  %v13200_v55 = vld [vmem:[#allocation18 + $0x940] ss:$24 sps:$4 sm:$0xff]  }
 0x8db   :  { %10465 = vmatprep.subr.bf16.mxu0 %v13124_v33  ;;  %v13205_v33 = vld [vmem:[#allocation18 + $0x974] ss:$24 sps:$4 sm:$0xff]  }
 0x8de   :  { %10466 = vmatpush1.bf16.msra.mxu0 %v13122_v17  ;;  %v13203_v17 = vld [vmem:[#allocation18 + $0x970] ss:$24 sps:$4 sm:$0xff]  }
 0x8df   :  { %10467 = vmatprep.subr.bf16.mxu0 %v13127_v18  ;;  %v13208_v18 = vld [vmem:[#allocation18 + $0x9a4] ss:$24 sps:$4 sm:$0xff]  }
 0x8e2   :  { %10468 = vmatpush1.bf16.msra.mxu0 %v13125_v48  ;;  %v13206_v48 = vld [vmem:[#allocation18 + $0x9a0] ss:$24 sps:$4 sm:$0xff]  }
 0x8e3   :  { %10469 = vmatprep.subr.bf16.mxu0 %v13130_v29  ;;  %v13211_v29 = vld [vmem:[#allocation18 + $0x9d4] ss:$24 sps:$4 sm:$0xff]  }
 0x8e6   :  { %10470 = vmatpush1.bf16.msra.mxu0 %v13128_v34  ;;  %v13209_v34 = vld [vmem:[#allocation18 + $0x9d0] ss:$24 sps:$4 sm:$0xff]  }
 0x8e7   :  { %10471 = vmatprep.subr.bf16.mxu0 %v13133_v2  ;;  %v14235_v2 = vld [vmem:[#allocation19] sm:$0x3f] }
 0x8ea   :  { %10472 = vmatpush1.bf16.msra.mxu0 %v13131_v12  ;;  %v8143_v12 = vrot.slane %v14235_v2, %v13889_v40 }
 0x8eb   :  { %10473 = vmatprep.subr.bf16.mxu0 %v13136_v37  ;;  %v8139_v37 = vrot.slane %v14235_v2, %v13863_v27 }
 0x8ee   :  { %10474 = vmatpush1.bf16.msra.mxu0 %v13134_v36  ;;  %v8147_v36 = vrot.slane %v14235_v2, %v13892_v63 }
 0x8ef   :  { %10475 = vmatprep.subr.bf16.mxu0 %v13139_v21  ;;  %v13212_v21 = vld [vmem:[#allocation18 + $0xa00] ss:$24 sps:$4 sm:$0xff]  }
 0x8f2   :  { %10476 = vmatpush1.bf16.msra.mxu0 %v13137_v22  ;;  %v13217_v22 = vld [vmem:[#allocation18 + $0xa34] ss:$24 sps:$4 sm:$0xff]  }
 0x8f3   :  { %10477 = vmatprep.subr.bf16.mxu0 %v13142_v23 }
 0x8f6   :  { %10478 = vmatpush1.bf16.msra.mxu0 %v13140_v9 }
 0x8f7   :  { %10479 = vmatprep.subr.bf16.mxu0 %v13145_v24 }
 0x8fa   :  { %10480 = vmatpush1.bf16.msra.mxu0 %v13143_v25 }
 0x8fb   :  { %10481 = vmatprep.subr.bf16.mxu0 %v13148_v58 }
 0x8fe   :  { %10482 = vmatpush1.bf16.msra.mxu0 %v13146_v31 }
 0x8ff   :  { %10492 = vmatprep.subr.bf16.mxu0 %v13151_v32 }
 0x901   :  { %10484 = vmatmul.mubr.bf16.vlgmr.msra.gmra.mrb[36].mxu0 %v14195_v19  ;;  %v13164_v19 = vld [vmem:[#allocation18 + $0x700] ss:$24 sps:$4 sm:$0xff]  }
 0x902   :  { %10493 = vmatpush1.bf16.msra.mxu0 %v13149_v57  ;;  %10524 = vmatprep.mubr.bf16.mxu0 %v14208_v59  ;;  %v13167_v59 = vld [vmem:[#allocation18 + $0x730] ss:$24 sps:$4 sm:$0xff]  }
 0x903   :  { %10494 = vmatprep.subr.bf16.mxu0 %v13154_v35  ;;  %v13215_v35 = vld [vmem:[#allocation18 + $0xa30] ss:$24 sps:$4 sm:$0xff]  }
 0x906   :  { %10495 = vmatpush1.bf16.msra.mxu0 %v13152_v16 }
 0x907   :  { %10496 = vmatprep.subr.bf16.mxu0 %v13157_v30  ;;  %v13220_v30 = vld [vmem:[#allocation18 + $0xa64] ss:$24 sps:$4 sm:$0xff]  }
 0x90a   :  { %10497 = vmatpush1.bf16.msra.mxu0 %v13155_v39 }
 0x90b   :  { %10498 = vmatprep.subr.bf16.mxu0 %v13160_v42 }
 0x90e   :  { %10499 = vmatpush1.bf16.msra.mxu0 %v13158_v41 }
 0x90f   :  { %10500 = vmatprep.subr.bf16.mxu0 %v13163_v43  ;;  %v13218_v43 = vld [vmem:[#allocation18 + $0xa60] ss:$24 sps:$4 sm:$0xff]  }
 0x912   :  { %10501 = vmatpush1.bf16.msra.mxu0 %v13161_v44  ;;  %v13223_v44 = vld [vmem:[#allocation18 + $0xa94] ss:$24 sps:$4 sm:$0xff]  }
 0x913   :  { %10502 = vmatprep.subr.bf16.mxu0 %v13166_v46 }
 0x916   :  { %10503 = vmatpush1.bf16.msra.mxu0 %v13164_v19  ;;  %v13221_v19 = vld [vmem:[#allocation18 + $0xa90] ss:$24 sps:$4 sm:$0xff]  }
 0x917   :  { %10504 = vmatprep.subr.bf16.mxu0 %v13169_v47  ;;  %v13226_v47 = vld [vmem:[#allocation18 + $0xac4] ss:$24 sps:$4 sm:$0xff]  }
 0x91a   :  { %10505 = vmatpush1.bf16.msra.mxu0 %v13167_v59  ;;  %v13224_v59 = vld [vmem:[#allocation18 + $0xac0] ss:$24 sps:$4 sm:$0xff]  }
 0x91b   :  { %10506 = vmatprep.subr.bf16.mxu0 %v13172_v49  ;;  %v13229_v49 = vld [vmem:[#allocation18 + $0xaf4] ss:$24 sps:$4 sm:$0xff]  }
 0x91e   :  { %10507 = vmatpush1.bf16.msra.mxu0 %v13170_v51  ;;  %v13227_v51 = vld [vmem:[#allocation18 + $0xaf0] ss:$24 sps:$4 sm:$0xff]  }
 0x91f   :  { %10508 = vmatprep.subr.bf16.mxu0 %v13175_v52  ;;  %v13230_v52 = vld [vmem:[#allocation18 + $0xb20] ss:$24 sps:$4 sm:$0xff]  }
 0x922   :  { %10509 = vmatpush1.bf16.msra.mxu0 %v13173_v1  ;;  %v13235_v1 = vld [vmem:[#allocation18 + $0xb54] ss:$24 sps:$4 sm:$0xff]  }
 0x923   :  { %10510 = vmatprep.subr.bf16.mxu0 %v13178_v53  ;;  %v13233_v53 = vld [vmem:[#allocation18 + $0xb50] ss:$24 sps:$4 sm:$0xff]  }
 0x926   :  { %10511 = vmatpush1.bf16.msra.mxu0 %v13176_v54  ;;  %v13238_v54 = vld [vmem:[#allocation18 + $0xb84] ss:$24 sps:$4 sm:$0xff]  }
 0x927   :  { %10512 = vmatprep.subr.bf16.mxu0 %v13181_v56  ;;  %v13236_v56 = vld [vmem:[#allocation18 + $0xb80] ss:$24 sps:$4 sm:$0xff]  }
 0x92a   :  { %10513 = vmatpush1.bf16.msra.mxu0 %v13179_v60  ;;  %v13241_v60 = vld [vmem:[#allocation18 + $0xbb4] ss:$24 sps:$4 sm:$0xff]  }
 0x92b   :  { %10514 = vmatprep.subr.bf16.mxu0 %v13184_v61  ;;  %v13239_v61 = vld [vmem:[#allocation18 + $0xbb0] ss:$24 sps:$4 sm:$0xff]  }
 0x92e   :  { %10515 = vmatpush1.bf16.msra.mxu0 %v13182_v4  ;;  %v13244_v4 = vld [vmem:[#allocation18 + $0xbe4] ss:$24 sps:$4 sm:$0xff]  }
 0x92f   :  { %10516 = vmatprep.subr.bf16.mxu0 %v13187_v62  ;;  %v13242_v62 = vld [vmem:[#allocation18 + $0xbe0] ss:$24 sps:$4 sm:$0xff]  }
 0x932   :  { %10517 = vmatpush1.bf16.msra.mxu0 %v13185_v7  ;;  %v8151_v7 = vrot.slane %v14235_v2, %v13915_v11 }
 0x933   :  { %10518 = vmatprep.subr.bf16.mxu0 %v13190_v10  ;;  %v8155_v10 = vrot.slane %v14235_v2, %v13886_v50 }
 0x936   :  { %10519 = vmatpush1.bf16.msra.mxu0 %v13188_v13 }
 0x937   :  { %10520 = vmatprep.subr.bf16.mxu0 %v13193_v28 }
 0x93a   :  { %10521 = vmatpush1.bf16.msra.mxu0 %v13191_v14 }
 0x93b   :  { %10522 = vmatprep.subr.bf16.mxu0 %v13196_v3 }
 0x93e   :  { %10523 = vmatpush1.bf16.msra.mxu0 %v13194_v45 }
 0x93f   :  { %10533 = vmatprep.subr.bf16.mxu0 %v13199_v5 }
 0x941   :  { %10525 = vmatmul.mubr.bf16.vlgmr.msra.gmra.mrb[36].mxu0 %v14210_v20  ;;  %v13214_v20 = vld [vmem:[#allocation18 + $0xa04] ss:$24 sps:$4 sm:$0xff]  }
 0x942   :  { %10534 = vmatpush1.bf16.msra.mxu0 %v13197_v0  ;;  %10565 = vmatprep.mubr.bf16.mxu0 %v14214_v6  ;;  %v8135_v6 = vrot.slane %v14235_v2, %v13860_v26 }
 0x943   :  { %10535 = vmatprep.subr.bf16.mxu0 %v13202_v15 }
 0x946   :  { %10536 = vmatpush1.bf16.msra.mxu0 %v13200_v55 }
 0x947   :  { %10537 = vmatprep.subr.bf16.mxu0 %v13205_v33 }
 0x94a   :  { %10538 = vmatpush1.bf16.msra.mxu0 %v13203_v17 }
 0x94b   :  { %10539 = vmatprep.subr.bf16.mxu0 %v13208_v18 }
 0x94e   :  { %10540 = vmatpush1.bf16.msra.mxu0 %v13206_v48 }
 0x94f   :  { %10541 = vmatprep.subr.bf16.mxu0 %v13211_v29 }
 0x952   :  { %10542 = vmatpush1.bf16.msra.mxu0 %v13209_v34 }
 0x953   :  { %10543 = vmatprep.subr.bf16.mxu0 %v13214_v20 }
 0x954   :  { %v10239_v23 = vpop.f32.mrb[32].mxu0  ;;  %v10403_v9 = vpop.f32.mrb[36].mxu1 }
 0x955   :  { %v12086_v24 = vadd.f32 %v10239_v23, %v8135_v6  ;;  %v12088_v25 = vadd.f32 %v10403_v9, %v8143_v12  ;;  %v10241_v58 = vpop.f32.mrb[33].mxu0  ;;  %v10405_v31 = vpop.f32.mrb[37].mxu1 }
 0x956   :  { %v12087_v26 = vadd.f32 %v10241_v58, %v8139_v37  ;;  %v12089_v32 = vadd.f32 %v10405_v31, %v8147_v36  ;;  %v10243_v57 = vpop.f32.mrb[34].mxu0  ;;  %v10407_v40 = vpop.f32.mrb[38].mxu1  ;;  %10544 = vmatpush1.bf16.msra.mxu0 %v13212_v21 }
 0x957   :  { %v10244_v16 = vpop.f32.mrb[35].mxu0  ;;  %v10408_v27 = vpop.f32.mrb[39].mxu1  ;;  %10545 = vmatprep.subr.bf16.mxu0 %v13217_v22 }
 0x958   :  { %v10580_v63 = vcombine.low %v12086_v24, %v12087_v26  ;;  %v10581_v39 = vcombine.low %v12088_v25, %v12089_v32 }
 0x95a   :  { %v10588_v42 = vrot.slane %v10580_v63, %v13791_v38  ;;  %v10595_v41 = vrot.slane %v10581_v39, %v13791_v38  ;;  %10546 = vmatpush1.bf16.msra.mxu0 %v13215_v35  ;;  %v13232_v38 = vld [vmem:[#allocation18 + $0xb24] ss:$24 sps:$4 sm:$0xff]  }
 0x95b   :  { %10547 = vmatprep.subr.bf16.mxu0 %v13220_v30 }
 0x95c   :  { %v10596_v46 = vcombine.low %v10588_v42, %v10595_v41 }
 0x95e   :  { %10607 = vst [vmem:[%s14274_s16] sm:$0xff] %v10596_v46  ;;  %10548 = vmatpush1.bf16.msra.mxu0 %v13218_v43 }
 0x95f   :  { %10549 = vmatprep.subr.bf16.mxu0 %v13223_v44 }
 0x962   :  { %10550 = vmatpush1.bf16.msra.mxu0 %v13221_v19 }
 0x963   :  { %10551 = vmatprep.subr.bf16.mxu0 %v13226_v47 }
 0x966   :  { %10552 = vmatpush1.bf16.msra.mxu0 %v13224_v59 }
 0x967   :  { %10553 = vmatprep.subr.bf16.mxu0 %v13229_v49 }
 0x96a   :  { %10554 = vmatpush1.bf16.msra.mxu0 %v13227_v51 }
 0x96b   :  { %10555 = vmatprep.subr.bf16.mxu0 %v13232_v38 }
 0x96e   :  { %10556 = vmatpush1.bf16.msra.mxu0 %v13230_v52 }
 0x96f   :  { %10557 = vmatprep.subr.bf16.mxu0 %v13235_v1 }
 0x972   :  { %10558 = vmatpush1.bf16.msra.mxu0 %v13233_v53 }
 0x973   :  { %10559 = vmatprep.subr.bf16.mxu0 %v13238_v54 }
 0x976   :  { %10560 = vmatpush1.bf16.msra.mxu0 %v13236_v56 }
 0x977   :  { %10561 = vmatprep.subr.bf16.mxu0 %v13241_v60 }
 0x97a   :  { %10562 = vmatpush1.bf16.msra.mxu0 %v13239_v61 }
 0x97b   :  { %10563 = vmatprep.subr.bf16.mxu0 %v13244_v4 }
 0x97e   :  { %10564 = vmatpush1.bf16.msra.mxu0 %v13242_v62 }
 0x981   :  { %10566 = vmatmul.mubr.bf16.vlgmr.msra.gmra.mrb[36].mxu0 %v14224_v8 }
 0xa54   :  { %v10567_v13 = vpop.f32.mrb[36].mxu0 }
 0xa55   :  { %v12090_v28 = vadd.f32 %v10567_v13, %v8151_v7  ;;  %v10569_v14 = vpop.f32.mrb[37].mxu0 }
 0xa56   :  { %v12091_v3 = vadd.f32 %v10569_v14, %v8155_v10  ;;  %v10571_v45 = vpop.f32.mrb[38].mxu0 }
 0xa57   :  { %v10572_v5 = vpop.f32.mrb[39].mxu0 }
 0xa58   :  { %v10597_v0 = vcombine.low %v12090_v28, %v12091_v3 }
 0xa5a   :  { %11975 = vst.sshfl [vmem:[%s14274_s16 + $0x8] sm:$0x33 pattern:$0x76325410] %v10597_v0 }
 0xa5b   :  { %10613 = vsyncpa [#allocation3], 1 }
 0xa5c   :  { %10614 = vsyncpa [#allocation5], 1 }
 0xa5d   :  { %10615 = vsyncpa [#allocation8], 1 }
 0xa5e   :  { %10616 = vsyncpa [#allocation11], 1 }
 0xa5f   :  { %10617 = vsyncpa [#allocation14], 1 }
 0xa60   :  { %10618 = vsyncpa [#allocation17], 1 }
 0xa61   :  { %10619 = vsyncpa [#allocation20], 1 }

</bundles_post_ra>
